<compile_context>
chip_gen: v7x
topology: tpu7x:2x2x1
jax: 0.10.0
libtpu: 0.0.40
codegen_flags: <defaults>
</compile_context>

<pallas_src>
import numpy as np
import jax
import jax.numpy as jnp
from jax import lax
from jax.experimental import pallas as pl
from jax.experimental.pallas import tpu as pltpu

# Static geometry implied by the PyTorch module (linear in_features = 64*4*4):
#   28 -conv5-> 24 -pool2-> 12 -conv5-> 8 -pool2-> 4
IN_HW = 28
K = 5
C1 = 32                # conv1 output channels
C2 = 64                # conv2 output channels
H1 = IN_HW - K + 1     # 24  conv1 spatial
P1 = H1 // 2           # 12  pool1 spatial
H2 = P1 - K + 1        # 8   conv2 spatial
P2 = H2 // 2           # 4   pool2 spatial
BAND_N = H1 * C1       # 768  conv1 band-matmul width, lane index = w*32 + c
COL_K = K * K * C1     # 800  conv2 im2col contraction width
LIN_K = C2 * P2 * P2   # 1024 linear contraction width


# ------------------------------ fused kernel ------------------------------- #

def _cnn_fused_kernel(x_ref, w1b_ref, w2c_ref, wl_ref, bl_ref, out_ref,
                      c1_ref, hp_ref, p1_ref, col_ref, lin_ref):
    BB = x_ref.shape[0]
    f32 = jnp.float32

    # ---- Stage 1: conv1 on the MXU as 5 accumulated band matmuls -----------
    # c1[b, h, w*32 + c] = sum_kh sum_w' x[b, h+kh, w'] * w1band[kh, w', w*32+c]
    #                    = conv1 output (bias folded into the linear bias).
    for kh in range(K):
        lhs = x_ref[:, kh:kh + H1, :].reshape(BB * H1, IN_HW)       # (B*24, 28)
        prod = jnp.dot(lhs, w1b_ref[kh], preferred_element_type=f32)
        if kh == 0:
            c1_ref[...] = prod.reshape(BB, H1, BAND_N)
        else:
            c1_ref[...] = c1_ref[...] + prod.reshape(BB, H1, BAND_N)

    # ---- Pool1, H direction: 12 wide (B, 768) stores (was 144 tiny ones) ----
    for i2 in range(P1):
        hp_ref[:, i2, :] = jnp.maximum(c1_ref[:, 2 * i2, :],
                                       c1_ref[:, 2 * i2 + 1, :])

    # ---- Pool1, W direction + relayout to channels-on-lanes -----------------
    # p1_ref dims are (B, pooled_W, pooled_H, C1) so each j2 writes one full
    # (12, 32) slab per sample: one store per pooled column.
    for j2 in range(P1):
        e = hp_ref[:, :, (2 * j2) * C1:(2 * j2 + 1) * C1]           # (B,12,32)
        o = hp_ref[:, :, (2 * j2 + 1) * C1:(2 * j2 + 2) * C1]
        p1_ref[:, j2, :, :] = jnp.maximum(e, o)

    # ---- Stage 2: one-time im2col + ONE (B*64, 800) @ (800, 64) matmul ------
    # col[b, w2, h2, (kh*5+kw)*32 + c] = pool1[b, W=w2+kw, H=h2+kh, c]
    for kh in range(K):
        for kw in range(K):
            t = kh * K + kw
            col_ref[:, :, :, t * C1:(t + 1) * C1] = \
                p1_ref[:, kw:kw + H2, kh:kh + H2, :]
    out2 = jnp.dot(col_ref[...].reshape(BB * H2 * H2, COL_K), w2c_ref[...],
                   preferred_element_type=f32)                      # (B*64, 64)
    a2 = out2.reshape(BB, H2, H2, C2)             # dims (B, w2, h2, C2)

    # ---- Stage 3: maxpool2 -> (B, 1024) scratch -> ONE linear matmul --------
    for pw in range(P2):
        rcol = jnp.maximum(a2[:, 2 * pw, :, :], a2[:, 2 * pw + 1, :, :])
        for ph in range(P2):
            v = jnp.maximum(rcol[:, 2 * ph, :], rcol[:, 2 * ph + 1, :])
            q = pw * P2 + ph
            lin_ref[:, q * C2:(q + 1) * C2] = v                     # (B, 64)
    logits = jnp.dot(lin_ref[...], wl_ref[...],
                     preferred_element_type=f32) + bl_ref[...]
    out_ref[...] = jnp.maximum(logits, 0.0)


# ------------------------------ host wrappers ------------------------------ #

def init_params(key, in_channels=1, classes=10):
    ks = jax.random.split(key, 6)
    return dict(
        # PyTorch Conv2d weight layout: (C_out, C_in, KH, KW)
        w1=0.10 * jax.random.normal(ks[0], (C1, in_channels, K, K), jnp.float32),
        b1=0.10 * jax.random.normal(ks[1], (C1,), jnp.float32),
        w2=0.05 * jax.random.normal(ks[2], (C2, C1, K, K), jnp.float32),
        b2=0.05 * jax.random.normal(ks[3], (C2,), jnp.float32),
        # PyTorch Linear weight layout: (classes, 64*4*4), NCHW flatten order
        wl=0.05 * jax.random.normal(ks[4], (classes, C2 * P2 * P2), jnp.float32),
        bl=0.05 * jax.random.normal(ks[5], (classes,), jnp.float32),
    )


def prepare_params(p):
    """One-time host-side repack of PyTorch-layout weights (outside jit).

    Conv biases are folded exactly into the linear bias: a per-channel bias is
    spatially constant, so it commutes with both 2x2 max-pools and then passes
    affinely through conv2 / the linear layer (VALID conv => every output
    position sees the full window)."""
    cls = int(p["wl"].shape[0])
    w1 = np.asarray(p["w1"], np.float32)       # (C1, 1, K, K)
    b1 = np.asarray(p["b1"], np.float32)       # (C1,)
    w2 = np.asarray(p["w2"], np.float32)       # (C2, C1, K, K)
    b2 = np.asarray(p["b2"], np.float32)       # (C2,)
    wl = np.asarray(p["wl"], np.float32)       # (cls, 1024) NCHW flatten
    bl = np.asarray(p["bl"], np.float32)       # (cls,)

    # conv1 band weights: w1b[kh, w', w*32 + c] = w1[c, 0, kh, w' - w]
    w1b = np.zeros((K, IN_HW, H1, C1), np.float32)
    for kh in range(K):
        for kw in range(K):
            for w in range(H1):
                w1b[kh, w + kw, w, :] = w1[:, 0, kh, kw]
    w1b = w1b.reshape(K, IN_HW, BAND_N)

    # conv2 im2col weights: w2c[(kh*5 + kw)*32 + c, n] = w2[n, c, kh, kw]
    w2c = np.transpose(w2, (2, 3, 1, 0)).reshape(COL_K, C2)

    # linear weights: kernel packs pooled conv2 as (pw, ph, n) along the 1024
    # axis; PyTorch flattens NCHW as (n, ph, pw).
    wl4 = wl.reshape(cls, C2, P2, P2)                         # (cls, n, ph, pw)
    wlk = np.transpose(wl4, (3, 2, 1, 0)).reshape(LIN_K, cls)

    # Fold conv1/conv2 biases into the linear bias:
    #   conv2 of the constant b1 image adds beta[n] = sum_{c,kh,kw} b1[c]*w2[n,c,kh,kw]
    beta = (w2 * b1[None, :, None, None]).sum(axis=(1, 2, 3)) + b2    # (C2,)
    bl_eff = bl + np.tile(beta, P2 * P2) @ wlk                        # (cls,)

    return dict(
        w1b=jnp.asarray(w1b),
        w2c=jnp.asarray(w2c),
        wlk=jnp.asarray(wlk),
        bl=jnp.asarray(bl_eff.reshape(1, cls)),
    )


def cnn_forward(x, kp):
    """x: (B, 1, 28, 28) NCHW float32 -> (B, classes) float32."""
    B = x.shape[0]
    assert x.shape[1] == 1 and x.shape[2] == IN_HW and x.shape[3] == IN_HW
    n_cls = kp["bl"].shape[1]
    x2 = x.reshape(B, IN_HW, IN_HW)   # C_in == 1: drop channel dim (raw input DMA)

    # Batch grid: shards batch blocks across TensorCores (v7x) and bounds
    # per-block VMEM; weights use constant index_maps so they stay resident.
    bb = B if B <= 8 else 8
    assert B % bb == 0, "pad batch to a multiple of 8 for B > 8"
    grid = (B // bb,)

    grid_spec = pltpu.PrefetchScalarGridSpec(
        num_scalar_prefetch=0,
        grid=grid,
        in_specs=[
            pl.BlockSpec((bb, IN_HW, IN_HW), lambda i: (i, 0, 0)),   # input
            pl.BlockSpec((K, IN_HW, BAND_N), lambda i: (0, 0, 0)),   # conv1 band
            pl.BlockSpec((COL_K, C2), lambda i: (0, 0)),             # conv2 im2col
            pl.BlockSpec((LIN_K, n_cls), lambda i: (0, 0)),          # linear
            pl.BlockSpec((1, n_cls), lambda i: (0, 0)),              # folded bias
        ],
        out_specs=pl.BlockSpec((bb, n_cls), lambda i: (i, 0)),
        scratch_shapes=[
            pltpu.VMEM((bb, H1, BAND_N), jnp.float32),     # conv1 band output
            pltpu.VMEM((bb, P1, BAND_N), jnp.float32),     # H-pooled conv1
            pltpu.VMEM((bb, P1, P1, C1), jnp.float32),     # pool1 (B, W, H, C)
            pltpu.VMEM((bb, H2, H2, COL_K), jnp.float32),  # conv2 im2col
            pltpu.VMEM((bb, LIN_K), jnp.float32),          # pooled conv2, flat
        ],
    )
    return pl.pallas_call(
        _cnn_fused_kernel,
        out_shape=jax.ShapeDtypeStruct((B, n_cls), jnp.float32),
        grid_spec=grid_spec,
        compiler_params=pltpu.CompilerParams(
            dimension_semantics=("parallel",),
            vmem_limit_bytes=32 * 1024 * 1024),
    )(x2, kp["w1b"], kp["w2c"], kp["wlk"], kp["bl"])


def reference_forward(x, p):
    """Pure-JAX/XLA reference reproducing the PyTorch forward."""
    dn = ("NCHW", "OIHW", "NCHW")
    hi = lax.Precision.HIGHEST
    y = lax.conv_general_dilated(x, p["w1"], (1, 1), "VALID",
                                 dimension_numbers=dn, precision=hi)
    y = y + p["b1"][None, :, None, None]
    y = lax.reduce_window(y, -jnp.inf, lax.max, (1, 1, 2, 2), (1, 1, 2, 2), "VALID")
    y = lax.conv_general_dilated(y, p["w2"], (1, 1), "VALID",
                                 dimension_numbers=dn, precision=hi)
    y = y + p["b2"][None, :, None, None]
    y = lax.reduce_window(y, -jnp.inf, lax.max, (1, 1, 2, 2), (1, 1, 2, 2), "VALID")
    y = y.reshape(x.shape[0], -1)
    y = jnp.dot(y, p["wl"].T, precision=hi) + p["bl"]
    return jnp.maximum(y, 0.0)


if __name__ == "__main__":
    key = jax.random.PRNGKey(0)
    kx, kparam = jax.random.split(key)
    # 28x28 is implied by linear(64*4*4): 28 -conv5-> 24 -pool-> 12 -conv5-> 8 -pool-> 4
    x = jax.random.normal(kx, (2, 1, IN_HW, IN_HW), dtype=jnp.float32)
    params = init_params(kparam)
    kparams = prepare_params(params)          # one-time weight repack, outside jit

    out = jax.block_until_ready(jax.jit(cnn_forward)(x, kparams))
    assert out.shape == (2, 10) and out.dtype == jnp.float32

    ref = jax.block_until_ready(reference_forward(x, params))
    max_err = float(jnp.max(jnp.abs(out - ref)))
    if max_err > 2e-2:
        raise AssertionError(f"Pallas CNN mismatch vs reference: max abs err = {max_err}")

    print("KERNEL_OK")
</pallas_src>

<mosaic_0001>
module attributes {stable_mosaic.version = 11 : i64} {
  func.func @_cnn_fused_kernel(%arg0: i32, %arg1: memref<2x28x28xf32, #tpu.memory_space<vmem>>, %arg2: memref<5x28x768xf32, #tpu.memory_space<vmem>>, %arg3: memref<800x64xf32, #tpu.memory_space<vmem>>, %arg4: memref<1024x10xf32, #tpu.memory_space<vmem>>, %arg5: memref<1x10xf32, #tpu.memory_space<vmem>>, %arg6: memref<2x10xf32, #tpu.memory_space<vmem>>, %arg7: memref<2x24x768xf32, #tpu.memory_space<vmem>>, %arg8: memref<2x12x768xf32, #tpu.memory_space<vmem>>, %arg9: memref<2x12x12x32xf32, #tpu.memory_space<vmem>>, %arg10: memref<2x8x8x800xf32, #tpu.memory_space<vmem>>, %arg11: memref<2x1024xf32, #tpu.memory_space<vmem>>) attributes {dimension_semantics = [#tpu.dimension_semantics<parallel>], iteration_bounds = array<i64: 1>, scalar_prefetch = 0 : i64, scratch_operands = 5 : i64, tpu.core_type = #tpu.core_type<tc>, window_params = [{transform_indices = @transform_0, window_bounds = array<i64: 2, 28, 28>}, {pipeline_mode = #tpu.pipeline_mode<synchronous>, transform_indices = @transform_1, window_bounds = array<i64: 5, 28, 768>}, {pipeline_mode = #tpu.pipeline_mode<synchronous>, transform_indices = @transform_2, window_bounds = array<i64: 800, 64>}, {pipeline_mode = #tpu.pipeline_mode<synchronous>, transform_indices = @transform_3, window_bounds = array<i64: 1024, 10>}, {pipeline_mode = #tpu.pipeline_mode<synchronous>, transform_indices = @transform_4, window_bounds = array<i64: 1, 10>}, {transform_indices = @transform_5, window_bounds = array<i64: 2, 10>}]} {
    %c0 = arith.constant 0 : index
    %c0_0 = arith.constant 0 : index
    %c0_1 = arith.constant 0 : index
    %0 = vector.load %arg1[%c0, %c0_0, %c0_1] : memref<2x28x28xf32, #tpu.memory_space<vmem>>, vector<2x24x28xf32>
    %1 = vector.shape_cast %0 : vector<2x24x28xf32> to vector<48x28xf32>
    %c0_2 = arith.constant 0 : index
    %c0_3 = arith.constant 0 : index
    %c0_4 = arith.constant 0 : index
    %2 = vector.load %arg2[%c0_2, %c0_3, %c0_4] : memref<5x28x768xf32, #tpu.memory_space<vmem>>, vector<1x28x768xf32>
    %3 = vector.shape_cast %2 : vector<1x28x768xf32> to vector<28x768xf32>
    %cst = arith.constant dense<0.000000e+00> : vector<48x768xf32>
    %4 = tpu.matmul %1, %3, %cst {dimension_numbers = #tpu.dot_dimension_numbers<[1], [0], [0], [1], [0, 0, 1, 1], [], []>} : vector<48x28xf32>, vector<28x768xf32>, vector<48x768xf32> -> vector<48x768xf32>
    %5 = vector.shape_cast %4 : vector<48x768xf32> to vector<2x24x768xf32>
    %c0_5 = arith.constant 0 : index
    %c0_6 = arith.constant 0 : index
    %c0_7 = arith.constant 0 : index
    %6 = vector.load %arg7[%c0_5, %c0_6, %c0_7] : memref<2x24x768xf32, #tpu.memory_space<vmem>>, vector<2x24x768xf32>
    tpu.vector_store %arg7[%c0_5, %c0_6, %c0_7], %5 {strides = array<i32>} : memref<2x24x768xf32, #tpu.memory_space<vmem>>, vector<2x24x768xf32>,
    %c0_8 = arith.constant 0 : index
    %c1 = arith.constant 1 : index
    %c0_9 = arith.constant 0 : index
    %7 = vector.load %arg1[%c0_8, %c1, %c0_9] : memref<2x28x28xf32, #tpu.memory_space<vmem>>, vector<2x24x28xf32>
    %8 = vector.shape_cast %7 : vector<2x24x28xf32> to vector<48x28xf32>
    %c1_10 = arith.constant 1 : index
    %c0_11 = arith.constant 0 : index
    %c0_12 = arith.constant 0 : index
    %9 = vector.load %arg2[%c1_10, %c0_11, %c0_12] : memref<5x28x768xf32, #tpu.memory_space<vmem>>, vector<1x28x768xf32>
    %10 = vector.shape_cast %9 : vector<1x28x768xf32> to vector<28x768xf32>
    %cst_13 = arith.constant dense<0.000000e+00> : vector<48x768xf32>
    %11 = tpu.matmul %8, %10, %cst_13 {dimension_numbers = #tpu.dot_dimension_numbers<[1], [0], [0], [1], [0, 0, 1, 1], [], []>} : vector<48x28xf32>, vector<28x768xf32>, vector<48x768xf32> -> vector<48x768xf32>
    %c0_14 = arith.constant 0 : index
    %c0_15 = arith.constant 0 : index
    %c0_16 = arith.constant 0 : index
    %12 = vector.load %arg7[%c0_14, %c0_15, %c0_16] : memref<2x24x768xf32, #tpu.memory_space<vmem>>, vector<2x24x768xf32>
    %13 = vector.shape_cast %11 : vector<48x768xf32> to vector<2x24x768xf32>
    %14 = arith.addf %12, %13 : vector<2x24x768xf32>
    %c0_17 = arith.constant 0 : index
    %c0_18 = arith.constant 0 : index
    %c0_19 = arith.constant 0 : index
    %15 = vector.load %arg7[%c0_17, %c0_18, %c0_19] : memref<2x24x768xf32, #tpu.memory_space<vmem>>, vector<2x24x768xf32>
    tpu.vector_store %arg7[%c0_17, %c0_18, %c0_19], %14 {strides = array<i32>} : memref<2x24x768xf32, #tpu.memory_space<vmem>>, vector<2x24x768xf32>,
    %c0_20 = arith.constant 0 : index
    %c2 = arith.constant 2 : index
    %c0_21 = arith.constant 0 : index
    %16 = vector.load %arg1[%c0_20, %c2, %c0_21] : memref<2x28x28xf32, #tpu.memory_space<vmem>>, vector<2x24x28xf32>
    %17 = vector.shape_cast %16 : vector<2x24x28xf32> to vector<48x28xf32>
    %c2_22 = arith.constant 2 : index
    %c0_23 = arith.constant 0 : index
    %c0_24 = arith.constant 0 : index
    %18 = vector.load %arg2[%c2_22, %c0_23, %c0_24] : memref<5x28x768xf32, #tpu.memory_space<vmem>>, vector<1x28x768xf32>
    %19 = vector.shape_cast %18 : vector<1x28x768xf32> to vector<28x768xf32>
    %cst_25 = arith.constant dense<0.000000e+00> : vector<48x768xf32>
    %20 = tpu.matmul %17, %19, %cst_25 {dimension_numbers = #tpu.dot_dimension_numbers<[1], [0], [0], [1], [0, 0, 1, 1], [], []>} : vector<48x28xf32>, vector<28x768xf32>, vector<48x768xf32> -> vector<48x768xf32>
    %c0_26 = arith.constant 0 : index
    %c0_27 = arith.constant 0 : index
    %c0_28 = arith.constant 0 : index
    %21 = vector.load %arg7[%c0_26, %c0_27, %c0_28] : memref<2x24x768xf32, #tpu.memory_space<vmem>>, vector<2x24x768xf32>
    %22 = vector.shape_cast %20 : vector<48x768xf32> to vector<2x24x768xf32>
    %23 = arith.addf %21, %22 : vector<2x24x768xf32>
    %c0_29 = arith.constant 0 : index
    %c0_30 = arith.constant 0 : index
    %c0_31 = arith.constant 0 : index
    %24 = vector.load %arg7[%c0_29, %c0_30, %c0_31] : memref<2x24x768xf32, #tpu.memory_space<vmem>>, vector<2x24x768xf32>
    tpu.vector_store %arg7[%c0_29, %c0_30, %c0_31], %23 {strides = array<i32>} : memref<2x24x768xf32, #tpu.memory_space<vmem>>, vector<2x24x768xf32>,
    %c0_32 = arith.constant 0 : index
    %c3 = arith.constant 3 : index
    %c0_33 = arith.constant 0 : index
    %25 = vector.load %arg1[%c0_32, %c3, %c0_33] : memref<2x28x28xf32, #tpu.memory_space<vmem>>, vector<2x24x28xf32>
    %26 = vector.shape_cast %25 : vector<2x24x28xf32> to vector<48x28xf32>
    %c3_34 = arith.constant 3 : index
    %c0_35 = arith.constant 0 : index
    %c0_36 = arith.constant 0 : index
    %27 = vector.load %arg2[%c3_34, %c0_35, %c0_36] : memref<5x28x768xf32, #tpu.memory_space<vmem>>, vector<1x28x768xf32>
    %28 = vector.shape_cast %27 : vector<1x28x768xf32> to vector<28x768xf32>
    %cst_37 = arith.constant dense<0.000000e+00> : vector<48x768xf32>
    %29 = tpu.matmul %26, %28, %cst_37 {dimension_numbers = #tpu.dot_dimension_numbers<[1], [0], [0], [1], [0, 0, 1, 1], [], []>} : vector<48x28xf32>, vector<28x768xf32>, vector<48x768xf32> -> vector<48x768xf32>
    %c0_38 = arith.constant 0 : index
    %c0_39 = arith.constant 0 : index
    %c0_40 = arith.constant 0 : index
    %30 = vector.load %arg7[%c0_38, %c0_39, %c0_40] : memref<2x24x768xf32, #tpu.memory_space<vmem>>, vector<2x24x768xf32>
    %31 = vector.shape_cast %29 : vector<48x768xf32> to vector<2x24x768xf32>
    %32 = arith.addf %30, %31 : vector<2x24x768xf32>
    %c0_41 = arith.constant 0 : index
    %c0_42 = arith.constant 0 : index
    %c0_43 = arith.constant 0 : index
    %33 = vector.load %arg7[%c0_41, %c0_42, %c0_43] : memref<2x24x768xf32, #tpu.memory_space<vmem>>, vector<2x24x768xf32>
    tpu.vector_store %arg7[%c0_41, %c0_42, %c0_43], %32 {strides = array<i32>} : memref<2x24x768xf32, #tpu.memory_space<vmem>>, vector<2x24x768xf32>,
    %c0_44 = arith.constant 0 : index
    %c4 = arith.constant 4 : index
    %c0_45 = arith.constant 0 : index
    %34 = vector.load %arg1[%c0_44, %c4, %c0_45] : memref<2x28x28xf32, #tpu.memory_space<vmem>>, vector<2x24x28xf32>
    %35 = vector.shape_cast %34 : vector<2x24x28xf32> to vector<48x28xf32>
    %c4_46 = arith.constant 4 : index
    %c0_47 = arith.constant 0 : index
    %c0_48 = arith.constant 0 : index
    %36 = vector.load %arg2[%c4_46, %c0_47, %c0_48] : memref<5x28x768xf32, #tpu.memory_space<vmem>>, vector<1x28x768xf32>
    %37 = vector.shape_cast %36 : vector<1x28x768xf32> to vector<28x768xf32>
    %cst_49 = arith.constant dense<0.000000e+00> : vector<48x768xf32>
    %38 = tpu.matmul %35, %37, %cst_49 {dimension_numbers = #tpu.dot_dimension_numbers<[1], [0], [0], [1], [0, 0, 1, 1], [], []>} : vector<48x28xf32>, vector<28x768xf32>, vector<48x768xf32> -> vector<48x768xf32>
    %c0_50 = arith.constant 0 : index
    %c0_51 = arith.constant 0 : index
    %c0_52 = arith.constant 0 : index
    %39 = vector.load %arg7[%c0_50, %c0_51, %c0_52] : memref<2x24x768xf32, #tpu.memory_space<vmem>>, vector<2x24x768xf32>
    %40 = vector.shape_cast %38 : vector<48x768xf32> to vector<2x24x768xf32>
    %41 = arith.addf %39, %40 : vector<2x24x768xf32>
    %c0_53 = arith.constant 0 : index
    %c0_54 = arith.constant 0 : index
    %c0_55 = arith.constant 0 : index
    %42 = vector.load %arg7[%c0_53, %c0_54, %c0_55] : memref<2x24x768xf32, #tpu.memory_space<vmem>>, vector<2x24x768xf32>
    tpu.vector_store %arg7[%c0_53, %c0_54, %c0_55], %41 {strides = array<i32>} : memref<2x24x768xf32, #tpu.memory_space<vmem>>, vector<2x24x768xf32>,
    %c0_56 = arith.constant 0 : index
    %c0_57 = arith.constant 0 : index
    %c0_58 = arith.constant 0 : index
    %43 = vector.load %arg7[%c0_56, %c0_57, %c0_58] : memref<2x24x768xf32, #tpu.memory_space<vmem>>, vector<2x1x768xf32>
    %44 = vector.shape_cast %43 : vector<2x1x768xf32> to vector<2x768xf32>
    %c0_59 = arith.constant 0 : index
    %c1_60 = arith.constant 1 : index
    %c0_61 = arith.constant 0 : index
    %45 = vector.load %arg7[%c0_59, %c1_60, %c0_61] : memref<2x24x768xf32, #tpu.memory_space<vmem>>, vector<2x1x768xf32>
    %46 = vector.shape_cast %45 : vector<2x1x768xf32> to vector<2x768xf32>
    %47 = arith.maximumf %44, %46 : vector<2x768xf32>
    %c0_62 = arith.constant 0 : index
    %c0_63 = arith.constant 0 : index
    %c0_64 = arith.constant 0 : index
    %48 = vector.load %arg8[%c0_62, %c0_63, %c0_64] : memref<2x12x768xf32, #tpu.memory_space<vmem>>, vector<2x1x768xf32>
    %49 = vector.shape_cast %48 : vector<2x1x768xf32> to vector<2x768xf32>
    %50 = vector.shape_cast %47 : vector<2x768xf32> to vector<2x1x768xf32>
    tpu.vector_store %arg8[%c0_62, %c0_63, %c0_64], %50 {strides = array<i32>} : memref<2x12x768xf32, #tpu.memory_space<vmem>>, vector<2x1x768xf32>,
    %c0_65 = arith.constant 0 : index
    %c2_66 = arith.constant 2 : index
    %c0_67 = arith.constant 0 : index
    %51 = vector.load %arg7[%c0_65, %c2_66, %c0_67] : memref<2x24x768xf32, #tpu.memory_space<vmem>>, vector<2x1x768xf32>
    %52 = vector.shape_cast %51 : vector<2x1x768xf32> to vector<2x768xf32>
    %c0_68 = arith.constant 0 : index
    %c3_69 = arith.constant 3 : index
    %c0_70 = arith.constant 0 : index
    %53 = vector.load %arg7[%c0_68, %c3_69, %c0_70] : memref<2x24x768xf32, #tpu.memory_space<vmem>>, vector<2x1x768xf32>
    %54 = vector.shape_cast %53 : vector<2x1x768xf32> to vector<2x768xf32>
    %55 = arith.maximumf %52, %54 : vector<2x768xf32>
    %c0_71 = arith.constant 0 : index
    %c1_72 = arith.constant 1 : index
    %c0_73 = arith.constant 0 : index
    %56 = vector.load %arg8[%c0_71, %c1_72, %c0_73] : memref<2x12x768xf32, #tpu.memory_space<vmem>>, vector<2x1x768xf32>
    %57 = vector.shape_cast %56 : vector<2x1x768xf32> to vector<2x768xf32>
    %58 = vector.shape_cast %55 : vector<2x768xf32> to vector<2x1x768xf32>
    tpu.vector_store %arg8[%c0_71, %c1_72, %c0_73], %58 {strides = array<i32>} : memref<2x12x768xf32, #tpu.memory_space<vmem>>, vector<2x1x768xf32>,
    %c0_74 = arith.constant 0 : index
    %c4_75 = arith.constant 4 : index
    %c0_76 = arith.constant 0 : index
    %59 = vector.load %arg7[%c0_74, %c4_75, %c0_76] : memref<2x24x768xf32, #tpu.memory_space<vmem>>, vector<2x1x768xf32>
    %60 = vector.shape_cast %59 : vector<2x1x768xf32> to vector<2x768xf32>
    %c0_77 = arith.constant 0 : index
    %c5 = arith.constant 5 : index
    %c0_78 = arith.constant 0 : index
    %61 = vector.load %arg7[%c0_77, %c5, %c0_78] : memref<2x24x768xf32, #tpu.memory_space<vmem>>, vector<2x1x768xf32>
    %62 = vector.shape_cast %61 : vector<2x1x768xf32> to vector<2x768xf32>
    %63 = arith.maximumf %60, %62 : vector<2x768xf32>
    %c0_79 = arith.constant 0 : index
    %c2_80 = arith.constant 2 : index
    %c0_81 = arith.constant 0 : index
    %64 = vector.load %arg8[%c0_79, %c2_80, %c0_81] : memref<2x12x768xf32, #tpu.memory_space<vmem>>, vector<2x1x768xf32>
    %65 = vector.shape_cast %64 : vector<2x1x768xf32> to vector<2x768xf32>
    %66 = vector.shape_cast %63 : vector<2x768xf32> to vector<2x1x768xf32>
    tpu.vector_store %arg8[%c0_79, %c2_80, %c0_81], %66 {strides = array<i32>} : memref<2x12x768xf32, #tpu.memory_space<vmem>>, vector<2x1x768xf32>,
    %c0_82 = arith.constant 0 : index
    %c6 = arith.constant 6 : index
    %c0_83 = arith.constant 0 : index
    %67 = vector.load %arg7[%c0_82, %c6, %c0_83] : memref<2x24x768xf32, #tpu.memory_space<vmem>>, vector<2x1x768xf32>
    %68 = vector.shape_cast %67 : vector<2x1x768xf32> to vector<2x768xf32>
    %c0_84 = arith.constant 0 : index
    %c7 = arith.constant 7 : index
    %c0_85 = arith.constant 0 : index
    %69 = vector.load %arg7[%c0_84, %c7, %c0_85] : memref<2x24x768xf32, #tpu.memory_space<vmem>>, vector<2x1x768xf32>
    %70 = vector.shape_cast %69 : vector<2x1x768xf32> to vector<2x768xf32>
    %71 = arith.maximumf %68, %70 : vector<2x768xf32>
    %c0_86 = arith.constant 0 : index
    %c3_87 = arith.constant 3 : index
    %c0_88 = arith.constant 0 : index
    %72 = vector.load %arg8[%c0_86, %c3_87, %c0_88] : memref<2x12x768xf32, #tpu.memory_space<vmem>>, vector<2x1x768xf32>
    %73 = vector.shape_cast %72 : vector<2x1x768xf32> to vector<2x768xf32>
    %74 = vector.shape_cast %71 : vector<2x768xf32> to vector<2x1x768xf32>
    tpu.vector_store %arg8[%c0_86, %c3_87, %c0_88], %74 {strides = array<i32>} : memref<2x12x768xf32, #tpu.memory_space<vmem>>, vector<2x1x768xf32>,
    %c0_89 = arith.constant 0 : index
    %c8 = arith.constant 8 : index
    %c0_90 = arith.constant 0 : index
    %75 = vector.load %arg7[%c0_89, %c8, %c0_90] : memref<2x24x768xf32, #tpu.memory_space<vmem>>, vector<2x1x768xf32>
    %76 = vector.shape_cast %75 : vector<2x1x768xf32> to vector<2x768xf32>
    %c0_91 = arith.constant 0 : index
    %c9 = arith.constant 9 : index
    %c0_92 = arith.constant 0 : index
    %77 = vector.load %arg7[%c0_91, %c9, %c0_92] : memref<2x24x768xf32, #tpu.memory_space<vmem>>, vector<2x1x768xf32>
    %78 = vector.shape_cast %77 : vector<2x1x768xf32> to vector<2x768xf32>
    %79 = arith.maximumf %76, %78 : vector<2x768xf32>
    %c0_93 = arith.constant 0 : index
    %c4_94 = arith.constant 4 : index
    %c0_95 = arith.constant 0 : index
    %80 = vector.load %arg8[%c0_93, %c4_94, %c0_95] : memref<2x12x768xf32, #tpu.memory_space<vmem>>, vector<2x1x768xf32>
    %81 = vector.shape_cast %80 : vector<2x1x768xf32> to vector<2x768xf32>
    %82 = vector.shape_cast %79 : vector<2x768xf32> to vector<2x1x768xf32>
    tpu.vector_store %arg8[%c0_93, %c4_94, %c0_95], %82 {strides = array<i32>} : memref<2x12x768xf32, #tpu.memory_space<vmem>>, vector<2x1x768xf32>,
    %c0_96 = arith.constant 0 : index
    %c10 = arith.constant 10 : index
    %c0_97 = arith.constant 0 : index
    %83 = vector.load %arg7[%c0_96, %c10, %c0_97] : memref<2x24x768xf32, #tpu.memory_space<vmem>>, vector<2x1x768xf32>
    %84 = vector.shape_cast %83 : vector<2x1x768xf32> to vector<2x768xf32>
    %c0_98 = arith.constant 0 : index
    %c11 = arith.constant 11 : index
    %c0_99 = arith.constant 0 : index
    %85 = vector.load %arg7[%c0_98, %c11, %c0_99] : memref<2x24x768xf32, #tpu.memory_space<vmem>>, vector<2x1x768xf32>
    %86 = vector.shape_cast %85 : vector<2x1x768xf32> to vector<2x768xf32>
    %87 = arith.maximumf %84, %86 : vector<2x768xf32>
    %c0_100 = arith.constant 0 : index
    %c5_101 = arith.constant 5 : index
    %c0_102 = arith.constant 0 : index
    %88 = vector.load %arg8[%c0_100, %c5_101, %c0_102] : memref<2x12x768xf32, #tpu.memory_space<vmem>>, vector<2x1x768xf32>
    %89 = vector.shape_cast %88 : vector<2x1x768xf32> to vector<2x768xf32>
    %90 = vector.shape_cast %87 : vector<2x768xf32> to vector<2x1x768xf32>
    tpu.vector_store %arg8[%c0_100, %c5_101, %c0_102], %90 {strides = array<i32>} : memref<2x12x768xf32, #tpu.memory_space<vmem>>, vector<2x1x768xf32>,
    %c0_103 = arith.constant 0 : index
    %c12 = arith.constant 12 : index
    %c0_104 = arith.constant 0 : index
    %91 = vector.load %arg7[%c0_103, %c12, %c0_104] : memref<2x24x768xf32, #tpu.memory_space<vmem>>, vector<2x1x768xf32>
    %92 = vector.shape_cast %91 : vector<2x1x768xf32> to vector<2x768xf32>
    %c0_105 = arith.constant 0 : index
    %c13 = arith.constant 13 : index
    %c0_106 = arith.constant 0 : index
    %93 = vector.load %arg7[%c0_105, %c13, %c0_106] : memref<2x24x768xf32, #tpu.memory_space<vmem>>, vector<2x1x768xf32>
    %94 = vector.shape_cast %93 : vector<2x1x768xf32> to vector<2x768xf32>
    %95 = arith.maximumf %92, %94 : vector<2x768xf32>
    %c0_107 = arith.constant 0 : index
    %c6_108 = arith.constant 6 : index
    %c0_109 = arith.constant 0 : index
    %96 = vector.load %arg8[%c0_107, %c6_108, %c0_109] : memref<2x12x768xf32, #tpu.memory_space<vmem>>, vector<2x1x768xf32>
    %97 = vector.shape_cast %96 : vector<2x1x768xf32> to vector<2x768xf32>
    %98 = vector.shape_cast %95 : vector<2x768xf32> to vector<2x1x768xf32>
    tpu.vector_store %arg8[%c0_107, %c6_108, %c0_109], %98 {strides = array<i32>} : memref<2x12x768xf32, #tpu.memory_space<vmem>>, vector<2x1x768xf32>,
    %c0_110 = arith.constant 0 : index
    %c14 = arith.constant 14 : index
    %c0_111 = arith.constant 0 : index
    %99 = vector.load %arg7[%c0_110, %c14, %c0_111] : memref<2x24x768xf32, #tpu.memory_space<vmem>>, vector<2x1x768xf32>
    %100 = vector.shape_cast %99 : vector<2x1x768xf32> to vector<2x768xf32>
    %c0_112 = arith.constant 0 : index
    %c15 = arith.constant 15 : index
    %c0_113 = arith.constant 0 : index
    %101 = vector.load %arg7[%c0_112, %c15, %c0_113] : memref<2x24x768xf32, #tpu.memory_space<vmem>>, vector<2x1x768xf32>
    %102 = vector.shape_cast %101 : vector<2x1x768xf32> to vector<2x768xf32>
    %103 = arith.maximumf %100, %102 : vector<2x768xf32>
    %c0_114 = arith.constant 0 : index
    %c7_115 = arith.constant 7 : index
    %c0_116 = arith.constant 0 : index
    %104 = vector.load %arg8[%c0_114, %c7_115, %c0_116] : memref<2x12x768xf32, #tpu.memory_space<vmem>>, vector<2x1x768xf32>
    %105 = vector.shape_cast %104 : vector<2x1x768xf32> to vector<2x768xf32>
    %106 = vector.shape_cast %103 : vector<2x768xf32> to vector<2x1x768xf32>
    tpu.vector_store %arg8[%c0_114, %c7_115, %c0_116], %106 {strides = array<i32>} : memref<2x12x768xf32, #tpu.memory_space<vmem>>, vector<2x1x768xf32>,
    %c0_117 = arith.constant 0 : index
    %c16 = arith.constant 16 : index
    %c0_118 = arith.constant 0 : index
    %107 = vector.load %arg7[%c0_117, %c16, %c0_118] : memref<2x24x768xf32, #tpu.memory_space<vmem>>, vector<2x1x768xf32>
    %108 = vector.shape_cast %107 : vector<2x1x768xf32> to vector<2x768xf32>
    %c0_119 = arith.constant 0 : index
    %c17 = arith.constant 17 : index
    %c0_120 = arith.constant 0 : index
    %109 = vector.load %arg7[%c0_119, %c17, %c0_120] : memref<2x24x768xf32, #tpu.memory_space<vmem>>, vector<2x1x768xf32>
    %110 = vector.shape_cast %109 : vector<2x1x768xf32> to vector<2x768xf32>
    %111 = arith.maximumf %108, %110 : vector<2x768xf32>
    %c0_121 = arith.constant 0 : index
    %c8_122 = arith.constant 8 : index
    %c0_123 = arith.constant 0 : index
    %112 = vector.load %arg8[%c0_121, %c8_122, %c0_123] : memref<2x12x768xf32, #tpu.memory_space<vmem>>, vector<2x1x768xf32>
    %113 = vector.shape_cast %112 : vector<2x1x768xf32> to vector<2x768xf32>
    %114 = vector.shape_cast %111 : vector<2x768xf32> to vector<2x1x768xf32>
    tpu.vector_store %arg8[%c0_121, %c8_122, %c0_123], %114 {strides = array<i32>} : memref<2x12x768xf32, #tpu.memory_space<vmem>>, vector<2x1x768xf32>,
    %c0_124 = arith.constant 0 : index
    %c18 = arith.constant 18 : index
    %c0_125 = arith.constant 0 : index
    %115 = vector.load %arg7[%c0_124, %c18, %c0_125] : memref<2x24x768xf32, #tpu.memory_space<vmem>>, vector<2x1x768xf32>
    %116 = vector.shape_cast %115 : vector<2x1x768xf32> to vector<2x768xf32>
    %c0_126 = arith.constant 0 : index
    %c19 = arith.constant 19 : index
    %c0_127 = arith.constant 0 : index
    %117 = vector.load %arg7[%c0_126, %c19, %c0_127] : memref<2x24x768xf32, #tpu.memory_space<vmem>>, vector<2x1x768xf32>
    %118 = vector.shape_cast %117 : vector<2x1x768xf32> to vector<2x768xf32>
    %119 = arith.maximumf %116, %118 : vector<2x768xf32>
    %c0_128 = arith.constant 0 : index
    %c9_129 = arith.constant 9 : index
    %c0_130 = arith.constant 0 : index
    %120 = vector.load %arg8[%c0_128, %c9_129, %c0_130] : memref<2x12x768xf32, #tpu.memory_space<vmem>>, vector<2x1x768xf32>
    %121 = vector.shape_cast %120 : vector<2x1x768xf32> to vector<2x768xf32>
    %122 = vector.shape_cast %119 : vector<2x768xf32> to vector<2x1x768xf32>
    tpu.vector_store %arg8[%c0_128, %c9_129, %c0_130], %122 {strides = array<i32>} : memref<2x12x768xf32, #tpu.memory_space<vmem>>, vector<2x1x768xf32>,
    %c0_131 = arith.constant 0 : index
    %c20 = arith.constant 20 : index
    %c0_132 = arith.constant 0 : index
    %123 = vector.load %arg7[%c0_131, %c20, %c0_132] : memref<2x24x768xf32, #tpu.memory_space<vmem>>, vector<2x1x768xf32>
    %124 = vector.shape_cast %123 : vector<2x1x768xf32> to vector<2x768xf32>
    %c0_133 = arith.constant 0 : index
    %c21 = arith.constant 21 : index
    %c0_134 = arith.constant 0 : index
    %125 = vector.load %arg7[%c0_133, %c21, %c0_134] : memref<2x24x768xf32, #tpu.memory_space<vmem>>, vector<2x1x768xf32>
    %126 = vector.shape_cast %125 : vector<2x1x768xf32> to vector<2x768xf32>
    %127 = arith.maximumf %124, %126 : vector<2x768xf32>
    %c0_135 = arith.constant 0 : index
    %c10_136 = arith.constant 10 : index
    %c0_137 = arith.constant 0 : index
    %128 = vector.load %arg8[%c0_135, %c10_136, %c0_137] : memref<2x12x768xf32, #tpu.memory_space<vmem>>, vector<2x1x768xf32>
    %129 = vector.shape_cast %128 : vector<2x1x768xf32> to vector<2x768xf32>
    %130 = vector.shape_cast %127 : vector<2x768xf32> to vector<2x1x768xf32>
    tpu.vector_store %arg8[%c0_135, %c10_136, %c0_137], %130 {strides = array<i32>} : memref<2x12x768xf32, #tpu.memory_space<vmem>>, vector<2x1x768xf32>,
    %c0_138 = arith.constant 0 : index
    %c22 = arith.constant 22 : index
    %c0_139 = arith.constant 0 : index
    %131 = vector.load %arg7[%c0_138, %c22, %c0_139] : memref<2x24x768xf32, #tpu.memory_space<vmem>>, vector<2x1x768xf32>
    %132 = vector.shape_cast %131 : vector<2x1x768xf32> to vector<2x768xf32>
    %c0_140 = arith.constant 0 : index
    %c23 = arith.constant 23 : index
    %c0_141 = arith.constant 0 : index
    %133 = vector.load %arg7[%c0_140, %c23, %c0_141] : memref<2x24x768xf32, #tpu.memory_space<vmem>>, vector<2x1x768xf32>
    %134 = vector.shape_cast %133 : vector<2x1x768xf32> to vector<2x768xf32>
    %135 = arith.maximumf %132, %134 : vector<2x768xf32>
    %c0_142 = arith.constant 0 : index
    %c11_143 = arith.constant 11 : index
    %c0_144 = arith.constant 0 : index
    %136 = vector.load %arg8[%c0_142, %c11_143, %c0_144] : memref<2x12x768xf32, #tpu.memory_space<vmem>>, vector<2x1x768xf32>
    %137 = vector.shape_cast %136 : vector<2x1x768xf32> to vector<2x768xf32>
    %138 = vector.shape_cast %135 : vector<2x768xf32> to vector<2x1x768xf32>
    tpu.vector_store %arg8[%c0_142, %c11_143, %c0_144], %138 {strides = array<i32>} : memref<2x12x768xf32, #tpu.memory_space<vmem>>, vector<2x1x768xf32>,
    %c0_145 = arith.constant 0 : index
    %c0_146 = arith.constant 0 : index
    %c0_147 = arith.constant 0 : index
    %139 = vector.load %arg8[%c0_145, %c0_146, %c0_147] : memref<2x12x768xf32, #tpu.memory_space<vmem>>, vector<2x12x32xf32>
    %c0_148 = arith.constant 0 : index
    %c0_149 = arith.constant 0 : index
    %c32 = arith.constant 32 : index
    %140 = vector.load %arg8[%c0_148, %c0_149, %c32] : memref<2x12x768xf32, #tpu.memory_space<vmem>>, vector<2x12x32xf32>
    %141 = arith.maximumf %139, %140 : vector<2x12x32xf32>
    %c0_150 = arith.constant 0 : index
    %c0_151 = arith.constant 0 : index
    %c0_152 = arith.constant 0 : index
    %c0_153 = arith.constant 0 : index
    %142 = vector.load %arg9[%c0_150, %c0_151, %c0_152, %c0_153] : memref<2x12x12x32xf32, #tpu.memory_space<vmem>>, vector<2x1x12x32xf32>
    %143 = vector.shape_cast %142 : vector<2x1x12x32xf32> to vector<2x12x32xf32>
    %144 = vector.shape_cast %141 : vector<2x12x32xf32> to vector<2x1x12x32xf32>
    tpu.vector_store %arg9[%c0_150, %c0_151, %c0_152, %c0_153], %144 {strides = array<i32>} : memref<2x12x12x32xf32, #tpu.memory_space<vmem>>, vector<2x1x12x32xf32>,
    %c0_154 = arith.constant 0 : index
    %c0_155 = arith.constant 0 : index
    %c64 = arith.constant 64 : index
    %145 = vector.load %arg8[%c0_154, %c0_155, %c64] : memref<2x12x768xf32, #tpu.memory_space<vmem>>, vector<2x12x32xf32>
    %c0_156 = arith.constant 0 : index
    %c0_157 = arith.constant 0 : index
    %c96 = arith.constant 96 : index
    %146 = vector.load %arg8[%c0_156, %c0_157, %c96] : memref<2x12x768xf32, #tpu.memory_space<vmem>>, vector<2x12x32xf32>
    %147 = arith.maximumf %145, %146 : vector<2x12x32xf32>
    %c0_158 = arith.constant 0 : index
    %c1_159 = arith.constant 1 : index
    %c0_160 = arith.constant 0 : index
    %c0_161 = arith.constant 0 : index
    %148 = vector.load %arg9[%c0_158, %c1_159, %c0_160, %c0_161] : memref<2x12x12x32xf32, #tpu.memory_space<vmem>>, vector<2x1x12x32xf32>
    %149 = vector.shape_cast %148 : vector<2x1x12x32xf32> to vector<2x12x32xf32>
    %150 = vector.shape_cast %147 : vector<2x12x32xf32> to vector<2x1x12x32xf32>
    tpu.vector_store %arg9[%c0_158, %c1_159, %c0_160, %c0_161], %150 {strides = array<i32>} : memref<2x12x12x32xf32, #tpu.memory_space<vmem>>, vector<2x1x12x32xf32>,
    %c0_162 = arith.constant 0 : index
    %c0_163 = arith.constant 0 : index
    %c128 = arith.constant 128 : index
    %151 = vector.load %arg8[%c0_162, %c0_163, %c128] : memref<2x12x768xf32, #tpu.memory_space<vmem>>, vector<2x12x32xf32>
    %c0_164 = arith.constant 0 : index
    %c0_165 = arith.constant 0 : index
    %c160 = arith.constant 160 : index
    %152 = vector.load %arg8[%c0_164, %c0_165, %c160] : memref<2x12x768xf32, #tpu.memory_space<vmem>>, vector<2x12x32xf32>
    %153 = arith.maximumf %151, %152 : vector<2x12x32xf32>
    %c0_166 = arith.constant 0 : index
    %c2_167 = arith.constant 2 : index
    %c0_168 = arith.constant 0 : index
    %c0_169 = arith.constant 0 : index
    %154 = vector.load %arg9[%c0_166, %c2_167, %c0_168, %c0_169] : memref<2x12x12x32xf32, #tpu.memory_space<vmem>>, vector<2x1x12x32xf32>
    %155 = vector.shape_cast %154 : vector<2x1x12x32xf32> to vector<2x12x32xf32>
    %156 = vector.shape_cast %153 : vector<2x12x32xf32> to vector<2x1x12x32xf32>
    tpu.vector_store %arg9[%c0_166, %c2_167, %c0_168, %c0_169], %156 {strides = array<i32>} : memref<2x12x12x32xf32, #tpu.memory_space<vmem>>, vector<2x1x12x32xf32>,
    %c0_170 = arith.constant 0 : index
    %c0_171 = arith.constant 0 : index
    %c192 = arith.constant 192 : index
    %157 = vector.load %arg8[%c0_170, %c0_171, %c192] : memref<2x12x768xf32, #tpu.memory_space<vmem>>, vector<2x12x32xf32>
    %c0_172 = arith.constant 0 : index
    %c0_173 = arith.constant 0 : index
    %c224 = arith.constant 224 : index
    %158 = vector.load %arg8[%c0_172, %c0_173, %c224] : memref<2x12x768xf32, #tpu.memory_space<vmem>>, vector<2x12x32xf32>
    %159 = arith.maximumf %157, %158 : vector<2x12x32xf32>
    %c0_174 = arith.constant 0 : index
    %c3_175 = arith.constant 3 : index
    %c0_176 = arith.constant 0 : index
    %c0_177 = arith.constant 0 : index
    %160 = vector.load %arg9[%c0_174, %c3_175, %c0_176, %c0_177] : memref<2x12x12x32xf32, #tpu.memory_space<vmem>>, vector<2x1x12x32xf32>
    %161 = vector.shape_cast %160 : vector<2x1x12x32xf32> to vector<2x12x32xf32>
    %162 = vector.shape_cast %159 : vector<2x12x32xf32> to vector<2x1x12x32xf32>
    tpu.vector_store %arg9[%c0_174, %c3_175, %c0_176, %c0_177], %162 {strides = array<i32>} : memref<2x12x12x32xf32, #tpu.memory_space<vmem>>, vector<2x1x12x32xf32>,
    %c0_178 = arith.constant 0 : index
    %c0_179 = arith.constant 0 : index
    %c256 = arith.constant 256 : index
    %163 = vector.load %arg8[%c0_178, %c0_179, %c256] : memref<2x12x768xf32, #tpu.memory_space<vmem>>, vector<2x12x32xf32>
    %c0_180 = arith.constant 0 : index
    %c0_181 = arith.constant 0 : index
    %c288 = arith.constant 288 : index
    %164 = vector.load %arg8[%c0_180, %c0_181, %c288] : memref<2x12x768xf32, #tpu.memory_space<vmem>>, vector<2x12x32xf32>
    %165 = arith.maximumf %163, %164 : vector<2x12x32xf32>
    %c0_182 = arith.constant 0 : index
    %c4_183 = arith.constant 4 : index
    %c0_184 = arith.constant 0 : index
    %c0_185 = arith.constant 0 : index
    %166 = vector.load %arg9[%c0_182, %c4_183, %c0_184, %c0_185] : memref<2x12x12x32xf32, #tpu.memory_space<vmem>>, vector<2x1x12x32xf32>
    %167 = vector.shape_cast %166 : vector<2x1x12x32xf32> to vector<2x12x32xf32>
    %168 = vector.shape_cast %165 : vector<2x12x32xf32> to vector<2x1x12x32xf32>
    tpu.vector_store %arg9[%c0_182, %c4_183, %c0_184, %c0_185], %168 {strides = array<i32>} : memref<2x12x12x32xf32, #tpu.memory_space<vmem>>, vector<2x1x12x32xf32>,
    %c0_186 = arith.constant 0 : index
    %c0_187 = arith.constant 0 : index
    %c320 = arith.constant 320 : index
    %169 = vector.load %arg8[%c0_186, %c0_187, %c320] : memref<2x12x768xf32, #tpu.memory_space<vmem>>, vector<2x12x32xf32>
    %c0_188 = arith.constant 0 : index
    %c0_189 = arith.constant 0 : index
    %c352 = arith.constant 352 : index
    %170 = vector.load %arg8[%c0_188, %c0_189, %c352] : memref<2x12x768xf32, #tpu.memory_space<vmem>>, vector<2x12x32xf32>
    %171 = arith.maximumf %169, %170 : vector<2x12x32xf32>
    %c0_190 = arith.constant 0 : index
    %c5_191 = arith.constant 5 : index
    %c0_192 = arith.constant 0 : index
    %c0_193 = arith.constant 0 : index
    %172 = vector.load %arg9[%c0_190, %c5_191, %c0_192, %c0_193] : memref<2x12x12x32xf32, #tpu.memory_space<vmem>>, vector<2x1x12x32xf32>
    %173 = vector.shape_cast %172 : vector<2x1x12x32xf32> to vector<2x12x32xf32>
    %174 = vector.shape_cast %171 : vector<2x12x32xf32> to vector<2x1x12x32xf32>
    tpu.vector_store %arg9[%c0_190, %c5_191, %c0_192, %c0_193], %174 {strides = array<i32>} : memref<2x12x12x32xf32, #tpu.memory_space<vmem>>, vector<2x1x12x32xf32>,
    %c0_194 = arith.constant 0 : index
    %c0_195 = arith.constant 0 : index
    %c384 = arith.constant 384 : index
    %175 = vector.load %arg8[%c0_194, %c0_195, %c384] : memref<2x12x768xf32, #tpu.memory_space<vmem>>, vector<2x12x32xf32>
    %c0_196 = arith.constant 0 : index
    %c0_197 = arith.constant 0 : index
    %c416 = arith.constant 416 : index
    %176 = vector.load %arg8[%c0_196, %c0_197, %c416] : memref<2x12x768xf32, #tpu.memory_space<vmem>>, vector<2x12x32xf32>
    %177 = arith.maximumf %175, %176 : vector<2x12x32xf32>
    %c0_198 = arith.constant 0 : index
    %c6_199 = arith.constant 6 : index
    %c0_200 = arith.constant 0 : index
    %c0_201 = arith.constant 0 : index
    %178 = vector.load %arg9[%c0_198, %c6_199, %c0_200, %c0_201] : memref<2x12x12x32xf32, #tpu.memory_space<vmem>>, vector<2x1x12x32xf32>
    %179 = vector.shape_cast %178 : vector<2x1x12x32xf32> to vector<2x12x32xf32>
    %180 = vector.shape_cast %177 : vector<2x12x32xf32> to vector<2x1x12x32xf32>
    tpu.vector_store %arg9[%c0_198, %c6_199, %c0_200, %c0_201], %180 {strides = array<i32>} : memref<2x12x12x32xf32, #tpu.memory_space<vmem>>, vector<2x1x12x32xf32>,
    %c0_202 = arith.constant 0 : index
    %c0_203 = arith.constant 0 : index
    %c448 = arith.constant 448 : index
    %181 = vector.load %arg8[%c0_202, %c0_203, %c448] : memref<2x12x768xf32, #tpu.memory_space<vmem>>, vector<2x12x32xf32>
    %c0_204 = arith.constant 0 : index
    %c0_205 = arith.constant 0 : index
    %c480 = arith.constant 480 : index
    %182 = vector.load %arg8[%c0_204, %c0_205, %c480] : memref<2x12x768xf32, #tpu.memory_space<vmem>>, vector<2x12x32xf32>
    %183 = arith.maximumf %181, %182 : vector<2x12x32xf32>
    %c0_206 = arith.constant 0 : index
    %c7_207 = arith.constant 7 : index
    %c0_208 = arith.constant 0 : index
    %c0_209 = arith.constant 0 : index
    %184 = vector.load %arg9[%c0_206, %c7_207, %c0_208, %c0_209] : memref<2x12x12x32xf32, #tpu.memory_space<vmem>>, vector<2x1x12x32xf32>
    %185 = vector.shape_cast %184 : vector<2x1x12x32xf32> to vector<2x12x32xf32>
    %186 = vector.shape_cast %183 : vector<2x12x32xf32> to vector<2x1x12x32xf32>
    tpu.vector_store %arg9[%c0_206, %c7_207, %c0_208, %c0_209], %186 {strides = array<i32>} : memref<2x12x12x32xf32, #tpu.memory_space<vmem>>, vector<2x1x12x32xf32>,
    %c0_210 = arith.constant 0 : index
    %c0_211 = arith.constant 0 : index
    %c512 = arith.constant 512 : index
    %187 = vector.load %arg8[%c0_210, %c0_211, %c512] : memref<2x12x768xf32, #tpu.memory_space<vmem>>, vector<2x12x32xf32>
    %c0_212 = arith.constant 0 : index
    %c0_213 = arith.constant 0 : index
    %c544 = arith.constant 544 : index
    %188 = vector.load %arg8[%c0_212, %c0_213, %c544] : memref<2x12x768xf32, #tpu.memory_space<vmem>>, vector<2x12x32xf32>
    %189 = arith.maximumf %187, %188 : vector<2x12x32xf32>
    %c0_214 = arith.constant 0 : index
    %c8_215 = arith.constant 8 : index
    %c0_216 = arith.constant 0 : index
    %c0_217 = arith.constant 0 : index
    %190 = vector.load %arg9[%c0_214, %c8_215, %c0_216, %c0_217] : memref<2x12x12x32xf32, #tpu.memory_space<vmem>>, vector<2x1x12x32xf32>
    %191 = vector.shape_cast %190 : vector<2x1x12x32xf32> to vector<2x12x32xf32>
    %192 = vector.shape_cast %189 : vector<2x12x32xf32> to vector<2x1x12x32xf32>
    tpu.vector_store %arg9[%c0_214, %c8_215, %c0_216, %c0_217], %192 {strides = array<i32>} : memref<2x12x12x32xf32, #tpu.memory_space<vmem>>, vector<2x1x12x32xf32>,
    %c0_218 = arith.constant 0 : index
    %c0_219 = arith.constant 0 : index
    %c576 = arith.constant 576 : index
    %193 = vector.load %arg8[%c0_218, %c0_219, %c576] : memref<2x12x768xf32, #tpu.memory_space<vmem>>, vector<2x12x32xf32>
    %c0_220 = arith.constant 0 : index
    %c0_221 = arith.constant 0 : index
    %c608 = arith.constant 608 : index
    %194 = vector.load %arg8[%c0_220, %c0_221, %c608] : memref<2x12x768xf32, #tpu.memory_space<vmem>>, vector<2x12x32xf32>
    %195 = arith.maximumf %193, %194 : vector<2x12x32xf32>
    %c0_222 = arith.constant 0 : index
    %c9_223 = arith.constant 9 : index
    %c0_224 = arith.constant 0 : index
    %c0_225 = arith.constant 0 : index
    %196 = vector.load %arg9[%c0_222, %c9_223, %c0_224, %c0_225] : memref<2x12x12x32xf32, #tpu.memory_space<vmem>>, vector<2x1x12x32xf32>
    %197 = vector.shape_cast %196 : vector<2x1x12x32xf32> to vector<2x12x32xf32>
    %198 = vector.shape_cast %195 : vector<2x12x32xf32> to vector<2x1x12x32xf32>
    tpu.vector_store %arg9[%c0_222, %c9_223, %c0_224, %c0_225], %198 {strides = array<i32>} : memref<2x12x12x32xf32, #tpu.memory_space<vmem>>, vector<2x1x12x32xf32>,
    %c0_226 = arith.constant 0 : index
    %c0_227 = arith.constant 0 : index
    %c640 = arith.constant 640 : index
    %199 = vector.load %arg8[%c0_226, %c0_227, %c640] : memref<2x12x768xf32, #tpu.memory_space<vmem>>, vector<2x12x32xf32>
    %c0_228 = arith.constant 0 : index
    %c0_229 = arith.constant 0 : index
    %c672 = arith.constant 672 : index
    %200 = vector.load %arg8[%c0_228, %c0_229, %c672] : memref<2x12x768xf32, #tpu.memory_space<vmem>>, vector<2x12x32xf32>
    %201 = arith.maximumf %199, %200 : vector<2x12x32xf32>
    %c0_230 = arith.constant 0 : index
    %c10_231 = arith.constant 10 : index
    %c0_232 = arith.constant 0 : index
    %c0_233 = arith.constant 0 : index
    %202 = vector.load %arg9[%c0_230, %c10_231, %c0_232, %c0_233] : memref<2x12x12x32xf32, #tpu.memory_space<vmem>>, vector<2x1x12x32xf32>
    %203 = vector.shape_cast %202 : vector<2x1x12x32xf32> to vector<2x12x32xf32>
    %204 = vector.shape_cast %201 : vector<2x12x32xf32> to vector<2x1x12x32xf32>
    tpu.vector_store %arg9[%c0_230, %c10_231, %c0_232, %c0_233], %204 {strides = array<i32>} : memref<2x12x12x32xf32, #tpu.memory_space<vmem>>, vector<2x1x12x32xf32>,
    %c0_234 = arith.constant 0 : index
    %c0_235 = arith.constant 0 : index
    %c704 = arith.constant 704 : index
    %205 = vector.load %arg8[%c0_234, %c0_235, %c704] : memref<2x12x768xf32, #tpu.memory_space<vmem>>, vector<2x12x32xf32>
    %c0_236 = arith.constant 0 : index
    %c0_237 = arith.constant 0 : index
    %c736 = arith.constant 736 : index
    %206 = vector.load %arg8[%c0_236, %c0_237, %c736] : memref<2x12x768xf32, #tpu.memory_space<vmem>>, vector<2x12x32xf32>
    %207 = arith.maximumf %205, %206 : vector<2x12x32xf32>
    %c0_238 = arith.constant 0 : index
    %c11_239 = arith.constant 11 : index
    %c0_240 = arith.constant 0 : index
    %c0_241 = arith.constant 0 : index
    %208 = vector.load %arg9[%c0_238, %c11_239, %c0_240, %c0_241] : memref<2x12x12x32xf32, #tpu.memory_space<vmem>>, vector<2x1x12x32xf32>
    %209 = vector.shape_cast %208 : vector<2x1x12x32xf32> to vector<2x12x32xf32>
    %210 = vector.shape_cast %207 : vector<2x12x32xf32> to vector<2x1x12x32xf32>
    tpu.vector_store %arg9[%c0_238, %c11_239, %c0_240, %c0_241], %210 {strides = array<i32>} : memref<2x12x12x32xf32, #tpu.memory_space<vmem>>, vector<2x1x12x32xf32>,
    %c0_242 = arith.constant 0 : index
    %c0_243 = arith.constant 0 : index
    %c0_244 = arith.constant 0 : index
    %c0_245 = arith.constant 0 : index
    %211 = vector.load %arg9[%c0_242, %c0_243, %c0_244, %c0_245] : memref<2x12x12x32xf32, #tpu.memory_space<vmem>>, vector<2x8x8x32xf32>
    %c0_246 = arith.constant 0 : index
    %c0_247 = arith.constant 0 : index
    %c0_248 = arith.constant 0 : index
    %c0_249 = arith.constant 0 : index
    %212 = vector.load %arg10[%c0_246, %c0_247, %c0_248, %c0_249] : memref<2x8x8x800xf32, #tpu.memory_space<vmem>>, vector<2x8x8x32xf32>
    tpu.vector_store %arg10[%c0_246, %c0_247, %c0_248, %c0_249], %211 {strides = array<i32>} : memref<2x8x8x800xf32, #tpu.memory_space<vmem>>, vector<2x8x8x32xf32>,
    %c0_250 = arith.constant 0 : index
    %c1_251 = arith.constant 1 : index
    %c0_252 = arith.constant 0 : index
    %c0_253 = arith.constant 0 : index
    %213 = vector.load %arg9[%c0_250, %c1_251, %c0_252, %c0_253] : memref<2x12x12x32xf32, #tpu.memory_space<vmem>>, vector<2x8x8x32xf32>
    %c0_254 = arith.constant 0 : index
    %c0_255 = arith.constant 0 : index
    %c0_256 = arith.constant 0 : index
    %c32_257 = arith.constant 32 : index
    %214 = vector.load %arg10[%c0_254, %c0_255, %c0_256, %c32_257] : memref<2x8x8x800xf32, #tpu.memory_space<vmem>>, vector<2x8x8x32xf32>
    tpu.vector_store %arg10[%c0_254, %c0_255, %c0_256, %c32_257], %213 {strides = array<i32>} : memref<2x8x8x800xf32, #tpu.memory_space<vmem>>, vector<2x8x8x32xf32>,
    %c0_258 = arith.constant 0 : index
    %c2_259 = arith.constant 2 : index
    %c0_260 = arith.constant 0 : index
    %c0_261 = arith.constant 0 : index
    %215 = vector.load %arg9[%c0_258, %c2_259, %c0_260, %c0_261] : memref<2x12x12x32xf32, #tpu.memory_space<vmem>>, vector<2x8x8x32xf32>
    %c0_262 = arith.constant 0 : index
    %c0_263 = arith.constant 0 : index
    %c0_264 = arith.constant 0 : index
    %c64_265 = arith.constant 64 : index
    %216 = vector.load %arg10[%c0_262, %c0_263, %c0_264, %c64_265] : memref<2x8x8x800xf32, #tpu.memory_space<vmem>>, vector<2x8x8x32xf32>
    tpu.vector_store %arg10[%c0_262, %c0_263, %c0_264, %c64_265], %215 {strides = array<i32>} : memref<2x8x8x800xf32, #tpu.memory_space<vmem>>, vector<2x8x8x32xf32>,
    %c0_266 = arith.constant 0 : index
    %c3_267 = arith.constant 3 : index
    %c0_268 = arith.constant 0 : index
    %c0_269 = arith.constant 0 : index
    %217 = vector.load %arg9[%c0_266, %c3_267, %c0_268, %c0_269] : memref<2x12x12x32xf32, #tpu.memory_space<vmem>>, vector<2x8x8x32xf32>
    %c0_270 = arith.constant 0 : index
    %c0_271 = arith.constant 0 : index
    %c0_272 = arith.constant 0 : index
    %c96_273 = arith.constant 96 : index
    %218 = vector.load %arg10[%c0_270, %c0_271, %c0_272, %c96_273] : memref<2x8x8x800xf32, #tpu.memory_space<vmem>>, vector<2x8x8x32xf32>
    tpu.vector_store %arg10[%c0_270, %c0_271, %c0_272, %c96_273], %217 {strides = array<i32>} : memref<2x8x8x800xf32, #tpu.memory_space<vmem>>, vector<2x8x8x32xf32>,
    %c0_274 = arith.constant 0 : index
    %c4_275 = arith.constant 4 : index
    %c0_276 = arith.constant 0 : index
    %c0_277 = arith.constant 0 : index
    %219 = vector.load %arg9[%c0_274, %c4_275, %c0_276, %c0_277] : memref<2x12x12x32xf32, #tpu.memory_space<vmem>>, vector<2x8x8x32xf32>
    %c0_278 = arith.constant 0 : index
    %c0_279 = arith.constant 0 : index
    %c0_280 = arith.constant 0 : index
    %c128_281 = arith.constant 128 : index
    %220 = vector.load %arg10[%c0_278, %c0_279, %c0_280, %c128_281] : memref<2x8x8x800xf32, #tpu.memory_space<vmem>>, vector<2x8x8x32xf32>
    tpu.vector_store %arg10[%c0_278, %c0_279, %c0_280, %c128_281], %219 {strides = array<i32>} : memref<2x8x8x800xf32, #tpu.memory_space<vmem>>, vector<2x8x8x32xf32>,
    %c0_282 = arith.constant 0 : index
    %c0_283 = arith.constant 0 : index
    %c1_284 = arith.constant 1 : index
    %c0_285 = arith.constant 0 : index
    %221 = vector.load %arg9[%c0_282, %c0_283, %c1_284, %c0_285] : memref<2x12x12x32xf32, #tpu.memory_space<vmem>>, vector<2x8x8x32xf32>
    %c0_286 = arith.constant 0 : index
    %c0_287 = arith.constant 0 : index
    %c0_288 = arith.constant 0 : index
    %c160_289 = arith.constant 160 : index
    %222 = vector.load %arg10[%c0_286, %c0_287, %c0_288, %c160_289] : memref<2x8x8x800xf32, #tpu.memory_space<vmem>>, vector<2x8x8x32xf32>
    tpu.vector_store %arg10[%c0_286, %c0_287, %c0_288, %c160_289], %221 {strides = array<i32>} : memref<2x8x8x800xf32, #tpu.memory_space<vmem>>, vector<2x8x8x32xf32>,
    %c0_290 = arith.constant 0 : index
    %c1_291 = arith.constant 1 : index
    %c1_292 = arith.constant 1 : index
    %c0_293 = arith.constant 0 : index
    %223 = vector.load %arg9[%c0_290, %c1_291, %c1_292, %c0_293] : memref<2x12x12x32xf32, #tpu.memory_space<vmem>>, vector<2x8x8x32xf32>
    %c0_294 = arith.constant 0 : index
    %c0_295 = arith.constant 0 : index
    %c0_296 = arith.constant 0 : index
    %c192_297 = arith.constant 192 : index
    %224 = vector.load %arg10[%c0_294, %c0_295, %c0_296, %c192_297] : memref<2x8x8x800xf32, #tpu.memory_space<vmem>>, vector<2x8x8x32xf32>
    tpu.vector_store %arg10[%c0_294, %c0_295, %c0_296, %c192_297], %223 {strides = array<i32>} : memref<2x8x8x800xf32, #tpu.memory_space<vmem>>, vector<2x8x8x32xf32>,
    %c0_298 = arith.constant 0 : index
    %c2_299 = arith.constant 2 : index
    %c1_300 = arith.constant 1 : index
    %c0_301 = arith.constant 0 : index
    %225 = vector.load %arg9[%c0_298, %c2_299, %c1_300, %c0_301] : memref<2x12x12x32xf32, #tpu.memory_space<vmem>>, vector<2x8x8x32xf32>
    %c0_302 = arith.constant 0 : index
    %c0_303 = arith.constant 0 : index
    %c0_304 = arith.constant 0 : index
    %c224_305 = arith.constant 224 : index
    %226 = vector.load %arg10[%c0_302, %c0_303, %c0_304, %c224_305] : memref<2x8x8x800xf32, #tpu.memory_space<vmem>>, vector<2x8x8x32xf32>
    tpu.vector_store %arg10[%c0_302, %c0_303, %c0_304, %c224_305], %225 {strides = array<i32>} : memref<2x8x8x800xf32, #tpu.memory_space<vmem>>, vector<2x8x8x32xf32>,
    %c0_306 = arith.constant 0 : index
    %c3_307 = arith.constant 3 : index
    %c1_308 = arith.constant 1 : index
    %c0_309 = arith.constant 0 : index
    %227 = vector.load %arg9[%c0_306, %c3_307, %c1_308, %c0_309] : memref<2x12x12x32xf32, #tpu.memory_space<vmem>>, vector<2x8x8x32xf32>
    %c0_310 = arith.constant 0 : index
    %c0_311 = arith.constant 0 : index
    %c0_312 = arith.constant 0 : index
    %c256_313 = arith.constant 256 : index
    %228 = vector.load %arg10[%c0_310, %c0_311, %c0_312, %c256_313] : memref<2x8x8x800xf32, #tpu.memory_space<vmem>>, vector<2x8x8x32xf32>
    tpu.vector_store %arg10[%c0_310, %c0_311, %c0_312, %c256_313], %227 {strides = array<i32>} : memref<2x8x8x800xf32, #tpu.memory_space<vmem>>, vector<2x8x8x32xf32>,
    %c0_314 = arith.constant 0 : index
    %c4_315 = arith.constant 4 : index
    %c1_316 = arith.constant 1 : index
    %c0_317 = arith.constant 0 : index
    %229 = vector.load %arg9[%c0_314, %c4_315, %c1_316, %c0_317] : memref<2x12x12x32xf32, #tpu.memory_space<vmem>>, vector<2x8x8x32xf32>
    %c0_318 = arith.constant 0 : index
    %c0_319 = arith.constant 0 : index
    %c0_320 = arith.constant 0 : index
    %c288_321 = arith.constant 288 : index
    %230 = vector.load %arg10[%c0_318, %c0_319, %c0_320, %c288_321] : memref<2x8x8x800xf32, #tpu.memory_space<vmem>>, vector<2x8x8x32xf32>
    tpu.vector_store %arg10[%c0_318, %c0_319, %c0_320, %c288_321], %229 {strides = array<i32>} : memref<2x8x8x800xf32, #tpu.memory_space<vmem>>, vector<2x8x8x32xf32>,
    %c0_322 = arith.constant 0 : index
    %c0_323 = arith.constant 0 : index
    %c2_324 = arith.constant 2 : index
    %c0_325 = arith.constant 0 : index
    %231 = vector.load %arg9[%c0_322, %c0_323, %c2_324, %c0_325] : memref<2x12x12x32xf32, #tpu.memory_space<vmem>>, vector<2x8x8x32xf32>
    %c0_326 = arith.constant 0 : index
    %c0_327 = arith.constant 0 : index
    %c0_328 = arith.constant 0 : index
    %c320_329 = arith.constant 320 : index
    %232 = vector.load %arg10[%c0_326, %c0_327, %c0_328, %c320_329] : memref<2x8x8x800xf32, #tpu.memory_space<vmem>>, vector<2x8x8x32xf32>
    tpu.vector_store %arg10[%c0_326, %c0_327, %c0_328, %c320_329], %231 {strides = array<i32>} : memref<2x8x8x800xf32, #tpu.memory_space<vmem>>, vector<2x8x8x32xf32>,
    %c0_330 = arith.constant 0 : index
    %c1_331 = arith.constant 1 : index
    %c2_332 = arith.constant 2 : index
    %c0_333 = arith.constant 0 : index
    %233 = vector.load %arg9[%c0_330, %c1_331, %c2_332, %c0_333] : memref<2x12x12x32xf32, #tpu.memory_space<vmem>>, vector<2x8x8x32xf32>
    %c0_334 = arith.constant 0 : index
    %c0_335 = arith.constant 0 : index
    %c0_336 = arith.constant 0 : index
    %c352_337 = arith.constant 352 : index
    %234 = vector.load %arg10[%c0_334, %c0_335, %c0_336, %c352_337] : memref<2x8x8x800xf32, #tpu.memory_space<vmem>>, vector<2x8x8x32xf32>
    tpu.vector_store %arg10[%c0_334, %c0_335, %c0_336, %c352_337], %233 {strides = array<i32>} : memref<2x8x8x800xf32, #tpu.memory_space<vmem>>, vector<2x8x8x32xf32>,
    %c0_338 = arith.constant 0 : index
    %c2_339 = arith.constant 2 : index
    %c2_340 = arith.constant 2 : index
    %c0_341 = arith.constant 0 : index
    %235 = vector.load %arg9[%c0_338, %c2_339, %c2_340, %c0_341] : memref<2x12x12x32xf32, #tpu.memory_space<vmem>>, vector<2x8x8x32xf32>
    %c0_342 = arith.constant 0 : index
    %c0_343 = arith.constant 0 : index
    %c0_344 = arith.constant 0 : index
    %c384_345 = arith.constant 384 : index
    %236 = vector.load %arg10[%c0_342, %c0_343, %c0_344, %c384_345] : memref<2x8x8x800xf32, #tpu.memory_space<vmem>>, vector<2x8x8x32xf32>
    tpu.vector_store %arg10[%c0_342, %c0_343, %c0_344, %c384_345], %235 {strides = array<i32>} : memref<2x8x8x800xf32, #tpu.memory_space<vmem>>, vector<2x8x8x32xf32>,
    %c0_346 = arith.constant 0 : index
    %c3_347 = arith.constant 3 : index
    %c2_348 = arith.constant 2 : index
    %c0_349 = arith.constant 0 : index
    %237 = vector.load %arg9[%c0_346, %c3_347, %c2_348, %c0_349] : memref<2x12x12x32xf32, #tpu.memory_space<vmem>>, vector<2x8x8x32xf32>
    %c0_350 = arith.constant 0 : index
    %c0_351 = arith.constant 0 : index
    %c0_352 = arith.constant 0 : index
    %c416_353 = arith.constant 416 : index
    %238 = vector.load %arg10[%c0_350, %c0_351, %c0_352, %c416_353] : memref<2x8x8x800xf32, #tpu.memory_space<vmem>>, vector<2x8x8x32xf32>
    tpu.vector_store %arg10[%c0_350, %c0_351, %c0_352, %c416_353], %237 {strides = array<i32>} : memref<2x8x8x800xf32, #tpu.memory_space<vmem>>, vector<2x8x8x32xf32>,
    %c0_354 = arith.constant 0 : index
    %c4_355 = arith.constant 4 : index
    %c2_356 = arith.constant 2 : index
    %c0_357 = arith.constant 0 : index
    %239 = vector.load %arg9[%c0_354, %c4_355, %c2_356, %c0_357] : memref<2x12x12x32xf32, #tpu.memory_space<vmem>>, vector<2x8x8x32xf32>
    %c0_358 = arith.constant 0 : index
    %c0_359 = arith.constant 0 : index
    %c0_360 = arith.constant 0 : index
    %c448_361 = arith.constant 448 : index
    %240 = vector.load %arg10[%c0_358, %c0_359, %c0_360, %c448_361] : memref<2x8x8x800xf32, #tpu.memory_space<vmem>>, vector<2x8x8x32xf32>
    tpu.vector_store %arg10[%c0_358, %c0_359, %c0_360, %c448_361], %239 {strides = array<i32>} : memref<2x8x8x800xf32, #tpu.memory_space<vmem>>, vector<2x8x8x32xf32>,
    %c0_362 = arith.constant 0 : index
    %c0_363 = arith.constant 0 : index
    %c3_364 = arith.constant 3 : index
    %c0_365 = arith.constant 0 : index
    %241 = vector.load %arg9[%c0_362, %c0_363, %c3_364, %c0_365] : memref<2x12x12x32xf32, #tpu.memory_space<vmem>>, vector<2x8x8x32xf32>
    %c0_366 = arith.constant 0 : index
    %c0_367 = arith.constant 0 : index
    %c0_368 = arith.constant 0 : index
    %c480_369 = arith.constant 480 : index
    %242 = vector.load %arg10[%c0_366, %c0_367, %c0_368, %c480_369] : memref<2x8x8x800xf32, #tpu.memory_space<vmem>>, vector<2x8x8x32xf32>
    tpu.vector_store %arg10[%c0_366, %c0_367, %c0_368, %c480_369], %241 {strides = array<i32>} : memref<2x8x8x800xf32, #tpu.memory_space<vmem>>, vector<2x8x8x32xf32>,
    %c0_370 = arith.constant 0 : index
    %c1_371 = arith.constant 1 : index
    %c3_372 = arith.constant 3 : index
    %c0_373 = arith.constant 0 : index
    %243 = vector.load %arg9[%c0_370, %c1_371, %c3_372, %c0_373] : memref<2x12x12x32xf32, #tpu.memory_space<vmem>>, vector<2x8x8x32xf32>
    %c0_374 = arith.constant 0 : index
    %c0_375 = arith.constant 0 : index
    %c0_376 = arith.constant 0 : index
    %c512_377 = arith.constant 512 : index
    %244 = vector.load %arg10[%c0_374, %c0_375, %c0_376, %c512_377] : memref<2x8x8x800xf32, #tpu.memory_space<vmem>>, vector<2x8x8x32xf32>
    tpu.vector_store %arg10[%c0_374, %c0_375, %c0_376, %c512_377], %243 {strides = array<i32>} : memref<2x8x8x800xf32, #tpu.memory_space<vmem>>, vector<2x8x8x32xf32>,
    %c0_378 = arith.constant 0 : index
    %c2_379 = arith.constant 2 : index
    %c3_380 = arith.constant 3 : index
    %c0_381 = arith.constant 0 : index
    %245 = vector.load %arg9[%c0_378, %c2_379, %c3_380, %c0_381] : memref<2x12x12x32xf32, #tpu.memory_space<vmem>>, vector<2x8x8x32xf32>
    %c0_382 = arith.constant 0 : index
    %c0_383 = arith.constant 0 : index
    %c0_384 = arith.constant 0 : index
    %c544_385 = arith.constant 544 : index
    %246 = vector.load %arg10[%c0_382, %c0_383, %c0_384, %c544_385] : memref<2x8x8x800xf32, #tpu.memory_space<vmem>>, vector<2x8x8x32xf32>
    tpu.vector_store %arg10[%c0_382, %c0_383, %c0_384, %c544_385], %245 {strides = array<i32>} : memref<2x8x8x800xf32, #tpu.memory_space<vmem>>, vector<2x8x8x32xf32>,
    %c0_386 = arith.constant 0 : index
    %c3_387 = arith.constant 3 : index
    %c3_388 = arith.constant 3 : index
    %c0_389 = arith.constant 0 : index
    %247 = vector.load %arg9[%c0_386, %c3_387, %c3_388, %c0_389] : memref<2x12x12x32xf32, #tpu.memory_space<vmem>>, vector<2x8x8x32xf32>
    %c0_390 = arith.constant 0 : index
    %c0_391 = arith.constant 0 : index
    %c0_392 = arith.constant 0 : index
    %c576_393 = arith.constant 576 : index
    %248 = vector.load %arg10[%c0_390, %c0_391, %c0_392, %c576_393] : memref<2x8x8x800xf32, #tpu.memory_space<vmem>>, vector<2x8x8x32xf32>
    tpu.vector_store %arg10[%c0_390, %c0_391, %c0_392, %c576_393], %247 {strides = array<i32>} : memref<2x8x8x800xf32, #tpu.memory_space<vmem>>, vector<2x8x8x32xf32>,
    %c0_394 = arith.constant 0 : index
    %c4_395 = arith.constant 4 : index
    %c3_396 = arith.constant 3 : index
    %c0_397 = arith.constant 0 : index
    %249 = vector.load %arg9[%c0_394, %c4_395, %c3_396, %c0_397] : memref<2x12x12x32xf32, #tpu.memory_space<vmem>>, vector<2x8x8x32xf32>
    %c0_398 = arith.constant 0 : index
    %c0_399 = arith.constant 0 : index
    %c0_400 = arith.constant 0 : index
    %c608_401 = arith.constant 608 : index
    %250 = vector.load %arg10[%c0_398, %c0_399, %c0_400, %c608_401] : memref<2x8x8x800xf32, #tpu.memory_space<vmem>>, vector<2x8x8x32xf32>
    tpu.vector_store %arg10[%c0_398, %c0_399, %c0_400, %c608_401], %249 {strides = array<i32>} : memref<2x8x8x800xf32, #tpu.memory_space<vmem>>, vector<2x8x8x32xf32>,
    %c0_402 = arith.constant 0 : index
    %c0_403 = arith.constant 0 : index
    %c4_404 = arith.constant 4 : index
    %c0_405 = arith.constant 0 : index
    %251 = vector.load %arg9[%c0_402, %c0_403, %c4_404, %c0_405] : memref<2x12x12x32xf32, #tpu.memory_space<vmem>>, vector<2x8x8x32xf32>
    %c0_406 = arith.constant 0 : index
    %c0_407 = arith.constant 0 : index
    %c0_408 = arith.constant 0 : index
    %c640_409 = arith.constant 640 : index
    %252 = vector.load %arg10[%c0_406, %c0_407, %c0_408, %c640_409] : memref<2x8x8x800xf32, #tpu.memory_space<vmem>>, vector<2x8x8x32xf32>
    tpu.vector_store %arg10[%c0_406, %c0_407, %c0_408, %c640_409], %251 {strides = array<i32>} : memref<2x8x8x800xf32, #tpu.memory_space<vmem>>, vector<2x8x8x32xf32>,
    %c0_410 = arith.constant 0 : index
    %c1_411 = arith.constant 1 : index
    %c4_412 = arith.constant 4 : index
    %c0_413 = arith.constant 0 : index
    %253 = vector.load %arg9[%c0_410, %c1_411, %c4_412, %c0_413] : memref<2x12x12x32xf32, #tpu.memory_space<vmem>>, vector<2x8x8x32xf32>
    %c0_414 = arith.constant 0 : index
    %c0_415 = arith.constant 0 : index
    %c0_416 = arith.constant 0 : index
    %c672_417 = arith.constant 672 : index
    %254 = vector.load %arg10[%c0_414, %c0_415, %c0_416, %c672_417] : memref<2x8x8x800xf32, #tpu.memory_space<vmem>>, vector<2x8x8x32xf32>
    tpu.vector_store %arg10[%c0_414, %c0_415, %c0_416, %c672_417], %253 {strides = array<i32>} : memref<2x8x8x800xf32, #tpu.memory_space<vmem>>, vector<2x8x8x32xf32>,
    %c0_418 = arith.constant 0 : index
    %c2_419 = arith.constant 2 : index
    %c4_420 = arith.constant 4 : index
    %c0_421 = arith.constant 0 : index
    %255 = vector.load %arg9[%c0_418, %c2_419, %c4_420, %c0_421] : memref<2x12x12x32xf32, #tpu.memory_space<vmem>>, vector<2x8x8x32xf32>
    %c0_422 = arith.constant 0 : index
    %c0_423 = arith.constant 0 : index
    %c0_424 = arith.constant 0 : index
    %c704_425 = arith.constant 704 : index
    %256 = vector.load %arg10[%c0_422, %c0_423, %c0_424, %c704_425] : memref<2x8x8x800xf32, #tpu.memory_space<vmem>>, vector<2x8x8x32xf32>
    tpu.vector_store %arg10[%c0_422, %c0_423, %c0_424, %c704_425], %255 {strides = array<i32>} : memref<2x8x8x800xf32, #tpu.memory_space<vmem>>, vector<2x8x8x32xf32>,
    %c0_426 = arith.constant 0 : index
    %c3_427 = arith.constant 3 : index
    %c4_428 = arith.constant 4 : index
    %c0_429 = arith.constant 0 : index
    %257 = vector.load %arg9[%c0_426, %c3_427, %c4_428, %c0_429] : memref<2x12x12x32xf32, #tpu.memory_space<vmem>>, vector<2x8x8x32xf32>
    %c0_430 = arith.constant 0 : index
    %c0_431 = arith.constant 0 : index
    %c0_432 = arith.constant 0 : index
    %c736_433 = arith.constant 736 : index
    %258 = vector.load %arg10[%c0_430, %c0_431, %c0_432, %c736_433] : memref<2x8x8x800xf32, #tpu.memory_space<vmem>>, vector<2x8x8x32xf32>
    tpu.vector_store %arg10[%c0_430, %c0_431, %c0_432, %c736_433], %257 {strides = array<i32>} : memref<2x8x8x800xf32, #tpu.memory_space<vmem>>, vector<2x8x8x32xf32>,
    %c0_434 = arith.constant 0 : index
    %c4_435 = arith.constant 4 : index
    %c4_436 = arith.constant 4 : index
    %c0_437 = arith.constant 0 : index
    %259 = vector.load %arg9[%c0_434, %c4_435, %c4_436, %c0_437] : memref<2x12x12x32xf32, #tpu.memory_space<vmem>>, vector<2x8x8x32xf32>
    %c0_438 = arith.constant 0 : index
    %c0_439 = arith.constant 0 : index
    %c0_440 = arith.constant 0 : index
    %c768 = arith.constant 768 : index
    %260 = vector.load %arg10[%c0_438, %c0_439, %c0_440, %c768] : memref<2x8x8x800xf32, #tpu.memory_space<vmem>>, vector<2x8x8x32xf32>
    tpu.vector_store %arg10[%c0_438, %c0_439, %c0_440, %c768], %259 {strides = array<i32>} : memref<2x8x8x800xf32, #tpu.memory_space<vmem>>, vector<2x8x8x32xf32>,
    %c0_441 = arith.constant 0 : index
    %c0_442 = arith.constant 0 : index
    %c0_443 = arith.constant 0 : index
    %c0_444 = arith.constant 0 : index
    %261 = vector.load %arg10[%c0_441, %c0_442, %c0_443, %c0_444] : memref<2x8x8x800xf32, #tpu.memory_space<vmem>>, vector<2x8x8x800xf32>
    %262 = vector.shape_cast %261 : vector<2x8x8x800xf32> to vector<128x800xf32>
    %c0_445 = arith.constant 0 : index
    %c0_446 = arith.constant 0 : index
    %263 = vector.load %arg3[%c0_445, %c0_446] : memref<800x64xf32, #tpu.memory_space<vmem>>, vector<800x64xf32>
    %cst_447 = arith.constant dense<0.000000e+00> : vector<128x64xf32>
    %264 = tpu.matmul %262, %263, %cst_447 {dimension_numbers = #tpu.dot_dimension_numbers<[1], [0], [0], [1], [0, 0, 1, 1], [], []>} : vector<128x800xf32>, vector<800x64xf32>, vector<128x64xf32> -> vector<128x64xf32>
    %265 = vector.shape_cast %264 : vector<128x64xf32> to vector<2x8x8x64xf32>
    %266 = vector.extract_strided_slice %265 {offsets = [0, 0, 0, 0], sizes = [2, 1, 8, 64], strides = [1, 1, 1, 1]} : vector<2x8x8x64xf32> to vector<2x1x8x64xf32>
    %267 = vector.shape_cast %266 : vector<2x1x8x64xf32> to vector<2x8x64xf32>
    %268 = vector.extract_strided_slice %265 {offsets = [0, 1, 0, 0], sizes = [2, 1, 8, 64], strides = [1, 1, 1, 1]} : vector<2x8x8x64xf32> to vector<2x1x8x64xf32>
    %269 = vector.shape_cast %268 : vector<2x1x8x64xf32> to vector<2x8x64xf32>
    %270 = arith.maximumf %267, %269 : vector<2x8x64xf32>
    %271 = vector.extract_strided_slice %270 {offsets = [0, 0, 0], sizes = [2, 1, 64], strides = [1, 1, 1]} : vector<2x8x64xf32> to vector<2x1x64xf32>
    %272 = vector.shape_cast %271 : vector<2x1x64xf32> to vector<2x64xf32>
    %273 = vector.extract_strided_slice %270 {offsets = [0, 1, 0], sizes = [2, 1, 64], strides = [1, 1, 1]} : vector<2x8x64xf32> to vector<2x1x64xf32>
    %274 = vector.shape_cast %273 : vector<2x1x64xf32> to vector<2x64xf32>
    %275 = arith.maximumf %272, %274 : vector<2x64xf32>
    %c0_448 = arith.constant 0 : index
    %c0_449 = arith.constant 0 : index
    %276 = vector.load %arg11[%c0_448, %c0_449] : memref<2x1024xf32, #tpu.memory_space<vmem>>, vector<2x64xf32>
    tpu.vector_store %arg11[%c0_448, %c0_449], %275 {strides = array<i32>} : memref<2x1024xf32, #tpu.memory_space<vmem>>, vector<2x64xf32>,
    %277 = vector.extract_strided_slice %270 {offsets = [0, 2, 0], sizes = [2, 1, 64], strides = [1, 1, 1]} : vector<2x8x64xf32> to vector<2x1x64xf32>
    %278 = vector.shape_cast %277 : vector<2x1x64xf32> to vector<2x64xf32>
    %279 = vector.extract_strided_slice %270 {offsets = [0, 3, 0], sizes = [2, 1, 64], strides = [1, 1, 1]} : vector<2x8x64xf32> to vector<2x1x64xf32>
    %280 = vector.shape_cast %279 : vector<2x1x64xf32> to vector<2x64xf32>
    %281 = arith.maximumf %278, %280 : vector<2x64xf32>
    %c0_450 = arith.constant 0 : index
    %c64_451 = arith.constant 64 : index
    %282 = vector.load %arg11[%c0_450, %c64_451] : memref<2x1024xf32, #tpu.memory_space<vmem>>, vector<2x64xf32>
    tpu.vector_store %arg11[%c0_450, %c64_451], %281 {strides = array<i32>} : memref<2x1024xf32, #tpu.memory_space<vmem>>, vector<2x64xf32>,
    %283 = vector.extract_strided_slice %270 {offsets = [0, 4, 0], sizes = [2, 1, 64], strides = [1, 1, 1]} : vector<2x8x64xf32> to vector<2x1x64xf32>
    %284 = vector.shape_cast %283 : vector<2x1x64xf32> to vector<2x64xf32>
    %285 = vector.extract_strided_slice %270 {offsets = [0, 5, 0], sizes = [2, 1, 64], strides = [1, 1, 1]} : vector<2x8x64xf32> to vector<2x1x64xf32>
    %286 = vector.shape_cast %285 : vector<2x1x64xf32> to vector<2x64xf32>
    %287 = arith.maximumf %284, %286 : vector<2x64xf32>
    %c0_452 = arith.constant 0 : index
    %c128_453 = arith.constant 128 : index
    %288 = vector.load %arg11[%c0_452, %c128_453] : memref<2x1024xf32, #tpu.memory_space<vmem>>, vector<2x64xf32>
    tpu.vector_store %arg11[%c0_452, %c128_453], %287 {strides = array<i32>} : memref<2x1024xf32, #tpu.memory_space<vmem>>, vector<2x64xf32>,
    %289 = vector.extract_strided_slice %270 {offsets = [0, 6, 0], sizes = [2, 1, 64], strides = [1, 1, 1]} : vector<2x8x64xf32> to vector<2x1x64xf32>
    %290 = vector.shape_cast %289 : vector<2x1x64xf32> to vector<2x64xf32>
    %291 = vector.extract_strided_slice %270 {offsets = [0, 7, 0], sizes = [2, 1, 64], strides = [1, 1, 1]} : vector<2x8x64xf32> to vector<2x1x64xf32>
    %292 = vector.shape_cast %291 : vector<2x1x64xf32> to vector<2x64xf32>
    %293 = arith.maximumf %290, %292 : vector<2x64xf32>
    %c0_454 = arith.constant 0 : index
    %c192_455 = arith.constant 192 : index
    %294 = vector.load %arg11[%c0_454, %c192_455] : memref<2x1024xf32, #tpu.memory_space<vmem>>, vector<2x64xf32>
    tpu.vector_store %arg11[%c0_454, %c192_455], %293 {strides = array<i32>} : memref<2x1024xf32, #tpu.memory_space<vmem>>, vector<2x64xf32>,
    %295 = vector.extract_strided_slice %265 {offsets = [0, 2, 0, 0], sizes = [2, 1, 8, 64], strides = [1, 1, 1, 1]} : vector<2x8x8x64xf32> to vector<2x1x8x64xf32>
    %296 = vector.shape_cast %295 : vector<2x1x8x64xf32> to vector<2x8x64xf32>
    %297 = vector.extract_strided_slice %265 {offsets = [0, 3, 0, 0], sizes = [2, 1, 8, 64], strides = [1, 1, 1, 1]} : vector<2x8x8x64xf32> to vector<2x1x8x64xf32>
    %298 = vector.shape_cast %297 : vector<2x1x8x64xf32> to vector<2x8x64xf32>
    %299 = arith.maximumf %296, %298 : vector<2x8x64xf32>
    %300 = vector.extract_strided_slice %299 {offsets = [0, 0, 0], sizes = [2, 1, 64], strides = [1, 1, 1]} : vector<2x8x64xf32> to vector<2x1x64xf32>
    %301 = vector.shape_cast %300 : vector<2x1x64xf32> to vector<2x64xf32>
    %302 = vector.extract_strided_slice %299 {offsets = [0, 1, 0], sizes = [2, 1, 64], strides = [1, 1, 1]} : vector<2x8x64xf32> to vector<2x1x64xf32>
    %303 = vector.shape_cast %302 : vector<2x1x64xf32> to vector<2x64xf32>
    %304 = arith.maximumf %301, %303 : vector<2x64xf32>
    %c0_456 = arith.constant 0 : index
    %c256_457 = arith.constant 256 : index
    %305 = vector.load %arg11[%c0_456, %c256_457] : memref<2x1024xf32, #tpu.memory_space<vmem>>, vector<2x64xf32>
    tpu.vector_store %arg11[%c0_456, %c256_457], %304 {strides = array<i32>} : memref<2x1024xf32, #tpu.memory_space<vmem>>, vector<2x64xf32>,
    %306 = vector.extract_strided_slice %299 {offsets = [0, 2, 0], sizes = [2, 1, 64], strides = [1, 1, 1]} : vector<2x8x64xf32> to vector<2x1x64xf32>
    %307 = vector.shape_cast %306 : vector<2x1x64xf32> to vector<2x64xf32>
    %308 = vector.extract_strided_slice %299 {offsets = [0, 3, 0], sizes = [2, 1, 64], strides = [1, 1, 1]} : vector<2x8x64xf32> to vector<2x1x64xf32>
    %309 = vector.shape_cast %308 : vector<2x1x64xf32> to vector<2x64xf32>
    %310 = arith.maximumf %307, %309 : vector<2x64xf32>
    %c0_458 = arith.constant 0 : index
    %c320_459 = arith.constant 320 : index
    %311 = vector.load %arg11[%c0_458, %c320_459] : memref<2x1024xf32, #tpu.memory_space<vmem>>, vector<2x64xf32>
    tpu.vector_store %arg11[%c0_458, %c320_459], %310 {strides = array<i32>} : memref<2x1024xf32, #tpu.memory_space<vmem>>, vector<2x64xf32>,
    %312 = vector.extract_strided_slice %299 {offsets = [0, 4, 0], sizes = [2, 1, 64], strides = [1, 1, 1]} : vector<2x8x64xf32> to vector<2x1x64xf32>
    %313 = vector.shape_cast %312 : vector<2x1x64xf32> to vector<2x64xf32>
    %314 = vector.extract_strided_slice %299 {offsets = [0, 5, 0], sizes = [2, 1, 64], strides = [1, 1, 1]} : vector<2x8x64xf32> to vector<2x1x64xf32>
    %315 = vector.shape_cast %314 : vector<2x1x64xf32> to vector<2x64xf32>
    %316 = arith.maximumf %313, %315 : vector<2x64xf32>
    %c0_460 = arith.constant 0 : index
    %c384_461 = arith.constant 384 : index
    %317 = vector.load %arg11[%c0_460, %c384_461] : memref<2x1024xf32, #tpu.memory_space<vmem>>, vector<2x64xf32>
    tpu.vector_store %arg11[%c0_460, %c384_461], %316 {strides = array<i32>} : memref<2x1024xf32, #tpu.memory_space<vmem>>, vector<2x64xf32>,
    %318 = vector.extract_strided_slice %299 {offsets = [0, 6, 0], sizes = [2, 1, 64], strides = [1, 1, 1]} : vector<2x8x64xf32> to vector<2x1x64xf32>
    %319 = vector.shape_cast %318 : vector<2x1x64xf32> to vector<2x64xf32>
    %320 = vector.extract_strided_slice %299 {offsets = [0, 7, 0], sizes = [2, 1, 64], strides = [1, 1, 1]} : vector<2x8x64xf32> to vector<2x1x64xf32>
    %321 = vector.shape_cast %320 : vector<2x1x64xf32> to vector<2x64xf32>
    %322 = arith.maximumf %319, %321 : vector<2x64xf32>
    %c0_462 = arith.constant 0 : index
    %c448_463 = arith.constant 448 : index
    %323 = vector.load %arg11[%c0_462, %c448_463] : memref<2x1024xf32, #tpu.memory_space<vmem>>, vector<2x64xf32>
    tpu.vector_store %arg11[%c0_462, %c448_463], %322 {strides = array<i32>} : memref<2x1024xf32, #tpu.memory_space<vmem>>, vector<2x64xf32>,
    %324 = vector.extract_strided_slice %265 {offsets = [0, 4, 0, 0], sizes = [2, 1, 8, 64], strides = [1, 1, 1, 1]} : vector<2x8x8x64xf32> to vector<2x1x8x64xf32>
    %325 = vector.shape_cast %324 : vector<2x1x8x64xf32> to vector<2x8x64xf32>
    %326 = vector.extract_strided_slice %265 {offsets = [0, 5, 0, 0], sizes = [2, 1, 8, 64], strides = [1, 1, 1, 1]} : vector<2x8x8x64xf32> to vector<2x1x8x64xf32>
    %327 = vector.shape_cast %326 : vector<2x1x8x64xf32> to vector<2x8x64xf32>
    %328 = arith.maximumf %325, %327 : vector<2x8x64xf32>
    %329 = vector.extract_strided_slice %328 {offsets = [0, 0, 0], sizes = [2, 1, 64], strides = [1, 1, 1]} : vector<2x8x64xf32> to vector<2x1x64xf32>
    %330 = vector.shape_cast %329 : vector<2x1x64xf32> to vector<2x64xf32>
    %331 = vector.extract_strided_slice %328 {offsets = [0, 1, 0], sizes = [2, 1, 64], strides = [1, 1, 1]} : vector<2x8x64xf32> to vector<2x1x64xf32>
    %332 = vector.shape_cast %331 : vector<2x1x64xf32> to vector<2x64xf32>
    %333 = arith.maximumf %330, %332 : vector<2x64xf32>
    %c0_464 = arith.constant 0 : index
    %c512_465 = arith.constant 512 : index
    %334 = vector.load %arg11[%c0_464, %c512_465] : memref<2x1024xf32, #tpu.memory_space<vmem>>, vector<2x64xf32>
    tpu.vector_store %arg11[%c0_464, %c512_465], %333 {strides = array<i32>} : memref<2x1024xf32, #tpu.memory_space<vmem>>, vector<2x64xf32>,
    %335 = vector.extract_strided_slice %328 {offsets = [0, 2, 0], sizes = [2, 1, 64], strides = [1, 1, 1]} : vector<2x8x64xf32> to vector<2x1x64xf32>
    %336 = vector.shape_cast %335 : vector<2x1x64xf32> to vector<2x64xf32>
    %337 = vector.extract_strided_slice %328 {offsets = [0, 3, 0], sizes = [2, 1, 64], strides = [1, 1, 1]} : vector<2x8x64xf32> to vector<2x1x64xf32>
    %338 = vector.shape_cast %337 : vector<2x1x64xf32> to vector<2x64xf32>
    %339 = arith.maximumf %336, %338 : vector<2x64xf32>
    %c0_466 = arith.constant 0 : index
    %c576_467 = arith.constant 576 : index
    %340 = vector.load %arg11[%c0_466, %c576_467] : memref<2x1024xf32, #tpu.memory_space<vmem>>, vector<2x64xf32>
    tpu.vector_store %arg11[%c0_466, %c576_467], %339 {strides = array<i32>} : memref<2x1024xf32, #tpu.memory_space<vmem>>, vector<2x64xf32>,
    %341 = vector.extract_strided_slice %328 {offsets = [0, 4, 0], sizes = [2, 1, 64], strides = [1, 1, 1]} : vector<2x8x64xf32> to vector<2x1x64xf32>
    %342 = vector.shape_cast %341 : vector<2x1x64xf32> to vector<2x64xf32>
    %343 = vector.extract_strided_slice %328 {offsets = [0, 5, 0], sizes = [2, 1, 64], strides = [1, 1, 1]} : vector<2x8x64xf32> to vector<2x1x64xf32>
    %344 = vector.shape_cast %343 : vector<2x1x64xf32> to vector<2x64xf32>
    %345 = arith.maximumf %342, %344 : vector<2x64xf32>
    %c0_468 = arith.constant 0 : index
    %c640_469 = arith.constant 640 : index
    %346 = vector.load %arg11[%c0_468, %c640_469] : memref<2x1024xf32, #tpu.memory_space<vmem>>, vector<2x64xf32>
    tpu.vector_store %arg11[%c0_468, %c640_469], %345 {strides = array<i32>} : memref<2x1024xf32, #tpu.memory_space<vmem>>, vector<2x64xf32>,
    %347 = vector.extract_strided_slice %328 {offsets = [0, 6, 0], sizes = [2, 1, 64], strides = [1, 1, 1]} : vector<2x8x64xf32> to vector<2x1x64xf32>
    %348 = vector.shape_cast %347 : vector<2x1x64xf32> to vector<2x64xf32>
    %349 = vector.extract_strided_slice %328 {offsets = [0, 7, 0], sizes = [2, 1, 64], strides = [1, 1, 1]} : vector<2x8x64xf32> to vector<2x1x64xf32>
    %350 = vector.shape_cast %349 : vector<2x1x64xf32> to vector<2x64xf32>
    %351 = arith.maximumf %348, %350 : vector<2x64xf32>
    %c0_470 = arith.constant 0 : index
    %c704_471 = arith.constant 704 : index
    %352 = vector.load %arg11[%c0_470, %c704_471] : memref<2x1024xf32, #tpu.memory_space<vmem>>, vector<2x64xf32>
    tpu.vector_store %arg11[%c0_470, %c704_471], %351 {strides = array<i32>} : memref<2x1024xf32, #tpu.memory_space<vmem>>, vector<2x64xf32>,
    %353 = vector.extract_strided_slice %265 {offsets = [0, 6, 0, 0], sizes = [2, 1, 8, 64], strides = [1, 1, 1, 1]} : vector<2x8x8x64xf32> to vector<2x1x8x64xf32>
    %354 = vector.shape_cast %353 : vector<2x1x8x64xf32> to vector<2x8x64xf32>
    %355 = vector.extract_strided_slice %265 {offsets = [0, 7, 0, 0], sizes = [2, 1, 8, 64], strides = [1, 1, 1, 1]} : vector<2x8x8x64xf32> to vector<2x1x8x64xf32>
    %356 = vector.shape_cast %355 : vector<2x1x8x64xf32> to vector<2x8x64xf32>
    %357 = arith.maximumf %354, %356 : vector<2x8x64xf32>
    %358 = vector.extract_strided_slice %357 {offsets = [0, 0, 0], sizes = [2, 1, 64], strides = [1, 1, 1]} : vector<2x8x64xf32> to vector<2x1x64xf32>
    %359 = vector.shape_cast %358 : vector<2x1x64xf32> to vector<2x64xf32>
    %360 = vector.extract_strided_slice %357 {offsets = [0, 1, 0], sizes = [2, 1, 64], strides = [1, 1, 1]} : vector<2x8x64xf32> to vector<2x1x64xf32>
    %361 = vector.shape_cast %360 : vector<2x1x64xf32> to vector<2x64xf32>
    %362 = arith.maximumf %359, %361 : vector<2x64xf32>
    %c0_472 = arith.constant 0 : index
    %c768_473 = arith.constant 768 : index
    %363 = vector.load %arg11[%c0_472, %c768_473] : memref<2x1024xf32, #tpu.memory_space<vmem>>, vector<2x64xf32>
    tpu.vector_store %arg11[%c0_472, %c768_473], %362 {strides = array<i32>} : memref<2x1024xf32, #tpu.memory_space<vmem>>, vector<2x64xf32>,
    %364 = vector.extract_strided_slice %357 {offsets = [0, 2, 0], sizes = [2, 1, 64], strides = [1, 1, 1]} : vector<2x8x64xf32> to vector<2x1x64xf32>
    %365 = vector.shape_cast %364 : vector<2x1x64xf32> to vector<2x64xf32>
    %366 = vector.extract_strided_slice %357 {offsets = [0, 3, 0], sizes = [2, 1, 64], strides = [1, 1, 1]} : vector<2x8x64xf32> to vector<2x1x64xf32>
    %367 = vector.shape_cast %366 : vector<2x1x64xf32> to vector<2x64xf32>
    %368 = arith.maximumf %365, %367 : vector<2x64xf32>
    %c0_474 = arith.constant 0 : index
    %c832 = arith.constant 832 : index
    %369 = vector.load %arg11[%c0_474, %c832] : memref<2x1024xf32, #tpu.memory_space<vmem>>, vector<2x64xf32>
    tpu.vector_store %arg11[%c0_474, %c832], %368 {strides = array<i32>} : memref<2x1024xf32, #tpu.memory_space<vmem>>, vector<2x64xf32>,
    %370 = vector.extract_strided_slice %357 {offsets = [0, 4, 0], sizes = [2, 1, 64], strides = [1, 1, 1]} : vector<2x8x64xf32> to vector<2x1x64xf32>
    %371 = vector.shape_cast %370 : vector<2x1x64xf32> to vector<2x64xf32>
    %372 = vector.extract_strided_slice %357 {offsets = [0, 5, 0], sizes = [2, 1, 64], strides = [1, 1, 1]} : vector<2x8x64xf32> to vector<2x1x64xf32>
    %373 = vector.shape_cast %372 : vector<2x1x64xf32> to vector<2x64xf32>
    %374 = arith.maximumf %371, %373 : vector<2x64xf32>
    %c0_475 = arith.constant 0 : index
    %c896 = arith.constant 896 : index
    %375 = vector.load %arg11[%c0_475, %c896] : memref<2x1024xf32, #tpu.memory_space<vmem>>, vector<2x64xf32>
    tpu.vector_store %arg11[%c0_475, %c896], %374 {strides = array<i32>} : memref<2x1024xf32, #tpu.memory_space<vmem>>, vector<2x64xf32>,
    %376 = vector.extract_strided_slice %357 {offsets = [0, 6, 0], sizes = [2, 1, 64], strides = [1, 1, 1]} : vector<2x8x64xf32> to vector<2x1x64xf32>
    %377 = vector.shape_cast %376 : vector<2x1x64xf32> to vector<2x64xf32>
    %378 = vector.extract_strided_slice %357 {offsets = [0, 7, 0], sizes = [2, 1, 64], strides = [1, 1, 1]} : vector<2x8x64xf32> to vector<2x1x64xf32>
    %379 = vector.shape_cast %378 : vector<2x1x64xf32> to vector<2x64xf32>
    %380 = arith.maximumf %377, %379 : vector<2x64xf32>
    %c0_476 = arith.constant 0 : index
    %c960 = arith.constant 960 : index
    %381 = vector.load %arg11[%c0_476, %c960] : memref<2x1024xf32, #tpu.memory_space<vmem>>, vector<2x64xf32>
    tpu.vector_store %arg11[%c0_476, %c960], %380 {strides = array<i32>} : memref<2x1024xf32, #tpu.memory_space<vmem>>, vector<2x64xf32>,
    %c0_477 = arith.constant 0 : index
    %c0_478 = arith.constant 0 : index
    %382 = vector.load %arg11[%c0_477, %c0_478] : memref<2x1024xf32, #tpu.memory_space<vmem>>, vector<2x1024xf32>
    %c0_479 = arith.constant 0 : index
    %c0_480 = arith.constant 0 : index
    %383 = vector.load %arg4[%c0_479, %c0_480] : memref<1024x10xf32, #tpu.memory_space<vmem>>, vector<1024x10xf32>
    %cst_481 = arith.constant dense<0.000000e+00> : vector<2x10xf32>
    %384 = tpu.matmul %382, %383, %cst_481 {dimension_numbers = #tpu.dot_dimension_numbers<[1], [0], [0], [1], [0, 0, 1, 1], [], []>} : vector<2x1024xf32>, vector<1024x10xf32>, vector<2x10xf32> -> vector<2x10xf32>
    %c0_482 = arith.constant 0 : index
    %c0_483 = arith.constant 0 : index
    %385 = vector.load %arg5[%c0_482, %c0_483] : memref<1x10xf32, #tpu.memory_space<vmem>>, vector<1x10xf32>
    %386 = vector.broadcast %385 : vector<1x10xf32> to vector<2x10xf32>
    %387 = arith.addf %384, %386 : vector<2x10xf32>
    %cst_484 = arith.constant 0.000000e+00 : f32
    %388 = vector.broadcast %cst_484 : f32 to vector<2x10xf32>
    %389 = arith.maximumf %387, %388 : vector<2x10xf32>
    %c0_485 = arith.constant 0 : index
    %c0_486 = arith.constant 0 : index
    %390 = vector.load %arg6[%c0_485, %c0_486] : memref<2x10xf32, #tpu.memory_space<vmem>>, vector<2x10xf32>
    tpu.vector_store %arg6[%c0_485, %c0_486], %389 {strides = array<i32>} : memref<2x10xf32, #tpu.memory_space<vmem>>, vector<2x10xf32>,
    return
  }
  func.func @transform_0(%arg0: i32) -> (i32, i32, i32) {
    %c0_i32 = arith.constant 0 : i32
    %c0_i32_0 = arith.constant 0 : i32
    %c0_i32_1 = arith.constant 0 : i32
    return %arg0, %c0_i32, %c0_i32_0 : i32, i32, i32
  }
  func.func @transform_1(%arg0: i32) -> (i32, i32, i32) {
    %c0_i32 = arith.constant 0 : i32
    %c0_i32_0 = arith.constant 0 : i32
    %c0_i32_1 = arith.constant 0 : i32
    %c0_i32_2 = arith.constant 0 : i32
    return %c0_i32, %c0_i32_0, %c0_i32_1 : i32, i32, i32
  }
  func.func @transform_2(%arg0: i32) -> (i32, i32) {
    %c0_i32 = arith.constant 0 : i32
    %c0_i32_0 = arith.constant 0 : i32
    %c0_i32_1 = arith.constant 0 : i32
    return %c0_i32, %c0_i32_0 : i32, i32
  }
  func.func @transform_3(%arg0: i32) -> (i32, i32) {
    %c0_i32 = arith.constant 0 : i32
    %c0_i32_0 = arith.constant 0 : i32
    %c0_i32_1 = arith.constant 0 : i32
    return %c0_i32, %c0_i32_0 : i32, i32
  }
  func.func @transform_4(%arg0: i32) -> (i32, i32) {
    %c0_i32 = arith.constant 0 : i32
    %c0_i32_0 = arith.constant 0 : i32
    %c0_i32_1 = arith.constant 0 : i32
    return %c0_i32, %c0_i32_0 : i32, i32
  }
  func.func @transform_5(%arg0: i32) -> (i32, i32) {
    %c0_i32 = arith.constant 0 : i32
    %c0_i32_0 = arith.constant 0 : i32
    return %arg0, %c0_i32 : i32, i32
  }
}

</mosaic_0001>

<bundles_post_ra>
// kernel: cnn_forward.1
= control target key start
LH: loop header
LB: loop body
LE: loop exit
PB: predicated region body
PF: predicated region fallthrough
CT: control target
= control target key end

     0   :  { %vm70_vm0 = vcmask 1043456   ;;  %v7939_v7 = vmov 0.0   ;;  %vm7940_vm1 = vmmov 1   ;;  %vm51_vm3 = vcmask 228352   ;;  %s11453_s0 = inlined_call_operand.vmem [shape: f32[2,28,28], index: 0, kind: input, shape index: {}]   ;;  %s11454_s1 = inlined_call_operand.vmem [shape: f32[5,28,768], index: 1, kind: input, shape index: {}]   ;;  %s11455_s2 = inlined_call_operand.vmem [shape: f32[800,64], index: 2, kind: input, shape index: {}]   ;;  %s11456_s3 = inlined_call_operand.vmem [shape: f32[1024,10], index: 3, kind: input, shape index: {}]   ;;  %s11457_s4 = inlined_call_operand.vmem [shape: f32[1,10], index: 4, kind: input, shape index: {}]   ;;  %s11458_s5 = inlined_call_operand.hbm [shape: f32[2,10], index: 5, kind: output, shape index: {}]  }
   0x1   :  { %v28_v0 = vld [vmem:[%s11454_s1 + $0x8] sm:$0xff]  ;;  %v34_v1 = vld [vmem:[%s11454_s1 + $0x38] sm:$0xff]  ;;  %v27_v2 = vld [vmem:[%s11454_s1] sm:$0xff]  ;;  %153 = vmatprep.mubr.f32.mxu0 %v7939_v7  ;;  %171 = vmatprep.mubr.f32.mxu1 %v7939_v7 }
   0x2   :  { %v7365_v3 = vpack.c.bf16 %v34_v1, %v28_v0  ;;  %v33_v4 = vld [vmem:[%s11454_s1 + $0x30] sm:$0xff]  ;;  %v40_v5 = vld [vmem:[%s11454_s1 + $0x68] sm:$0xff]  ;;  %v46_v6 = vld [vmem:[%s11454_s1 + $0x98] sm:$0xf] }
   0x3   :  { %v7367_v8 = vpack.c.bf16 %v33_v4, %v27_v2  ;;  %v7369_v9 = vpack.c.bf16 %v46_v6, %v40_v5  ;;  %vm7996_vm2 = vmpackc.low %vm70_vm0, %vm7940_vm1  ;;  %v39_v11 = vld [vmem:[%s11454_s1 + $0x60] sm:$0xff]  ;;  %v45_v12 = vld [vmem:[%s11454_s1 + $0x90] sm:$0xf] }
   0x4   :  { %7366 = vmatprep.subr.bf16.mxu0 %v7365_v3  ;;  %7747 = vmatprep.subr.bf16.mxu1 %v7365_v3  ;;  %v32_v13 = vld [vmem:[%s11454_s1 + $0x28] sm:$0xff]  ;;  %v7372_v14 = vpack.c.bf16 %v45_v12, %v39_v11  ;;  %v38_v15 = vld [vmem:[%s11454_s1 + $0x58] sm:$0xff]  ;;  %v31_v17 = vld [vmem:[%s11454_s1 + $0x20] sm:$0xff] }
   0x5   :  { %7368 = vmatpush1.bf16.msra.mxu0 %v7367_v8  ;;  %7749 = vmatpush1.bf16.msra.mxu1 %v7367_v8  ;;  %v7385_v16 = vpack.c.bf16 %v38_v15, %v32_v13  ;;  %v37_v18 = vld [vmem:[%s11454_s1 + $0x50] sm:$0xff]  ;;  %v30_v19 = vld [vmem:[%s11454_s1 + $0x18] sm:$0xff]  ;;  %v36_v20 = vld [vmem:[%s11454_s1 + $0x48] sm:$0xff] }
   0x6   :  { %7371 = vmatprep.subr.msk.bf16.mxu0 %vm7996_vm2, %v7369_v9  ;;  %7748 = vmatprep.subr.msk.bf16.mxu1 %vm7996_vm2, %v7369_v9  ;;  %v29_v21 = vld [vmem:[%s11454_s1 + $0x10] sm:$0xff]  ;;  %v35_v22 = vld [vmem:[%s11454_s1 + $0x40] sm:$0xff]  ;;  %v7375_v23 = vpack.c.bf16 %v36_v20, %v30_v19  ;;  %v44_v24 = vld [vmem:[%s11454_s1 + $0x88] sm:$0xff]  ;;  %v7387_v28 = vpack.c.bf16 %v37_v18, %v31_v17 }
   0x7   :  { %v50_v25 = vld [vmem:[%s11454_s1 + $0xb8] sm:$0xf]  ;;  %v21_v26 = vld [vmem:[%s11453_s0] sm:$0xff]  ;;  %v7377_v29 = vpack.c.bf16 %v35_v22, %v29_v21  ;;  %v48_v32 = vld [vmem:[%s11454_s1 + $0xa8] sm:$0xf] }
   0x8   :  { %v8050_v27 = vld [vmem:[%s11453_s0 + $0x20] sm:$0xff]  ;;  %v42_v31 = vld [vmem:[%s11454_s1 + $0x78] sm:$0xff]  ;;  %v7389_v33 = vpack.c.bf16 %v50_v25, %v44_v24  ;;  %v49_v34 = vld [vmem:[%s11454_s1 + $0xb0] sm:$0xf] }
   0x9   :  { %7374 = vmatpush1.bf16.msk.msra.mxu0 %vm7996_vm2, %v7372_v14  ;;  %7750 = vmatpush1.bf16.msk.msra.mxu1 %vm7996_vm2, %v7372_v14  ;;  %v43_v30 = vld [vmem:[%s11454_s1 + $0x80] sm:$0xff]  ;;  %v7379_v35 = vpack.c.bf16 %v48_v32, %v42_v31  ;;  %v41_v36 = vld [vmem:[%s11454_s1 + $0x70] sm:$0xff]  ;;  %v6725_v38 = vld [vmem:[%s11454_s1 + $0xc8] sm:$0xff] }
   0xa   :  { %7386 = vmatprep.subr.bf16.mxu0 %v7385_v16  ;;  %7376 = vmatprep.subr.bf16.mxu1 %v7375_v23  ;;  %v47_v37 = vld [vmem:[%s11454_s1 + $0xa0] sm:$0xf]  ;;  %v6731_v39 = vld [vmem:[%s11454_s1 + $0xf8] sm:$0xff]  ;;  %v22_v40 = vld [vmem:[%s11453_s0 + $0x8] sm:$0xff]  ;;  %v7392_v42 = vpack.c.bf16 %v49_v34, %v43_v30 }
   0xb   :  { %v8086_v41 = vld [vmem:[%s11453_s0 + $0x28] sm:$0xff]  ;;  %v7382_v43 = vpack.c.bf16 %v47_v37, %v41_v36  ;;  %v6727_v44 = vld [vmem:[%s11454_s1 + $0xd8] sm:$0xff]  ;;  %v7395_v46 = vpack.c.bf16 %v6731_v39, %v6725_v38  ;;  %v23_v48 = vld [vmem:[%s11453_s0 + $0x10] sm:$0xff] }
   0xc   :  { %6702 = vmatmul.mubr.msk.f32.vlgmr.msra.gmra.mrb[0].mxu0 %vm51_vm3, %v21_v26  ;;  %6705 = vmatmul.mubr.msk.f32.vlgmr.msra.gmra.mrb[0].mxu1 %vm51_vm3, %v8050_v27  ;;  %v6733_v45 = vld [vmem:[%s11454_s1 + $0x108] sm:$0xff]  ;;  %v8110_v49 = vld [vmem:[%s11453_s0 + $0x30] sm:$0xff]  ;;  %v6724_v50 = vld [vmem:[%s11454_s1 + $0xc0] sm:$0xff] }
   0xd   :  { %7388 = vmatpush1.bf16.msra.mxu0 %v7387_v28  ;;  %159 = vmatprep.mubr.f32.mxu0 %v7939_v7  ;;  %v7405_v47 = vpack.c.bf16 %v6733_v45, %v6727_v44  ;;  %v6730_v51 = vld [vmem:[%s11454_s1 + $0xf0] sm:$0xff]  ;;  %v6737_v52 = vld [vmem:[%s11454_s1 + $0x128] sm:$0xff]  ;;  %v6743_v53 = vld [vmem:[%s11454_s1 + $0x158] sm:$0xf] }
   0xe   :  { %177 = vmatprep.mubr.f32.mxu1 %v7939_v7  ;;  %7378 = vmatpush1.bf16.msra.mxu1 %v7377_v29  ;;  %v6726_v54 = vld [vmem:[%s11454_s1 + $0xd0] sm:$0xff]  ;;  %v6732_v55 = vld [vmem:[%s11454_s1 + $0x100] sm:$0xff]  ;;  %v7397_v56 = vpack.c.bf16 %v6730_v51, %v6724_v50  ;;  %v7399_v57 = vpack.c.bf16 %v6743_v53, %v6737_v52  ;;  %v6739_v61 = vld [vmem:[%s11454_s1 + $0x138] sm:$0xff] }
   0xf   :  { %7391 = vmatprep.subr.msk.bf16.mxu0 %vm7996_vm2, %v7389_v33  ;;  %7381 = vmatprep.subr.msk.bf16.mxu1 %vm7996_vm2, %v7379_v35  ;;  %v6736_v58 = vld [vmem:[%s11454_s1 + $0x120] sm:$0xff]  ;;  %v6742_v59 = vld [vmem:[%s11454_s1 + $0x150] sm:$0xf]  ;;  %v7407_v60 = vpack.c.bf16 %v6732_v55, %v6726_v54  ;;  %v6745_v62 = vld [vmem:[%s11454_s1 + $0x168] sm:$0xf] }
  0x10   :  { %6703 = vmatmul.mubr.msk.f32.gmra.mrb[2].mxu0 %vm51_vm3, %v22_v40  ;;  %6706 = vmatmul.mubr.msk.f32.gmra.mrb[2].mxu1 %vm51_vm3, %v8086_v41  ;;  %v6738_v63 = vld [vmem:[%s11454_s1 + $0x130] sm:$0xff]  ;;  %v6744_v0 = vld [vmem:[%s11454_s1 + $0x160] sm:$0xf]  ;;  %v6729_v1 = vld [vmem:[%s11454_s1 + $0xe8] sm:$0xff]  ;;  %v7402_v3 = vpack.c.bf16 %v6742_v59, %v6736_v58  ;;  %v7409_v4 = vpack.c.bf16 %v6745_v62, %v6739_v61 }
  0x11   :  { %165 = vmatprep.mubr.f32.mxu0 %v7939_v7  ;;  %183 = vmatprep.mubr.f32.mxu1 %v7939_v7  ;;  %v6735_v2 = vld [vmem:[%s11454_s1 + $0x118] sm:$0xff]  ;;  %v7412_v5 = vpack.c.bf16 %v6744_v0, %v6738_v63  ;;  %v6781_v9 = vld [vmem:[%s11454_s1 + $0x1c8] sm:$0xff]  ;;  %v6728_v12 = vld [vmem:[%s11454_s1 + $0xe0] sm:$0xff] }
  0x12   :  { %7394 = vmatpush1.bf16.msk.msra.mxu0 %vm7996_vm2, %v7392_v42  ;;  %7384 = vmatpush1.bf16.msk.msra.mxu1 %vm7996_vm2, %v7382_v43  ;;  %v7415_v6 = vpack.c.bf16 %v6735_v2, %v6729_v1  ;;  %v6775_v8 = vld [vmem:[%s11454_s1 + $0x198] sm:$0xff]  ;;  %v6734_v13 = vld [vmem:[%s11454_s1 + $0x110] sm:$0xff]  ;;  %v6741_v14 = vld [vmem:[%s11454_s1 + $0x148] sm:$0xff] }
  0x13   :  { %7396 = vmatprep.subr.bf16.mxu0 %v7395_v46  ;;  %7406 = vmatprep.subr.bf16.mxu1 %v7405_v47  ;;  %v7435_v11 = vpack.c.bf16 %v6781_v9, %v6775_v8  ;;  %v6747_v15 = vld [vmem:[%s11454_s1 + $0x178] sm:$0xf]  ;;  %v6774_v16 = vld [vmem:[%s11454_s1 + $0x190] sm:$0xff]  ;;  %v6780_v17 = vld [vmem:[%s11454_s1 + $0x1c0] sm:$0xff]  ;;  %v7417_v19 = vpack.c.bf16 %v6734_v13, %v6728_v12 }
  0x14   :  { %6704 = vmatmul.mubr.msk.f32.gmra.mrb[4].mxu0 %vm51_vm3, %v23_v48  ;;  %6707 = vmatmul.mubr.msk.f32.gmra.mrb[4].mxu1 %vm51_vm3, %v8110_v49  ;;  %v8228_v18 = vld [vmem:[%s11453_s0 + $0x1] sm:$0xff]  ;;  %v7419_v20 = vpack.c.bf16 %v6747_v15, %v6741_v14  ;;  %v6746_v22 = vld [vmem:[%s11454_s1 + $0x170] sm:$0xf]  ;;  %v6787_v23 = vld [vmem:[%s11454_s1 + $0x1f8] sm:$0xff]  ;;  %v7437_v24 = vpack.c.bf16 %v6780_v17, %v6774_v16 }
  0x15   :  { %254 = vmatprep.mubr.f32.mxu1 %v7939_v7  ;;  %355 = vmatprep.mubr.f32.mxu0 %v7939_v7  ;;  %v6740_v21 = vld [vmem:[%s11454_s1 + $0x140] sm:$0xff]  ;;  %v6793_v25 = vld [vmem:[%s11454_s1 + $0x228] sm:$0xf] }
  0x18   :  { %6710 = vmatmul.mubr.msk.f32.vlgmr.msra.gmra.mrb[6].mxu1 %vm51_vm3, %v21_v26  ;;  %6718 = vmatmul.mubr.msk.f32.vlgmr.msra.gmra.mrb[6].mxu0 %vm51_vm3, %v21_v26  ;;  %v6786_v26 = vld [vmem:[%s11454_s1 + $0x1f0] sm:$0xff] }
  0x19   :  { %7398 = vmatpush1.bf16.msra.mxu0 %v7397_v56  ;;  %260 = vmatprep.mubr.f32.mxu1 %v7939_v7 }
  0x1a   :  { %361 = vmatprep.mubr.f32.mxu0 %v7939_v7  ;;  %7401 = vmatprep.subr.msk.bf16.mxu0 %vm7996_vm2, %v7399_v57 }
  0x1b   :  { %7408 = vmatpush1.bf16.msra.mxu1 %v7407_v60 }
  0x1c   :  { %6711 = vmatmul.mubr.msk.f32.gmra.mrb[8].mxu1 %vm51_vm3, %v22_v40  ;;  %6719 = vmatmul.mubr.msk.f32.gmra.mrb[8].mxu0 %vm51_vm3, %v22_v40 }
  0x1d   :  { %266 = vmatprep.mubr.f32.mxu1 %v7939_v7  ;;  %367 = vmatprep.mubr.f32.mxu0 %v7939_v7 }
  0x1e   :  { %7404 = vmatpush1.bf16.msk.msra.mxu0 %vm7996_vm2, %v7402_v3  ;;  %7411 = vmatprep.subr.msk.bf16.mxu1 %vm7996_vm2, %v7409_v4 }
  0x1f   :  { %7414 = vmatpush1.bf16.msk.msra.mxu1 %vm7996_vm2, %v7412_v5  ;;  %7416 = vmatprep.subr.bf16.mxu0 %v7415_v6 }
  0x20   :  { %6712 = vmatmul.mubr.msk.f32.gmra.mrb[10].mxu1 %vm51_vm3, %v23_v48  ;;  %6720 = vmatmul.mubr.msk.f32.gmra.mrb[10].mxu0 %vm51_vm3, %v23_v48 }
  0x21   :  { %272 = vmatprep.mubr.f32.mxu1 %v7939_v7  ;;  %373 = vmatprep.mubr.f32.mxu0 %v7939_v7 }
  0x22   :  { %7436 = vmatprep.subr.bf16.mxu1 %v7435_v11 }
  0x24   :  { %6713 = vmatmul.mubr.msk.f32.gmra.mrb[12].mxu1 %vm51_vm3, %v8050_v27  ;;  %6721 = vmatmul.mubr.msk.f32.gmra.mrb[12].mxu0 %vm51_vm3, %v8050_v27 }
  0x25   :  { %278 = vmatprep.mubr.f32.mxu1 %v7939_v7  ;;  %379 = vmatprep.mubr.f32.mxu0 %v7939_v7 }
  0x28   :  { %6714 = vmatmul.mubr.msk.f32.gmra.mrb[14].mxu1 %vm51_vm3, %v8086_v41  ;;  %6722 = vmatmul.mubr.msk.f32.gmra.mrb[14].mxu0 %vm51_vm3, %v8086_v41 }
  0x29   :  { %284 = vmatprep.mubr.f32.mxu1 %v7939_v7  ;;  %385 = vmatprep.mubr.f32.mxu0 %v7939_v7 }
  0x2c   :  { %6715 = vmatmul.mubr.msk.f32.gmra.mrb[16].mxu1 %vm51_vm3, %v8110_v49  ;;  %6723 = vmatmul.mubr.msk.f32.gmra.mrb[16].mxu0 %vm51_vm3, %v8110_v49 }
  0x2d   :  { %559 = vmatprep.mubr.f32.mxu0 %v7939_v7  ;;  %660 = vmatprep.mubr.f32.mxu1 %v7939_v7 }
  0x2e   :  { %10 = vsyncpa [#allocation8], 0  ;;  %v6792_v27 = vld [vmem:[%s11454_s1 + $0x220] sm:$0xf]  ;;  %v6773_v28 = vld [vmem:[%s11454_s1 + $0x188] sm:$0xff]  ;;  %v7422_v31 = vpack.c.bf16 %v6746_v22, %v6740_v21  ;;  %v7439_v32 = vpack.c.bf16 %v6793_v25, %v6787_v23  ;;  %s7942_s16 = smov 64  }
  0x2f   :  { %v6779_v29 = vld [vmem:[%s11454_s1 + $0x1b8] sm:$0xff]  ;;  %v8262_v30 = vld [vmem:[%s11453_s0 + $0x9] sm:$0xff]  ;;  %v7442_v33 = vpack.c.bf16 %v6792_v27, %v6786_v26  ;;  %v8299_v39 = vld [vmem:[%s11453_s0 + $0x21] sm:$0xff]  ;;  %vm2654_vm5 = vcmask 261120   ;;  %vm2656_vm6 = vcmask 257024   ;;  %s7943_s17 = smov 32  }
  0x30   :  { %6750 = vmatmul.mubr.msk.f32.vlgmr.msra.gmra.mrb[0].mxu0 %vm51_vm3, %v8228_v18  ;;  %6758 = vmatmul.mubr.msk.f32.vlgmr.msra.gmra.mrb[6].mxu1 %vm51_vm3, %v8228_v18  ;;  %v7425_v34 = vpack.c.bf16 %v6779_v29, %v6773_v28  ;;  %v6823_v35 = vld [vmem:[%s11454_s1 + $0x258] sm:$0xff]  ;;  %v6829_v36 = vld [vmem:[%s11454_s1 + $0x288] sm:$0xff]  ;;  %v6772_v42 = vld [vmem:[%s11454_s1 + $0x180] sm:$0xff]  ;;  %vm3187_vm7 = vcmask 523520   ;;  %vm3284_vm8 = vcmask 785920   ;;  %vm3381_vm9 = vcmask 1048320  }
  0x31   :  { %7418 = vmatpush1.bf16.msra.mxu0 %v7417_v19  ;;  %565 = vmatprep.mubr.f32.mxu0 %v7939_v7  ;;  %v8282_v37 = vld [vmem:[%s11453_s0 + $0x11] sm:$0xff]  ;;  %v7465_v38 = vpack.c.bf16 %v6829_v36, %v6823_v35  ;;  %v8310_v40 = vld [vmem:[%s11453_s0 + $0x29] sm:$0xff]  ;;  %v6828_v47 = vld [vmem:[%s11454_s1 + $0x280] sm:$0xff]  ;;  %vm5901_vm10 = vcmask 1041409   ;;  %vm5903_vm11 = vcmask 1043459   ;;  %vm5905_vm12 = vcmask 1045509  }
  0x32   :  { %666 = vmatprep.mubr.f32.mxu1 %v7939_v7  ;;  %7421 = vmatprep.subr.msk.bf16.mxu0 %vm7996_vm2, %v7419_v20  ;;  %v8321_v41 = vld [vmem:[%s11453_s0 + $0x31] sm:$0xff]  ;;  %v6785_v44 = vld [vmem:[%s11454_s1 + $0x1e8] sm:$0xff]  ;;  %v6784_v51 = vld [vmem:[%s11454_s1 + $0x1e0] sm:$0xff]  ;;  %vm5907_vm13 = vcmask 1047559   ;;  %vm5910_vm14 = vcmask 517120   ;;  %vm5924_vm15 = vcmask 1041920  }
  0x33   :  { %7438 = vmatpush1.bf16.msra.mxu1 %v7437_v24  ;;  %v6778_v43 = vld [vmem:[%s11454_s1 + $0x1b0] sm:$0xff]  ;;  %v6791_v45 = vld [vmem:[%s11454_s1 + $0x218] sm:$0xf]  ;;  %v8350_v48 = vld [vmem:[%s11453_s0 + $0x2] sm:$0xff]  ;;  %vm6684_vm0 = vcmask 74752  }
  0x34   :  { %6751 = vmatmul.mubr.msk.f32.gmra.mrb[2].mxu0 %vm51_vm3, %v8262_v30  ;;  %6759 = vmatmul.mubr.msk.f32.gmra.mrb[8].mxu1 %vm51_vm3, %v8262_v30  ;;  %v6822_v46 = vld [vmem:[%s11454_s1 + $0x250] sm:$0xff]  ;;  %v7427_v49 = vpack.c.bf16 %v6778_v43, %v6772_v42  ;;  %v7429_v50 = vpack.c.bf16 %v6791_v45, %v6785_v44  ;;  %v6835_v54 = vld [vmem:[%s11454_s1 + $0x2b8] sm:$0xff]  ;;  %v6841_v55 = vld [vmem:[%s11454_s1 + $0x2e8] sm:$0xf] }
  0x35   :  { %571 = vmatprep.mubr.f32.mxu0 %v7939_v7  ;;  %672 = vmatprep.mubr.f32.mxu1 %v7939_v7  ;;  %v6790_v52 = vld [vmem:[%s11454_s1 + $0x210] sm:$0xf]  ;;  %v7467_v53 = vpack.c.bf16 %v6828_v47, %v6822_v46  ;;  %v6840_v57 = vld [vmem:[%s11454_s1 + $0x2e0] sm:$0xf]  ;;  %v6777_v58 = vld [vmem:[%s11454_s1 + $0x1a8] sm:$0xff]  ;;  %v7469_v62 = vpack.c.bf16 %v6841_v55, %v6835_v54 }
  0x36   :  { %7424 = vmatpush1.bf16.msk.msra.mxu0 %vm7996_vm2, %v7422_v31  ;;  %7441 = vmatprep.subr.msk.bf16.mxu1 %vm7996_vm2, %v7439_v32  ;;  %v6834_v56 = vld [vmem:[%s11454_s1 + $0x2b0] sm:$0xff]  ;;  %v6783_v59 = vld [vmem:[%s11454_s1 + $0x1d8] sm:$0xff]  ;;  %v7432_v61 = vpack.c.bf16 %v6790_v52, %v6784_v51  ;;  %v6877_v2 = vld [vmem:[%s11454_s1 + $0x348] sm:$0xff] }
  0x37   :  { %7444 = vmatpush1.bf16.msk.msra.mxu1 %vm7996_vm2, %v7442_v33  ;;  %7426 = vmatprep.subr.bf16.mxu0 %v7425_v34  ;;  %v8384_v60 = vld [vmem:[%s11453_s0 + $0xa] sm:$0xff]  ;;  %v7472_v63 = vpack.c.bf16 %v6840_v57, %v6834_v56  ;;  %v7445_v0 = vpack.c.bf16 %v6783_v59, %v6777_v58  ;;  %v6871_v1 = vld [vmem:[%s11454_s1 + $0x318] sm:$0xff]  ;;  %v8421_v5 = vld [vmem:[%s11453_s0 + $0x22] sm:$0xff] }
  0x38   :  { %6752 = vmatmul.mubr.msk.f32.gmra.mrb[4].mxu0 %vm51_vm3, %v8282_v37  ;;  %6760 = vmatmul.mubr.msk.f32.gmra.mrb[10].mxu1 %vm51_vm3, %v8282_v37  ;;  %v8404_v3 = vld [vmem:[%s11453_s0 + $0x12] sm:$0xff]  ;;  %v7495_v4 = vpack.c.bf16 %v6877_v2, %v6871_v1  ;;  %v8432_v6 = vld [vmem:[%s11453_s0 + $0x2a] sm:$0xff]  ;;  %v6776_v9 = vld [vmem:[%s11454_s1 + $0x1a0] sm:$0xff] }
  0x39   :  { %577 = vmatprep.mubr.f32.mxu0 %v7939_v7  ;;  %678 = vmatprep.mubr.f32.mxu1 %v7939_v7  ;;  %v8443_v8 = vld [vmem:[%s11453_s0 + $0x32] sm:$0xff]  ;;  %v6789_v12 = vld [vmem:[%s11454_s1 + $0x208] sm:$0xff]  ;;  %v6876_v15 = vld [vmem:[%s11454_s1 + $0x340] sm:$0xff] }
  0x3a   :  { %7466 = vmatprep.subr.bf16.mxu1 %v7465_v38  ;;  %v6782_v11 = vld [vmem:[%s11454_s1 + $0x1d0] sm:$0xff]  ;;  %v6795_v13 = vld [vmem:[%s11454_s1 + $0x238] sm:$0xf]  ;;  %v8472_v16 = vld [vmem:[%s11453_s0 + $0x3] sm:$0xff] }
  0x3b   :  { %v6870_v14 = vld [vmem:[%s11454_s1 + $0x310] sm:$0xff]  ;;  %v7447_v17 = vpack.c.bf16 %v6782_v11, %v6776_v9  ;;  %v6788_v19 = vld [vmem:[%s11454_s1 + $0x200] sm:$0xff]  ;;  %v6883_v22 = vld [vmem:[%s11454_s1 + $0x378] sm:$0xff] }
  0x3c   :  { %6753 = vmatmul.mubr.msk.f32.gmra.mrb[18].mxu0 %vm51_vm3, %v8299_v39  ;;  %6761 = vmatmul.mubr.msk.f32.gmra.mrb[12].mxu1 %vm51_vm3, %v8299_v39  ;;  %v6794_v20 = vld [vmem:[%s11454_s1 + $0x230] sm:$0xf]  ;;  %v7497_v21 = vpack.c.bf16 %v6876_v15, %v6870_v14  ;;  %v6889_v23 = vld [vmem:[%s11454_s1 + $0x3a8] sm:$0xf]  ;;  %v6888_v25 = vld [vmem:[%s11454_s1 + $0x3a0] sm:$0xf] }
  0x3d   :  { %583 = vmatprep.mubr.f32.mxu0 %v7939_v7  ;;  %684 = vmatprep.mubr.f32.mxu1 %v7939_v7  ;;  %v6882_v24 = vld [vmem:[%s11454_s1 + $0x370] sm:$0xff]  ;;  %v6821_v26 = vld [vmem:[%s11454_s1 + $0x248] sm:$0xff]  ;;  %v6827_v27 = vld [vmem:[%s11454_s1 + $0x278] sm:$0xff]  ;;  %v7452_v29 = vpack.c.bf16 %v6794_v20, %v6788_v19 }
  0x3e   :  { %v8506_v28 = vld [vmem:[%s11453_s0 + $0xb] sm:$0xff]  ;;  %v7502_v31 = vpack.c.bf16 %v6888_v25, %v6882_v24  ;;  %v7455_v32 = vpack.c.bf16 %v6827_v27, %v6821_v26  ;;  %v8520_v33 = vld [vmem:[%s11453_s0 + $0x13] sm:$0xff]  ;;  %v8537_v34 = vld [vmem:[%s11453_s0 + $0x23] sm:$0xff] }
  0x3f   :  { %v8548_v35 = vld [vmem:[%s11453_s0 + $0x2b] sm:$0xff]  ;;  %v8559_v36 = vld [vmem:[%s11453_s0 + $0x33] sm:$0xff]  ;;  %v6832_v44 = vld [vmem:[%s11454_s1 + $0x2a0] sm:$0xff] }
  0x40   :  { %6754 = vmatmul.mubr.msk.f32.gmra.mrb[20].mxu0 %vm51_vm3, %v8310_v40  ;;  %6762 = vmatmul.mubr.msk.f32.gmra.mrb[14].mxu1 %vm51_vm3, %v8310_v40  ;;  %v6826_v38 = vld [vmem:[%s11454_s1 + $0x270] sm:$0xff]  ;;  %v6825_v46 = vld [vmem:[%s11454_s1 + $0x268] sm:$0xff]  ;;  %v6831_v47 = vld [vmem:[%s11454_s1 + $0x298] sm:$0xff] }
  0x41   :  { %589 = vmatprep.mubr.f32.mxu0 %v7939_v7  ;;  %690 = vmatprep.mubr.f32.mxu1 %v7939_v7  ;;  %v6838_v45 = vld [vmem:[%s11454_s1 + $0x2d0] sm:$0xf]  ;;  %v8618_v51 = vld [vmem:[%s11453_s0 + $0x14] sm:$0xff]  ;;  %v8631_v52 = vld [vmem:[%s11453_s0 + $0x24] sm:$0xff] }
  0x42   :  { %v8653_v54 = vld [vmem:[%s11453_s0 + $0x34] sm:$0xff]  ;;  %v6824_v55 = vld [vmem:[%s11454_s1 + $0x260] sm:$0xff]  ;;  %v6837_v57 = vld [vmem:[%s11454_s1 + $0x2c8] sm:$0xff] }
  0x43   :  { %v6830_v56 = vld [vmem:[%s11454_s1 + $0x290] sm:$0xff]  ;;  %v6843_v58 = vld [vmem:[%s11454_s1 + $0x2f8] sm:$0xf]  ;;  %v6880_v11 = vld [vmem:[%s11454_s1 + $0x360] sm:$0xff] }
  0x44   :  { %6755 = vmatmul.mubr.msk.f32.gmra.mrb[22].mxu0 %vm51_vm3, %v8321_v41  ;;  %6763 = vmatmul.mubr.msk.f32.gmra.mrb[16].mxu1 %vm51_vm3, %v8321_v41  ;;  %v7477_v59 = vpack.c.bf16 %v6830_v56, %v6824_v55  ;;  %v6879_v14 = vld [vmem:[%s11454_s1 + $0x358] sm:$0xff]  ;;  %v6885_v19 = vld [vmem:[%s11454_s1 + $0x388] sm:$0xff]  ;;  %v6890_v24 = vld [vmem:[%s11454_s1 + $0x3b0] sm:$0xf] }
  0x45   :  { %761 = vmatprep.mubr.f32.mxu0 %v7939_v7  ;;  %1138 = vmatprep.mubr.f32.mxu1 %v7939_v7  ;;  %v6891_v20 = vld [vmem:[%s11454_s1 + $0x3b8] sm:$0xf] }
  0x48   :  { %6766 = vmatmul.mubr.msk.f32.vlgmr.msra.gmra.mrb[6].mxu0 %vm51_vm3, %v8228_v18  ;;  %6806 = vmatmul.mubr.msk.f32.vlgmr.msra.gmra.mrb[6].mxu1 %vm51_vm3, %v8350_v48  ;;  %v7449_v18 = vpack.c.bf16 %v6795_v13, %v6789_v12  ;;  %v6886_v12 = vld [vmem:[%s11454_s1 + $0x390] sm:$0xf]  ;;  %v6873_v13 = vld [vmem:[%s11454_s1 + $0x328] sm:$0xff] }
  0x49   :  { %7428 = vmatpush1.bf16.msra.mxu0 %v7427_v49  ;;  %767 = vmatprep.mubr.f32.mxu0 %v7939_v7  ;;  %v8604_v49 = vld [vmem:[%s11453_s0 + $0xc] sm:$0xff]  ;;  %v7492_v15 = vpack.c.bf16 %v6886_v12, %v6880_v11 }
  0x4a   :  { %1144 = vmatprep.mubr.f32.mxu1 %v7939_v7  ;;  %7431 = vmatprep.subr.msk.bf16.mxu0 %vm7996_vm2, %v7429_v50  ;;  %v7475_v50 = vpack.c.bf16 %v6831_v47, %v6825_v46 }
  0x4b   :  { %7468 = vmatpush1.bf16.msra.mxu1 %v7467_v53  ;;  %v8642_v53 = vld [vmem:[%s11453_s0 + $0x2c] sm:$0xff] }
  0x4c   :  { %6767 = vmatmul.mubr.msk.f32.gmra.mrb[8].mxu0 %vm51_vm3, %v8262_v30  ;;  %6807 = vmatmul.mubr.msk.f32.gmra.mrb[8].mxu1 %vm51_vm3, %v8384_v60  ;;  %v7499_v30 = vpack.c.bf16 %v6889_v23, %v6883_v22  ;;  %v7509_v22 = vpack.c.bf16 %v6891_v20, %v6885_v19  ;;  %v6884_v23 = vld [vmem:[%s11454_s1 + $0x380] sm:$0xff] }
  0x4d   :  { %773 = vmatprep.mubr.f32.mxu0 %v7939_v7  ;;  %1150 = vmatprep.mubr.f32.mxu1 %v7939_v7  ;;  %v7512_v25 = vpack.c.bf16 %v6890_v24, %v6884_v23 }
  0x4e   :  { %7434 = vmatpush1.bf16.msk.msra.mxu0 %vm7996_vm2, %v7432_v61  ;;  %7471 = vmatprep.subr.msk.bf16.mxu1 %vm7996_vm2, %v7469_v62  ;;  %v6836_v61 = vld [vmem:[%s11454_s1 + $0x2c0] sm:$0xff]  ;;  %v6842_v62 = vld [vmem:[%s11454_s1 + $0x2f0] sm:$0xf] }
  0x4f   :  { %7474 = vmatpush1.bf16.msk.msra.mxu1 %vm7996_vm2, %v7472_v63  ;;  %7446 = vmatprep.subr.bf16.mxu0 %v7445_v0  ;;  %v6869_v63 = vld [vmem:[%s11454_s1 + $0x308] sm:$0xff]  ;;  %v6875_v0 = vld [vmem:[%s11454_s1 + $0x338] sm:$0xff]  ;;  %v7482_v1 = vpack.c.bf16 %v6842_v62, %v6836_v61 }
  0x50   :  { %6768 = vmatmul.mubr.msk.f32.gmra.mrb[10].mxu0 %vm51_vm3, %v8282_v37  ;;  %6808 = vmatmul.mubr.msk.f32.gmra.mrb[10].mxu1 %vm51_vm3, %v8404_v3  ;;  %v6820_v37 = vld [vmem:[%s11454_s1 + $0x240] sm:$0xff]  ;;  %v7485_v2 = vpack.c.bf16 %v6875_v0, %v6869_v63 }
  0x51   :  { %779 = vmatprep.mubr.f32.mxu0 %v7939_v7  ;;  %1156 = vmatprep.mubr.f32.mxu1 %v7939_v7  ;;  %v7457_v42 = vpack.c.bf16 %v6826_v38, %v6820_v37 }
  0x52   :  { %7496 = vmatprep.subr.bf16.mxu1 %v7495_v4  ;;  %v6874_v4 = vld [vmem:[%s11454_s1 + $0x330] sm:$0xff] }
  0x54   :  { %6769 = vmatmul.mubr.msk.f32.gmra.mrb[12].mxu0 %vm51_vm3, %v8299_v39  ;;  %6809 = vmatmul.mubr.msk.f32.gmra.mrb[12].mxu1 %vm51_vm3, %v8421_v5  ;;  %v6833_v39 = vld [vmem:[%s11454_s1 + $0x2a8] sm:$0xff] }
  0x55   :  { %785 = vmatprep.mubr.f32.mxu0 %v7939_v7  ;;  %1162 = vmatprep.mubr.f32.mxu1 %v7939_v7 }
  0x58   :  { %6770 = vmatmul.mubr.msk.f32.gmra.mrb[14].mxu0 %vm51_vm3, %v8310_v40  ;;  %6810 = vmatmul.mubr.msk.f32.gmra.mrb[14].mxu1 %vm51_vm3, %v8432_v6  ;;  %v6839_v40 = vld [vmem:[%s11454_s1 + $0x2d8] sm:$0xf] }
  0x59   :  { %791 = vmatprep.mubr.f32.mxu0 %v7939_v7  ;;  %1168 = vmatprep.mubr.f32.mxu1 %v7939_v7  ;;  %v7459_v43 = vpack.c.bf16 %v6839_v40, %v6833_v39 }
  0x5c   :  { %6771 = vmatmul.mubr.msk.f32.gmra.mrb[16].mxu0 %vm51_vm3, %v8321_v41  ;;  %6811 = vmatmul.mubr.msk.f32.gmra.mrb[16].mxu1 %vm51_vm3, %v8443_v8  ;;  %v8582_v41 = vld [vmem:[%s11453_s0 + $0x4] sm:$0xff]  ;;  %s7945_s0 = smov [#allocation7]  }
  0x5d   :  { %1037 = vmatprep.mubr.f32.mxu0 %v7939_v7  ;;  %1616 = vmatprep.mubr.f32.mxu1 %v7939_v7  ;;  %s6692_s7 = sshll.u32 %s7945_s0, 4  ;;  %s6693_s7 = int_to_ptr.vmem [resolvable:$true] %s6692_s7 }
  0x5e   :  { %p7920_p1 = scmp.lt.s32.totalorder %s6693_s7, %s6693_s7 }
  0x60   :  { %6798 = vmatmul.mubr.msk.f32.vlgmr.msra.gmra.mrb[0].mxu0 %vm51_vm3, %v8350_v48  ;;  %6854 = vmatmul.mubr.msk.f32.vlgmr.msra.gmra.mrb[6].mxu1 %vm51_vm3, %v8472_v16 }
  0x61   :  { %7448 = vmatpush1.bf16.msra.mxu0 %v7447_v17  ;;  %1043 = vmatprep.mubr.f32.mxu0 %v7939_v7  ;;  %v7505_v17 = vpack.c.bf16 %v6879_v14, %v6873_v13 }
  0x62   :  { %1622 = vmatprep.mubr.f32.mxu1 %v7939_v7  ;;  %7451 = vmatprep.subr.msk.bf16.mxu0 %vm7996_vm2, %v7449_v18  ;;  %v6878_v18 = vld [vmem:[%s11454_s1 + $0x350] sm:$0xff] }
  0x63   :  { %7498 = vmatpush1.bf16.msra.mxu1 %v7497_v21 }
  0x64   :  { %6799 = vmatmul.mubr.msk.f32.gmra.mrb[2].mxu0 %vm51_vm3, %v8384_v60  ;;  %6855 = vmatmul.mubr.msk.f32.gmra.mrb[8].mxu1 %vm51_vm3, %v8506_v28 }
  0x65   :  { %1049 = vmatprep.mubr.f32.mxu0 %v7939_v7  ;;  %1628 = vmatprep.mubr.f32.mxu1 %v7939_v7 }
  0x66   :  { %7454 = vmatpush1.bf16.msk.msra.mxu0 %vm7996_vm2, %v7452_v29  ;;  %7501 = vmatprep.subr.msk.bf16.mxu1 %vm7996_vm2, %v7499_v30 }
  0x67   :  { %7504 = vmatpush1.bf16.msk.msra.mxu1 %vm7996_vm2, %v7502_v31  ;;  %7456 = vmatprep.subr.bf16.mxu0 %v7455_v32 }
  0x68   :  { %6800 = vmatmul.mubr.msk.f32.gmra.mrb[4].mxu0 %vm51_vm3, %v8404_v3  ;;  %6856 = vmatmul.mubr.msk.f32.gmra.mrb[10].mxu1 %vm51_vm3, %v8520_v33 }
  0x69   :  { %1055 = vmatprep.mubr.f32.mxu0 %v7939_v7  ;;  %1634 = vmatprep.mubr.f32.mxu1 %v7939_v7 }
  0x6c   :  { %6801 = vmatmul.mubr.msk.f32.gmra.mrb[18].mxu0 %vm51_vm3, %v8421_v5  ;;  %6857 = vmatmul.mubr.msk.f32.gmra.mrb[12].mxu1 %vm51_vm3, %v8537_v34 }
  0x6d   :  { %1061 = vmatprep.mubr.f32.mxu0 %v7939_v7  ;;  %1640 = vmatprep.mubr.f32.mxu1 %v7939_v7 }
  0x70   :  { %6802 = vmatmul.mubr.msk.f32.gmra.mrb[20].mxu0 %vm51_vm3, %v8432_v6  ;;  %6858 = vmatmul.mubr.msk.f32.gmra.mrb[14].mxu1 %vm51_vm3, %v8548_v35 }
  0x71   :  { %1067 = vmatprep.mubr.f32.mxu0 %v7939_v7  ;;  %1646 = vmatprep.mubr.f32.mxu1 %v7939_v7 }
  0x74   :  { %6803 = vmatmul.mubr.msk.f32.gmra.mrb[22].mxu0 %vm51_vm3, %v8443_v8  ;;  %6859 = vmatmul.mubr.msk.f32.gmra.mrb[16].mxu1 %vm51_vm3, %v8559_v36 }
  0x75   :  { %1239 = vmatprep.mubr.f32.mxu0 %v7939_v7  ;;  %2094 = vmatprep.mubr.f32.mxu1 %v7939_v7 }
  0x78   :  { %6814 = vmatmul.mubr.msk.f32.vlgmr.msra.gmra.mrb[6].mxu0 %vm51_vm3, %v8350_v48  ;;  %6902 = vmatmul.mubr.msk.f32.vlgmr.msra.gmra.mrb[6].mxu1 %vm51_vm3, %v8582_v41  ;;  %v7462_v48 = vpack.c.bf16 %v6838_v45, %v6832_v44 }
  0x79   :  { %7458 = vmatpush1.bf16.msra.mxu0 %v7457_v42  ;;  %1245 = vmatprep.mubr.f32.mxu0 %v7939_v7 }
  0x7a   :  { %2100 = vmatprep.mubr.f32.mxu1 %v7939_v7  ;;  %7461 = vmatprep.subr.msk.bf16.mxu0 %vm7996_vm2, %v7459_v43 }
  0x7c   :  { %6815 = vmatmul.mubr.msk.f32.gmra.mrb[8].mxu0 %vm51_vm3, %v8384_v60  ;;  %6903 = vmatmul.mubr.msk.f32.gmra.mrb[8].mxu1 %vm51_vm3, %v8604_v49  ;;  %v7479_v60 = vpack.c.bf16 %v6843_v58, %v6837_v57 }
  0x7d   :  { %1251 = vmatprep.mubr.f32.mxu0 %v7939_v7  ;;  %2106 = vmatprep.mubr.f32.mxu1 %v7939_v7 }
  0x7e   :  { %7464 = vmatpush1.bf16.msk.msra.mxu0 %vm7996_vm2, %v7462_v48 }
  0x7f   :  { %7476 = vmatprep.subr.bf16.mxu0 %v7475_v50 }
  0x80   :  { %6816 = vmatmul.mubr.msk.f32.gmra.mrb[10].mxu0 %vm51_vm3, %v8404_v3  ;;  %6904 = vmatmul.mubr.msk.f32.gmra.mrb[10].mxu1 %vm51_vm3, %v8618_v51  ;;  %v6868_v3 = vld [vmem:[%s11454_s1 + $0x300] sm:$0xff] }
  0x81   :  { %1257 = vmatprep.mubr.f32.mxu0 %v7939_v7  ;;  %2112 = vmatprep.mubr.f32.mxu1 %v7939_v7 }
  0x84   :  { %6817 = vmatmul.mubr.msk.f32.gmra.mrb[12].mxu0 %vm51_vm3, %v8421_v5  ;;  %6905 = vmatmul.mubr.msk.f32.gmra.mrb[12].mxu1 %vm51_vm3, %v8631_v52  ;;  %v6881_v5 = vld [vmem:[%s11454_s1 + $0x368] sm:$0xff] }
  0x85   :  { %1263 = vmatprep.mubr.f32.mxu0 %v7939_v7  ;;  %2118 = vmatprep.mubr.f32.mxu1 %v7939_v7 }
  0x88   :  { %6818 = vmatmul.mubr.msk.f32.gmra.mrb[14].mxu0 %vm51_vm3, %v8432_v6  ;;  %6906 = vmatmul.mubr.msk.f32.gmra.mrb[14].mxu1 %vm51_vm3, %v8642_v53  ;;  %v6887_v6 = vld [vmem:[%s11454_s1 + $0x398] sm:$0xf] }
  0x89   :  { %1269 = vmatprep.mubr.f32.mxu0 %v7939_v7  ;;  %2124 = vmatprep.mubr.f32.mxu1 %v7939_v7  ;;  %v7489_v9 = vpack.c.bf16 %v6887_v6, %v6881_v5 }
  0x8c   :  { %6819 = vmatmul.mubr.msk.f32.gmra.mrb[16].mxu0 %vm51_vm3, %v8443_v8  ;;  %6907 = vmatmul.mubr.msk.f32.gmra.mrb[16].mxu1 %vm51_vm3, %v8653_v54  ;;  %v7487_v8 = vpack.c.bf16 %v6874_v4, %v6868_v3 }
  0x8d   :  { %1515 = vmatprep.mubr.f32.mxu0 %v7939_v7 }
  0x90   :  { %6846 = vmatmul.mubr.msk.f32.vlgmr.msra.gmra.mrb[0].mxu0 %vm51_vm3, %v8472_v16 }
  0x91   :  { %7478 = vmatpush1.bf16.msra.mxu0 %v7477_v59  ;;  %1521 = vmatprep.mubr.f32.mxu0 %v7939_v7 }
  0x92   :  { %7481 = vmatprep.subr.msk.bf16.mxu0 %vm7996_vm2, %v7479_v60 }
  0x94   :  { %6847 = vmatmul.mubr.msk.f32.gmra.mrb[2].mxu0 %vm51_vm3, %v8506_v28 }
  0x95   :  { %1527 = vmatprep.mubr.f32.mxu0 %v7939_v7  ;;  %7484 = vmatpush1.bf16.msk.msra.mxu0 %vm7996_vm2, %v7482_v1  ;;  %v11459_v1 = vlaneseq }
  0x96   :  { %7486 = vmatprep.subr.bf16.mxu0 %v7485_v2 }
  0x97   :  { %vm8810_vm4 = vcmp.lt.s32.totalorder %v11459_v1, 768 }
  0x98   :  { %6848 = vmatmul.mubr.msk.f32.gmra.mrb[4].mxu0 %vm51_vm3, %v8520_v33 }
  0x99   :  { %1533 = vmatprep.mubr.f32.mxu0 %v7939_v7 }
  0x9c   :  { %6849 = vmatmul.mubr.msk.f32.gmra.mrb[18].mxu0 %vm51_vm3, %v8537_v34 }
  0x9d   :  { %1539 = vmatprep.mubr.f32.mxu0 %v7939_v7 }
  0xa0   :  { %6850 = vmatmul.mubr.msk.f32.gmra.mrb[20].mxu0 %vm51_vm3, %v8548_v35 }
  0xa1   :  { %1545 = vmatprep.mubr.f32.mxu0 %v7939_v7 }
  0xa4   :  { %6851 = vmatmul.mubr.msk.f32.gmra.mrb[22].mxu0 %vm51_vm3, %v8559_v36 }
  0xa5   :  { %1717 = vmatprep.mubr.f32.mxu0 %v7939_v7 }
  0xa8   :  { %6862 = vmatmul.mubr.msk.f32.vlgmr.msra.gmra.mrb[6].mxu0 %vm51_vm3, %v8472_v16  ;;  %v6872_v16 = vld [vmem:[%s11454_s1 + $0x320] sm:$0xff]  ;;  %s7941_s1 = smov 96  }
  0xa9   :  { %7488 = vmatpush1.bf16.msra.mxu0 %v7487_v8  ;;  %1723 = vmatprep.mubr.f32.mxu0 %v7939_v7  ;;  %v7507_v21 = vpack.c.bf16 %v6878_v18, %v6872_v16 }
  0xaa   :  { %7491 = vmatprep.subr.msk.bf16.mxu0 %vm7996_vm2, %v7489_v9 }
  0xac   :  { %6863 = vmatmul.mubr.msk.f32.gmra.mrb[8].mxu0 %vm51_vm3, %v8506_v28 }
  0xad   :  { %1729 = vmatprep.mubr.f32.mxu0 %v7939_v7  ;;  %7494 = vmatpush1.bf16.msk.msra.mxu0 %vm7996_vm2, %v7492_v15 }
  0xae   :  { %7506 = vmatprep.subr.bf16.mxu0 %v7505_v17 }
  0xb0   :  { %6864 = vmatmul.mubr.msk.f32.gmra.mrb[10].mxu0 %vm51_vm3, %v8520_v33 }
  0xb1   :  { %1735 = vmatprep.mubr.f32.mxu0 %v7939_v7 }
  0xb4   :  { %6865 = vmatmul.mubr.msk.f32.gmra.mrb[12].mxu0 %vm51_vm3, %v8537_v34 }
  0xb5   :  { %1741 = vmatprep.mubr.f32.mxu0 %v7939_v7 }
  0xb8   :  { %6866 = vmatmul.mubr.msk.f32.gmra.mrb[14].mxu0 %vm51_vm3, %v8548_v35 }
  0xb9   :  { %1747 = vmatprep.mubr.f32.mxu0 %v7939_v7 }
  0xbc   :  { %6867 = vmatmul.mubr.msk.f32.gmra.mrb[16].mxu0 %vm51_vm3, %v8559_v36 }
  0xbd   :  { %1993 = vmatprep.mubr.f32.mxu0 %v7939_v7 }
  0xc0   :  { %6894 = vmatmul.mubr.msk.f32.vlgmr.msra.gmra.mrb[0].mxu0 %vm51_vm3, %v8582_v41 }
  0xc1   :  { %7508 = vmatpush1.bf16.msra.mxu0 %v7507_v21  ;;  %1999 = vmatprep.mubr.f32.mxu0 %v7939_v7 }
  0xc2   :  { %7511 = vmatprep.subr.msk.bf16.mxu0 %vm7996_vm2, %v7509_v22 }
  0xc4   :  { %6895 = vmatmul.mubr.msk.f32.gmra.mrb[2].mxu0 %vm51_vm3, %v8604_v49 }
  0xc5   :  { %2005 = vmatprep.mubr.f32.mxu0 %v7939_v7  ;;  %7514 = vmatpush1.bf16.msk.msra.mxu0 %vm7996_vm2, %v7512_v25 }
  0xc8   :  { %6896 = vmatmul.mubr.msk.f32.gmra.mrb[4].mxu0 %vm51_vm3, %v8618_v51 }
  0xc9   :  { %2011 = vmatprep.mubr.f32.mxu0 %v7939_v7 }
  0xcc   :  { %6897 = vmatmul.mubr.msk.f32.gmra.mrb[18].mxu0 %vm51_vm3, %v8631_v52 }
  0xcd   :  { %2017 = vmatprep.mubr.f32.mxu0 %v7939_v7 }
  0xd0   :  { %6898 = vmatmul.mubr.msk.f32.gmra.mrb[20].mxu0 %vm51_vm3, %v8642_v53 }
  0xd1   :  { %2023 = vmatprep.mubr.f32.mxu0 %v7939_v7 }
  0xd4   :  { %6899 = vmatmul.mubr.msk.f32.gmra.mrb[22].mxu0 %vm51_vm3, %v8653_v54 }
  0xd5   :  { %2195 = vmatprep.mubr.f32.mxu0 %v7939_v7 }
  0xd8   :  { %6910 = vmatmul.mubr.msk.f32.vlgmr.msra.gmra.mrb[6].mxu0 %vm51_vm3, %v8582_v41 }
  0xd9   :  { %2201 = vmatprep.mubr.f32.mxu0 %v7939_v7 }
  0xdc   :  { %6911 = vmatmul.mubr.msk.f32.gmra.mrb[8].mxu0 %vm51_vm3, %v8604_v49 }
  0xdd   :  { %2207 = vmatprep.mubr.f32.mxu0 %v7939_v7 }
  0xdf   :  { %v173_v10 = vpop.f32.mrb[0].mxu1 }
  0xe0   :  { %6912 = vmatmul.mubr.msk.f32.gmra.mrb[10].mxu0 %vm51_vm3, %v8618_v51  ;;  %v175_v26 = vpop.f32.mrb[1].mxu1 }
  0xe1   :  { %2213 = vmatprep.mubr.f32.mxu0 %v7939_v7 }
  0xe3   :  { %v179_v27 = vpop.f32.mrb[2].mxu1 }
  0xe4   :  { %6913 = vmatmul.mubr.msk.f32.gmra.mrb[12].mxu0 %vm51_vm3, %v8631_v52  ;;  %v181_v28 = vpop.f32.mrb[3].mxu1 }
  0xe5   :  { %2219 = vmatprep.mubr.f32.mxu0 %v7939_v7 }
  0xe7   :  { %v185_v29 = vpop.f32.mrb[4].mxu1 }
  0xe8   :  { %6914 = vmatmul.mubr.msk.f32.gmra.mrb[14].mxu0 %vm51_vm3, %v8642_v53  ;;  %v187_v30 = vpop.f32.mrb[5].mxu1 }
  0xe9   :  { %2225 = vmatprep.mubr.f32.mxu0 %v7939_v7 }
  0xec   :  { %6915 = vmatmul.mubr.msk.f32.gmra.mrb[16].mxu0 %vm51_vm3, %v8653_v54 }
 0x14b   :  { %v2096_v31 = vpop.f32.mrb[6].mxu1 }
 0x14c   :  { %2306 = vst [vmem:[#allocation2 + $0x10] sm:$0xff] %v2096_v31  ;;  %v2098_v32 = vpop.f32.mrb[7].mxu1 }
 0x14d   :  { %2307 = vst [vmem:[#allocation2 + $0x18] sm:$0xff] %v2098_v32 }
 0x14f   :  { %v2102_v33 = vpop.f32.mrb[8].mxu1 }
 0x150   :  { %2312 = vst [vmem:[#allocation2 + $0x40] sm:$0xff] %v2102_v33  ;;  %v2104_v34 = vpop.f32.mrb[9].mxu1 }
 0x151   :  { %2313 = vst [vmem:[#allocation2 + $0x48] sm:$0xff] %v2104_v34 }
 0x153   :  { %v2108_v35 = vpop.f32.mrb[10].mxu1 }
 0x154   :  { %2318 = vst [vmem:[#allocation2 + $0x70] sm:$0xff] %v2108_v35  ;;  %v2110_v36 = vpop.f32.mrb[11].mxu1 }
 0x155   :  { %2319 = vst [vmem:[#allocation2 + $0x78] sm:$0xff] %v2110_v36 }
 0x157   :  { %v2114_v37 = vpop.f32.mrb[12].mxu1 }
 0x158   :  { %2324 = vst [vmem:[#allocation2 + $0xa0] sm:$0xff] %v2114_v37  ;;  %v2116_v38 = vpop.f32.mrb[13].mxu1 }
 0x159   :  { %2325 = vst [vmem:[#allocation2 + $0xa8] sm:$0xff] %v2116_v38 }
 0x15b   :  { %v2120_v7 = vpop.f32.mrb[14].mxu1 }
 0x15c   :  { %2330 = vst [vmem:[#allocation2 + $0xd0] sm:$0xff] %v2120_v7  ;;  %v2122_v39 = vpop.f32.mrb[15].mxu1 }
 0x15d   :  { %2331 = vst [vmem:[#allocation2 + $0xd8] sm:$0xff] %v2122_v39 }
 0x15f   :  { %v2126_v40 = vpop.f32.mrb[16].mxu1 }
 0x160   :  { %2336 = vst [vmem:[#allocation2 + $0x100] sm:$0xff] %v2126_v40  ;;  %v2128_v41 = vpop.f32.mrb[17].mxu1 }
 0x161   :  { %2337 = vst [vmem:[#allocation2 + $0x108] sm:$0xff] %v2128_v41 }
 0x193   :  { %v1995_v42 = vpop.f32.mrb[0].mxu0 }
 0x194   :  { %2304 = vst [vmem:[#allocation2] sm:$0xff] %v1995_v42  ;;  %v1997_v43 = vpop.f32.mrb[1].mxu0 }
 0x195   :  { %2305 = vst [vmem:[#allocation2 + $0x8] sm:$0xff] %v1997_v43 }
 0x197   :  { %v2001_v44 = vpop.f32.mrb[2].mxu0 }
 0x198   :  { %2310 = vst [vmem:[#allocation2 + $0x30] sm:$0xff] %v2001_v44  ;;  %v2003_v45 = vpop.f32.mrb[3].mxu0 }
 0x199   :  { %2311 = vst [vmem:[#allocation2 + $0x38] sm:$0xff] %v2003_v45 }
 0x19b   :  { %v2007_v46 = vpop.f32.mrb[4].mxu0 }
 0x19c   :  { %2316 = vst [vmem:[#allocation2 + $0x60] sm:$0xff] %v2007_v46  ;;  %v2009_v47 = vpop.f32.mrb[5].mxu0  ;;  %v2340_v3 = vld [vmem:[#allocation2] ss:$8 sm:$0xf] }
 0x19d   :  { %2317 = vst [vmem:[#allocation2 + $0x68] sm:$0xff] %v2009_v47  ;;  %v2348_v4 = vld [vmem:[#allocation2 + $0x1] ss:$8 sm:$0xf] }
 0x19e   :  { %v2367_v5 = vld [vmem:[#allocation2 + $0x2] ss:$8 sm:$0xf]  ;;  %v2375_v6 = vld [vmem:[#allocation2 + $0x3] ss:$8 sm:$0xf] }
 0x19f   :  { %v2013_v49 = vpop.f32.mrb[18].mxu0  ;;  %v2391_v11 = vld [vmem:[#allocation2 + $0x4] ss:$8 sm:$0xf] }
 0x1a0   :  { %v7753_v48 = vadd.f32 %v2013_v49, %v173_v10  ;;  %v2015_v50 = vpop.f32.mrb[19].mxu0  ;;  %v2399_v12 = vld [vmem:[#allocation2 + $0x5] ss:$8 sm:$0xf] }
 0x1a1   :  { %v7756_v51 = vadd.f32 %v2015_v50, %v175_v26  ;;  %v2415_v15 = vld [vmem:[#allocation2 + $0x6] ss:$8 sm:$0xf]  ;;  %v2423_v17 = vld [vmem:[#allocation2 + $0x7] ss:$8 sm:$0xf] }
 0x1a2   :  { %2322 = vst [vmem:[#allocation2 + $0x90] sm:$0xff] %v7753_v48  ;;  %v2439_v21 = vld [vmem:[#allocation2 + $0x30] ss:$8 sm:$0xf] }
 0x1a3   :  { %v2019_v52 = vpop.f32.mrb[20].mxu0  ;;  %2323 = vst [vmem:[#allocation2 + $0x98] sm:$0xff] %v7756_v51  ;;  %v2447_v22 = vld [vmem:[#allocation2 + $0x31] ss:$8 sm:$0xf] }
 0x1a4   :  { %v7759_v53 = vadd.f32 %v2019_v52, %v179_v27  ;;  %v2021_v54 = vpop.f32.mrb[21].mxu0  ;;  %v2463_v26 = vld [vmem:[#allocation2 + $0x32] ss:$8 sm:$0xf] }
 0x1a5   :  { %v7762_v55 = vadd.f32 %v2021_v54, %v181_v28  ;;  %v2471_v27 = vld [vmem:[#allocation2 + $0x33] ss:$8 sm:$0xf]  ;;  %v2487_v33 = vld [vmem:[#allocation2 + $0x34] ss:$8 sm:$0xf] }
 0x1a6   :  { %2328 = vst [vmem:[#allocation2 + $0xc0] sm:$0xff] %v7759_v53  ;;  %v2495_v34 = vld [vmem:[#allocation2 + $0x35] ss:$8 sm:$0xf] }
 0x1a7   :  { %v2025_v56 = vpop.f32.mrb[22].mxu0  ;;  %2329 = vst [vmem:[#allocation2 + $0xc8] sm:$0xff] %v7762_v55  ;;  %v2511_v39 = vld [vmem:[#allocation2 + $0x36] ss:$8 sm:$0xf] }
 0x1a8   :  { %v7765_v57 = vadd.f32 %v2025_v56, %v185_v29  ;;  %v2027_v58 = vpop.f32.mrb[23].mxu0  ;;  %v2519_v40 = vld [vmem:[#allocation2 + $0x37] ss:$8 sm:$0xf] }
 0x1a9   :  { %v7768_v59 = vadd.f32 %v2027_v58, %v187_v30  ;;  %v2535_v46 = vld [vmem:[#allocation2 + $0x60] ss:$8 sm:$0xf]  ;;  %v2543_v47 = vld [vmem:[#allocation2 + $0x61] ss:$8 sm:$0xf] }
 0x1aa   :  { %2334 = vst [vmem:[#allocation2 + $0xf0] sm:$0xff] %v7765_v57  ;;  %v2559_v53 = vld [vmem:[#allocation2 + $0x62] ss:$8 sm:$0xf] }
 0x1ab   :  { %v2197_v60 = vpop.f32.mrb[6].mxu0  ;;  %2335 = vst [vmem:[#allocation2 + $0xf8] sm:$0xff] %v7768_v59  ;;  %v2567_v54 = vld [vmem:[#allocation2 + $0x63] ss:$8 sm:$0xf] }
 0x1ac   :  { %2308 = vst [vmem:[#allocation2 + $0x20] sm:$0xff] %v2197_v60  ;;  %v2199_v61 = vpop.f32.mrb[7].mxu0  ;;  %v2583_v60 = vld [vmem:[#allocation2 + $0x64] ss:$8 sm:$0xf] }
 0x1ad   :  { %2309 = vst [vmem:[#allocation2 + $0x28] sm:$0xff] %v2199_v61  ;;  %v2591_v61 = vld [vmem:[#allocation2 + $0x65] ss:$8 sm:$0xf] }
 0x1af   :  { %v2203_v62 = vpop.f32.mrb[8].mxu0 }
 0x1b0   :  { %2314 = vst [vmem:[#allocation2 + $0x50] sm:$0xff] %v2203_v62  ;;  %v2205_v63 = vpop.f32.mrb[9].mxu0 }
 0x1b1   :  { %2315 = vst [vmem:[#allocation2 + $0x58] sm:$0xff] %v2205_v63 }
 0x1b3   :  { %v2209_v0 = vpop.f32.mrb[10].mxu0 }
 0x1b4   :  { %2320 = vst [vmem:[#allocation2 + $0x80] sm:$0xff] %v2209_v0  ;;  %v2211_v2 = vpop.f32.mrb[11].mxu0  ;;  %v2341_v13 = vld [vmem:[#allocation2] ss:$8 sm:$0x30] }
 0x1b5   :  { %2321 = vst [vmem:[#allocation2 + $0x88] sm:$0xff] %v2211_v2  ;;  %v2349_v14 = vld [vmem:[#allocation2 + $0x1] ss:$8 sm:$0x30]  ;;  %v2342_v16 = vor.u32 %v2341_v13, %v2340_v3 }
 0x1b6   :  { %v2350_v18 = vor.u32 %v2349_v14, %v2348_v4  ;;  %v2368_v19 = vld [vmem:[#allocation2 + $0x2] ss:$8 sm:$0x30]  ;;  %v2376_v20 = vld [vmem:[#allocation2 + $0x3] ss:$8 sm:$0x30] }
 0x1b7   :  { %v2215_v8 = vpop.f32.mrb[12].mxu0  ;;  %v2369_v23 = vor.u32 %v2368_v19, %v2367_v5  ;;  %v2377_v24 = vor.u32 %v2376_v20, %v2375_v6  ;;  %v2392_v25 = vld [vmem:[#allocation2 + $0x4] ss:$8 sm:$0x30] }
 0x1b8   :  { %2326 = vst [vmem:[#allocation2 + $0xb0] sm:$0xff] %v2215_v8  ;;  %v2400_v10 = vld [vmem:[#allocation2 + $0x5] ss:$8 sm:$0x30]  ;;  %v2393_v28 = vor.u32 %v2392_v25, %v2391_v11  ;;  %v2355_v32 = vmax.f32 %v2342_v16, %v2350_v18 }
 0x1b9   :  { %v2401_v29 = vor.u32 %v2400_v10, %v2399_v12  ;;  %v2416_v30 = vld [vmem:[#allocation2 + $0x6] ss:$8 sm:$0x30]  ;;  %v2424_v31 = vld [vmem:[#allocation2 + $0x7] ss:$8 sm:$0x30]  ;;  %v2382_v7 = vmax.f32 %v2369_v23, %v2377_v24 }
 0x1ba   :  { %v2417_v35 = vor.u32 %v2416_v30, %v2415_v15  ;;  %v2425_v36 = vor.u32 %v2424_v31, %v2423_v17  ;;  %v2440_v37 = vld [vmem:[#allocation2 + $0x30] ss:$8 sm:$0x30]  ;;  %v2448_v38 = vld [vmem:[#allocation2 + $0x31] ss:$8 sm:$0x30] }
 0x1bb   :  { %v2441_v41 = vor.u32 %v2440_v37, %v2439_v21  ;;  %v2449_v42 = vor.u32 %v2448_v38, %v2447_v22  ;;  %v2464_v43 = vld [vmem:[#allocation2 + $0x32] ss:$8 sm:$0x30]  ;;  %v2472_v44 = vld [vmem:[#allocation2 + $0x33] ss:$8 sm:$0x30]  ;;  %v2406_v45 = vmax.f32 %v2393_v28, %v2401_v29 }
 0x1bc   :  { %2361 = vst.msk [vmem:[#allocation3] ss:$8 sm:$0xf] %vm8810_vm4, %v2355_v32  ;;  %2362 = vst.msk [vmem:[#allocation3] ss:$8 sm:$0x30] %vm8810_vm4, %v2355_v32  ;;  %v2465_v49 = vor.u32 %v2464_v43, %v2463_v26  ;;  %v2473_v48 = vor.u32 %v2472_v44, %v2471_v27  ;;  %v2430_v52 = vmax.f32 %v2417_v35, %v2425_v36 }
 0x1bd   :  { %v2488_v50 = vld [vmem:[#allocation2 + $0x34] ss:$8 sm:$0x30]  ;;  %v2496_v51 = vld [vmem:[#allocation2 + $0x35] ss:$8 sm:$0x30]  ;;  %v2454_v59 = vmax.f32 %v2441_v41, %v2449_v42 }
 0x1be   :  { %2385 = vst.msk [vmem:[#allocation3 + $0x1] ss:$8 sm:$0xf] %vm8810_vm4, %v2382_v7  ;;  %2386 = vst.msk [vmem:[#allocation3 + $0x1] ss:$8 sm:$0x30] %vm8810_vm4, %v2382_v7  ;;  %v2489_v55 = vor.u32 %v2488_v50, %v2487_v33  ;;  %v2497_v56 = vor.u32 %v2496_v51, %v2495_v34  ;;  %v2478_v3 = vmax.f32 %v2465_v49, %v2473_v48 }
 0x1bf   :  { %v2512_v57 = vld [vmem:[#allocation2 + $0x36] ss:$8 sm:$0x30]  ;;  %v2520_v58 = vld [vmem:[#allocation2 + $0x37] ss:$8 sm:$0x30] }
 0x1c0   :  { %2409 = vst.msk [vmem:[#allocation3 + $0x2] ss:$8 sm:$0xf] %vm8810_vm4, %v2406_v45  ;;  %2410 = vst.msk [vmem:[#allocation3 + $0x2] ss:$8 sm:$0x30] %vm8810_vm4, %v2406_v45  ;;  %v2513_v62 = vor.u32 %v2512_v57, %v2511_v39  ;;  %v2521_v63 = vor.u32 %v2520_v58, %v2519_v40  ;;  %v2502_v13 = vmax.f32 %v2489_v55, %v2497_v56 }
 0x1c1   :  { %v2536_v0 = vld [vmem:[#allocation2 + $0x60] ss:$8 sm:$0x30]  ;;  %v2544_v2 = vld [vmem:[#allocation2 + $0x61] ss:$8 sm:$0x30] }
 0x1c2   :  { %2433 = vst.msk [vmem:[#allocation3 + $0x3] ss:$8 sm:$0xf] %vm8810_vm4, %v2430_v52  ;;  %2434 = vst.msk [vmem:[#allocation3 + $0x3] ss:$8 sm:$0x30] %vm8810_vm4, %v2430_v52  ;;  %v2537_v6 = vor.u32 %v2536_v0, %v2535_v46  ;;  %v2545_v8 = vor.u32 %v2544_v2, %v2543_v47  ;;  %v2526_v18 = vmax.f32 %v2513_v62, %v2521_v63 }
 0x1c3   :  { %v2607_v4 = vld [vmem:[#allocation2 + $0x66] ss:$8 sm:$0xf]  ;;  %v2615_v5 = vld [vmem:[#allocation2 + $0x67] ss:$8 sm:$0xf] }
 0x1c4   :  { %v2560_v11 = vld [vmem:[#allocation2 + $0x62] ss:$8 sm:$0x30]  ;;  %v2568_v12 = vld [vmem:[#allocation2 + $0x63] ss:$8 sm:$0x30]  ;;  %v2550_v19 = vmax.f32 %v2537_v6, %v2545_v8 }
 0x1c5   :  { %2457 = vst.msk [vmem:[#allocation3 + $0x4] ss:$8 sm:$0xf] %vm8810_vm4, %v2454_v59  ;;  %2458 = vst.msk [vmem:[#allocation3 + $0x4] ss:$8 sm:$0x30] %vm8810_vm4, %v2454_v59  ;;  %v2561_v14 = vor.u32 %v2560_v11, %v2559_v53  ;;  %v2569_v15 = vor.u32 %v2568_v12, %v2567_v54 }
 0x1c6   :  { %v2584_v17 = vld [vmem:[#allocation2 + $0x64] ss:$8 sm:$0x30]  ;;  %v2592_v16 = vld [vmem:[#allocation2 + $0x65] ss:$8 sm:$0x30] }
 0x1c7   :  { %2481 = vst.msk [vmem:[#allocation3 + $0x5] ss:$8 sm:$0xf] %vm8810_vm4, %v2478_v3  ;;  %2482 = vst.msk [vmem:[#allocation3 + $0x5] ss:$8 sm:$0x30] %vm8810_vm4, %v2478_v3  ;;  %v2585_v20 = vor.u32 %v2584_v17, %v2583_v60  ;;  %v2593_v21 = vor.u32 %v2592_v16, %v2591_v61  ;;  %v2574_v24 = vmax.f32 %v2561_v14, %v2569_v15 }
 0x1c8   :  { %v2608_v22 = vld [vmem:[#allocation2 + $0x66] ss:$8 sm:$0x30]  ;;  %v2616_v23 = vld [vmem:[#allocation2 + $0x67] ss:$8 sm:$0x30] }
 0x1c9   :  { %2505 = vst.msk [vmem:[#allocation3 + $0x6] ss:$8 sm:$0xf] %vm8810_vm4, %v2502_v13  ;;  %2506 = vst.msk [vmem:[#allocation3 + $0x6] ss:$8 sm:$0x30] %vm8810_vm4, %v2502_v13  ;;  %v2609_v25 = vor.u32 %v2608_v22, %v2607_v4  ;;  %v2617_v10 = vor.u32 %v2616_v23, %v2615_v5  ;;  %v2598_v27 = vmax.f32 %v2585_v20, %v2593_v21 }
 0x1ca   :  { %v2217_v26 = vpop.f32.mrb[13].mxu0  ;;  %2529 = vst.msk [vmem:[#allocation3 + $0x7] ss:$8 sm:$0xf] %vm8810_vm4, %v2526_v18 }
 0x1cb   :  { %2530 = vst.msk [vmem:[#allocation3 + $0x7] ss:$8 sm:$0x30] %vm8810_vm4, %v2526_v18  ;;  %2327 = vst [vmem:[#allocation2 + $0xb8] sm:$0xff] %v2217_v26  ;;  %v2221_v28 = vpop.f32.mrb[14].mxu0  ;;  %v2622_v29 = vmax.f32 %v2609_v25, %v2617_v10 }
 0x1cc   :  { %2553 = vst.msk [vmem:[#allocation3 + $0x30] ss:$8 sm:$0xf] %vm8810_vm4, %v2550_v19  ;;  %2554 = vst.msk [vmem:[#allocation3 + $0x30] ss:$8 sm:$0x30] %vm8810_vm4, %v2550_v19 }
 0x1cd   :  { %2332 = vst [vmem:[#allocation2 + $0xe0] sm:$0xff] %v2221_v28  ;;  %v2223_v30 = vpop.f32.mrb[15].mxu0  ;;  %2577 = vst.msk [vmem:[#allocation3 + $0x31] ss:$8 sm:$0xf] %vm8810_vm4, %v2574_v24 }
 0x1ce   :  { %2578 = vst.msk [vmem:[#allocation3 + $0x31] ss:$8 sm:$0x30] %vm8810_vm4, %v2574_v24  ;;  %2333 = vst [vmem:[#allocation2 + $0xe8] sm:$0xff] %v2223_v30  ;;  %v2227_v31 = vpop.f32.mrb[16].mxu0 }
 0x1cf   :  { %2601 = vst.msk [vmem:[#allocation3 + $0x32] ss:$8 sm:$0xf] %vm8810_vm4, %v2598_v27  ;;  %2602 = vst.msk [vmem:[#allocation3 + $0x32] ss:$8 sm:$0x30] %vm8810_vm4, %v2598_v27 }
 0x1d0   :  { %2625 = vst.msk [vmem:[#allocation3 + $0x33] ss:$8 sm:$0xf] %vm8810_vm4, %v2622_v29  ;;  %2626 = vst.msk [vmem:[#allocation3 + $0x33] ss:$8 sm:$0x30] %vm8810_vm4, %v2622_v29 }
 0x1d1   :  { %2338 = vst [vmem:[#allocation2 + $0x110] sm:$0xff] %v2227_v31  ;;  %v2229_v32 = vpop.f32.mrb[17].mxu0  ;;  %v2344_v33 = vld [vmem:[#allocation2 + $0x90] ss:$8 sm:$0xf] }
 0x1d2   :  { %v2352_v34 = vld [vmem:[#allocation2 + $0x91] ss:$8 sm:$0xf]  ;;  %2339 = vst [vmem:[#allocation2 + $0x118] sm:$0xff] %v2229_v32 }
 0x1d3   :  { %v2371_v35 = vld [vmem:[#allocation2 + $0x92] ss:$8 sm:$0xf]  ;;  %v2379_v36 = vld [vmem:[#allocation2 + $0x93] ss:$8 sm:$0xf] }
 0x1d4   :  { %v2345_v37 = vld [vmem:[#allocation2 + $0x90] ss:$8 sm:$0x30]  ;;  %v2353_v38 = vld [vmem:[#allocation2 + $0x91] ss:$8 sm:$0x30] }
 0x1d5   :  { %v2395_v7 = vld [vmem:[#allocation2 + $0x94] ss:$8 sm:$0xf]  ;;  %v2403_v39 = vld [vmem:[#allocation2 + $0x95] ss:$8 sm:$0xf]  ;;  %v2346_v40 = vor.u32 %v2345_v37, %v2344_v33  ;;  %v2354_v41 = vor.u32 %v2353_v38, %v2352_v34 }
 0x1d6   :  { %v2372_v42 = vld [vmem:[#allocation2 + $0x92] ss:$8 sm:$0x30]  ;;  %v2380_v43 = vld [vmem:[#allocation2 + $0x93] ss:$8 sm:$0x30] }
 0x1d7   :  { %v2419_v44 = vld [vmem:[#allocation2 + $0x96] ss:$8 sm:$0xf]  ;;  %v2427_v45 = vld [vmem:[#allocation2 + $0x97] ss:$8 sm:$0xf]  ;;  %v2373_v46 = vor.u32 %v2372_v42, %v2371_v35  ;;  %v2381_v47 = vor.u32 %v2380_v43, %v2379_v36  ;;  %v2356_v52 = vmax.f32 %v2346_v40, %v2354_v41 }
 0x1d8   :  { %v2396_v49 = vld [vmem:[#allocation2 + $0x94] ss:$8 sm:$0x30]  ;;  %v2404_v48 = vld [vmem:[#allocation2 + $0x95] ss:$8 sm:$0x30] }
 0x1d9   :  { %v2443_v50 = vld [vmem:[#allocation2 + $0xc0] ss:$8 sm:$0xf]  ;;  %v2451_v51 = vld [vmem:[#allocation2 + $0xc1] ss:$8 sm:$0xf]  ;;  %v2397_v53 = vor.u32 %v2396_v49, %v2395_v7  ;;  %v2405_v54 = vor.u32 %v2404_v48, %v2403_v39  ;;  %v2383_v59 = vmax.f32 %v2373_v46, %v2381_v47 }
 0x1da   :  { %v2420_v55 = vld [vmem:[#allocation2 + $0x96] ss:$8 sm:$0x30]  ;;  %v2428_v56 = vld [vmem:[#allocation2 + $0x97] ss:$8 sm:$0x30] }
 0x1db   :  { %v2467_v57 = vld [vmem:[#allocation2 + $0xc2] ss:$8 sm:$0xf]  ;;  %v2475_v58 = vld [vmem:[#allocation2 + $0xc3] ss:$8 sm:$0xf]  ;;  %v2421_v60 = vor.u32 %v2420_v55, %v2419_v44  ;;  %v2429_v61 = vor.u32 %v2428_v56, %v2427_v45  ;;  %v2407_v3 = vmax.f32 %v2397_v53, %v2405_v54 }
 0x1dc   :  { %v2444_v62 = vld [vmem:[#allocation2 + $0xc0] ss:$8 sm:$0x30]  ;;  %v2452_v63 = vld [vmem:[#allocation2 + $0xc1] ss:$8 sm:$0x30] }
 0x1dd   :  { %v2491_v0 = vld [vmem:[#allocation2 + $0xc4] ss:$8 sm:$0xf]  ;;  %v2499_v2 = vld [vmem:[#allocation2 + $0xc5] ss:$8 sm:$0xf]  ;;  %v2445_v4 = vor.u32 %v2444_v62, %v2443_v50  ;;  %v2453_v5 = vor.u32 %v2452_v63, %v2451_v51  ;;  %v2431_v13 = vmax.f32 %v2421_v60, %v2429_v61 }
 0x1de   :  { %v2468_v6 = vld [vmem:[#allocation2 + $0xc2] ss:$8 sm:$0x30]  ;;  %v2476_v8 = vld [vmem:[#allocation2 + $0xc3] ss:$8 sm:$0x30] }
 0x1df   :  { %v2515_v11 = vld [vmem:[#allocation2 + $0xc6] ss:$8 sm:$0xf]  ;;  %v2523_v12 = vld [vmem:[#allocation2 + $0xc7] ss:$8 sm:$0xf]  ;;  %v2469_v14 = vor.u32 %v2468_v6, %v2467_v57  ;;  %v2477_v15 = vor.u32 %v2476_v8, %v2475_v58  ;;  %v2455_v20 = vmax.f32 %v2445_v4, %v2453_v5 }
 0x1e0   :  { %2364 = vst.msk [vmem:[#allocation3 + $0x60] ss:$8 sm:$0xf] %vm8810_vm4, %v2356_v52  ;;  %2365 = vst.msk [vmem:[#allocation3 + $0x60] ss:$8 sm:$0x30] %vm8810_vm4, %v2356_v52 }
 0x1e1   :  { %v2492_v17 = vld [vmem:[#allocation2 + $0xc4] ss:$8 sm:$0x30]  ;;  %v2500_v16 = vld [vmem:[#allocation2 + $0xc5] ss:$8 sm:$0x30]  ;;  %v2479_v26 = vmax.f32 %v2469_v14, %v2477_v15 }
 0x1e2   :  { %v2539_v18 = vld [vmem:[#allocation2 + $0xf0] ss:$8 sm:$0xf]  ;;  %v2547_v19 = vld [vmem:[#allocation2 + $0xf1] ss:$8 sm:$0xf]  ;;  %v2493_v21 = vor.u32 %v2492_v17, %v2491_v0  ;;  %v2501_v22 = vor.u32 %v2500_v16, %v2499_v2 }
 0x1e3   :  { %2388 = vst.msk [vmem:[#allocation3 + $0x61] ss:$8 sm:$0xf] %vm8810_vm4, %v2383_v59  ;;  %2389 = vst.msk [vmem:[#allocation3 + $0x61] ss:$8 sm:$0x30] %vm8810_vm4, %v2383_v59 }
 0x1e4   :  { %v2516_v23 = vld [vmem:[#allocation2 + $0xc6] ss:$8 sm:$0x30]  ;;  %v2524_v24 = vld [vmem:[#allocation2 + $0xc7] ss:$8 sm:$0x30]  ;;  %v2503_v32 = vmax.f32 %v2493_v21, %v2501_v22 }
 0x1e5   :  { %v2563_v25 = vld [vmem:[#allocation2 + $0xf2] ss:$8 sm:$0xf]  ;;  %v2571_v10 = vld [vmem:[#allocation2 + $0xf3] ss:$8 sm:$0xf]  ;;  %v2517_v27 = vor.u32 %v2516_v23, %v2515_v11  ;;  %v2525_v28 = vor.u32 %v2524_v24, %v2523_v12 }
 0x1e6   :  { %2412 = vst.msk [vmem:[#allocation3 + $0x62] ss:$8 sm:$0xf] %vm8810_vm4, %v2407_v3  ;;  %2413 = vst.msk [vmem:[#allocation3 + $0x62] ss:$8 sm:$0x30] %vm8810_vm4, %v2407_v3 }
 0x1e7   :  { %v2540_v29 = vld [vmem:[#allocation2 + $0xf0] ss:$8 sm:$0x30]  ;;  %v2548_v30 = vld [vmem:[#allocation2 + $0xf1] ss:$8 sm:$0x30]  ;;  %v2527_v37 = vmax.f32 %v2517_v27, %v2525_v28 }
 0x1e8   :  { %v2587_v31 = vld [vmem:[#allocation2 + $0xf4] ss:$8 sm:$0xf]  ;;  %2436 = vst.msk [vmem:[#allocation3 + $0x63] ss:$8 sm:$0xf] %vm8810_vm4, %v2431_v13  ;;  %v2541_v33 = vor.u32 %v2540_v29, %v2539_v18  ;;  %v2549_v34 = vor.u32 %v2548_v30, %v2547_v19 }
 0x1e9   :  { %2437 = vst.msk [vmem:[#allocation3 + $0x63] ss:$8 sm:$0x30] %vm8810_vm4, %v2431_v13  ;;  %v2564_v35 = vld [vmem:[#allocation2 + $0xf2] ss:$8 sm:$0x30] }
 0x1ea   :  { %v2572_v36 = vld [vmem:[#allocation2 + $0xf3] ss:$8 sm:$0x30]  ;;  %2460 = vst.msk [vmem:[#allocation3 + $0x64] ss:$8 sm:$0xf] %vm8810_vm4, %v2455_v20  ;;  %v2565_v38 = vor.u32 %v2564_v35, %v2563_v25  ;;  %v2551_v41 = vmax.f32 %v2541_v33, %v2549_v34 }
 0x1eb   :  { %2461 = vst.msk [vmem:[#allocation3 + $0x64] ss:$8 sm:$0x30] %vm8810_vm4, %v2455_v20  ;;  %v2573_v7 = vor.u32 %v2572_v36, %v2571_v10  ;;  %v2588_v39 = vld [vmem:[#allocation2 + $0xf4] ss:$8 sm:$0x30] }
 0x1ec   :  { %v2595_v40 = vld [vmem:[#allocation2 + $0xf5] ss:$8 sm:$0xf]  ;;  %2484 = vst.msk [vmem:[#allocation3 + $0x65] ss:$8 sm:$0xf] %vm8810_vm4, %v2479_v26  ;;  %v2589_v42 = vor.u32 %v2588_v39, %v2587_v31 }
 0x1ed   :  { %2485 = vst.msk [vmem:[#allocation3 + $0x65] ss:$8 sm:$0x30] %vm8810_vm4, %v2479_v26  ;;  %v2596_v43 = vld [vmem:[#allocation2 + $0xf5] ss:$8 sm:$0x30]  ;;  %v2575_v45 = vmax.f32 %v2565_v38, %v2573_v7 }
 0x1ee   :  { %v2611_v44 = vld [vmem:[#allocation2 + $0xf6] ss:$8 sm:$0xf]  ;;  %2508 = vst.msk [vmem:[#allocation3 + $0x66] ss:$8 sm:$0xf] %vm8810_vm4, %v2503_v32  ;;  %v2597_v46 = vor.u32 %v2596_v43, %v2595_v40 }
 0x1ef   :  { %2509 = vst.msk [vmem:[#allocation3 + $0x66] ss:$8 sm:$0x30] %vm8810_vm4, %v2503_v32  ;;  %v2612_v47 = vld [vmem:[#allocation2 + $0xf6] ss:$8 sm:$0x30] }
 0x1f0   :  { %v2619_v49 = vld [vmem:[#allocation2 + $0xf7] ss:$8 sm:$0xf]  ;;  %2532 = vst.msk [vmem:[#allocation3 + $0x67] ss:$8 sm:$0xf] %vm8810_vm4, %v2527_v37  ;;  %v2613_v48 = vor.u32 %v2612_v47, %v2611_v44  ;;  %v2599_v53 = vmax.f32 %v2589_v42, %v2597_v46 }
 0x1f1   :  { %2533 = vst.msk [vmem:[#allocation3 + $0x67] ss:$8 sm:$0x30] %vm8810_vm4, %v2527_v37  ;;  %v2620_v50 = vld [vmem:[#allocation2 + $0xf7] ss:$8 sm:$0x30] }
 0x1f2   :  { %v8894_v51 = vld [vmem:[#allocation3 + $0x8] sm:$0xff]  ;;  %2556 = vst.msk [vmem:[#allocation3 + $0x90] ss:$8 sm:$0xf] %vm8810_vm4, %v2551_v41  ;;  %v8900_v52 = vld [vmem:[#allocation3] sm:$0xff]  ;;  %v2621_v54 = vor.u32 %v2620_v50, %v2619_v49  ;;  %v8914_v56 = vld [vmem:[#allocation3 + $0x10] sm:$0xff] }
 0x1f3   :  { %2557 = vst.msk [vmem:[#allocation3 + $0x90] ss:$8 sm:$0x30] %vm8810_vm4, %v2551_v41  ;;  %2742 = vrot.lane.b32.xlu1 %v8894_v51, %s7941_s1  ;;  %2580 = vst.msk [vmem:[#allocation3 + $0x91] ss:$8 sm:$0xf] %vm8810_vm4, %v2575_v45  ;;  %2668 = vrot.lane.b32.xlu0 %v8900_v52, %s7941_s1 }
 0x1f4   :  { %2581 = vst.msk [vmem:[#allocation3 + $0x91] ss:$8 sm:$0x30] %vm8810_vm4, %v2575_v45  ;;  %v2623_v55 = vmax.f32 %v2613_v48, %v2621_v54  ;;  %2604 = vst.msk [vmem:[#allocation3 + $0x92] ss:$8 sm:$0xf] %vm8810_vm4, %v2599_v53 }
 0x1f5   :  { %2605 = vst.msk [vmem:[#allocation3 + $0x92] ss:$8 sm:$0x30] %vm8810_vm4, %v2599_v53  ;;  %v8924_v57 = vld [vmem:[#allocation3 + $0x18] sm:$0xff]  ;;  %v8930_v58 = vld [vmem:[#allocation3 + $0x20] sm:$0xff]  ;;  %v8940_v9 = vld [vmem:[#allocation3 + $0x28] sm:$0xff] }
 0x1f6   :  { %2628 = vst.msk [vmem:[#allocation3 + $0x93] ss:$8 sm:$0xf] %vm8810_vm4, %v2623_v55  ;;  %2629 = vst.msk [vmem:[#allocation3 + $0x93] ss:$8 sm:$0x30] %vm8810_vm4, %v2623_v55 }
 0x1f7   :  { %2713 = vrot.lane.b32.xlu1 %v8894_v51, %s7941_s1  ;;  %2816 = vrot.lane.b32.xlu0 %v8914_v56, %s7941_s1  ;;  %v8942_v59 = vld [vmem:[#allocation3 + $0x38] sm:$0xf]  ;;  %v8948_v60 = vld [vmem:[#allocation3 + $0x40] sm:$0xf]  ;;  %v8954_v61 = vld [vmem:[#allocation3 + $0x48] sm:$0xf] }
 0x1f8   :  { %v8956_v62 = vld [vmem:[#allocation3 + $0x30] sm:$0xf]  ;;  %v8964_v0 = vld [vmem:[#allocation3 + $0x38] sm:$0xf]  ;;  %v8980_v5 = vld [vmem:[#allocation3 + $0x40] sm:$0xf] }
 0x1f9   :  { %v8962_v63 = vld [vmem:[#allocation3 + $0x50] sm:$0xf]  ;;  %v8970_v2 = vld [vmem:[#allocation3 + $0x58] sm:$0xf]  ;;  %v8986_v6 = vld [vmem:[#allocation3 + $0x48] sm:$0xf] }
 0x1fa   :  { %v8972_v3 = vld [vmem:[#allocation3 + $0x30] sm:$0xf]  ;;  %v8978_v4 = vld [vmem:[#allocation3 + $0x58] sm:$0xf]  ;;  %v8988_v8 = vld [vmem:[#allocation3 + $0x60] sm:$0xff] }
 0x1fb   :  { %2787 = vrot.lane.b32.xlu1 %v8914_v56, %s7941_s1  ;;  %2890 = vrot.lane.b32.xlu0 %v8924_v57, %s7941_s1  ;;  %v8994_v11 = vld [vmem:[#allocation3 + $0x50] sm:$0xf]  ;;  %v8996_v12 = vld [vmem:[#allocation3 + $0x68] sm:$0xff]  ;;  %v9008_v14 = vld [vmem:[#allocation3 + $0x78] sm:$0xff] }
 0x1fc   :  { %v9002_v13 = vld [vmem:[#allocation3 + $0x70] sm:$0xff]  ;;  %v9010_v15 = vld [vmem:[#allocation3 + $0x88] sm:$0xff]  ;;  %v9016_v17 = vld [vmem:[#allocation3 + $0x80] sm:$0xff] }
 0x1fd   :  { %v9022_v16 = vld [vmem:[#allocation3 + $0x90] sm:$0xf]  ;;  %v9028_v18 = vld [vmem:[#allocation3 + $0x98] sm:$0xf]  ;;  %v9034_v19 = vld [vmem:[#allocation3 + $0xa0] sm:$0xf] }
 0x1fe   :  { %v9040_v20 = vld [vmem:[#allocation3 + $0xa8] sm:$0xf]  ;;  %v9046_v21 = vld [vmem:[#allocation3 + $0x90] sm:$0xf]  ;;  %v9054_v23 = vld [vmem:[#allocation3 + $0xa0] sm:$0xf] }
 0x1ff   :  { %2861 = vrot.lane.b32.xlu1 %v8924_v57, %s7941_s1  ;;  %2964 = vrot.lane.b32.xlu0 %v8930_v58, %s7941_s1  ;;  %v9048_v22 = vld [vmem:[#allocation3 + $0xb0] sm:$0xf]  ;;  %v9056_v24 = vld [vmem:[#allocation3 + $0x98] sm:$0xf]  ;;  %v9062_v25 = vld [vmem:[#allocation3 + $0xa8] sm:$0xf] }
 0x200   :  { %v9064_v10 = vld [vmem:[#allocation3 + $0xb8] sm:$0xf]  ;;  %v9070_v26 = vld [vmem:[#allocation3 + $0xb0] sm:$0xf] }
 0x201   :  { %v9072_v27 = vld [vmem:[#allocation3 + $0xb8] sm:$0xf] }
 0x203   :  { %2935 = vrot.lane.b32.xlu1 %v8930_v58, %s7941_s1  ;;  %2638 = vrot.lane.b32.xlu0 %v8900_v52, %s7941_s1 }
 0x207   :  { %3038 = vrot.lane.b32.xlu0 %v8940_v9, %s7941_s1  ;;  %2744 = vrot.lane.b32.xlu1 %v8942_v59, %s7941_s1 }
 0x20b   :  { %3009 = vrot.lane.b32.xlu0 %v8940_v9, %s7941_s1  ;;  %2818 = vrot.lane.b32.xlu1 %v8948_v60, %s7941_s1 }
 0x20f   :  { %2892 = vrot.lane.b32.xlu1 %v8954_v61, %s7941_s1  ;;  %2670 = vrot.lane.b32.xlu0 %v8956_v62, %s7941_s1 }
 0x213   :  { %2966 = vrot.lane.b32.xlu1 %v8962_v63, %s7941_s1  ;;  %2715 = vrot.lane.b32.xlu0 %v8964_v0, %s7941_s1 }
 0x217   :  { %3040 = vrot.lane.b32.xlu0 %v8970_v2, %s7941_s1  ;;  %2640 = vrot.lane.b32.xlu1 %v8972_v3, %s7941_s1 }
 0x21b   :  { %3011 = vrot.lane.b32.xlu0 %v8978_v4, %s7941_s1  ;;  %2789 = vrot.lane.b32.xlu1 %v8980_v5, %s7941_s1 }
 0x21f   :  { %2863 = vrot.lane.b32.xlu1 %v8986_v6, %s7941_s1  ;;  %2672 = vrot.lane.b32.xlu0 %v8988_v8, %s7941_s1 }
 0x223   :  { %2937 = vrot.lane.b32.xlu1 %v8994_v11, %s7941_s1  ;;  %2746 = vrot.lane.b32.xlu0 %v8996_v12, %s7941_s1 }
 0x227   :  { %2820 = vrot.lane.b32.xlu0 %v9002_v13, %s7941_s1  ;;  %2642 = vrot.lane.b32.xlu1 %v8988_v8, %s7941_s1 }
 0x22b   :  { %2894 = vrot.lane.b32.xlu0 %v9008_v14, %s7941_s1  ;;  %3042 = vrot.lane.b32.xlu1 %v9010_v15, %s7941_s1 }
 0x22f   :  { %2968 = vrot.lane.b32.xlu0 %v9016_v17, %s7941_s1  ;;  %3013 = vrot.lane.b32.xlu1 %v9010_v15, %s7941_s1 }
 0x233   :  { %2717 = vrot.lane.b32.xlu0 %v8996_v12, %s7941_s1  ;;  %2674 = vrot.lane.b32.xlu1 %v9022_v16, %s7941_s1 }
 0x237   :  { %2791 = vrot.lane.b32.xlu0 %v9002_v13, %s7941_s1  ;;  %2748 = vrot.lane.b32.xlu1 %v9028_v18, %s7941_s1 }
 0x23b   :  { %2865 = vrot.lane.b32.xlu0 %v9008_v14, %s7941_s1  ;;  %2822 = vrot.lane.b32.xlu1 %v9034_v19, %s7941_s1 }
 0x23f   :  { %2939 = vrot.lane.b32.xlu0 %v9016_v17, %s7941_s1  ;;  %2896 = vrot.lane.b32.xlu1 %v9040_v20, %s7941_s1 }
 0x243   :  { %2644 = vrot.lane.b32.xlu0 %v9046_v21, %s7941_s1  ;;  %2970 = vrot.lane.b32.xlu1 %v9048_v22, %s7941_s1 }
 0x247   :  { %2793 = vrot.lane.b32.xlu0 %v9054_v23, %s7941_s1  ;;  %2719 = vrot.lane.b32.xlu1 %v9056_v24, %s7941_s1 }
 0x24b   :  { %2867 = vrot.lane.b32.xlu0 %v9062_v25, %s7941_s1  ;;  %3044 = vrot.lane.b32.xlu1 %v9064_v10, %s7941_s1 }
 0x24f   :  { %2941 = vrot.lane.b32.xlu0 %v9070_v26, %s7941_s1  ;;  %3015 = vrot.lane.b32.xlu1 %v9072_v27, %s7941_s1 }
 0x265   :  { %v2743_v28 = vpop.permute.xlu1 %2742  ;;  %v2669_v29 = vpop.permute.xlu0 %2668 }
 0x266   :  { %v2754_v30 = vmax.f32 %v8894_v51, %v2743_v28  ;;  %v2680_v31 = vmax.f32 %v8900_v52, %v2669_v29 }
 0x268   :  { %2762 = vrot.lane.b32.xlu0 %v2754_v30, %s7942_s16  ;;  %2688 = vrot.lane.b32.xlu1 %v2680_v31, %s7942_s16 }
 0x269   :  { %v2714_v32 = vpop.permute.xlu1 %2713  ;;  %v2817_v33 = vpop.permute.xlu0 %2816 }
 0x26a   :  { %v2725_v34 = vmax.f32 %v8894_v51, %v2714_v32  ;;  %v2828_v35 = vmax.f32 %v8914_v56, %v2817_v33 }
 0x26c   :  { %2730 = vst.msk [vmem:[#allocation4 + $0x20] sm:$0xff] %vm2654_vm5, %v2725_v34  ;;  %2836 = vrot.lane.b32.xlu0 %v2828_v35, %s7942_s16 }
 0x26d   :  { %v2788_v36 = vpop.permute.xlu1 %2787  ;;  %v2891_v37 = vpop.permute.xlu0 %2890 }
 0x26e   :  { %v2799_v38 = vmax.f32 %v8914_v56, %v2788_v36  ;;  %v2902_v7 = vmax.f32 %v8924_v57, %v2891_v37 }
 0x270   :  { %2804 = vst.msk [vmem:[#allocation4 + $0x40] sm:$0xff] %vm2654_vm5, %v2799_v38  ;;  %2910 = vrot.lane.b32.xlu0 %v2902_v7, %s7942_s16 }
 0x271   :  { %v2862_v39 = vpop.permute.xlu1 %2861  ;;  %v2965_v40 = vpop.permute.xlu0 %2964 }
 0x272   :  { %v2873_v41 = vmax.f32 %v8924_v57, %v2862_v39  ;;  %v2976_v42 = vmax.f32 %v8930_v58, %v2965_v40 }
 0x273   :  { %v3077_v43 = vld [vmem:[#allocation4 + $0x20] sm:$0xff] }
 0x274   :  { %2878 = vst.msk [vmem:[#allocation4 + $0x60] sm:$0xff] %vm2654_vm5, %v2873_v41  ;;  %2984 = vrot.lane.b32.xlu1 %v2976_v42, %s7942_s16  ;;  %3093 = vst.msk [vmem:[#allocation5 + $0x70] sm:$0xff] %vm2654_vm5, %v3077_v43  ;;  %v3204_v42 = vld [vmem:[#allocation4 + $0x20] sm:$0xff] }
 0x275   :  { %v2936_v44 = vpop.permute.xlu1 %2935  ;;  %v2639_v45 = vpop.permute.xlu0 %2638 }
 0x276   :  { %v2947_v46 = vmax.f32 %v8930_v58, %v2936_v44  ;;  %v2650_v47 = vmax.f32 %v8900_v52, %v2639_v45 }
 0x277   :  { %v9097_v49 = vld [vmem:[#allocation4 + $0x40] sm:$0xff] }
 0x278   :  { %v3079_v48 = vld [vmem:[#allocation4 + $0x40] sm:$0xff]  ;;  %2952 = vst.msk [vmem:[#allocation4 + $0x80] sm:$0xff] %vm2654_vm5, %v2947_v46  ;;  %2655 = vst.msk [vmem:[#allocation4] sm:$0xff] %vm2654_vm5, %v2650_v47 }
 0x279   :  { %3414 = vst.msk [vmem:[#allocation5 + $0x8] sm:$0xff] %vm2654_vm5, %v9097_v49  ;;  %3095 = vst.msk [vmem:[#allocation5 + $0xe0] sm:$0xff] %vm2654_vm5, %v3079_v48  ;;  %v3039_v50 = vpop.permute.xlu0 %3038  ;;  %v2745_v51 = vpop.permute.xlu1 %2744 }
 0x27a   :  { %v3050_v53 = vmax.f32 %v8940_v9, %v3039_v50 }
 0x27b   :  { %v9105_v54 = vld [vmem:[#allocation4 + $0x60] sm:$0xff] }
 0x27c   :  { %v3081_v55 = vld [vmem:[#allocation4 + $0x60] sm:$0xff]  ;;  %3058 = vrot.lane.b32.xlu1 %v3050_v53, %s7942_s16  ;;  %3416 = vst.msk [vmem:[#allocation5 + $0x78] sm:$0xff] %vm2654_vm5, %v9105_v54 }
 0x27d   :  { %3097 = vst.msk [vmem:[#allocation5 + $0x150] sm:$0xff] %vm2654_vm5, %v3081_v55  ;;  %v3010_v52 = vpop.permute.xlu0 %3009  ;;  %v2819_v56 = vpop.permute.xlu1 %2818 }
 0x27e   :  { %v3021_v57 = vmax.f32 %v8940_v9, %v3010_v52  ;;  %v2755_v9 = vmax.f32 %v8942_v59, %v2745_v51  ;;  %v2829_v38 = vmax.f32 %v8948_v60, %v2819_v56 }
 0x27f   :  { %v9112_v58 = vld [vmem:[#allocation4 + $0x80] sm:$0xff] }
 0x280   :  { %v3075_v28 = vld [vmem:[#allocation4] sm:$0xff]  ;;  %3026 = vst.msk [vmem:[#allocation4 + $0xa0] sm:$0xff] %vm2654_vm5, %v3021_v57  ;;  %3418 = vst.msk [vmem:[#allocation5 + $0xe8] sm:$0xff] %vm2654_vm5, %v9112_v58 }
 0x281   :  { %3091 = vst.msk [vmem:[#allocation5] sm:$0xff] %vm2654_vm5, %v3075_v28  ;;  %v2893_v29 = vpop.permute.xlu1 %2892  ;;  %v2671_v30 = vpop.permute.xlu0 %2670 }
 0x282   :  { %v2681_v31 = vmax.f32 %v8956_v62, %v2671_v30  ;;  %v2903_v39 = vmax.f32 %v8954_v61, %v2893_v29 }
 0x284   :  { %2690 = vrot.lane.b32.xlu0 %v2681_v31, %s7942_s16 }
 0x285   :  { %v2967_v32 = vpop.permute.xlu1 %2966  ;;  %v2716_v33 = vpop.permute.xlu0 %2715 }
 0x286   :  { %v2977_v34 = vmax.f32 %v8962_v63, %v2967_v32  ;;  %v2726_v35 = vmax.f32 %v8964_v0, %v2716_v33 }
 0x287   :  { %v3308_v36 = vld [vmem:[#allocation4 + $0xa0] sm:$0xff] }
 0x288   :  { %2731 = vst.msk [vmem:[#allocation4 + $0x28] sm:$0xf] %vm2656_vm6, %v2726_v35  ;;  %2764 = vrot.lane.b32.xlu0 %v2755_v9, %s7942_s16  ;;  %2986 = vrot.lane.b32.xlu1 %v2977_v34, %s7942_s16 }
 0x289   :  { %3420 = vst.msk [vmem:[#allocation5 + $0x158] sm:$0xff] %vm2654_vm5, %v3308_v36  ;;  %v3041_v62 = vpop.permute.xlu0 %3040  ;;  %v2641_v37 = vpop.permute.xlu1 %2640 }
 0x28a   :  { %v3051_v7 = vmax.f32 %v8970_v2, %v3041_v62  ;;  %v2651_v59 = vmax.f32 %v8972_v3, %v2641_v37 }
 0x28c   :  { %2657 = vst.msk [vmem:[#allocation4 + $0x8] sm:$0xf] %vm2656_vm6, %v2651_v59  ;;  %2838 = vrot.lane.b32.xlu0 %v2829_v38, %s7942_s16  ;;  %3060 = vrot.lane.b32.xlu1 %v3051_v7, %s7942_s16 }
 0x28d   :  { %v3012_v63 = vpop.permute.xlu0 %3011  ;;  %v2790_v0 = vpop.permute.xlu1 %2789 }
 0x28e   :  { %v3022_v40 = vmax.f32 %v8978_v4, %v3012_v63  ;;  %v2800_v41 = vmax.f32 %v8980_v5, %v2790_v0 }
 0x28f   :  { %v4038_v60 = vld [vmem:[#allocation4 + $0x22] sm:$0xff] }
 0x290   :  { %3027 = vst.msk [vmem:[#allocation4 + $0xa8] sm:$0xf] %vm2656_vm6, %v3022_v40  ;;  %2805 = vst.msk [vmem:[#allocation4 + $0x48] sm:$0xf] %vm2656_vm6, %v2800_v41  ;;  %2912 = vrot.lane.b32.xlu0 %v2903_v39, %s7942_s16  ;;  %3236 = vrot.lane.b32.xlu1 %v3204_v42, %s7942_s16  ;;  %v4359_v2 = vld [vmem:[#allocation4 + $0x23] sm:$0xff] }
 0x291   :  { %v2864_v3 = vpop.permute.xlu1 %2863  ;;  %v2673_v43 = vpop.permute.xlu0 %2672  ;;  %4054 = vst.msk [vmem:[#allocation5 + $0x18] sm:$0xff] %vm2654_vm5, %v4038_v60  ;;  %4375 = vst.msk [vmem:[#allocation5 + $0x58] sm:$0xff] %vm2654_vm5, %v4359_v2  ;;  %v4680_v61 = vld [vmem:[#allocation4 + $0x24] sm:$0xff] }
 0x292   :  { %v2874_v4 = vmax.f32 %v8986_v6, %v2864_v3  ;;  %4696 = vst.msk [vmem:[#allocation5 + $0x98] sm:$0xff] %vm2654_vm5, %v4680_v61  ;;  %v2682_v51 = vmax.f32 %v8988_v8, %v2673_v43  ;;  %v3622_v60 = vld [vmem:[#allocation4 + $0x21] sm:$0xff] }
 0x293   :  { %v4678_v5 = vld [vmem:[#allocation4 + $0x4] sm:$0xff] }
 0x294   :  { %2879 = vst.msk [vmem:[#allocation4 + $0x68] sm:$0xf] %vm2656_vm6, %v2874_v4  ;;  %3153 = vrot.lane.b32.xlu0 %v9112_v58, %s7943_s17  ;;  %3141 = vrot.lane.b32.xlu1 %v3204_v42, %s7943_s17  ;;  %v3430_v39 = vld [vmem:[#allocation4 + $0x1] sm:$0xff] }
 0x295   :  { %v2938_v44 = vpop.permute.xlu1 %2937  ;;  %v9148_v45 = vpop.permute.xlu0 %2746  ;;  %4694 = vst.msk [vmem:[#allocation5 + $0x28] sm:$0xff] %vm2654_vm5, %v4678_v5 }
 0x296   :  { %v2948_v46 = vmax.f32 %v8994_v11, %v2938_v44 }
 0x297   :  { %v9152_v47 = vld [vmem:[#allocation4 + $0xa4] sm:$0xff] }
 0x298   :  { %v9154_v6 = vld [vmem:[#allocation4 + $0x44] sm:$0xff]  ;;  %5020 = vst.msk [vmem:[#allocation5 + $0x180] sm:$0xff] %vm2654_vm5, %v9152_v47  ;;  %3347 = vrot.lane.b32.xlu0 %v3308_v36, %s7941_s1  ;;  %3335 = vrot.lane.b32.xlu1 %v9097_v49, %s7941_s1 }
 0x299   :  { %5014 = vst.msk [vmem:[#allocation5 + $0x30] sm:$0xff] %vm2654_vm5, %v9154_v6  ;;  %v9164_v48 = vpop.permute.xlu0 %2820  ;;  %v2643_v11 = vpop.permute.xlu1 %2642  ;;  %v3719_v50 = vld [vmem:[#allocation4 + $0x41] sm:$0xff] }
 0x29a   :  { %2953 = vst.msk [vmem:[#allocation4 + $0x88] sm:$0xf] %vm2656_vm6, %v2948_v46  ;;  %v2652_v53 = vmax.f32 %v8988_v8, %v2643_v11  ;;  %v4040_v55 = vld [vmem:[#allocation4 + $0x42] sm:$0xff] }
 0x29b   :  { %3735 = vst.msk [vmem:[#allocation5 + $0x48] sm:$0xff] %vm2654_vm5, %v3719_v50  ;;  %v3725_v52 = vld [vmem:[#allocation4 + $0xa1] sm:$0xff]  ;;  %4056 = vst.msk [vmem:[#allocation5 + $0x88] sm:$0xff] %vm2654_vm5, %v4040_v55 }
 0x29c   :  { %v4361_v56 = vld [vmem:[#allocation4 + $0x43] sm:$0xff]  ;;  %3741 = vst.msk [vmem:[#allocation5 + $0x198] sm:$0xff] %vm2654_vm5, %v3725_v52  ;;  %2658 = vst.msk [vmem:[#allocation4 + $0xc0] sm:$0xff] %vm2654_vm5, %v2652_v53  ;;  %2692 = vrot.lane.b32.xlu0 %v2682_v51, %s7942_s16  ;;  %3240 = vrot.lane.b32.xlu1 %v9097_v49, %s7942_s16 }
 0x29d   :  { %v9169_v57 = vld [vmem:[#allocation4 + $0x64] sm:$0xff]  ;;  %4377 = vst.msk [vmem:[#allocation5 + $0xc8] sm:$0xff] %vm2654_vm5, %v4361_v56  ;;  %v9180_v29 = vpop.permute.xlu0 %2894  ;;  %v9182_v30 = vpop.permute.xlu1 %3042 }
 0x29e   :  { %5016 = vst.msk [vmem:[#allocation5 + $0xa0] sm:$0xff] %vm2654_vm5, %v9169_v57  ;;  %v3721_v8 = vld [vmem:[#allocation4 + $0x61] sm:$0xff] }
 0x29f   :  { %v4042_v28 = vld [vmem:[#allocation4 + $0x62] sm:$0xff]  ;;  %3737 = vst.msk [vmem:[#allocation5 + $0xb8] sm:$0xff] %vm2654_vm5, %v3721_v8 }
 0x2a0   :  { %4058 = vst.msk [vmem:[#allocation5 + $0xf8] sm:$0xff] %vm2654_vm5, %v4042_v28  ;;  %v4363_v31 = vld [vmem:[#allocation4 + $0x63] sm:$0xff]  ;;  %3145 = vrot.lane.b32.xlu1 %v9097_v49, %s7943_s17 }
 0x2a1   :  { %v4682_v32 = vld [vmem:[#allocation4 + $0x44] sm:$0xff]  ;;  %4379 = vst.msk [vmem:[#allocation5 + $0x138] sm:$0xff] %vm2654_vm5, %v4363_v31  ;;  %v2969_v36 = vpop.permute.xlu0 %2968  ;;  %v3014_v62 = vpop.permute.xlu1 %3013 }
 0x2a2   :  { %v4684_v33 = vld [vmem:[#allocation4 + $0x64] sm:$0xff]  ;;  %4698 = vst.msk [vmem:[#allocation5 + $0x108] sm:$0xff] %vm2654_vm5, %v4682_v32  ;;  %v2978_v38 = vmax.f32 %v9016_v17, %v2969_v36  ;;  %v3023_v7 = vmax.f32 %v9010_v15, %v3014_v62 }
 0x2a3   :  { %4700 = vst.msk [vmem:[#allocation5 + $0x178] sm:$0xff] %vm2654_vm5, %v4684_v33  ;;  %v9189_v9 = vld [vmem:[#allocation4 + $0x84] sm:$0xff] }
 0x2a4   :  { %5018 = vst.msk [vmem:[#allocation5 + $0x110] sm:$0xff] %vm2654_vm5, %v9189_v9  ;;  %v3723_v34 = vld [vmem:[#allocation4 + $0x81] sm:$0xff]  ;;  %3028 = vst.msk [vmem:[#allocation4 + $0x160] sm:$0xff] %vm2654_vm5, %v3023_v7  ;;  %2988 = vrot.lane.b32.xlu0 %v2978_v38, %s7942_s16  ;;  %3339 = vrot.lane.b32.xlu1 %v9105_v54, %s7941_s1 }
 0x2a5   :  { %v4044_v35 = vld [vmem:[#allocation4 + $0x82] sm:$0xff]  ;;  %3739 = vst.msk [vmem:[#allocation5 + $0x128] sm:$0xff] %vm2654_vm5, %v3723_v34  ;;  %v2718_v49 = vpop.permute.xlu0 %2717  ;;  %v9205_v63 = vpop.permute.xlu1 %2674 }
 0x2a6   :  { %4060 = vst.msk [vmem:[#allocation5 + $0x168] sm:$0xff] %vm2654_vm5, %v4044_v35  ;;  %v4365_v37 = vld [vmem:[#allocation4 + $0x83] sm:$0xff]  ;;  %v2727_v0 = vmax.f32 %v8996_v12, %v2718_v49 }
 0x2a7   :  { %4381 = vst.msk [vmem:[#allocation5 + $0x1a8] sm:$0xff] %vm2654_vm5, %v4365_v37  ;;  %v3083_v59 = vld [vmem:[#allocation4 + $0xc0] sm:$0xff] }
 0x2a8   :  { %3099 = vst.msk [vmem:[#allocation5 + $0x1c0] sm:$0xff] %vm2654_vm5, %v3083_v59  ;;  %2732 = vst.msk [vmem:[#allocation4 + $0xe0] sm:$0xff] %vm2654_vm5, %v2727_v0  ;;  %3462 = vrot.lane.b32.xlu0 %v3430_v39, %s7943_s17  ;;  %3244 = vrot.lane.b32.xlu1 %v9105_v54, %s7942_s16  ;;  %v3624_v55 = vld [vmem:[#allocation4 + $0x41] sm:$0xff] }
 0x2a9   :  { %v2792_v40 = vpop.permute.xlu0 %2791  ;;  %v9212_v41 = vpop.permute.xlu1 %2748  ;;  %v3626_v62 = vld [vmem:[#allocation4 + $0x61] sm:$0xff] }
 0x2aa   :  { %v2801_v42 = vmax.f32 %v9002_v13, %v2792_v40  ;;  %v3846_v40 = vld [vmem:[#allocation4 + $0x2] sm:$0xff] }
 0x2ab   :  { %v9215_v2 = vld [vmem:[#allocation4 + $0x160] sm:$0xff] }
 0x2ac   :  { %2806 = vst.msk [vmem:[#allocation4 + $0x100] sm:$0xff] %vm2654_vm5, %v2801_v42  ;;  %3654 = vrot.lane.b32.xlu0 %v3622_v60, %s7941_s1  ;;  %3149 = vrot.lane.b32.xlu1 %v9105_v54, %s7943_s17  ;;  %3428 = vst.msk [vmem:[#allocation5 + $0x318] sm:$0xff] %vm2654_vm5, %v9215_v2 }
 0x2ad   :  { %v2866_v3 = vpop.permute.xlu0 %2865  ;;  %v9223_v43 = vpop.permute.xlu1 %2822 }
 0x2ae   :  { %v2875_v61 = vmax.f32 %v9008_v14, %v2866_v3  ;;  %v3943_v3 = vld [vmem:[#allocation4 + $0x22] sm:$0xff] }
 0x2af   :  { %v3085_v4 = vld [vmem:[#allocation4 + $0xe0] sm:$0xff] }
 0x2b0   :  { %2880 = vst.msk [vmem:[#allocation4 + $0x120] sm:$0xff] %vm2654_vm5, %v2875_v61  ;;  %3560 = vrot.lane.b32.xlu0 %v3622_v60, %s7942_s16  ;;  %3343 = vrot.lane.b32.xlu1 %v9112_v58, %s7941_s1  ;;  %3101 = vst.msk [vmem:[#allocation5 + $0x230] sm:$0xff] %vm2654_vm5, %v3085_v4 }
 0x2b1   :  { %v2940_v5 = vpop.permute.xlu0 %2939  ;;  %v9231_v54 = vpop.permute.xlu1 %2896 }
 0x2b2   :  { %v2949_v44 = vmax.f32 %v9016_v17, %v2940_v5  ;;  %v2756_v17 = vmax.f32 %v8996_v12, %v9148_v45  ;;  %v2830_v12 = vmax.f32 %v9002_v13, %v9164_v48  ;;  %v2904_v13 = vmax.f32 %v9008_v14, %v9180_v29  ;;  %v9279_v14 = vld [vmem:[#allocation4 + $0x81] sm:$0xff] }
 0x2b3   :  { %v9234_v46 = vld [vmem:[#allocation4 + $0x100] sm:$0xff] }
 0x2b4   :  { %v3087_v11 = vld [vmem:[#allocation4 + $0x100] sm:$0xff]  ;;  %2954 = vst.msk [vmem:[#allocation4 + $0x140] sm:$0xff] %vm2654_vm5, %v2949_v44  ;;  %3466 = vrot.lane.b32.xlu0 %v3622_v60, %s7943_s17  ;;  %3248 = vrot.lane.b32.xlu1 %v9112_v58, %s7942_s16  ;;  %3422 = vst.msk [vmem:[#allocation5 + $0x1c8] sm:$0xff] %vm2654_vm5, %v9234_v46 }
 0x2b5   :  { %3103 = vst.msk [vmem:[#allocation5 + $0x2a0] sm:$0xff] %vm2654_vm5, %v3087_v11  ;;  %v2645_v50 = vpop.permute.xlu0 %2644  ;;  %v9243_v51 = vpop.permute.xlu1 %2970 }
 0x2b6   :  { %v2653_v53 = vmax.f32 %v9046_v21, %v2645_v50  ;;  %v3052_v50 = vmax.f32 %v9010_v15, %v9182_v30 }
 0x2b7   :  { %v9248_v52 = vld [vmem:[#allocation4 + $0x120] sm:$0xff] }
 0x2b8   :  { %v3089_v56 = vld [vmem:[#allocation4 + $0x120] sm:$0xff]  ;;  %2659 = vst.msk [vmem:[#allocation4 + $0xc8] sm:$0xf] %vm2656_vm6, %v2653_v53  ;;  %3658 = vrot.lane.b32.xlu0 %v3624_v55, %s7941_s1  ;;  %2766 = vrot.lane.b32.xlu1 %v2756_v17, %s7942_s16 }
 0x2b9   :  { %3424 = vst.msk [vmem:[#allocation5 + $0x238] sm:$0xff] %vm2654_vm5, %v9248_v52  ;;  %3105 = vst.msk [vmem:[#allocation5 + $0x310] sm:$0xff] %vm2654_vm5, %v3089_v56  ;;  %v2794_v58 = vpop.permute.xlu0 %2793  ;;  %v2720_v8 = vpop.permute.xlu1 %2719  ;;  %v4166_v17 = vld [vmem:[#allocation4 + $0x42] sm:$0xff] }
 0x2ba   :  { %v2802_v21 = vmax.f32 %v9054_v23, %v2794_v58  ;;  %v2728_v45 = vmax.f32 %v9056_v24, %v2720_v8  ;;  %v4262_v56 = vld [vmem:[#allocation4 + $0x3] sm:$0xff] }
 0x2bb   :  { %v9260_v28 = vld [vmem:[#allocation4 + $0x140] sm:$0xff] }
 0x2bc   :  { %2807 = vst.msk [vmem:[#allocation4 + $0x108] sm:$0xf] %vm2656_vm6, %v2802_v21  ;;  %2733 = vst.msk [vmem:[#allocation4 + $0xe8] sm:$0xf] %vm2656_vm6, %v2728_v45  ;;  %3564 = vrot.lane.b32.xlu0 %v3624_v55, %s7942_s16  ;;  %2840 = vrot.lane.b32.xlu1 %v2830_v12, %s7942_s16  ;;  %v4168_v12 = vld [vmem:[#allocation4 + $0x62] sm:$0xff] }
 0x2bd   :  { %3426 = vst.msk [vmem:[#allocation5 + $0x2a8] sm:$0xff] %vm2654_vm5, %v9260_v28  ;;  %v2868_v31 = vpop.permute.xlu0 %2867  ;;  %v9268_v32 = vpop.permute.xlu1 %3044 }
 0x2be   :  { %v2876_v23 = vmax.f32 %v9062_v25, %v2868_v31 }
 0x2bf   :  { %v4686_v24 = vld [vmem:[#allocation4 + $0xc4] sm:$0xff] }
 0x2c0   :  { %2881 = vst.msk [vmem:[#allocation4 + $0x128] sm:$0xf] %vm2656_vm6, %v2876_v23  ;;  %3470 = vrot.lane.b32.xlu0 %v3624_v55, %s7943_s17  ;;  %2914 = vrot.lane.b32.xlu1 %v2904_v13, %s7942_s16  ;;  %v9340_v13 = vld [vmem:[#allocation4 + $0x23] sm:$0xff] }
 0x2c1   :  { %v2942_v48 = vpop.permute.xlu0 %2941  ;;  %v3016_v33 = vpop.permute.xlu1 %3015  ;;  %4702 = vst.msk [vmem:[#allocation5 + $0x1e8] sm:$0xff] %vm2654_vm5, %v4686_v24 }
 0x2c2   :  { %v2950_v34 = vmax.f32 %v9070_v26, %v2942_v48  ;;  %v3024_v35 = vmax.f32 %v9072_v27, %v3016_v33  ;;  %v3756_v48 = vld [vmem:[#allocation4 + $0xa1] sm:$0xff] }
 0x2c3   :  { %v5006_v36 = vld [vmem:[#allocation4 + $0x104] sm:$0xff] }
 0x2c4   :  { %5022 = vst.msk [vmem:[#allocation5 + $0x1f0] sm:$0xff] %vm2654_vm5, %v5006_v36  ;;  %3662 = vrot.lane.b32.xlu0 %v3626_v62, %s7941_s1  ;;  %3572 = vrot.lane.b32.xlu1 %v9279_v14, %s7942_s16  ;;  %v4046_v25 = vld [vmem:[#allocation4 + $0xe2] sm:$0xff] }
 0x2c5   :  { %2955 = vst.msk [vmem:[#allocation4 + $0x148] sm:$0xf] %vm2656_vm6, %v2950_v34  ;;  %3029 = vst.msk [vmem:[#allocation4 + $0x168] sm:$0xf] %vm2656_vm6, %v3024_v35  ;;  %v3727_v29 = vld [vmem:[#allocation4 + $0x101] sm:$0xff] }
 0x2c6   :  { %4062 = vst.msk [vmem:[#allocation5 + $0x1d8] sm:$0xff] %vm2654_vm5, %v4046_v25  ;;  %3743 = vst.msk [vmem:[#allocation5 + $0x208] sm:$0xff] %vm2654_vm5, %v3727_v29  ;;  %v4048_v27 = vld [vmem:[#allocation4 + $0x102] sm:$0xff] }
 0x2c7   :  { %v5008_v26 = vld [vmem:[#allocation4 + $0x124] sm:$0xff]  ;;  %4064 = vst.msk [vmem:[#allocation5 + $0x248] sm:$0xff] %vm2654_vm5, %v4048_v27 }
 0x2c8   :  { %5024 = vst.msk [vmem:[#allocation5 + $0x260] sm:$0xff] %vm2654_vm5, %v5008_v26  ;;  %3568 = vrot.lane.b32.xlu0 %v3626_v62, %s7942_s16  ;;  %3782 = vrot.lane.b32.xlu1 %v3624_v55, %s7943_s17  ;;  %v3729_v37 = vld [vmem:[#allocation4 + $0x121] sm:$0xff] }
 0x2c9   :  { %v4050_v38 = vld [vmem:[#allocation4 + $0x122] sm:$0xff]  ;;  %3745 = vst.msk [vmem:[#allocation5 + $0x278] sm:$0xff] %vm2654_vm5, %v3729_v37 }
 0x2ca   :  { %4066 = vst.msk [vmem:[#allocation5 + $0x2b8] sm:$0xff] %vm2654_vm5, %v4050_v38  ;;  %v4367_v7 = vld [vmem:[#allocation4 + $0xe3] sm:$0xff] }
 0x2cb   :  { %v4688_v59 = vld [vmem:[#allocation4 + $0xe4] sm:$0xff]  ;;  %4383 = vst.msk [vmem:[#allocation5 + $0x218] sm:$0xff] %vm2654_vm5, %v4367_v7 }
 0x2cc   :  { %v4369_v49 = vld [vmem:[#allocation4 + $0x103] sm:$0xff]  ;;  %4704 = vst.msk [vmem:[#allocation5 + $0x258] sm:$0xff] %vm2654_vm5, %v4688_v59  ;;  %3474 = vrot.lane.b32.xlu0 %v3626_v62, %s7943_s17  ;;  %3878 = vrot.lane.b32.xlu1 %v3846_v40, %s7942_s16 }
 0x2cd   :  { %v5010_v0 = vld [vmem:[#allocation4 + $0x144] sm:$0xff]  ;;  %4385 = vst.msk [vmem:[#allocation5 + $0x288] sm:$0xff] %vm2654_vm5, %v4369_v49 }
 0x2ce   :  { %v5012_v39 = vld [vmem:[#allocation4 + $0x164] sm:$0xff]  ;;  %5026 = vst.msk [vmem:[#allocation5 + $0x2d0] sm:$0xff] %vm2654_vm5, %v5010_v0 }
 0x2cf   :  { %5028 = vst.msk [vmem:[#allocation5 + $0x340] sm:$0xff] %vm2654_vm5, %v5012_v39  ;;  %v3731_v42 = vld [vmem:[#allocation4 + $0x141] sm:$0xff] }
 0x2d0   :  { %v4052_v60 = vld [vmem:[#allocation4 + $0x142] sm:$0xff]  ;;  %3747 = vst.msk [vmem:[#allocation5 + $0x2e8] sm:$0xff] %vm2654_vm5, %v3731_v42  ;;  %3666 = vrot.lane.b32.xlu0 %v9279_v14, %s7941_s1  ;;  %3976 = vrot.lane.b32.xlu1 %v3943_v3, %s7941_s1 }
 0x2d1   :  { %4068 = vst.msk [vmem:[#allocation5 + $0x328] sm:$0xff] %vm2654_vm5, %v4052_v60  ;;  %v3733_v61 = vld [vmem:[#allocation4 + $0x161] sm:$0xff] }
 0x2d2   :  { %v4690_v4 = vld [vmem:[#allocation4 + $0x104] sm:$0xff]  ;;  %3749 = vst.msk [vmem:[#allocation5 + $0x358] sm:$0xff] %vm2654_vm5, %v3733_v61 }
 0x2d3   :  { %4706 = vst.msk [vmem:[#allocation5 + $0x2c8] sm:$0xff] %vm2654_vm5, %v4690_v4  ;;  %v4371_v5 = vld [vmem:[#allocation4 + $0x123] sm:$0xff] }
 0x2d4   :  { %v4692_v44 = vld [vmem:[#allocation4 + $0x124] sm:$0xff]  ;;  %4387 = vst.msk [vmem:[#allocation5 + $0x2f8] sm:$0xff] %vm2654_vm5, %v4371_v5  ;;  %3786 = vrot.lane.b32.xlu1 %v3626_v62, %s7943_s17  ;;  %3062 = vrot.lane.b32.xlu0 %v3052_v50, %s7942_s16 }
 0x2d5   :  { %4708 = vst.msk [vmem:[#allocation5 + $0x338] sm:$0xff] %vm2654_vm5, %v4692_v44  ;;  %v4373_v11 = vld [vmem:[#allocation4 + $0x143] sm:$0xff] }
 0x2d6   :  { %4389 = vst.msk [vmem:[#allocation5 + $0x368] sm:$0xff] %vm2654_vm5, %v4373_v11  ;;  %v4170_v35 = vld [vmem:[#allocation4 + $0x82] sm:$0xff] }
 0x2d7   :  { %v9362_v36 = vld [vmem:[#allocation4 + $0x43] sm:$0xff] }
 0x2d8   :  { %3882 = vrot.lane.b32.xlu1 %v3943_v3, %s7942_s16  ;;  %4198 = vrot.lane.b32.xlu0 %v4166_v17, %s7942_s16  ;;  %v4806_v25 = vld [vmem:[#allocation4 + $0x24] sm:$0xff] }
 0x2d9   :  { %v4172_v27 = vld [vmem:[#allocation4 + $0xa2] sm:$0xff] }
 0x2da   :  { %v2763_v53 = vpop.permute.xlu0 %2762  ;;  %v2689_v55 = vpop.permute.xlu1 %2688  ;;  %v9382_v49 = vld [vmem:[#allocation4 + $0x63] sm:$0xff] }
 0x2db   :  { %2775 = vst.msk [vmem:[#allocation4 + $0x30] sm:$0xff] %vm2654_vm5, %v2763_v53  ;;  %2701 = vst.msk [vmem:[#allocation4 + $0x10] sm:$0xff] %vm2654_vm5, %v2689_v55 }
 0x2dc   :  { %3980 = vrot.lane.b32.xlu1 %v4166_v17, %s7941_s1  ;;  %4294 = vrot.lane.b32.xlu0 %v4262_v56, %s7941_s1 }
 0x2de   :  { %v2837_v15 = vpop.permute.xlu0 %2836 }
 0x2df   :  { %2849 = vst.msk [vmem:[#allocation4 + $0x50] sm:$0xff] %vm2654_vm5, %v2837_v15 }
 0x2e0   :  { %3790 = vrot.lane.b32.xlu1 %v9279_v14, %s7943_s17  ;;  %4104 = vrot.lane.b32.xlu0 %v4166_v17, %s7943_s17 }
 0x2e2   :  { %v2911_v30 = vpop.permute.xlu0 %2910  ;;  %v9326_v58 = vld [vmem:[#allocation4 + $0x10] sm:$0xff] }
 0x2e3   :  { %v9328_v8 = vld [vmem:[#allocation4 + $0x30] sm:$0xff]  ;;  %2923 = vst.msk [vmem:[#allocation4 + $0x70] sm:$0xff] %vm2654_vm5, %v2911_v30  ;;  %3092 = vst.msk [vmem:[#allocation5 + $0x38] sm:$0xff] %vm2654_vm5, %v9326_v58 }
 0x2e4   :  { %3094 = vst.msk [vmem:[#allocation5 + $0xa8] sm:$0xff] %vm2654_vm5, %v9328_v8  ;;  %3886 = vrot.lane.b32.xlu1 %v4166_v17, %s7942_s16  ;;  %4202 = vrot.lane.b32.xlu0 %v4168_v12, %s7942_s16 }
 0x2e6   :  { %v2985_v21 = vpop.permute.xlu1 %2984  ;;  %v9337_v45 = vld [vmem:[#allocation4 + $0x50] sm:$0xff] }
 0x2e7   :  { %v3399_v31 = vld [vmem:[#allocation4 + $0x50] sm:$0xff]  ;;  %2997 = vst.msk [vmem:[#allocation4 + $0x90] sm:$0xff] %vm2654_vm5, %v2985_v21  ;;  %3096 = vst.msk [vmem:[#allocation5 + $0x118] sm:$0xff] %vm2654_vm5, %v9337_v45 }
 0x2e8   :  { %3415 = vst.msk [vmem:[#allocation5 + $0x40] sm:$0xff] %vm2654_vm5, %v3399_v31  ;;  %3984 = vrot.lane.b32.xlu1 %v4168_v12, %s7941_s1  ;;  %4298 = vrot.lane.b32.xlu0 %v9340_v13, %s7941_s1 }
 0x2ea   :  { %v9348_v23 = vld [vmem:[#allocation4 + $0x70] sm:$0xff] }
 0x2eb   :  { %v3401_v24 = vld [vmem:[#allocation4 + $0x70] sm:$0xff]  ;;  %3098 = vst.msk [vmem:[#allocation5 + $0x188] sm:$0xff] %vm2654_vm5, %v9348_v23 }
 0x2ec   :  { %3417 = vst.msk [vmem:[#allocation5 + $0xb0] sm:$0xff] %vm2654_vm5, %v3401_v24  ;;  %3794 = vrot.lane.b32.xlu1 %v3756_v48, %s7943_s17  ;;  %4108 = vrot.lane.b32.xlu0 %v4168_v12, %s7943_s17 }
 0x2ee   :  { %v3059_v33 = vpop.permute.xlu1 %3058  ;;  %v9355_v34 = vld [vmem:[#allocation4 + $0x90] sm:$0xff] }
 0x2ef   :  { %3071 = vst.msk [vmem:[#allocation4 + $0xb0] sm:$0xff] %vm2654_vm5, %v3059_v33  ;;  %3419 = vst.msk [vmem:[#allocation5 + $0x120] sm:$0xff] %vm2654_vm5, %v9355_v34 }
 0x2f0   :  { %3890 = vrot.lane.b32.xlu1 %v4168_v12, %s7942_s16  ;;  %4206 = vrot.lane.b32.xlu0 %v4170_v35, %s7942_s16 }
 0x2f4   :  { %3988 = vrot.lane.b32.xlu1 %v4170_v35, %s7941_s1  ;;  %4302 = vrot.lane.b32.xlu0 %v9362_v36, %s7941_s1 }
 0x2f6   :  { %v2691_v62 = vpop.permute.xlu0 %2690  ;;  %v3405_v14 = vld [vmem:[#allocation4 + $0xb0] sm:$0xff] }
 0x2f7   :  { %2702 = vst.msk [vmem:[#allocation4 + $0x18] sm:$0xf] %vm2656_vm6, %v2691_v62 }
 0x2f8   :  { %3421 = vst.msk [vmem:[#allocation5 + $0x190] sm:$0xff] %vm2654_vm5, %v3405_v14  ;;  %4838 = vrot.lane.b32.xlu1 %v4806_v25, %s7942_s16  ;;  %4112 = vrot.lane.b32.xlu0 %v4170_v35, %s7943_s17 }
 0x2fa   :  { %v2765_v29 = vpop.permute.xlu0 %2764  ;;  %v2987_v26 = vpop.permute.xlu1 %2986 }
 0x2fb   :  { %2776 = vst.msk [vmem:[#allocation4 + $0x38] sm:$0xf] %vm2656_vm6, %v2765_v29  ;;  %2998 = vst.msk [vmem:[#allocation4 + $0x98] sm:$0xf] %vm2656_vm6, %v2987_v26 }
 0x2fc   :  { %4614 = vrot.lane.b32.xlu1 %v9362_v36, %s7941_s1  ;;  %4210 = vrot.lane.b32.xlu0 %v4172_v27, %s7942_s16 }
 0x2fe   :  { %v2839_v37 = vpop.permute.xlu0 %2838  ;;  %v3061_v38 = vpop.permute.xlu1 %3060  ;;  %v9376_v7 = vld [vmem:[#allocation4 + $0x14] sm:$0xff] }
 0x2ff   :  { %v9378_v59 = vld [vmem:[#allocation4 + $0x13] sm:$0xff]  ;;  %2850 = vst.msk [vmem:[#allocation4 + $0x58] sm:$0xf] %vm2656_vm6, %v2839_v37  ;;  %3072 = vst.msk [vmem:[#allocation4 + $0xb8] sm:$0xf] %vm2656_vm6, %v3061_v38 }
 0x300   :  { %4695 = vst.msk [vmem:[#allocation5 + $0x60] sm:$0xff] %vm2654_vm5, %v9376_v7  ;;  %4374 = vst.msk [vmem:[#allocation5 + $0x20] sm:$0xff] %vm2654_vm5, %v9378_v59  ;;  %4744 = vrot.lane.b32.xlu1 %v4806_v25, %s7943_s17  ;;  %4306 = vrot.lane.b32.xlu0 %v9382_v49, %s7941_s1  ;;  %v4491_v25 = vld [vmem:[#allocation4 + $0x83] sm:$0xff] }
 0x302   :  { %v5003_v0 = vld [vmem:[#allocation4 + $0x94] sm:$0xff]  ;;  %v2913_v39 = vpop.permute.xlu0 %2912  ;;  %v9391_v40 = vpop.permute.xlu1 %3236 }
 0x303   :  { %v9393_v42 = vld [vmem:[#allocation4 + $0x31] sm:$0xff]  ;;  %5019 = vst.msk [vmem:[#allocation5 + $0x148] sm:$0xff] %vm2654_vm5, %v5003_v0 }
 0x304   :  { %v9395_v60 = vld [vmem:[#allocation4 + $0x32] sm:$0xff]  ;;  %2924 = vst.msk [vmem:[#allocation4 + $0x78] sm:$0xf] %vm2656_vm6, %v2913_v39  ;;  %4936 = vrot.lane.b32.xlu1 %v9154_v6, %s7941_s1  ;;  %4116 = vrot.lane.b32.xlu0 %v4172_v27, %s7943_s17 }
 0x305   :  { %3734 = vst.msk [vmem:[#allocation5 + $0x10] sm:$0xff] %vm2654_vm5, %v9393_v42  ;;  %4055 = vst.msk [vmem:[#allocation5 + $0x50] sm:$0xff] %vm2654_vm5, %v9395_v60  ;;  %v9403_v3 = vld [vmem:[#allocation4 + $0x91] sm:$0xff] }
 0x306   :  { %v9405_v61 = vld [vmem:[#allocation4 + $0x92] sm:$0xff]  ;;  %3740 = vst.msk [vmem:[#allocation5 + $0x160] sm:$0xff] %vm2654_vm5, %v9403_v3  ;;  %v3154_v50 = vpop.permute.xlu0 %3153  ;;  %v3142_v17 = vpop.permute.xlu1 %3141 }
 0x307   :  { %v9407_v4 = vld [vmem:[#allocation4 + $0x33] sm:$0xff]  ;;  %4061 = vst.msk [vmem:[#allocation5 + $0x1a0] sm:$0xff] %vm2654_vm5, %v9405_v61 }
 0x308   :  { %4376 = vst.msk [vmem:[#allocation5 + $0x90] sm:$0xff] %vm2654_vm5, %v9407_v4  ;;  %v9418_v5 = vld [vmem:[#allocation4 + $0x34] sm:$0xff]  ;;  %4842 = vrot.lane.b32.xlu1 %v9154_v6, %s7942_s16  ;;  %4422 = vrot.lane.b32.xlu0 %v9340_v13, %s7943_s17 }
 0x309   :  { %4697 = vst.msk [vmem:[#allocation5 + $0xd0] sm:$0xff] %vm2654_vm5, %v9418_v5  ;;  %v4999_v44 = vld [vmem:[#allocation4 + $0x54] sm:$0xff] }
 0x30a   :  { %v5005_v11 = vld [vmem:[#allocation4 + $0xb4] sm:$0xff]  ;;  %5015 = vst.msk [vmem:[#allocation5 + $0x68] sm:$0xff] %vm2654_vm5, %v4999_v44  ;;  %4699 = vst.msk [vmem:[#allocation5 + $0x140] sm:$0xff] %vm2654_vm5, %v4999_v44  ;;  %v9443_v30 = vpop.permute.xlu0 %3347  ;;  %v9445_v12 = vpop.permute.xlu1 %3335 }
 0x30b   :  { %v9422_v53 = vld [vmem:[#allocation4 + $0x51] sm:$0xff]  ;;  %5021 = vst.msk [vmem:[#allocation5 + $0x1b8] sm:$0xff] %vm2654_vm5, %v5005_v11  ;;  %v4588_v11 = vld [vmem:[#allocation4 + $0xa3] sm:$0xff] }
 0x30c   :  { %3195 = vst.msk [vmem:[#allocation5 + $0x188] sm:$0xff] %vm3187_vm7, %v3154_v50  ;;  %3189 = vst.msk [vmem:[#allocation5 + $0x38] sm:$0xff] %vm3187_vm7, %v3142_v17  ;;  %v9430_v55 = vld [vmem:[#allocation4 + $0x52] sm:$0xff]  ;;  %4618 = vrot.lane.b32.xlu1 %v9382_v49, %s7941_s1  ;;  %4520 = vrot.lane.b32.xlu0 %v9362_v36, %s7942_s16  ;;  %v3053_v50 = vmax.f32 %v9064_v10, %v9268_v32  ;;  %v3212_v10 = vld [vmem:[#allocation4 + $0xe0] sm:$0xff]  ;;  %v2757_v32 = vmax.f32 %v9028_v18, %v9212_v41 }
 0x30d   :  { %3736 = vst.msk [vmem:[#allocation5 + $0x80] sm:$0xff] %vm2654_vm5, %v9422_v53  ;;  %v9432_v56 = vld [vmem:[#allocation4 + $0x53] sm:$0xff]  ;;  %4057 = vst.msk [vmem:[#allocation5 + $0xc0] sm:$0xff] %vm2654_vm5, %v9430_v55 }
 0x30e   :  { %4378 = vst.msk [vmem:[#allocation5 + $0x100] sm:$0xff] %vm2654_vm5, %v9432_v56  ;;  %v5001_v15 = vld [vmem:[#allocation4 + $0x74] sm:$0xff]  ;;  %v2693_v24 = vpop.permute.xlu0 %2692  ;;  %v9465_v48 = vpop.permute.xlu1 %3240 }
 0x30f   :  { %v9447_v21 = vld [vmem:[#allocation4 + $0x71] sm:$0xff]  ;;  %5017 = vst.msk [vmem:[#allocation5 + $0xd8] sm:$0xff] %vm2654_vm5, %v5001_v15  ;;  %4701 = vst.msk [vmem:[#allocation5 + $0x1b0] sm:$0xff] %vm2654_vm5, %v5001_v15 }
 0x310   :  { %v9449_v31 = vld [vmem:[#allocation4 + $0x72] sm:$0xff]  ;;  %3738 = vst.msk [vmem:[#allocation5 + $0xf0] sm:$0xff] %vm2654_vm5, %v9447_v21  ;;  %2703 = vst.msk [vmem:[#allocation4 + $0xd0] sm:$0xff] %vm2654_vm5, %v2693_v24  ;;  %4748 = vrot.lane.b32.xlu1 %v9154_v6, %s7943_s17  ;;  %4426 = vrot.lane.b32.xlu0 %v9362_v36, %s7943_s17 }
 0x311   :  { %4059 = vst.msk [vmem:[#allocation5 + $0x130] sm:$0xff] %vm2654_vm5, %v9449_v31  ;;  %v9456_v13 = vld [vmem:[#allocation4 + $0x73] sm:$0xff] }
 0x312   :  { %4380 = vst.msk [vmem:[#allocation5 + $0x170] sm:$0xff] %vm2654_vm5, %v9456_v13  ;;  %v3146_v33 = vpop.permute.xlu1 %3145 }
 0x313   :  { %3191 = vst.msk [vmem:[#allocation5 + $0xa8] sm:$0xff] %vm3187_vm7, %v3146_v33 }
 0x314   :  { %4940 = vrot.lane.b32.xlu1 %v9169_v57, %s7941_s1  ;;  %4524 = vrot.lane.b32.xlu0 %v9382_v49, %s7942_s16 }
 0x316   :  { %v2989_v35 = vpop.permute.xlu0 %2988  ;;  %v9477_v62 = vpop.permute.xlu1 %3339 }
 0x317   :  { %v9479_v14 = vld [vmem:[#allocation4 + $0xd0] sm:$0xff]  ;;  %2999 = vst.msk [vmem:[#allocation4 + $0x150] sm:$0xff] %vm2654_vm5, %v2989_v35  ;;  %v2831_v35 = vmax.f32 %v9034_v19, %v9223_v43  ;;  %v2905_v19 = vmax.f32 %v9040_v20, %v9231_v54 }
 0x318   :  { %3100 = vst.msk [vmem:[#allocation5 + $0x1f8] sm:$0xff] %vm2654_vm5, %v9479_v14  ;;  %4430 = vrot.lane.b32.xlu0 %v9382_v49, %s7943_s17  ;;  %4846 = vrot.lane.b32.xlu1 %v9169_v57, %s7942_s16 }
 0x31a   :  { %v3463_v6 = vpop.permute.xlu0 %3462  ;;  %v9488_v36 = vpop.permute.xlu1 %3244 }
 0x31b   :  { %3510 = vst.msk [vmem:[#allocation5 + $0x8] sm:$0xff] %vm3187_vm7, %v3463_v6 }
 0x31c   :  { %4528 = vrot.lane.b32.xlu0 %v4491_v25, %s7942_s16  ;;  %4622 = vrot.lane.b32.xlu1 %v4491_v25, %s7941_s1 }
 0x31e   :  { %v9493_v29 = vpop.permute.xlu0 %3654  ;;  %v3150_v26 = vpop.permute.xlu1 %3149  ;;  %v9495_v27 = vld [vmem:[#allocation4 + $0x150] sm:$0xff] }
 0x31f   :  { %3193 = vst.msk [vmem:[#allocation5 + $0x118] sm:$0xff] %vm3187_vm7, %v3150_v26 }
 0x320   :  { %3427 = vst.msk [vmem:[#allocation5 + $0x2e0] sm:$0xff] %vm2654_vm5, %v9495_v27  ;;  %4434 = vrot.lane.b32.xlu0 %v4491_v25, %s7943_s17  ;;  %4752 = vrot.lane.b32.xlu1 %v9169_v57, %s7943_s17  ;;  %v2979_v57 = vmax.f32 %v9048_v22, %v9243_v51  ;;  %v2683_v22 = vmax.f32 %v9022_v16, %v9205_v63 }
 0x322   :  { %v9503_v37 = vpop.permute.xlu0 %3560  ;;  %v9505_v38 = vpop.permute.xlu1 %3343 }
 0x324   :  { %4756 = vrot.lane.b32.xlu0 %v9189_v9, %s7943_s17  ;;  %4944 = vrot.lane.b32.xlu1 %v9189_v9, %s7941_s1 }
 0x326   :  { %v3467_v49 = vpop.permute.xlu0 %3466  ;;  %v9511_v0 = vpop.permute.xlu1 %3248 }
 0x327   :  { %3512 = vst.msk [vmem:[#allocation5 + $0x78] sm:$0xff] %vm3187_vm7, %v3467_v49 }
 0x328   :  { %4948 = vrot.lane.b32.xlu0 %v9152_v47, %s7941_s1  ;;  %4850 = vrot.lane.b32.xlu1 %v9189_v9, %s7942_s16 }
 0x32a   :  { %v9520_v39 = vpop.permute.xlu0 %3658  ;;  %v2767_v44 = vpop.permute.xlu1 %2766 }
 0x32b   :  { %2777 = vst.msk [vmem:[#allocation4 + $0xf0] sm:$0xff] %vm2654_vm5, %v2767_v44 }
 0x32c   :  { %4626 = vrot.lane.b32.xlu1 %v4588_v11, %s7941_s1  ;;  %2990 = vrot.lane.b32.xlu0 %v2979_v57, %s7942_s16 }
 0x32e   :  { %v9527_v47 = vpop.permute.xlu0 %3564  ;;  %v2841_v17 = vpop.permute.xlu1 %2840 }
 0x32f   :  { %2851 = vst.msk [vmem:[#allocation4 + $0x110] sm:$0xff] %vm2654_vm5, %v2841_v17 }
 0x330   :  { %4532 = vrot.lane.b32.xlu1 %v4588_v11, %s7942_s16  ;;  %3064 = vrot.lane.b32.xlu0 %v3053_v50, %s7942_s16 }
 0x332   :  { %v3471_v9 = vpop.permute.xlu0 %3470  ;;  %v2915_v51 = vpop.permute.xlu1 %2914  ;;  %v9534_v15 = vld [vmem:[#allocation4 + $0xf0] sm:$0xff] }
 0x333   :  { %3514 = vst.msk [vmem:[#allocation5 + $0xe8] sm:$0xff] %vm3187_vm7, %v3471_v9  ;;  %v3630_v9 = vld [vmem:[#allocation4 + $0xe1] sm:$0xff] }
 0x334   :  { %2925 = vst.msk [vmem:[#allocation4 + $0x130] sm:$0xff] %vm2654_vm5, %v2915_v51  ;;  %3102 = vst.msk [vmem:[#allocation5 + $0x268] sm:$0xff] %vm2654_vm5, %v9534_v15  ;;  %2694 = vrot.lane.b32.xlu1 %v2683_v22, %s7942_s16  ;;  %3252 = vrot.lane.b32.xlu0 %v3212_v10, %s7942_s16 }
 0x336   :  { %v9544_v16 = vpop.permute.xlu0 %3662  ;;  %v9546_v63 = vpop.permute.xlu1 %3572  ;;  %v9548_v24 = vld [vmem:[#allocation4 + $0x110] sm:$0xff] }
 0x337   :  { %v3407_v33 = vld [vmem:[#allocation4 + $0x110] sm:$0xff]  ;;  %3104 = vst.msk [vmem:[#allocation5 + $0x2d8] sm:$0xff] %vm2654_vm5, %v9548_v24 }
 0x338   :  { %3423 = vst.msk [vmem:[#allocation5 + $0x200] sm:$0xff] %vm2654_vm5, %v3407_v33  ;;  %3157 = vrot.lane.b32.xlu0 %v3212_v10, %s7943_s17  ;;  %2768 = vrot.lane.b32.xlu1 %v2757_v32, %s7942_s16 }
 0x33a   :  { %v9557_v18 = vpop.permute.xlu0 %3568  ;;  %v3783_v41 = vpop.permute.xlu1 %3782 }
 0x33b   :  { %v9559_v6 = vld [vmem:[#allocation4 + $0x130] sm:$0xff]  ;;  %3830 = vst.msk [vmem:[#allocation5 + $0x10] sm:$0xff] %vm3187_vm7, %v3783_v41  ;;  %v3632_v41 = vld [vmem:[#allocation4 + $0x101] sm:$0xff] }
 0x33c   :  { %v3409_v25 = vld [vmem:[#allocation4 + $0x130] sm:$0xff]  ;;  %3106 = vst.msk [vmem:[#allocation5 + $0x348] sm:$0xff] %vm2654_vm5, %v9559_v6  ;;  %3351 = vrot.lane.b32.xlu0 %v9234_v46, %s7941_s1  ;;  %2842 = vrot.lane.b32.xlu1 %v2831_v35, %s7942_s16  ;;  %v3541_v35 = vld [vmem:[#allocation4 + $0x141] sm:$0xff] }
 0x33d   :  { %3425 = vst.msk [vmem:[#allocation5 + $0x270] sm:$0xff] %vm2654_vm5, %v3409_v25 }
 0x33e   :  { %v3475_v43 = vpop.permute.xlu0 %3474  ;;  %v3879_v26 = vpop.permute.xlu1 %3878 }
 0x33f   :  { %3516 = vst.msk [vmem:[#allocation5 + $0x158] sm:$0xff] %vm3187_vm7, %v3475_v43  ;;  %v4174_v43 = vld [vmem:[#allocation4 + $0x102] sm:$0xff] }
 0x340   :  { %3926 = vst.msk [vmem:[#allocation5 + $0x10] sm:$0xff] %vm3284_vm8, %v3879_v26  ;;  %3256 = vrot.lane.b32.xlu0 %v9234_v46, %s7942_s16  ;;  %2916 = vrot.lane.b32.xlu1 %v2905_v19, %s7942_s16 }
 0x342   :  { %v9575_v49 = vpop.permute.xlu0 %3666  ;;  %v9577_v57 = vpop.permute.xlu1 %3976 }
 0x344   :  { %3161 = vrot.lane.b32.xlu0 %v9234_v46, %s7943_s17  ;;  %3169 = vrot.lane.b32.xlu1 %v9260_v28, %s7943_s17  ;;  %v3438_v46 = vld [vmem:[#allocation4 + $0xc1] sm:$0xff] }
 0x346   :  { %v3063_v20 = vpop.permute.xlu0 %3062  ;;  %v3787_v54 = vpop.permute.xlu1 %3786 }
 0x347   :  { %3073 = vst.msk [vmem:[#allocation4 + $0x170] sm:$0xff] %vm2654_vm5, %v3063_v20  ;;  %v4270_v20 = vld [vmem:[#allocation4 + $0xc3] sm:$0xff] }
 0x348   :  { %3832 = vst.msk [vmem:[#allocation5 + $0x80] sm:$0xff] %vm3187_vm7, %v3787_v54  ;;  %3355 = vrot.lane.b32.xlu0 %v9248_v52, %s7941_s1  ;;  %3363 = vrot.lane.b32.xlu1 %v9215_v2, %s7941_s1 }
 0x34a   :  { %v9589_v44 = vpop.permute.xlu0 %4198  ;;  %v3883_v11 = vpop.permute.xlu1 %3882 }
 0x34b   :  { %3928 = vst.msk [vmem:[#allocation5 + $0x80] sm:$0xff] %vm3284_vm8, %v3883_v11 }
 0x34c   :  { %3260 = vrot.lane.b32.xlu0 %v9248_v52, %s7942_s16  ;;  %3478 = vrot.lane.b32.xlu1 %v3438_v46, %s7943_s17  ;;  %v3634_v46 = vld [vmem:[#allocation4 + $0x121] sm:$0xff] }
 0x34e   :  { %v9595_v50 = vpop.permute.xlu0 %4294  ;;  %v9597_v17 = vpop.permute.xlu1 %3980  ;;  %v3413_v22 = vld [vmem:[#allocation4 + $0x170] sm:$0xff] }
 0x34f   :  { %3429 = vst.msk [vmem:[#allocation5 + $0x350] sm:$0xff] %vm2654_vm5, %v3413_v22 }
 0x350   :  { %3165 = vrot.lane.b32.xlu0 %v9248_v52, %s7943_s17  ;;  %3670 = vrot.lane.b32.xlu1 %v3630_v9, %s7941_s1 }
 0x352   :  { %v4105_v2 = vpop.permute.xlu0 %4104  ;;  %v3791_v51 = vpop.permute.xlu1 %3790 }
 0x353   :  { %4151 = vst.msk [vmem:[#allocation5 + $0x50] sm:$0xff] %vm3187_vm7, %v4105_v2  ;;  %3834 = vst.msk [vmem:[#allocation5 + $0xf0] sm:$0xff] %vm3187_vm7, %v3791_v51  ;;  %v3951_v2 = vld [vmem:[#allocation4 + $0xe2] sm:$0xff] }
 0x354   :  { %3359 = vrot.lane.b32.xlu0 %v9260_v28, %s7941_s1  ;;  %3576 = vrot.lane.b32.xlu1 %v3630_v9, %s7942_s16 }
 0x356   :  { %v9608_v10 = vpop.permute.xlu0 %4202  ;;  %v3887_v32 = vpop.permute.xlu1 %3886 }
 0x357   :  { %3930 = vst.msk [vmem:[#allocation5 + $0xf0] sm:$0xff] %vm3284_vm8, %v3887_v32 }
 0x358   :  { %3264 = vrot.lane.b32.xlu0 %v9260_v28, %s7942_s16  ;;  %3482 = vrot.lane.b32.xlu1 %v3630_v9, %s7943_s17 }
 0x35a   :  { %v9614_v52 = vpop.permute.xlu0 %4298  ;;  %v9616_v33 = vpop.permute.xlu1 %3984 }
 0x35c   :  { %3588 = vrot.lane.b32.xlu0 %v3541_v35, %s7942_s16  ;;  %3674 = vrot.lane.b32.xlu1 %v3632_v41, %s7941_s1 }
 0x35e   :  { %v4109_v25 = vpop.permute.xlu0 %4108  ;;  %v3795_v19 = vpop.permute.xlu1 %3794 }
 0x35f   :  { %4153 = vst.msk [vmem:[#allocation5 + $0xc0] sm:$0xff] %vm3187_vm7, %v4109_v25  ;;  %3836 = vst.msk [vmem:[#allocation5 + $0x160] sm:$0xff] %vm3187_vm7, %v3795_v19 }
 0x360   :  { %4214 = vrot.lane.b32.xlu0 %v4174_v43, %s7942_s16  ;;  %3580 = vrot.lane.b32.xlu1 %v3632_v41, %s7942_s16 }
 0x362   :  { %v9624_v28 = vpop.permute.xlu0 %4206  ;;  %v3891_v26 = vpop.permute.xlu1 %3890 }
 0x363   :  { %3932 = vst.msk [vmem:[#allocation5 + $0x160] sm:$0xff] %vm3284_vm8, %v3891_v26 }
 0x364   :  { %4310 = vrot.lane.b32.xlu0 %v4270_v20, %s7941_s1  ;;  %3486 = vrot.lane.b32.xlu1 %v3632_v41, %s7943_s17 }
 0x366   :  { %v9629_v54 = vpop.permute.xlu0 %4302  ;;  %v9631_v11 = vpop.permute.xlu1 %3988 }
 0x367   :  { %11470 = vst [vmem:[#allocation10_spill] sm:$0xff] %v9631_v11  ;;  %v4276_v11 = vld [vmem:[#allocation4 + $0x123] sm:$0xff] }
 0x368   :  { %4120 = vrot.lane.b32.xlu0 %v4174_v43, %s7943_s17  ;;  %3678 = vrot.lane.b32.xlu1 %v3634_v46, %s7941_s1 }
 0x36a   :  { %v4113_v22 = vpop.permute.xlu0 %4112  ;;  %v9635_v9 = vpop.permute.xlu1 %4838 }
 0x36b   :  { %11471 = vst [vmem:[#allocation11_spill] sm:$0xff] %v9635_v9  ;;  %4155 = vst.msk [vmem:[#allocation5 + $0x130] sm:$0xff] %vm3187_vm7, %v4113_v22  ;;  %v4081_v22 = vld [vmem:[#allocation4 + $0x122] sm:$0xff] }
 0x36c   :  { %3992 = vrot.lane.b32.xlu0 %v3951_v2, %s7941_s1  ;;  %3584 = vrot.lane.b32.xlu1 %v3634_v46, %s7942_s16 }
 0x36e   :  { %v9640_v51 = vpop.permute.xlu0 %4210  ;;  %v9642_v32 = vpop.permute.xlu1 %4614 }
 0x36f   :  { %11472 = vst [vmem:[#allocation12_spill] sm:$0xff] %v9642_v32 }
 0x370   :  { %3802 = vrot.lane.b32.xlu0 %v3634_v46, %s7943_s17  ;;  %3490 = vrot.lane.b32.xlu1 %v3634_v46, %s7943_s17 }
 0x372   :  { %v9646_v25 = vpop.permute.xlu0 %4306  ;;  %v4745_v19 = vpop.permute.xlu1 %4744 }
 0x373   :  { %11473 = vst [vmem:[#allocation13_spill] sm:$0xff] %v9646_v25  ;;  %4791 = vst.msk [vmem:[#allocation5 + $0x60] sm:$0xff] %vm3187_vm7, %v4745_v19  ;;  %v3854_v19 = vld [vmem:[#allocation4 + $0xc2] sm:$0xff] }
 0x374   :  { %3898 = vrot.lane.b32.xlu0 %v3951_v2, %s7942_s16  ;;  %3682 = vrot.lane.b32.xlu1 %v3541_v35, %s7941_s1 }
 0x376   :  { %v4117_v26 = vpop.permute.xlu0 %4116  ;;  %v9651_v20 = vpop.permute.xlu1 %4936 }
 0x377   :  { %11474 = vst [vmem:[#allocation14_spill] sm:$0xff] %v9651_v20  ;;  %4157 = vst.msk [vmem:[#allocation5 + $0x1a0] sm:$0xff] %vm3187_vm7, %v4117_v26 }
 0x378   :  { %4124 = vrot.lane.b32.xlu0 %v4081_v22, %s7943_s17  ;;  %3798 = vrot.lane.b32.xlu1 %v3632_v41, %s7943_s17 }
 0x37a   :  { %v4423_v46 = vpop.permute.xlu0 %4422  ;;  %v9656_v1 = vpop.permute.xlu1 %4842 }
 0x37b   :  { %11475 = vst [vmem:[#allocation15_spill] sm:$0xff] %v9656_v1  ;;  %4470 = vst.msk [vmem:[#allocation5 + $0x20] sm:$0xff] %vm3187_vm7, %v4423_v46  ;;  %v4272_v46 = vld [vmem:[#allocation4 + $0xe3] sm:$0xff] }
 0x37c   :  { %3996 = vrot.lane.b32.xlu0 %v4174_v43, %s7941_s1  ;;  %3894 = vrot.lane.b32.xlu1 %v3854_v19, %s7942_s16 }
 0x37e   :  { %v9661_v2 = vpop.permute.xlu0 %4520  ;;  %v9663_v20 = vpop.permute.xlu1 %4618 }
 0x37f   :  { %11476 = vst [vmem:[#allocation16_spill] sm:$0xff] %v9661_v2  ;;  %11477 = vst [vmem:[#allocation17_spill] sm:$0xff] %v9663_v20  ;;  %v4083_v20 = vld [vmem:[#allocation4 + $0x142] sm:$0xff] }
 0x380   :  { %3806 = vrot.lane.b32.xlu0 %v3541_v35, %s7943_s17  ;;  %4218 = vrot.lane.b32.xlu1 %v4081_v22, %s7942_s16 }
 0x382   :  { %v4427_v26 = vpop.permute.xlu0 %4426  ;;  %v4749_v41 = vpop.permute.xlu1 %4748 }
 0x383   :  { %4472 = vst.msk [vmem:[#allocation5 + $0x90] sm:$0xff] %vm3187_vm7, %v4427_v26  ;;  %4793 = vst.msk [vmem:[#allocation5 + $0xd0] sm:$0xff] %vm3187_vm7, %v4749_v41  ;;  %v4274_v26 = vld [vmem:[#allocation4 + $0x103] sm:$0xff] }
 0x384   :  { %3902 = vrot.lane.b32.xlu0 %v4174_v43, %s7942_s16  ;;  %4314 = vrot.lane.b32.xlu1 %v4272_v46, %s7941_s1 }
 0x386   :  { %v9671_v19 = vpop.permute.xlu0 %4524  ;;  %v9673_v1 = vpop.permute.xlu1 %4940 }
 0x387   :  { %11478 = vst [vmem:[#allocation18_spill] sm:$0xff] %v9671_v19  ;;  %11479 = vst [vmem:[#allocation19_spill] sm:$0xff] %v9673_v1  ;;  %v3764_v1 = vld [vmem:[#allocation4 + $0x161] sm:$0xff] }
 0x388   :  { %4128 = vrot.lane.b32.xlu0 %v4083_v20, %s7943_s17  ;;  %4222 = vrot.lane.b32.xlu1 %v4083_v20, %s7942_s16  ;;  %v4180_v19 = vld [vmem:[#allocation4 + $0x162] sm:$0xff] }
 0x38a   :  { %v4431_v35 = vpop.permute.xlu0 %4430  ;;  %v9677_v2 = vpop.permute.xlu1 %4846 }
 0x38b   :  { %11480 = vst [vmem:[#allocation20_spill] sm:$0xff] %v9677_v2  ;;  %4474 = vst.msk [vmem:[#allocation5 + $0x100] sm:$0xff] %vm3187_vm7, %v4431_v35  ;;  %v5158_v2 = vld [vmem:[%s11455_s2 + $0x80] sm:$0xff]  ;;  %v5159_v35 = vld [vmem:[%s11455_s2 + $0x88] sm:$0xff] }
 0x38c   :  { %4000 = vrot.lane.b32.xlu0 %v4081_v22, %s7941_s1  ;;  %4318 = vrot.lane.b32.xlu1 %v4274_v26, %s7941_s1  ;;  %v7515_v32 = vpack.c.bf16 %v5159_v35, %v5158_v2  ;;  %v5160_v2 = vld [vmem:[%s11455_s2 + $0x90] sm:$0xff]  ;;  %v5161_v35 = vld [vmem:[%s11455_s2 + $0x98] sm:$0xff] }
 0x38e   :  { %v9682_v43 = vpop.permute.xlu0 %4528  ;;  %v9684_v41 = vpop.permute.xlu1 %4622  ;;  %7516 = vmatprep.subr.bf16.mxu1 %v7515_v32  ;;  %v5145_v32 = vld [vmem:[%s11455_s2 + $0x18] sm:$0xff] }
 0x38f   :  { %11481 = vst [vmem:[#allocation21_spill] sm:$0xff] %v9682_v43  ;;  %11482 = vst [vmem:[#allocation22_spill] sm:$0xff] %v9684_v41  ;;  %v5142_v43 = vld [vmem:[%s11455_s2] sm:$0xff]  ;;  %v5143_v41 = vld [vmem:[%s11455_s2 + $0x8] sm:$0xff] }
 0x390   :  { %3810 = vrot.lane.b32.xlu0 %v3764_v1, %s7943_s17  ;;  %4226 = vrot.lane.b32.xlu1 %v4180_v19, %s7942_s16  ;;  %v7517_v25 = vpack.c.bf16 %v5143_v41, %v5142_v43  ;;  %v7519_v43 = vpack.c.bf16 %v5161_v35, %v5160_v2  ;;  %v5146_v35 = vld [vmem:[%s11455_s2 + $0x20] sm:$0xff] }
 0x392   :  { %v4435_v1 = vpop.permute.xlu0 %4434  ;;  %v4753_v9 = vpop.permute.xlu1 %4752  ;;  %7518 = vmatpush3.bf16.msra.mxu1 %v7517_v25  ;;  %v5162_v25 = vld [vmem:[%s11455_s2 + $0xa0] sm:$0xff] }
 0x393   :  { %4476 = vst.msk [vmem:[#allocation5 + $0x170] sm:$0xff] %vm3187_vm7, %v4435_v1  ;;  %4795 = vst.msk [vmem:[#allocation5 + $0x140] sm:$0xff] %vm3187_vm7, %v4753_v9  ;;  %v5144_v9 = vld [vmem:[%s11455_s2 + $0x10] sm:$0xff]  ;;  %7520 = vmatprep.subr.bf16.mxu1 %v7519_v43  ;;  %v5163_v1 = vld [vmem:[%s11455_s2 + $0xa8] sm:$0xff] }
 0x394   :  { %3906 = vrot.lane.b32.xlu0 %v4081_v22, %s7942_s16  ;;  %4322 = vrot.lane.b32.xlu1 %v4276_v11, %s7941_s1  ;;  %v7521_v41 = vpack.c.bf16 %v5145_v32, %v5144_v9  ;;  %v7523_v2 = vpack.c.bf16 %v5163_v1, %v5162_v25  ;;  %v5164_v32 = vld [vmem:[%s11455_s2 + $0xb0] sm:$0xff] }
 0x395   :  { %v5148_v25 = vld [vmem:[%s11455_s2 + $0x30] sm:$0xff] }
 0x396   :  { %v4757_v22 = vpop.permute.xlu0 %4756  ;;  %v9716_v11 = vpop.permute.xlu1 %4944  ;;  %7522 = vmatpush3.bf16.msra.mxu1 %v7521_v41 }
 0x397   :  { %4797 = vst.msk [vmem:[#allocation5 + $0x1b0] sm:$0xff] %vm3187_vm7, %v4757_v22  ;;  %7524 = vmatprep.subr.bf16.mxu1 %v7523_v2  ;;  %v5165_v22 = vld [vmem:[%s11455_s2 + $0xb8] sm:$0xff] }
 0x398   :  { %4132 = vrot.lane.b32.xlu0 %v4180_v19, %s7943_s17  ;;  %4438 = vrot.lane.b32.xlu1 %v4272_v46, %s7943_s17  ;;  %v5147_v19 = vld [vmem:[%s11455_s2 + $0x28] sm:$0xff]  ;;  %v7527_v41 = vpack.c.bf16 %v5165_v22, %v5164_v32  ;;  %v5150_v22 = vld [vmem:[%s11455_s2 + $0x40] sm:$0xff] }
 0x399   :  { %v7525_v9 = vpack.c.bf16 %v5147_v19, %v5146_v35  ;;  %v4814_v35 = vld [vmem:[#allocation4 + $0xe4] sm:$0xff] }
 0x39a   :  { %v9733_v43 = vpop.permute.xlu0 %4948  ;;  %v9735_v46 = vpop.permute.xlu1 %4850  ;;  %v5166_v19 = vld [vmem:[%s11455_s2 + $0xc0] sm:$0xff] }
 0x39b   :  { %11483 = vst [vmem:[#allocation23_spill] sm:$0xff] %v9735_v46  ;;  %7526 = vmatpush3.bf16.msra.mxu1 %v7525_v9  ;;  %v5167_v9 = vld [vmem:[%s11455_s2 + $0xc8] sm:$0xff] }
 0x39c   :  { %4004 = vrot.lane.b32.xlu0 %v4083_v20, %s7941_s1  ;;  %4630 = vrot.lane.b32.xlu1 %v4274_v26, %s7941_s1  ;;  %v5149_v20 = vld [vmem:[%s11455_s2 + $0x38] sm:$0xff]  ;;  %v7531_v32 = vpack.c.bf16 %v5167_v9, %v5166_v19  ;;  %v5152_v9 = vld [vmem:[%s11455_s2 + $0x50] sm:$0xff] }
 0x39d   :  { %v7529_v2 = vpack.c.bf16 %v5149_v20, %v5148_v25  ;;  %7528 = vmatprep.subr.bf16.mxu1 %v7527_v41  ;;  %v5151_v41 = vld [vmem:[%s11455_s2 + $0x48] sm:$0xff] }
 0x39e   :  { %v2991_v1 = vpop.permute.xlu0 %2990  ;;  %v9751_v26 = vpop.permute.xlu1 %4626  ;;  %v7533_v20 = vpack.c.bf16 %v5151_v41, %v5150_v22 }
 0x39f   :  { %3000 = vst.msk [vmem:[#allocation4 + $0x158] sm:$0xf] %vm2656_vm6, %v2991_v1  ;;  %7530 = vmatpush3.bf16.msra.mxu1 %v7529_v2  ;;  %v5168_v1 = vld [vmem:[%s11455_s2 + $0xd0] sm:$0xff]  ;;  %v5169_v2 = vld [vmem:[%s11455_s2 + $0xd8] sm:$0xff] }
 0x3a0   :  { %4854 = vrot.lane.b32.xlu0 %v4814_v35, %s7942_s16  ;;  %3139 = vrot.lane.b32.xlu1 %v9326_v58, %s7943_s17  ;;  %v7535_v19 = vpack.c.bf16 %v5169_v2, %v5168_v1  ;;  %v5171_v1 = vld [vmem:[%s11455_s2 + $0xe8] sm:$0xff] }
 0x3a1   :  { %7532 = vmatprep.subr.bf16.mxu1 %v7531_v32 }
 0x3a2   :  { %v3065_v25 = vpop.permute.xlu0 %3064  ;;  %v9769_v58 = vpop.permute.xlu1 %4532 }
 0x3a3   :  { %11484 = vst [vmem:[#allocation24_spill] sm:$0xff] %v9769_v58  ;;  %3074 = vst.msk [vmem:[#allocation4 + $0x178] sm:$0xf] %vm2656_vm6, %v3065_v25  ;;  %7534 = vmatpush3.bf16.msra.mxu1 %v7533_v20  ;;  %v5170_v20 = vld [vmem:[%s11455_s2 + $0xe0] sm:$0xff] }
 0x3a4   :  { %4760 = vrot.lane.b32.xlu0 %v4814_v35, %s7943_s17  ;;  %3333 = vrot.lane.b32.xlu1 %v9328_v8, %s7941_s1  ;;  %v5153_v35 = vld [vmem:[%s11455_s2 + $0x58] sm:$0xff]  ;;  %v7539_v2 = vpack.c.bf16 %v5171_v1, %v5170_v20  ;;  %v5156_v1 = vld [vmem:[%s11455_s2 + $0x70] sm:$0xff] }
 0x3a5   :  { %v7537_v46 = vpack.c.bf16 %v5153_v35, %v5152_v9  ;;  %7536 = vmatprep.subr.bf16.mxu1 %v7535_v19  ;;  %v5155_v19 = vld [vmem:[%s11455_s2 + $0x68] sm:$0xff]  ;;  %v5173_v20 = vld [vmem:[%s11455_s2 + $0xf8] sm:$0xff] }
 0x3a6   :  { %v5011_v32 = vld [vmem:[#allocation4 + $0x154] sm:$0xff]  ;;  %v9787_v22 = vpop.permute.xlu0 %3252  ;;  %v2695_v41 = vpop.permute.xlu1 %2694 }
 0x3a7   :  { %v9789_v25 = vld [vmem:[#allocation4 + $0x151] sm:$0xff]  ;;  %5027 = vst.msk [vmem:[#allocation5 + $0x308] sm:$0xff] %vm2654_vm5, %v5011_v32  ;;  %7538 = vmatpush3.bf16.msra.mxu1 %v7537_v46 }
 0x3a8   :  { %v4053_v58 = vld [vmem:[#allocation4 + $0x152] sm:$0xff]  ;;  %2704 = vst.msk [vmem:[#allocation4 + $0xd8] sm:$0xf] %vm2656_vm6, %v2695_v41  ;;  %3341 = vrot.lane.b32.xlu0 %v9348_v23, %s7941_s1  ;;  %3238 = vrot.lane.b32.xlu1 %v9328_v8, %s7942_s16 }
 0x3a9   :  { %3748 = vst.msk [vmem:[#allocation5 + $0x320] sm:$0xff] %vm2654_vm5, %v9789_v25  ;;  %4069 = vst.msk [vmem:[#allocation5 + $0x360] sm:$0xff] %vm2654_vm5, %v4053_v58  ;;  %v5154_v58 = vld [vmem:[%s11455_s2 + $0x60] sm:$0xff]  ;;  %7540 = vmatprep.subr.bf16.mxu1 %v7539_v2  ;;  %v5172_v46 = vld [vmem:[%s11455_s2 + $0xf0] sm:$0xff] }
 0x3aa   :  { %v5013_v9 = vld [vmem:[#allocation4 + $0x174] sm:$0xff]  ;;  %v3158_v35 = vpop.permute.xlu0 %3157  ;;  %v2769_v32 = vpop.permute.xlu1 %2768  ;;  %v7541_v41 = vpack.c.bf16 %v5155_v19, %v5154_v58 }
 0x3ab   :  { %5029 = vst.msk [vmem:[#allocation5 + $0x378] sm:$0xff] %vm2654_vm5, %v5013_v9 }
 0x3ac   :  { %3197 = vst.msk [vmem:[#allocation5 + $0x1f8] sm:$0xff] %vm3187_vm7, %v3158_v35  ;;  %3345 = vrot.lane.b32.xlu0 %v9355_v34, %s7941_s1  ;;  %3143 = vrot.lane.b32.xlu1 %v9328_v8, %s7943_s17  ;;  %v7543_v35 = vpack.c.bf16 %v5173_v20, %v5172_v46  ;;  %v5157_v8 = vld [vmem:[%s11455_s2 + $0x78] sm:$0xff] }
 0x3ad   :  { %2778 = vst.msk [vmem:[#allocation4 + $0xf8] sm:$0xf] %vm2656_vm6, %v2769_v32  ;;  %7542 = vmatpush3.bf16.msra.mxu1 %v7541_v41  ;;  %v7545_v32 = vpack.c.bf16 %v5157_v8, %v5156_v1 }
 0x3ae   :  { %v9828_v2 = vpop.permute.xlu0 %3351  ;;  %v2843_v58 = vpop.permute.xlu1 %2842  ;;  %7544 = vmatprep.subr.bf16.mxu1 %v7543_v35 }
 0x3af   :  { %11485 = vst [vmem:[#allocation25_spill] sm:$0xff] %v9828_v2  ;;  %v4366_v19 = vld [vmem:[#allocation4 + $0xd3] sm:$0xff]  ;;  %2852 = vst.msk [vmem:[#allocation4 + $0x118] sm:$0xf] %vm2656_vm6, %v2843_v58 }
 0x3b0   :  { %v4687_v9 = vld [vmem:[#allocation4 + $0xd4] sm:$0xff]  ;;  %4382 = vst.msk [vmem:[#allocation5 + $0x1e0] sm:$0xff] %vm2654_vm5, %v4366_v19  ;;  %3250 = vrot.lane.b32.xlu0 %v9355_v34, %s7942_s16  ;;  %3337 = vrot.lane.b32.xlu1 %v9337_v45, %s7941_s1 }
 0x3b1   :  { %4703 = vst.msk [vmem:[#allocation5 + $0x220] sm:$0xff] %vm2654_vm5, %v4687_v9  ;;  %7546 = vmatpush3.bf16.msra.mxu1 %v7545_v32  ;;  %v3526_v58 = vld [vmem:[#allocation4 + $0x11] sm:$0xff] }
 0x3b2   :  { %v9840_v41 = vpop.permute.xlu0 %3256  ;;  %v2917_v46 = vpop.permute.xlu1 %2916 }
 0x3b3   :  { %2926 = vst.msk [vmem:[#allocation4 + $0x138] sm:$0xf] %vm2656_vm6, %v2917_v46 }
 0x3b4   :  { %v4047_v20 = vld [vmem:[#allocation4 + $0xf2] sm:$0xff]  ;;  %3558 = vrot.lane.b32.xlu0 %v3526_v58, %s7942_s16  ;;  %3242 = vrot.lane.b32.xlu1 %v9337_v45, %s7942_s16 }
 0x3b5   :  { %v9842_v2 = vld [vmem:[#allocation4 + $0xf1] sm:$0xff]  ;;  %4063 = vst.msk [vmem:[#allocation5 + $0x210] sm:$0xff] %vm2654_vm5, %v4047_v20 }
 0x3b6   :  { %3742 = vst.msk [vmem:[#allocation5 + $0x1d0] sm:$0xff] %vm2654_vm5, %v9842_v2  ;;  %v9848_v34 = vld [vmem:[#allocation4 + $0xf3] sm:$0xff]  ;;  %v3162_v9 = vpop.permute.xlu0 %3161  ;;  %v3170_v35 = vpop.permute.xlu1 %3169 }
 0x3b7   :  { %v9850_v1 = vld [vmem:[#allocation4 + $0xf4] sm:$0xff]  ;;  %4384 = vst.msk [vmem:[#allocation5 + $0x250] sm:$0xff] %vm2654_vm5, %v9848_v34 }
 0x3b8   :  { %11486 = vst [vmem:[#allocation26_spill] sm:$0xff] %v9850_v1  ;;  %4705 = vst.msk [vmem:[#allocation5 + $0x290] sm:$0xff] %vm2654_vm5, %v9850_v1  ;;  %v5007_v19 = vld [vmem:[#allocation4 + $0x114] sm:$0xff]  ;;  %3464 = vrot.lane.b32.xlu0 %v3526_v58, %s7943_s17  ;;  %3147 = vrot.lane.b32.xlu1 %v9337_v45, %s7943_s17 }
 0x3b9   :  { %v9859_v8 = vld [vmem:[#allocation4 + $0x111] sm:$0xff]  ;;  %5023 = vst.msk [vmem:[#allocation5 + $0x228] sm:$0xff] %vm2654_vm5, %v5007_v19 }
 0x3ba   :  { %v4049_v32 = vld [vmem:[#allocation4 + $0x112] sm:$0xff]  ;;  %3199 = vst.msk [vmem:[#allocation5 + $0x268] sm:$0xff] %vm3187_vm7, %v3162_v9  ;;  %3203 = vst.msk [vmem:[#allocation5 + $0x348] sm:$0xff] %vm3187_vm7, %v3170_v35  ;;  %v9878_v9 = vpop.permute.xlu0 %3355  ;;  %v9880_v35 = vpop.permute.xlu1 %3363 }
 0x3bb   :  { %3744 = vst.msk [vmem:[#allocation5 + $0x240] sm:$0xff] %vm2654_vm5, %v9859_v8  ;;  %4065 = vst.msk [vmem:[#allocation5 + $0x280] sm:$0xff] %vm2654_vm5, %v4049_v32  ;;  %v9867_v46 = vld [vmem:[#allocation4 + $0x113] sm:$0xff] }
 0x3bc   :  { %v9872_v20 = vld [vmem:[#allocation4 + $0x114] sm:$0xff]  ;;  %4386 = vst.msk [vmem:[#allocation5 + $0x2c0] sm:$0xff] %vm2654_vm5, %v9867_v46  ;;  %11488 = vst [vmem:[#allocation28_spill] sm:$0xff] %v9880_v35  ;;  %3656 = vrot.lane.b32.xlu0 %v9393_v42, %s7941_s1  ;;  %3246 = vrot.lane.b32.xlu1 %v9348_v23, %s7942_s16 }
 0x3bd   :  { %11487 = vst [vmem:[#allocation27_spill] sm:$0xff] %v9872_v20  ;;  %4707 = vst.msk [vmem:[#allocation5 + $0x300] sm:$0xff] %vm2654_vm5, %v9872_v20  ;;  %v5009_v19 = vld [vmem:[#allocation4 + $0x134] sm:$0xff] }
 0x3be   :  { %v9882_v32 = vld [vmem:[#allocation4 + $0x131] sm:$0xff]  ;;  %5025 = vst.msk [vmem:[#allocation5 + $0x298] sm:$0xff] %vm2654_vm5, %v5009_v19  ;;  %v9900_v19 = vpop.permute.xlu0 %3260  ;;  %v3479_v20 = vpop.permute.xlu1 %3478 }
 0x3bf   :  { %v4051_v1 = vld [vmem:[#allocation4 + $0x132] sm:$0xff]  ;;  %3746 = vst.msk [vmem:[#allocation5 + $0x2b0] sm:$0xff] %vm2654_vm5, %v9882_v32 }
 0x3c0   :  { %4067 = vst.msk [vmem:[#allocation5 + $0x2f0] sm:$0xff] %vm2654_vm5, %v4051_v1  ;;  %v9888_v45 = vld [vmem:[#allocation4 + $0x133] sm:$0xff]  ;;  %3562 = vrot.lane.b32.xlu0 %v9393_v42, %s7942_s16  ;;  %3151 = vrot.lane.b32.xlu1 %v9348_v23, %s7943_s17 }
 0x3c1   :  { %v9894_v58 = vld [vmem:[#allocation4 + $0x134] sm:$0xff]  ;;  %4388 = vst.msk [vmem:[#allocation5 + $0x330] sm:$0xff] %vm2654_vm5, %v9888_v45 }
 0x3c2   :  { %11489 = vst [vmem:[#allocation29_spill] sm:$0xff] %v9894_v58  ;;  %4709 = vst.msk [vmem:[#allocation5 + $0x370] sm:$0xff] %vm2654_vm5, %v9894_v58  ;;  %v3166_v1 = vpop.permute.xlu0 %3165  ;;  %v9907_v35 = vpop.permute.xlu1 %3670 }
 0x3c3   :  { %3518 = vst.msk [vmem:[#allocation5 + $0x1c8] sm:$0xff] %vm3187_vm7, %v3479_v20  ;;  %11490 = vst [vmem:[#allocation30_spill] sm:$0xff] %v9907_v35 }
 0x3c4   :  { %3201 = vst.msk [vmem:[#allocation5 + $0x2d8] sm:$0xff] %vm3187_vm7, %v3166_v1  ;;  %3468 = vrot.lane.b32.xlu0 %v9393_v42, %s7943_s17  ;;  %3472 = vrot.lane.b32.xlu1 %v9422_v53, %s7943_s17 }
 0x3c6   :  { %v9914_v58 = vpop.permute.xlu0 %3359  ;;  %v9916_v20 = vpop.permute.xlu1 %3576 }
 0x3c7   :  { %11491 = vst [vmem:[#allocation31_spill] sm:$0xff] %v9914_v58  ;;  %11492 = vst [vmem:[#allocation32_spill] sm:$0xff] %v9916_v20  ;;  %v3942_v20 = vld [vmem:[#allocation4 + $0x12] sm:$0xff] }
 0x3c8   :  { %3660 = vrot.lane.b32.xlu0 %v9422_v53, %s7941_s1  ;;  %3476 = vrot.lane.b32.xlu1 %v9447_v21, %s7943_s17 }
 0x3ca   :  { %v9922_v23 = vpop.permute.xlu0 %3264  ;;  %v3483_v35 = vpop.permute.xlu1 %3482 }
 0x3cb   :  { %11493 = vst [vmem:[#allocation33_spill] sm:$0xff] %v9922_v23  ;;  %3520 = vst.msk [vmem:[#allocation5 + $0x238] sm:$0xff] %vm3187_vm7, %v3483_v35 }
 0x3cc   :  { %3566 = vrot.lane.b32.xlu0 %v9422_v53, %s7942_s16  ;;  %3668 = vrot.lane.b32.xlu1 %v9403_v3, %s7941_s1 }
 0x3ce   :  { %v9929_v42 = vpop.permute.xlu0 %3588  ;;  %v9931_v1 = vpop.permute.xlu1 %3674 }
 0x3cf   :  { %11494 = vst [vmem:[#allocation34_spill] sm:$0xff] %v9929_v42  ;;  %11495 = vst [vmem:[#allocation35_spill] sm:$0xff] %v9931_v1 }
 0x3d0   :  { %3664 = vrot.lane.b32.xlu0 %v9447_v21, %s7941_s1  ;;  %3974 = vrot.lane.b32.xlu1 %v3942_v20, %s7941_s1 }
 0x3d2   :  { %v9936_v23 = vpop.permute.xlu0 %4214  ;;  %v9938_v58 = vpop.permute.xlu1 %3580 }
 0x3d3   :  { %11496 = vst [vmem:[#allocation36_spill] sm:$0xff] %v9936_v23  ;;  %11497 = vst [vmem:[#allocation37_spill] sm:$0xff] %v9938_v58  ;;  %v5224_v58 = vld [vmem:[%s11455_s2 + $0x290] sm:$0xff] }
 0x3d4   :  { %3570 = vrot.lane.b32.xlu0 %v9447_v21, %s7942_s16  ;;  %3784 = vrot.lane.b32.xlu1 %v9422_v53, %s7943_s17 }
 0x3d6   :  { %v9944_v35 = vpop.permute.xlu0 %4310  ;;  %v3487_v42 = vpop.permute.xlu1 %3486 }
 0x3d7   :  { %11498 = vst [vmem:[#allocation38_spill] sm:$0xff] %v9944_v35  ;;  %3522 = vst.msk [vmem:[#allocation5 + $0x2a8] sm:$0xff] %vm3187_vm7, %v3487_v42 }
 0x3d8   :  { %4102 = vrot.lane.b32.xlu0 %v9395_v60, %s7943_s17  ;;  %3880 = vrot.lane.b32.xlu1 %v3942_v20, %s7942_s16 }
 0x3da   :  { %v4121_v1 = vpop.permute.xlu0 %4120  ;;  %v9950_v23 = vpop.permute.xlu1 %3678 }
 0x3db   :  { %11499 = vst [vmem:[#allocation39_spill] sm:$0xff] %v9950_v23  ;;  %4159 = vst.msk [vmem:[#allocation5 + $0x210] sm:$0xff] %vm3187_vm7, %v4121_v1  ;;  %v5222_v1 = vld [vmem:[%s11455_s2 + $0x280] sm:$0xff] }
 0x3dc   :  { %4200 = vrot.lane.b32.xlu0 %v9430_v55, %s7942_s16  ;;  %3978 = vrot.lane.b32.xlu1 %v9395_v60, %s7941_s1 }
 0x3de   :  { %v9957_v53 = vpop.permute.xlu0 %3992  ;;  %v9959_v35 = vpop.permute.xlu1 %3584 }
 0x3df   :  { %11500 = vst [vmem:[#allocation40_spill] sm:$0xff] %v9957_v53  ;;  %11501 = vst [vmem:[#allocation41_spill] sm:$0xff] %v9959_v35  ;;  %v5225_v35 = vld [vmem:[%s11455_s2 + $0x298] sm:$0xff] }
 0x3e0   :  { %4296 = vrot.lane.b32.xlu0 %v9378_v59, %s7941_s1  ;;  %3788 = vrot.lane.b32.xlu1 %v9447_v21, %s7943_s17  ;;  %v5223_v59 = vld [vmem:[%s11455_s2 + $0x288] sm:$0xff]  ;;  %v5206_v21 = vld [vmem:[%s11455_s2 + $0x200] sm:$0xff] }
 0x3e1   :  { %v7579_v53 = vpack.c.bf16 %v5223_v59, %v5222_v1  ;;  %v7583_v1 = vpack.c.bf16 %v5225_v35, %v5224_v58  ;;  %v5208_v59 = vld [vmem:[%s11455_s2 + $0x210] sm:$0xff]  ;;  %v5226_v58 = vld [vmem:[%s11455_s2 + $0x2a0] sm:$0xff]  ;;  %v5227_v35 = vld [vmem:[%s11455_s2 + $0x2a8] sm:$0xff] }
 0x3e2   :  { %v3803_v20 = vpop.permute.xlu0 %3802  ;;  %v3491_v42 = vpop.permute.xlu1 %3490 }
 0x3e3   :  { %3840 = vst.msk [vmem:[#allocation5 + $0x240] sm:$0xff] %vm3187_vm7, %v3803_v20  ;;  %3524 = vst.msk [vmem:[#allocation5 + $0x318] sm:$0xff] %vm3187_vm7, %v3491_v42  ;;  %7580 = vmatprep.subr.bf16.mxu0 %v7579_v53  ;;  %v5210_v53 = vld [vmem:[%s11455_s2 + $0x220] sm:$0xff] }
 0x3e4   :  { %4106 = vrot.lane.b32.xlu0 %v9430_v55, %s7943_s17  ;;  %3884 = vrot.lane.b32.xlu1 %v9395_v60, %s7942_s16  ;;  %v5207_v60 = vld [vmem:[%s11455_s2 + $0x208] sm:$0xff] }
 0x3e5   :  { %v7581_v23 = vpack.c.bf16 %v5207_v60, %v5206_v21  ;;  %v5209_v21 = vld [vmem:[%s11455_s2 + $0x218] sm:$0xff] }
 0x3e6   :  { %v3899_v20 = vpop.permute.xlu0 %3898  ;;  %v9980_v42 = vpop.permute.xlu1 %3682 }
 0x3e7   :  { %11502 = vst [vmem:[#allocation42_spill] sm:$0xff] %v9980_v42  ;;  %3936 = vst.msk [vmem:[#allocation5 + $0x240] sm:$0xff] %vm3284_vm8, %v3899_v20  ;;  %7582 = vmatpush3.bf16.msra.mxu0 %v7581_v23  ;;  %v7585_v42 = vpack.c.bf16 %v5209_v21, %v5208_v59  ;;  %v7587_v23 = vpack.c.bf16 %v5227_v35, %v5226_v58 }
 0x3e8   :  { %4204 = vrot.lane.b32.xlu0 %v9449_v31, %s7942_s16  ;;  %3982 = vrot.lane.b32.xlu1 %v9430_v55, %s7941_s1 }
 0x3e9   :  { %7584 = vmatprep.subr.bf16.mxu0 %v7583_v1  ;;  %v5211_v1 = vld [vmem:[%s11455_s2 + $0x228] sm:$0xff] }
 0x3ea   :  { %v4125_v20 = vpop.permute.xlu0 %4124  ;;  %v3799_v60 = vpop.permute.xlu1 %3798 }
 0x3eb   :  { %4161 = vst.msk [vmem:[#allocation5 + $0x280] sm:$0xff] %vm3187_vm7, %v4125_v20  ;;  %3838 = vst.msk [vmem:[#allocation5 + $0x1d0] sm:$0xff] %vm3187_vm7, %v3799_v60  ;;  %7586 = vmatpush3.bf16.msra.mxu0 %v7585_v42  ;;  %v7589_v20 = vpack.c.bf16 %v5211_v1, %v5210_v53  ;;  %v5229_v60 = vld [vmem:[%s11455_s2 + $0x2b8] sm:$0xff]  ;;  %v5212_v42 = vld [vmem:[%s11455_s2 + $0x230] sm:$0xff] }
 0x3ec   :  { %4300 = vrot.lane.b32.xlu0 %v9407_v4, %s7941_s1  ;;  %3792 = vrot.lane.b32.xlu1 %v9403_v3, %s7943_s17  ;;  %v5228_v3 = vld [vmem:[%s11455_s2 + $0x2b0] sm:$0xff]  ;;  %v5230_v1 = vld [vmem:[%s11455_s2 + $0x2c0] sm:$0xff] }
 0x3ed   :  { %7588 = vmatprep.subr.bf16.mxu0 %v7587_v23  ;;  %v7591_v23 = vpack.c.bf16 %v5229_v60, %v5228_v3  ;;  %v5214_v3 = vld [vmem:[%s11455_s2 + $0x240] sm:$0xff]  ;;  %v5215_v60 = vld [vmem:[%s11455_s2 + $0x248] sm:$0xff] }
 0x3ee   :  { %v10020_v59 = vpop.permute.xlu0 %3996  ;;  %v3895_v21 = vpop.permute.xlu1 %3894 }
 0x3ef   :  { %11503 = vst [vmem:[#allocation43_spill] sm:$0xff] %v10020_v59  ;;  %3934 = vst.msk [vmem:[#allocation5 + $0x1d0] sm:$0xff] %vm3284_vm8, %v3895_v21  ;;  %7590 = vmatpush3.bf16.msra.mxu0 %v7589_v20  ;;  %v5231_v21 = vld [vmem:[%s11455_s2 + $0x2c8] sm:$0xff]  ;;  %v3757_v59 = vld [vmem:[#allocation4 + $0xb1] sm:$0xff] }
 0x3f0   :  { %4110 = vrot.lane.b32.xlu0 %v9449_v31, %s7943_s17  ;;  %3888 = vrot.lane.b32.xlu1 %v9430_v55, %s7942_s16  ;;  %v5213_v55 = vld [vmem:[%s11455_s2 + $0x238] sm:$0xff]  ;;  %v7595_v20 = vpack.c.bf16 %v5231_v21, %v5230_v1 }
 0x3f1   :  { %v7593_v53 = vpack.c.bf16 %v5213_v55, %v5212_v42  ;;  %7592 = vmatprep.subr.bf16.mxu0 %v7591_v23  ;;  %v7597_v55 = vpack.c.bf16 %v5215_v60, %v5214_v3  ;;  %v5232_v23 = vld [vmem:[%s11455_s2 + $0x2d0] sm:$0xff]  ;;  %v5233_v1 = vld [vmem:[%s11455_s2 + $0x2d8] sm:$0xff] }
 0x3f2   :  { %v3807_v58 = vpop.permute.xlu0 %3806  ;;  %v10036_v35 = vpop.permute.xlu1 %4218  ;;  %v7599_v21 = vpack.c.bf16 %v5233_v1, %v5232_v23  ;;  %v5235_v23 = vld [vmem:[%s11455_s2 + $0x2e8] sm:$0xff] }
 0x3f3   :  { %3842 = vst.msk [vmem:[#allocation5 + $0x2b0] sm:$0xff] %vm3187_vm7, %v3807_v58  ;;  %7594 = vmatpush3.bf16.msra.mxu0 %v7593_v53  ;;  %v5216_v53 = vld [vmem:[%s11455_s2 + $0x250] sm:$0xff] }
 0x3f4   :  { %4208 = vrot.lane.b32.xlu0 %v9405_v61, %s7942_s16  ;;  %3986 = vrot.lane.b32.xlu1 %v9449_v31, %s7941_s1 }
 0x3f5   :  { %7596 = vmatprep.subr.bf16.mxu0 %v7595_v20  ;;  %v5217_v20 = vld [vmem:[%s11455_s2 + $0x258] sm:$0xff] }
 0x3f6   :  { %v3903_v42 = vpop.permute.xlu0 %3902  ;;  %v10058_v58 = vpop.permute.xlu1 %4314 }
 0x3f7   :  { %3938 = vst.msk [vmem:[#allocation5 + $0x2b0] sm:$0xff] %vm3284_vm8, %v3903_v42  ;;  %7598 = vmatpush3.bf16.msra.mxu0 %v7597_v55  ;;  %v7601_v42 = vpack.c.bf16 %v5217_v20, %v5216_v53  ;;  %v5218_v55 = vld [vmem:[%s11455_s2 + $0x260] sm:$0xff]  ;;  %v4173_v20 = vld [vmem:[#allocation4 + $0xb2] sm:$0xff] }
 0x3f8   :  { %4304 = vrot.lane.b32.xlu0 %v9432_v56, %s7941_s1  ;;  %3796 = vrot.lane.b32.xlu1 %v3757_v59, %s7943_s17  ;;  %v5234_v59 = vld [vmem:[%s11455_s2 + $0x2e0] sm:$0xff] }
 0x3f9   :  { %7600 = vmatprep.subr.bf16.mxu0 %v7599_v21  ;;  %v7603_v1 = vpack.c.bf16 %v5235_v23, %v5234_v59  ;;  %v5237_v59 = vld [vmem:[%s11455_s2 + $0x2f8] sm:$0xff] }
 0x3fa   :  { %v4129_v3 = vpop.permute.xlu0 %4128  ;;  %v10076_v60 = vpop.permute.xlu1 %4222 }
 0x3fb   :  { %4163 = vst.msk [vmem:[#allocation5 + $0x2f0] sm:$0xff] %vm3187_vm7, %v4129_v3  ;;  %7602 = vmatpush3.bf16.msra.mxu0 %v7601_v42  ;;  %v5236_v3 = vld [vmem:[%s11455_s2 + $0x2f0] sm:$0xff] }
 0x3fc   :  { %4114 = vrot.lane.b32.xlu0 %v9405_v61, %s7943_s17  ;;  %3892 = vrot.lane.b32.xlu1 %v9449_v31, %s7942_s16  ;;  %v5219_v61 = vld [vmem:[%s11455_s2 + $0x268] sm:$0xff]  ;;  %v5220_v42 = vld [vmem:[%s11455_s2 + $0x270] sm:$0xff] }
 0x3fd   :  { %v7605_v53 = vpack.c.bf16 %v5219_v61, %v5218_v55  ;;  %7604 = vmatprep.subr.bf16.mxu0 %v7603_v1  ;;  %v7607_v1 = vpack.c.bf16 %v5237_v59, %v5236_v3 }
 0x3fe   :  { %v10095_v21 = vpop.permute.xlu0 %4000  ;;  %v10097_v31 = vpop.permute.xlu1 %4318 }
 0x3ff   :  { %11504 = vst [vmem:[#allocation44_spill] sm:$0xff] %v10095_v21  ;;  %7606 = vmatpush3.bf16.msra.mxu0 %v7605_v53 }
 0x400   :  { %4212 = vrot.lane.b32.xlu0 %v4173_v20, %s7942_s16  ;;  %4742 = vrot.lane.b32.xlu1 %v9376_v7, %s7943_s17  ;;  %v5221_v7 = vld [vmem:[%s11455_s2 + $0x278] sm:$0xff] }
 0x401   :  { %v7609_v61 = vpack.c.bf16 %v5221_v7, %v5220_v42  ;;  %7608 = vmatprep.subr.bf16.mxu0 %v7607_v1  ;;  %v4904_v7 = vld [vmem:[#allocation4 + $0x54] sm:$0xff] }
 0x402   :  { %v3811_v23 = vpop.permute.xlu0 %3810  ;;  %v10111_v55 = vpop.permute.xlu1 %4226 }
 0x403   :  { %3844 = vst.msk [vmem:[#allocation5 + $0x320] sm:$0xff] %vm3187_vm7, %v3811_v23  ;;  %7610 = vmatpush3.bf16.msra.mxu0 %v7609_v61 }
 0x404   :  { %4308 = vrot.lane.b32.xlu0 %v9456_v13, %s7941_s1  ;;  %4934 = vrot.lane.b32.xlu1 %v9418_v5, %s7941_s1 }
 0x406   :  { %v3907_v20 = vpop.permute.xlu0 %3906  ;;  %v10121_v21 = vpop.permute.xlu1 %4322 }
 0x407   :  { %3940 = vst.msk [vmem:[#allocation5 + $0x320] sm:$0xff] %vm3284_vm8, %v3907_v20 }
 0x408   :  { %4518 = vrot.lane.b32.xlu0 %v9407_v4, %s7942_s16  ;;  %4840 = vrot.lane.b32.xlu1 %v9418_v5, %s7942_s16 }
 0x40a   :  { %v4133_v53 = vpop.permute.xlu0 %4132  ;;  %v4439_v3 = vpop.permute.xlu1 %4438 }
 0x40b   :  { %4165 = vst.msk [vmem:[#allocation5 + $0x360] sm:$0xff] %vm3187_vm7, %v4133_v53  ;;  %4478 = vst.msk [vmem:[#allocation5 + $0x1e0] sm:$0xff] %vm3187_vm7, %v4439_v3  ;;  %v10163_v53 = vld [vmem:[#allocation4 + $0x93] sm:$0xff] }
 0x40c   :  { %4424 = vrot.lane.b32.xlu0 %v9407_v4, %s7943_s17  ;;  %4616 = vrot.lane.b32.xlu1 %v9432_v56, %s7941_s1 }
 0x40e   :  { %v10134_v59 = vpop.permute.xlu0 %4004  ;;  %v10136_v42 = vpop.permute.xlu1 %4630 }
 0x410   :  { %4522 = vrot.lane.b32.xlu0 %v9432_v56, %s7942_s16  ;;  %4746 = vrot.lane.b32.xlu1 %v9418_v5, %s7943_s17 }
 0x412   :  { %v10142_v23 = vpop.permute.xlu0 %4854  ;;  %v3140_v1 = vpop.permute.xlu1 %3139 }
 0x413   :  { %3188 = vst.msk [vmem:[#allocation5] sm:$0xff] %vm3187_vm7, %v3140_v1  ;;  %v4906_v1 = vld [vmem:[#allocation4 + $0x74] sm:$0xff] }
 0x414   :  { %3285 = vst.msk [vmem:[#allocation5] sm:$0xff] %vm3284_vm8, %v9391_v40  ;;  %4428 = vrot.lane.b32.xlu0 %v9432_v56, %s7943_s17  ;;  %4938 = vrot.lane.b32.xlu1 %v4904_v7, %s7941_s1 }
 0x416   :  { %v4761_v4 = vpop.permute.xlu0 %4760  ;;  %v3334_v61 = vpop.permute.xlu1 %3333 }
 0x417   :  { %4799 = vst.msk [vmem:[#allocation5 + $0x220] sm:$0xff] %vm3187_vm7, %v4761_v4 }
 0x418   :  { %3382 = vst.msk [vmem:[#allocation5] sm:$0xff] %vm3381_vm9, %v3334_v61  ;;  %4526 = vrot.lane.b32.xlu0 %v9456_v13, %s7942_s16  ;;  %4844 = vrot.lane.b32.xlu1 %v4904_v7, %s7942_s16 }
 0x41a   :  { %v3342_v5 = vpop.permute.xlu0 %3341  ;;  %v3239_v20 = vpop.permute.xlu1 %3238 }
 0x41b   :  { %3286 = vst.msk [vmem:[#allocation5 + $0x38] sm:$0xff] %vm3284_vm8, %v3239_v20 }
 0x41c   :  { %3383 = vst.msk [vmem:[#allocation5 + $0x38] sm:$0xff] %vm3381_vm9, %v9445_v12  ;;  %4432 = vrot.lane.b32.xlu0 %v9456_v13, %s7943_s17  ;;  %4620 = vrot.lane.b32.xlu1 %v9456_v13, %s7941_s1  ;;  %v4813_v13 = vld [vmem:[#allocation4 + $0x94] sm:$0xff] }
 0x41e   :  { %v3346_v40 = vpop.permute.xlu0 %3345  ;;  %v3144_v56 = vpop.permute.xlu1 %3143 }
 0x41f   :  { %3190 = vst.msk [vmem:[#allocation5 + $0x70] sm:$0xff] %vm3187_vm7, %v3144_v56 }
 0x420   :  { %3287 = vst.msk [vmem:[#allocation5 + $0x70] sm:$0xff] %vm3284_vm8, %v9465_v48  ;;  %4530 = vrot.lane.b32.xlu0 %v10163_v53, %s7942_s16  ;;  %4750 = vrot.lane.b32.xlu1 %v4904_v7, %s7943_s17 }
 0x422   :  { %v3251_v12 = vpop.permute.xlu0 %3250  ;;  %v3338_v3 = vpop.permute.xlu1 %3337 }
 0x423   :  { %3292 = vst.msk [vmem:[#allocation5 + $0x188] sm:$0xff] %vm3284_vm8, %v3251_v12 }
 0x424   :  { %3384 = vst.msk [vmem:[#allocation5 + $0x70] sm:$0xff] %vm3381_vm9, %v3338_v3  ;;  %3389 = vst.msk [vmem:[#allocation5 + $0x188] sm:$0xff] %vm3381_vm9, %v9443_v30  ;;  %4852 = vrot.lane.b32.xlu0 %v4813_v13, %s7942_s16  ;;  %4942 = vrot.lane.b32.xlu1 %v4906_v1, %s7941_s1 }
 0x426   :  { %v3559_v48 = vpop.permute.xlu0 %3558  ;;  %v3243_v4 = vpop.permute.xlu1 %3242 }
 0x427   :  { %3606 = vst.msk [vmem:[#allocation5 + $0x8] sm:$0xff] %vm3284_vm8, %v3559_v48  ;;  %3288 = vst.msk [vmem:[#allocation5 + $0xa8] sm:$0xff] %vm3284_vm8, %v3243_v4  ;;  %v5193_v4 = vld [vmem:[%s11455_s2 + $0x198] sm:$0xff] }
 0x428   :  { %3702 = vst.msk [vmem:[#allocation5 + $0x8] sm:$0xff] %vm3381_vm9, %v9493_v29  ;;  %3385 = vst.msk [vmem:[#allocation5 + $0xa8] sm:$0xff] %vm3381_vm9, %v9477_v62  ;;  %3155 = vrot.lane.b32.xlu0 %v9479_v14, %s7943_s17  ;;  %4848 = vrot.lane.b32.xlu1 %v4906_v1, %s7942_s16 }
 0x42a   :  { %v3465_v30 = vpop.permute.xlu0 %3464  ;;  %v3148_v7 = vpop.permute.xlu1 %3147 }
 0x42b   :  { %3511 = vst.msk [vmem:[#allocation5 + $0x40] sm:$0xff] %vm3187_vm7, %v3465_v30  ;;  %3192 = vst.msk [vmem:[#allocation5 + $0xe0] sm:$0xff] %vm3187_vm7, %v3148_v7  ;;  %v5044_v48 = vld [vmem:[#allocation5 + $0x70] sm:$0xff] }
 0x42c   :  { %3607 = vst.msk [vmem:[#allocation5 + $0x40] sm:$0xff] %vm3284_vm8, %v9503_v37  ;;  %3289 = vst.msk [vmem:[#allocation5 + $0xe0] sm:$0xff] %vm3284_vm8, %v9488_v36  ;;  %3349 = vrot.lane.b32.xlu0 %v9534_v15, %s7941_s1  ;;  %4624 = vrot.lane.b32.xlu1 %v10163_v53, %s7941_s1  ;;  %v5030_v36 = vld [vmem:[#allocation5] sm:$0xff] }
 0x42d   :  { %3386 = vst.msk [vmem:[#allocation5 + $0xe0] sm:$0xff] %vm3381_vm9, %v3342_v5  ;;  %v5191_v5 = vld [vmem:[%s11455_s2 + $0x188] sm:$0xff] }
 0x42e   :  { %v3657_v62 = vpop.permute.xlu0 %3656  ;;  %v3247_v14 = vpop.permute.xlu1 %3246 }
 0x42f   :  { %3703 = vst.msk [vmem:[#allocation5 + $0x40] sm:$0xff] %vm3381_vm9, %v3657_v62  ;;  %v5031_v29 = vld [vmem:[#allocation5 + $0x8] sm:$0xff]  ;;  %v5176_v62 = vld [vmem:[%s11455_s2 + $0x110] sm:$0xff] }
 0x430   :  { %3290 = vst.msk [vmem:[#allocation5 + $0x118] sm:$0xff] %vm3284_vm8, %v3247_v14  ;;  %5354 = vmatprep.mubr.f32.mxu1 %v5031_v29  ;;  %3254 = vrot.lane.b32.xlu0 %v9534_v15, %s7942_s16  ;;  %v5177_v14 = vld [vmem:[%s11455_s2 + $0x118] sm:$0xff] }
 0x431   :  { %3387 = vst.msk [vmem:[#allocation5 + $0x118] sm:$0xff] %vm3381_vm9, %v9505_v38  ;;  %4754 = vrot.lane.b32.xlu1 %v4906_v1, %s7943_s17  ;;  %5355 = vmatmul.mubr.f32.vlgmr.msra.gmra.mrb[18].mxu1 %v5030_v36  ;;  %v5190_v38 = vld [vmem:[%s11455_s2 + $0x180] sm:$0xff]  ;;  %v4589_v1 = vld [vmem:[#allocation4 + $0xb3] sm:$0xff]  ;;  %v7553_v29 = vpack.c.bf16 %v5177_v14, %v5176_v62 }
 0x432   :  { %v3563_v37 = vpop.permute.xlu0 %3562  ;;  %v3152_v61 = vpop.permute.xlu1 %3151  ;;  %v7547_v12 = vpack.c.bf16 %v5191_v5, %v5190_v38  ;;  %v5195_v38 = vld [vmem:[%s11455_s2 + $0x1a8] sm:$0xff] }
 0x433   :  { %3608 = vst.msk [vmem:[#allocation5 + $0x78] sm:$0xff] %vm3284_vm8, %v3563_v37 }
 0x434   :  { %3194 = vst.msk [vmem:[#allocation5 + $0x150] sm:$0xff] %vm3187_vm7, %v3152_v61  ;;  %3159 = vrot.lane.b32.xlu0 %v9534_v15, %s7943_s17  ;;  %v5174_v15 = vld [vmem:[%s11455_s2 + $0x100] sm:$0xff]  ;;  %7548 = vmatprep.subr.bf16.mxu1 %v7547_v12  ;;  %v5179_v12 = vld [vmem:[%s11455_s2 + $0x128] sm:$0xff] }
 0x435   :  { %3704 = vst.msk [vmem:[#allocation5 + $0x78] sm:$0xff] %vm3381_vm9, %v9520_v39  ;;  %4946 = vrot.lane.b32.xlu1 %v4813_v13, %s7941_s1 }
 0x436   :  { %3291 = vst.msk [vmem:[#allocation5 + $0x150] sm:$0xff] %vm3284_vm8, %v9511_v0  ;;  %v3469_v20 = vpop.permute.xlu0 %3468  ;;  %v3473_v39 = vpop.permute.xlu1 %3472  ;;  %v5038_v56 = vld [vmem:[#allocation5 + $0x40] sm:$0xff]  ;;  %v5037_v0 = vld [vmem:[#allocation5 + $0x38] sm:$0xff] }
 0x437   :  { %3388 = vst.msk [vmem:[#allocation5 + $0x150] sm:$0xff] %vm3381_vm9, %v3346_v40  ;;  %5359 = vmatprep.mubr.f32.mxu1 %v5038_v56  ;;  %v5175_v40 = vld [vmem:[%s11455_s2 + $0x108] sm:$0xff]  ;;  %v5178_v56 = vld [vmem:[%s11455_s2 + $0x120] sm:$0xff] }
 0x438   :  { %3513 = vst.msk [vmem:[#allocation5 + $0xb0] sm:$0xff] %vm3187_vm7, %v3469_v20  ;;  %3515 = vst.msk [vmem:[#allocation5 + $0x120] sm:$0xff] %vm3187_vm7, %v3473_v39  ;;  %3353 = vrot.lane.b32.xlu0 %v9548_v24, %s7941_s1  ;;  %5360 = vmatmul.mubr.f32.gmra.mrb[20].mxu1 %v5037_v0 }
 0x439   :  { %3609 = vst.msk [vmem:[#allocation5 + $0xb0] sm:$0xff] %vm3284_vm8, %v9527_v47  ;;  %3611 = vst.msk [vmem:[#allocation5 + $0x120] sm:$0xff] %vm3284_vm8, %v9557_v18  ;;  %4436 = vrot.lane.b32.xlu1 %v10163_v53, %s7943_s17  ;;  %v7549_v47 = vpack.c.bf16 %v5175_v40, %v5174_v15  ;;  %v5192_v53 = vld [vmem:[%s11455_s2 + $0x190] sm:$0xff]  ;;  %v7557_v15 = vpack.c.bf16 %v5179_v12, %v5178_v56  ;;  %v5058_v40 = vld [vmem:[#allocation5 + $0xe0] sm:$0xff] }
 0x43a   :  { %v3661_v3 = vpop.permute.xlu0 %3660  ;;  %v3477_v13 = vpop.permute.xlu1 %3476 }
 0x43b   :  { %3705 = vst.msk [vmem:[#allocation5 + $0xb0] sm:$0xff] %vm3381_vm9, %v3661_v3  ;;  %7550 = vmatpush3.bf16.msra.mxu1 %v7549_v47 }
 0x43c   :  { %3517 = vst.msk [vmem:[#allocation5 + $0x190] sm:$0xff] %vm3187_vm7, %v3477_v13  ;;  %v5045_v18 = vld [vmem:[#allocation5 + $0x78] sm:$0xff]  ;;  %3258 = vrot.lane.b32.xlu0 %v9548_v24, %s7942_s16 }
 0x43d   :  { %3613 = vst.msk [vmem:[#allocation5 + $0x190] sm:$0xff] %vm3284_vm8, %v9546_v63  ;;  %5364 = vmatprep.mubr.f32.mxu1 %v5045_v18  ;;  %4628 = vrot.lane.b32.xlu1 %v4589_v1, %s7941_s1  ;;  %v7551_v63 = vpack.c.bf16 %v5193_v4, %v5192_v53  ;;  %v4911_v53 = vld [vmem:[#allocation4 + $0x104] sm:$0xff] }
 0x43e   :  { %5365 = vmatmul.mubr.f32.gmra.mrb[22].mxu1 %v5044_v48  ;;  %v3567_v30 = vpop.permute.xlu0 %3566  ;;  %v3669_v7 = vpop.permute.xlu1 %3668  ;;  %v5180_v48 = vld [vmem:[%s11455_s2 + $0x130] sm:$0xff] }
 0x43f   :  { %3610 = vst.msk [vmem:[#allocation5 + $0xe8] sm:$0xff] %vm3284_vm8, %v3567_v30  ;;  %7552 = vmatprep.subr.bf16.mxu1 %v7551_v63 }
 0x440   :  { %3709 = vst.msk [vmem:[#allocation5 + $0x190] sm:$0xff] %vm3381_vm9, %v3669_v7  ;;  %3706 = vst.msk [vmem:[#allocation5 + $0xe8] sm:$0xff] %vm3381_vm9, %v9544_v16  ;;  %3163 = vrot.lane.b32.xlu0 %v9548_v24, %s7943_s17  ;;  %v5051_v16 = vld [vmem:[#allocation5 + $0xa8] sm:$0xff]  ;;  %7554 = vmatpush3.bf16.msra.mxu1 %v7553_v29  ;;  %v5194_v24 = vld [vmem:[%s11455_s2 + $0x1a0] sm:$0xff] }
 0x441   :  { %3357 = vrot.lane.b32.xlu1 %v9559_v6, %s7941_s1  ;;  %v7555_v39 = vpack.c.bf16 %v5195_v38, %v5194_v24  ;;  %v5072_v7 = vld [vmem:[#allocation5 + $0x150] sm:$0xff]  ;;  %v5079_v29 = vld [vmem:[#allocation5 + $0x188] sm:$0xff]  ;;  %v5182_v38 = vld [vmem:[%s11455_s2 + $0x140] sm:$0xff] }
 0x442   :  { %v3665_v36 = vpop.permute.xlu0 %3664  ;;  %v3975_v37 = vpop.permute.xlu1 %3974  ;;  %v5052_v61 = vld [vmem:[#allocation5 + $0xb0] sm:$0xff] }
 0x443   :  { %3707 = vst.msk [vmem:[#allocation5 + $0x120] sm:$0xff] %vm3381_vm9, %v3665_v36  ;;  %4022 = vst.msk [vmem:[#allocation5 + $0x10] sm:$0xff] %vm3381_vm9, %v3975_v37  ;;  %5369 = vmatprep.mubr.f32.mxu1 %v5052_v61  ;;  %7556 = vmatprep.subr.bf16.mxu1 %v7555_v39  ;;  %v5198_v61 = vld [vmem:[%s11455_s2 + $0x1c0] sm:$0xff] }
 0x444   :  { %3262 = vrot.lane.b32.xlu0 %v9559_v6, %s7942_s16  ;;  %5370 = vmatmul.mubr.f32.gmra.mrb[24].mxu1 %v5051_v16  ;;  %v5199_v16 = vld [vmem:[%s11455_s2 + $0x1c8] sm:$0xff] }
 0x445   :  { %3361 = vrot.lane.b32.xlu1 %v9495_v27, %s7941_s1  ;;  %7558 = vmatpush3.bf16.msra.mxu1 %v7557_v15  ;;  %v7563_v24 = vpack.c.bf16 %v5199_v16, %v5198_v61  ;;  %v5239_v16 = vld [vmem:[%s11455_s2 + $0x308] sm:$0xff] }
 0x446   :  { %v3571_v5 = vpop.permute.xlu0 %3570  ;;  %v3785_v20 = vpop.permute.xlu1 %3784 }
 0x447   :  { %3612 = vst.msk [vmem:[#allocation5 + $0x158] sm:$0xff] %vm3284_vm8, %v3571_v5  ;;  %v5059_v0 = vld [vmem:[#allocation5 + $0xe8] sm:$0xff]  ;;  %v5080_v63 = vld [vmem:[#allocation5 + $0x190] sm:$0xff] }
 0x448   :  { %3831 = vst.msk [vmem:[#allocation5 + $0x48] sm:$0xff] %vm3187_vm7, %v3785_v20  ;;  %3167 = vrot.lane.b32.xlu0 %v9559_v6, %s7943_s17  ;;  %5374 = vmatprep.mubr.f32.mxu1 %v5059_v0  ;;  %v5065_v6 = vld [vmem:[#allocation5 + $0x118] sm:$0xff]  ;;  %v5183_v5 = vld [vmem:[%s11455_s2 + $0x148] sm:$0xff] }
 0x449   :  { %3708 = vst.msk [vmem:[#allocation5 + $0x158] sm:$0xff] %vm3381_vm9, %v9575_v49  ;;  %3266 = vrot.lane.b32.xlu1 %v9495_v27, %s7942_s16  ;;  %5375 = vmatmul.mubr.f32.gmra.mrb[26].mxu1 %v5058_v40  ;;  %v3534_v27 = vld [vmem:[#allocation4 + $0xd1] sm:$0xff]  ;;  %v7565_v20 = vpack.c.bf16 %v5183_v5, %v5182_v38 }
 0x44a   :  { %v4103_v47 = vpop.permute.xlu0 %4102  ;;  %v3881_v3 = vpop.permute.xlu1 %3880  ;;  %v5066_v13 = vld [vmem:[#allocation5 + $0x120] sm:$0xff]  ;;  %v5196_v49 = vld [vmem:[%s11455_s2 + $0x1b0] sm:$0xff] }
 0x44b   :  { %4150 = vst.msk [vmem:[#allocation5 + $0x18] sm:$0xff] %vm3187_vm7, %v4103_v47  ;;  %5379 = vmatprep.mubr.f32.mxu1 %v5066_v13  ;;  %v5184_v40 = vld [vmem:[%s11455_s2 + $0x150] sm:$0xff]  ;;  %v5185_v47 = vld [vmem:[%s11455_s2 + $0x158] sm:$0xff] }
 0x44c   :  { %3927 = vst.msk [vmem:[#allocation5 + $0x48] sm:$0xff] %vm3284_vm8, %v3881_v3  ;;  %4246 = vst.msk [vmem:[#allocation5 + $0x18] sm:$0xff] %vm3284_vm8, %v9589_v44  ;;  %3488 = vrot.lane.b32.xlu0 %v9859_v8, %s7943_s17  ;;  %v5197_v44 = vld [vmem:[%s11455_s2 + $0x1b8] sm:$0xff] }
 0x44d   :  { %4023 = vst.msk [vmem:[#allocation5 + $0x48] sm:$0xff] %vm3381_vm9, %v9577_v57  ;;  %4342 = vst.msk [vmem:[#allocation5 + $0x18] sm:$0xff] %vm3381_vm9, %v9595_v50  ;;  %3574 = vrot.lane.b32.xlu1 %v3534_v27, %s7942_s16  ;;  %5380 = vmatmul.mubr.f32.gmra.mrb[28].mxu1 %v5065_v6  ;;  %v7559_v1 = vpack.c.bf16 %v5197_v44, %v5196_v49  ;;  %v5181_v50 = vld [vmem:[%s11455_s2 + $0x138] sm:$0xff]  ;;  %v5202_v49 = vld [vmem:[%s11455_s2 + $0x1e0] sm:$0xff] }
 0x44e   :  { %v4201_v57 = vpop.permute.xlu0 %4200  ;;  %v3979_v18 = vpop.permute.xlu1 %3978  ;;  %v7561_v30 = vpack.c.bf16 %v5181_v50, %v5180_v48  ;;  %v5187_v44 = vld [vmem:[%s11455_s2 + $0x168] sm:$0xff]  ;;  %v5204_v48 = vld [vmem:[%s11455_s2 + $0x1f0] sm:$0xff]  ;;  %v5205_v50 = vld [vmem:[%s11455_s2 + $0x1f8] sm:$0xff] }
 0x44f   :  { %4247 = vst.msk [vmem:[#allocation5 + $0x50] sm:$0xff] %vm3284_vm8, %v4201_v57  ;;  %7560 = vmatprep.subr.bf16.mxu1 %v7559_v1 }
 0x450   :  { %4024 = vst.msk [vmem:[#allocation5 + $0x80] sm:$0xff] %vm3381_vm9, %v3979_v18  ;;  %v5073_v4 = vld [vmem:[#allocation5 + $0x158] sm:$0xff]  ;;  %4952 = vrot.lane.b32.xlu0 %v4911_v53, %s7941_s1  ;;  %7562 = vmatpush3.bf16.msra.mxu1 %v7561_v30  ;;  %v7575_v30 = vpack.c.bf16 %v5205_v50, %v5204_v48 }
 0x451   :  { %5384 = vmatprep.mubr.f32.mxu1 %v5073_v4  ;;  %3480 = vrot.lane.b32.xlu1 %v3534_v27, %s7943_s17  ;;  %v3761_v50 = vld [vmem:[#allocation4 + $0x131] sm:$0xff] }
 0x452   :  { %5385 = vmatmul.mubr.f32.gmra.mrb[30].mxu1 %v5072_v7  ;;  %v4297_v62 = vpop.permute.xlu0 %4296  ;;  %v3789_v14 = vpop.permute.xlu1 %3788  ;;  %7564 = vmatprep.subr.bf16.mxu1 %v7563_v24  ;;  %v5188_v7 = vld [vmem:[%s11455_s2 + $0x170] sm:$0xff] }
 0x453   :  { %5389 = vmatprep.mubr.f32.mxu1 %v5080_v63  ;;  %4343 = vst.msk [vmem:[#allocation5 + $0x50] sm:$0xff] %vm3381_vm9, %v4297_v62  ;;  %v5189_v63 = vld [vmem:[%s11455_s2 + $0x178] sm:$0xff] }
 0x454   :  { %3833 = vst.msk [vmem:[#allocation5 + $0xb8] sm:$0xff] %vm3187_vm7, %v3789_v14  ;;  %4858 = vrot.lane.b32.xlu0 %v4911_v53, %s7942_s16  ;;  %7566 = vmatpush3.bf16.msra.mxu1 %v7565_v20  ;;  %v11505_v62 = vld [vmem:[#allocation10_spill] sm:$0xff]  ;;  %v4495_v14 = vld [vmem:[#allocation4 + $0x103] sm:$0xff] }
 0x455   :  { %3672 = vrot.lane.b32.xlu1 %v9842_v2, %s7941_s1  ;;  %v10442_v20 = vld [vmem:[#allocation4 + $0xf2] sm:$0xff] }
 0x456   :  { %5390 = vmatmul.mubr.f32.gmra.mrb[32].mxu1 %v5079_v29  ;;  %v4107_v36 = vpop.permute.xlu0 %4106  ;;  %v3885_v37 = vpop.permute.xlu1 %3884  ;;  %v7577_v29 = vpack.c.bf16 %v5189_v63, %v5188_v7 }
 0x457   :  { %4152 = vst.msk [vmem:[#allocation5 + $0x88] sm:$0xff] %vm3187_vm7, %v4107_v36  ;;  %v11506_v36 = vld [vmem:[#allocation13_spill] sm:$0xff] }
 0x458   :  { %3929 = vst.msk [vmem:[#allocation5 + $0xb8] sm:$0xff] %vm3284_vm8, %v3885_v37  ;;  %4248 = vst.msk [vmem:[#allocation5 + $0x88] sm:$0xff] %vm3284_vm8, %v9608_v10  ;;  %4764 = vrot.lane.b32.xlu0 %v4911_v53, %s7943_s17  ;;  %v4913_v10 = vld [vmem:[#allocation4 + $0x124] sm:$0xff] }
 0x459   :  { %4025 = vst.msk [vmem:[#allocation5 + $0xb8] sm:$0xff] %vm3381_vm9, %v9597_v17  ;;  %4344 = vst.msk [vmem:[#allocation5 + $0x88] sm:$0xff] %vm3381_vm9, %v9614_v52  ;;  %3578 = vrot.lane.b32.xlu1 %v9842_v2, %s7942_s16  ;;  %v5200_v17 = vld [vmem:[%s11455_s2 + $0x1d0] sm:$0xff]  ;;  %v5201_v52 = vld [vmem:[%s11455_s2 + $0x1d8] sm:$0xff] }
 0x45a   :  { %v4205_v39 = vpop.permute.xlu0 %4204  ;;  %v3983_v56 = vpop.permute.xlu1 %3982  ;;  %v7567_v15 = vpack.c.bf16 %v5201_v52, %v5200_v17  ;;  %v11508_v17 = vld [vmem:[#allocation12_spill] sm:$0xff]  ;;  %v11509_v52 = vld [vmem:[#allocation14_spill] sm:$0xff] }
 0x45b   :  { %4249 = vst.msk [vmem:[#allocation5 + $0xc0] sm:$0xff] %vm3284_vm8, %v4205_v39 }
 0x45c   :  { %4026 = vst.msk [vmem:[#allocation5 + $0xf0] sm:$0xff] %vm3381_vm9, %v3983_v56  ;;  %4956 = vrot.lane.b32.xlu0 %v4913_v10, %s7941_s1  ;;  %7568 = vmatprep.subr.bf16.mxu1 %v7567_v15 }
 0x45d   :  { %3484 = vrot.lane.b32.xlu1 %v9842_v2, %s7943_s17  ;;  %v7569_v2 = vpack.c.bf16 %v5185_v47, %v5184_v40  ;;  %v3855_v40 = vld [vmem:[#allocation4 + $0xd2] sm:$0xff]  ;;  %v11510_v47 = vld [vmem:[#allocation16_spill] sm:$0xff] }
 0x45e   :  { %v4301_v12 = vpop.permute.xlu0 %4300  ;;  %v3793_v0 = vpop.permute.xlu1 %3792 }
 0x45f   :  { %4345 = vst.msk [vmem:[#allocation5 + $0xc0] sm:$0xff] %vm3381_vm9, %v4301_v12  ;;  %7570 = vmatpush3.bf16.msra.mxu1 %v7569_v2 }
 0x460   :  { %3835 = vst.msk [vmem:[#allocation5 + $0x128] sm:$0xff] %vm3187_vm7, %v3793_v0  ;;  %4862 = vrot.lane.b32.xlu0 %v4913_v10, %s7942_s16 }
 0x461   :  { %3676 = vrot.lane.b32.xlu1 %v9859_v8, %s7941_s1 }
 0x462   :  { %v4111_v3 = vpop.permute.xlu0 %4110  ;;  %v3889_v13 = vpop.permute.xlu1 %3888 }
 0x463   :  { %4154 = vst.msk [vmem:[#allocation5 + $0xf8] sm:$0xff] %vm3187_vm7, %v4111_v3 }
 0x464   :  { %3931 = vst.msk [vmem:[#allocation5 + $0x128] sm:$0xff] %vm3284_vm8, %v3889_v13  ;;  %4250 = vst.msk [vmem:[#allocation5 + $0xf8] sm:$0xff] %vm3284_vm8, %v9624_v28  ;;  %4768 = vrot.lane.b32.xlu0 %v4913_v10, %s7943_s17  ;;  %v5203_v28 = vld [vmem:[%s11455_s2 + $0x1e8] sm:$0xff]  ;;  %v3759_v10 = vld [vmem:[#allocation4 + $0x111] sm:$0xff] }
 0x465   :  { %4027 = vst.msk [vmem:[#allocation5 + $0x128] sm:$0xff] %vm3381_vm9, %v9616_v33  ;;  %4346 = vst.msk [vmem:[#allocation5 + $0xf8] sm:$0xff] %vm3381_vm9, %v9629_v54  ;;  %3582 = vrot.lane.b32.xlu1 %v9859_v8, %s7942_s16  ;;  %v10384_v33 = vld [vmem:[#allocation4 + $0x144] sm:$0xff]  ;;  %v7571_v54 = vpack.c.bf16 %v5203_v28, %v5202_v49  ;;  %v10464_v13 = vld [vmem:[#allocation4 + $0x112] sm:$0xff] }
 0x466   :  { %v4209_v27 = vpop.permute.xlu0 %4208  ;;  %v3987_v6 = vpop.permute.xlu1 %3986  ;;  %v5186_v8 = vld [vmem:[%s11455_s2 + $0x160] sm:$0xff]  ;;  %v11511_v49 = vld [vmem:[#allocation17_spill] sm:$0xff] }
 0x467   :  { %4251 = vst.msk [vmem:[#allocation5 + $0x130] sm:$0xff] %vm3284_vm8, %v4209_v27  ;;  %v7573_v57 = vpack.c.bf16 %v5187_v44, %v5186_v8  ;;  %7572 = vmatprep.subr.bf16.mxu1 %v7571_v54  ;;  %v11512_v28 = vld [vmem:[#allocation15_spill] sm:$0xff]  ;;  %v4594_v54 = vld [vmem:[#allocation4 + $0x143] sm:$0xff] }
 0x468   :  { %4028 = vst.msk [vmem:[#allocation5 + $0x160] sm:$0xff] %vm3381_vm9, %v3987_v6  ;;  %4960 = vrot.lane.b32.xlu0 %v10384_v33, %s7941_s1 }
 0x469   :  { %3680 = vrot.lane.b32.xlu1 %v9882_v32, %s7941_s1  ;;  %7574 = vmatpush3.bf16.msra.mxu1 %v7573_v57  ;;  %v11513_v57 = vld [vmem:[#allocation18_spill] sm:$0xff] }
 0x46a   :  { %v4305_v18 = vpop.permute.xlu0 %4304  ;;  %v3797_v1 = vpop.permute.xlu1 %3796  ;;  %7576 = vmatprep.subr.bf16.mxu1 %v7575_v30 }
 0x46b   :  { %4347 = vst.msk [vmem:[#allocation5 + $0x130] sm:$0xff] %vm3381_vm9, %v4305_v18 }
 0x46c   :  { %3837 = vst.msk [vmem:[#allocation5 + $0x198] sm:$0xff] %vm3187_vm7, %v3797_v1  ;;  %4866 = vrot.lane.b32.xlu0 %v10384_v33, %s7942_s16 }
 0x46d   :  { %3586 = vrot.lane.b32.xlu1 %v9882_v32, %s7942_s16  ;;  %7578 = vmatpush3.bf16.msra.mxu1 %v7577_v29 }
 0x46e   :  { %v4115_v53 = vpop.permute.xlu0 %4114  ;;  %v3893_v4 = vpop.permute.xlu1 %3892 }
 0x46f   :  { %4156 = vst.msk [vmem:[#allocation5 + $0x168] sm:$0xff] %vm3187_vm7, %v4115_v53  ;;  %v11514_v53 = vld [vmem:[#allocation22_spill] sm:$0xff] }
 0x470   :  { %3933 = vst.msk [vmem:[#allocation5 + $0x198] sm:$0xff] %vm3284_vm8, %v3893_v4  ;;  %4252 = vst.msk [vmem:[#allocation5 + $0x168] sm:$0xff] %vm3284_vm8, %v9640_v51  ;;  %3492 = vrot.lane.b32.xlu0 %v9882_v32, %s7943_s17  ;;  %v11507_v51 = vld [vmem:[#allocation11_spill] sm:$0xff] }
 0x471   :  { %4029 = vst.msk [vmem:[#allocation5 + $0x198] sm:$0xff] %vm3381_vm9, %v11505_v62  ;;  %4348 = vst.msk [vmem:[#allocation5 + $0x168] sm:$0xff] %vm3381_vm9, %v11506_v36  ;;  %4536 = vrot.lane.b32.xlu1 %v4495_v14, %s7942_s16  ;;  %v5238_v32 = vld [vmem:[%s11455_s2 + $0x300] sm:$0xff] }
 0x472   :  { %v4213_v37 = vpop.permute.xlu0 %4212  ;;  %v4743_v61 = vpop.permute.xlu1 %4742  ;;  %v10438_v5 = vpack.c.bf16 %v5239_v16, %v5238_v32  ;;  %v11515_v4 = vld [vmem:[#allocation19_spill] sm:$0xff] }
 0x473   :  { %4253 = vst.msk [vmem:[#allocation5 + $0x1a0] sm:$0xff] %vm3284_vm8, %v4213_v37  ;;  %v10497_v37 = vld [vmem:[#allocation4 + $0x132] sm:$0xff] }
 0x474   :  { %4790 = vst.msk [vmem:[#allocation5 + $0x28] sm:$0xff] %vm3187_vm7, %v4743_v61  ;;  %3684 = vrot.lane.b32.xlu0 %v9789_v25, %s7941_s1  ;;  %v4592_v25 = vld [vmem:[#allocation4 + $0x123] sm:$0xff]  ;;  %7612 = vmatprep.subr.bf16.mxu1 %v10438_v5 }
 0x475   :  { %4886 = vst.msk [vmem:[#allocation5 + $0x28] sm:$0xff] %vm3284_vm8, %v11507_v51  ;;  %4442 = vrot.lane.b32.xlu1 %v4495_v14, %s7943_s17  ;;  %v11516_v14 = vld [vmem:[#allocation21_spill] sm:$0xff]  ;;  %v11517_v51 = vld [vmem:[#allocation20_spill] sm:$0xff] }
 0x476   :  { %v4309_v24 = vpop.permute.xlu0 %4308  ;;  %v4935_v38 = vpop.permute.xlu1 %4934 }
 0x477   :  { %4349 = vst.msk [vmem:[#allocation5 + $0x1a0] sm:$0xff] %vm3381_vm9, %v4309_v24  ;;  %4982 = vst.msk [vmem:[#allocation5 + $0x28] sm:$0xff] %vm3381_vm9, %v4935_v38 }
 0x478   :  { %4118 = vrot.lane.b32.xlu0 %v10442_v20, %s7943_s17 }
 0x479   :  { %4634 = vrot.lane.b32.xlu1 %v4592_v25, %s7941_s1 }
 0x47a   :  { %v4519_v39 = vpop.permute.xlu0 %4518  ;;  %v4841_v56 = vpop.permute.xlu1 %4840 }
 0x47b   :  { %4566 = vst.msk [vmem:[#allocation5 + $0x20] sm:$0xff] %vm3284_vm8, %v4519_v39  ;;  %4887 = vst.msk [vmem:[#allocation5 + $0x60] sm:$0xff] %vm3284_vm8, %v4841_v56 }
 0x47c   :  { %4662 = vst.msk [vmem:[#allocation5 + $0x20] sm:$0xff] %vm3381_vm9, %v11508_v17  ;;  %4983 = vst.msk [vmem:[#allocation5 + $0x60] sm:$0xff] %vm3381_vm9, %v11509_v52  ;;  %3800 = vrot.lane.b32.xlu0 %v3759_v10, %s7943_s17  ;;  %v4084_v17 = vld [vmem:[#allocation4 + $0x152] sm:$0xff] }
 0x47d   :  { %4540 = vrot.lane.b32.xlu1 %v4592_v25, %s7942_s16 }
 0x47e   :  { %v4425_v12 = vpop.permute.xlu0 %4424  ;;  %v4617_v0 = vpop.permute.xlu1 %4616  ;;  %v5035_v15 = vld [vmem:[#allocation5 + $0x28] sm:$0xff] }
 0x47f   :  { %4471 = vst.msk [vmem:[#allocation5 + $0x58] sm:$0xff] %vm3187_vm7, %v4425_v12  ;;  %5644 = vmatprep.mubr.f32.mxu0 %v5035_v15  ;;  %v11518_v12 = vld [vmem:[#allocation25_spill] sm:$0xff] }
 0x480   :  { %4567 = vst.msk [vmem:[#allocation5 + $0x58] sm:$0xff] %vm3284_vm8, %v11510_v47  ;;  %3896 = vrot.lane.b32.xlu0 %v3855_v40, %s7942_s16 }
 0x481   :  { %4663 = vst.msk [vmem:[#allocation5 + $0x58] sm:$0xff] %vm3381_vm9, %v4617_v0  ;;  %4446 = vrot.lane.b32.xlu1 %v4592_v25, %s7943_s17  ;;  %v3763_v25 = vld [vmem:[#allocation4 + $0x151] sm:$0xff]  ;;  %v11519_v0 = vld [vmem:[#allocation23_spill] sm:$0xff] }
 0x482   :  { %v4523_v2 = vpop.permute.xlu0 %4522  ;;  %v4747_v3 = vpop.permute.xlu1 %4746 }
 0x483   :  { %4568 = vst.msk [vmem:[#allocation5 + $0x90] sm:$0xff] %vm3284_vm8, %v4523_v2  ;;  %v5034_v27 = vld [vmem:[#allocation5 + $0x20] sm:$0xff] }
 0x484   :  { %4792 = vst.msk [vmem:[#allocation5 + $0x98] sm:$0xff] %vm3187_vm7, %v4747_v3  ;;  %v5042_v6 = vld [vmem:[#allocation5 + $0x60] sm:$0xff]  ;;  %4122 = vrot.lane.b32.xlu0 %v10464_v13, %s7943_s17  ;;  %5645 = vmatmul.mubr.f32.vlgmr.msra.gmra.mrb[24].mxu0 %v5034_v27  ;;  %v4181_v27 = vld [vmem:[#allocation4 + $0x172] sm:$0xff] }
 0x485   :  { %4664 = vst.msk [vmem:[#allocation5 + $0x90] sm:$0xff] %vm3381_vm9, %v11511_v49  ;;  %4638 = vrot.lane.b32.xlu1 %v4594_v54, %s7941_s1  ;;  %5649 = vmatprep.mubr.f32.mxu0 %v5042_v6  ;;  %v11520_v6 = vld [vmem:[#allocation24_spill] sm:$0xff] }
 0x486   :  { %4888 = vst.msk [vmem:[#allocation5 + $0x98] sm:$0xff] %vm3284_vm8, %v11512_v28  ;;  %v4429_v8 = vpop.permute.xlu0 %4428  ;;  %v4939_v44 = vpop.permute.xlu1 %4938 }
 0x487   :  { %4473 = vst.msk [vmem:[#allocation5 + $0xc8] sm:$0xff] %vm3187_vm7, %v4429_v8 }
 0x488   :  { %4984 = vst.msk [vmem:[#allocation5 + $0x98] sm:$0xff] %vm3381_vm9, %v4939_v44  ;;  %3994 = vrot.lane.b32.xlu0 %v10442_v20, %s7941_s1  ;;  %v5041_v18 = vld [vmem:[#allocation5 + $0x58] sm:$0xff] }
 0x489   :  { %4569 = vst.msk [vmem:[#allocation5 + $0xc8] sm:$0xff] %vm3284_vm8, %v11513_v57  ;;  %4544 = vrot.lane.b32.xlu1 %v4594_v54, %s7942_s16  ;;  %5650 = vmatmul.mubr.f32.gmra.mrb[26].mxu0 %v5041_v18  ;;  %v4718_v18 = vld [vmem:[#allocation4 + $0xd4] sm:$0xff] }
 0x48a   :  { %v4527_v1 = vpop.permute.xlu0 %4526  ;;  %v4845_v48 = vpop.permute.xlu1 %4844 }
 0x48b   :  { %4570 = vst.msk [vmem:[#allocation5 + $0x100] sm:$0xff] %vm3284_vm8, %v4527_v1  ;;  %4889 = vst.msk [vmem:[#allocation5 + $0xd0] sm:$0xff] %vm3284_vm8, %v4845_v48 }
 0x48c   :  { %4666 = vst.msk [vmem:[#allocation5 + $0x100] sm:$0xff] %vm3381_vm9, %v11514_v53  ;;  %4985 = vst.msk [vmem:[#allocation5 + $0xd0] sm:$0xff] %vm3381_vm9, %v11515_v4  ;;  %3804 = vrot.lane.b32.xlu0 %v3761_v50, %s7943_s17  ;;  %v5048_v62 = vld [vmem:[#allocation5 + $0x90] sm:$0xff]  ;;  %v11521_v50 = vld [vmem:[#allocation31_spill] sm:$0xff] }
 0x48d   :  { %4450 = vrot.lane.b32.xlu1 %v4594_v54, %s7943_s17  ;;  %v11522_v53 = vld [vmem:[#allocation26_spill] sm:$0xff] }
 0x48e   :  { %v4433_v30 = vpop.permute.xlu0 %4432  ;;  %v4621_v7 = vpop.permute.xlu1 %4620 }
 0x48f   :  { %v5049_v63 = vld [vmem:[#allocation5 + $0x98] sm:$0xff]  ;;  %4475 = vst.msk [vmem:[#allocation5 + $0x138] sm:$0xff] %vm3187_vm7, %v4433_v30  ;;  %v11523_v30 = vld [vmem:[#allocation33_spill] sm:$0xff] }
 0x490   :  { %4665 = vst.msk [vmem:[#allocation5 + $0xc8] sm:$0xff] %vm3381_vm9, %v4621_v7  ;;  %5654 = vmatprep.mubr.f32.mxu0 %v5049_v63  ;;  %3900 = vrot.lane.b32.xlu0 %v10442_v20, %s7942_s16  ;;  %v11524_v7 = vld [vmem:[#allocation28_spill] sm:$0xff] }
 0x491   :  { %4571 = vst.msk [vmem:[#allocation5 + $0x138] sm:$0xff] %vm3284_vm8, %v11516_v14  ;;  %5655 = vmatmul.mubr.f32.gmra.mrb[28].mxu0 %v5048_v62  ;;  %3990 = vrot.lane.b32.xlu1 %v3855_v40, %s7941_s1  ;;  %v11525_v62 = vld [vmem:[#allocation41_spill] sm:$0xff]  ;;  %v11526_v14 = vld [vmem:[#allocation30_spill] sm:$0xff] }
 0x492   :  { %v4531_v29 = vpop.permute.xlu0 %4530  ;;  %v4751_v36 = vpop.permute.xlu1 %4750 }
 0x493   :  { %4572 = vst.msk [vmem:[#allocation5 + $0x170] sm:$0xff] %vm3284_vm8, %v4531_v29  ;;  %v5056_v61 = vld [vmem:[#allocation5 + $0xd0] sm:$0xff]  ;;  %v5062_v10 = vld [vmem:[#allocation5 + $0x100] sm:$0xff] }
 0x494   :  { %4794 = vst.msk [vmem:[#allocation5 + $0x108] sm:$0xff] %vm3187_vm7, %v4751_v36  ;;  %4126 = vrot.lane.b32.xlu0 %v10497_v37, %s7943_s17  ;;  %5659 = vmatprep.mubr.f32.mxu0 %v5056_v61  ;;  %v11528_v61 = vld [vmem:[#allocation32_spill] sm:$0xff] }
 0x495   :  { %4668 = vst.msk [vmem:[#allocation5 + $0x170] sm:$0xff] %vm3381_vm9, %v9751_v26  ;;  %4216 = vrot.lane.b32.xlu1 %v10464_v13, %s7942_s16  ;;  %v4271_v26 = vld [vmem:[#allocation4 + $0xd3] sm:$0xff] }
 0x496   :  { %4890 = vst.msk [vmem:[#allocation5 + $0x108] sm:$0xff] %vm3284_vm8, %v11517_v51  ;;  %v4853_v32 = vpop.permute.xlu0 %4852  ;;  %v4943_v16 = vpop.permute.xlu1 %4942 }
 0x497   :  { %v5055_v24 = vld [vmem:[#allocation5 + $0xc8] sm:$0xff]  ;;  %4893 = vst.msk [vmem:[#allocation5 + $0x1b0] sm:$0xff] %vm3284_vm8, %v4853_v32 }
 0x498   :  { %4986 = vst.msk [vmem:[#allocation5 + $0x108] sm:$0xff] %vm3381_vm9, %v4943_v16  ;;  %5660 = vmatmul.mubr.f32.gmra.mrb[30].mxu0 %v5055_v24  ;;  %4989 = vst.msk [vmem:[#allocation5 + $0x1b0] sm:$0xff] %vm3381_vm9, %v9733_v43  ;;  %3998 = vrot.lane.b32.xlu0 %v10464_v13, %s7941_s1 }
 0x499   :  { %4312 = vrot.lane.b32.xlu1 %v4271_v26, %s7941_s1 }
 0x49a   :  { %v3156_v38 = vpop.permute.xlu0 %3155  ;;  %v4849_v20 = vpop.permute.xlu1 %4848 }
 0x49b   :  { %3196 = vst.msk [vmem:[#allocation5 + $0x1c0] sm:$0xff] %vm3187_vm7, %v3156_v38 }
 0x49c   :  { %4891 = vst.msk [vmem:[#allocation5 + $0x140] sm:$0xff] %vm3284_vm8, %v4849_v20  ;;  %3293 = vst.msk [vmem:[#allocation5 + $0x1c0] sm:$0xff] %vm3284_vm8, %v9787_v22  ;;  %3808 = vrot.lane.b32.xlu0 %v3763_v25, %s7943_s17  ;;  %v5076_v54 = vld [vmem:[#allocation5 + $0x170] sm:$0xff]  ;;  %v11529_v20 = vld [vmem:[#allocation35_spill] sm:$0xff] }
 0x49d   :  { %4987 = vst.msk [vmem:[#allocation5 + $0x140] sm:$0xff] %vm3381_vm9, %v9716_v11  ;;  %4220 = vrot.lane.b32.xlu1 %v10497_v37, %s7942_s16 }
 0x49e   :  { %v3350_v43 = vpop.permute.xlu0 %3349  ;;  %v4625_v39 = vpop.permute.xlu1 %4624 }
 0x49f   :  { %v5063_v56 = vld [vmem:[#allocation5 + $0x108] sm:$0xff]  ;;  %3390 = vst.msk [vmem:[#allocation5 + $0x1c0] sm:$0xff] %vm3381_vm9, %v3350_v43  ;;  %4667 = vst.msk [vmem:[#allocation5 + $0x138] sm:$0xff] %vm3381_vm9, %v4625_v39  ;;  %v5084_v8 = vld [vmem:[#allocation5 + $0x1b0] sm:$0xff] }
 0x4a0   :  { %5664 = vmatprep.mubr.f32.mxu0 %v5063_v56  ;;  %3904 = vrot.lane.b32.xlu0 %v10464_v13, %s7942_s16  ;;  %v3765_v13 = vld [vmem:[#allocation4 + $0x171] sm:$0xff] }
 0x4a1   :  { %5665 = vmatmul.mubr.f32.gmra.mrb[32].mxu0 %v5062_v10  ;;  %4316 = vrot.lane.b32.xlu1 %v9848_v34, %s7941_s1  ;;  %v11530_v10 = vld [vmem:[#allocation37_spill] sm:$0xff] }
 0x4a2   :  { %v3255_v11 = vpop.permute.xlu0 %3254 }
 0x4a3   :  { %3294 = vst.msk [vmem:[#allocation5 + $0x1f8] sm:$0xff] %vm3284_vm8, %v3255_v11  ;;  %v4755_v22 = vpop.permute.xlu1 %4754 }
 0x4a4   :  { %v5070_v52 = vld [vmem:[#allocation5 + $0x140] sm:$0xff]  ;;  %3391 = vst.msk [vmem:[#allocation5 + $0x1f8] sm:$0xff] %vm3381_vm9, %v11518_v12  ;;  %4130 = vrot.lane.b32.xlu0 %v4084_v17, %s7943_s17 }
 0x4a5   :  { %4796 = vst.msk [vmem:[#allocation5 + $0x178] sm:$0xff] %vm3187_vm7, %v4755_v22  ;;  %5669 = vmatprep.mubr.f32.mxu0 %v5070_v52  ;;  %4224 = vrot.lane.b32.xlu1 %v4084_v17, %s7942_s16  ;;  %v11531_v22 = vld [vmem:[#allocation29_spill] sm:$0xff] }
 0x4a6   :  { %4892 = vst.msk [vmem:[#allocation5 + $0x178] sm:$0xff] %vm3284_vm8, %v11519_v0  ;;  %v3160_v15 = vpop.permute.xlu0 %3159  ;;  %v5069_v40 = vld [vmem:[#allocation5 + $0x138] sm:$0xff]  ;;  %v5086_v24 = vld [vmem:[#allocation5 + $0x1c0] sm:$0xff] }
 0x4a7   :  { %3198 = vst.msk [vmem:[#allocation5 + $0x230] sm:$0xff] %vm3187_vm7, %v3160_v15  ;;  %v4947_v47 = vpop.permute.xlu1 %4946  ;;  %5670 = vmatmul.mubr.f32.gmra.mrb[34].mxu0 %v5069_v40  ;;  %v4595_v15 = vld [vmem:[#allocation4 + $0x153] sm:$0xff] }
 0x4a8   :  { %3295 = vst.msk [vmem:[#allocation5 + $0x230] sm:$0xff] %vm3284_vm8, %v9840_v41  ;;  %4002 = vrot.lane.b32.xlu0 %v10497_v37, %s7941_s1  ;;  %v11532_v40 = vld [vmem:[#allocation39_spill] sm:$0xff] }
 0x4a9   :  { %4988 = vst.msk [vmem:[#allocation5 + $0x178] sm:$0xff] %vm3381_vm9, %v4947_v47  ;;  %4320 = vrot.lane.b32.xlu1 %v9867_v46, %s7941_s1 }
 0x4aa   :  { %v3354_v2 = vpop.permute.xlu0 %3353 }
 0x4ab   :  { %3392 = vst.msk [vmem:[#allocation5 + $0x230] sm:$0xff] %vm3381_vm9, %v3354_v2  ;;  %v4437_v3 = vpop.permute.xlu1 %4436  ;;  %v5093_v56 = vld [vmem:[#allocation5 + $0x1f8] sm:$0xff] }
 0x4ac   :  { %4477 = vst.msk [vmem:[#allocation5 + $0x1a8] sm:$0xff] %vm3187_vm7, %v4437_v3  ;;  %3812 = vrot.lane.b32.xlu0 %v3765_v13, %s7943_s17 }
 0x4ad   :  { %4573 = vst.msk [vmem:[#allocation5 + $0x1a8] sm:$0xff] %vm3284_vm8, %v11520_v6  ;;  %4228 = vrot.lane.b32.xlu1 %v4181_v27, %s7942_s16  ;;  %v4916_v6 = vld [vmem:[#allocation4 + $0x154] sm:$0xff] }
 0x4ae   :  { %v3259_v41 = vpop.permute.xlu0 %3258 }
 0x4af   :  { %3296 = vst.msk [vmem:[#allocation5 + $0x268] sm:$0xff] %vm3284_vm8, %v3259_v41  ;;  %v4629_v49 = vpop.permute.xlu1 %4628 }
 0x4b0   :  { %v5077_v28 = vld [vmem:[#allocation5 + $0x178] sm:$0xff]  ;;  %3393 = vst.msk [vmem:[#allocation5 + $0x268] sm:$0xff] %vm3381_vm9, %v9878_v9  ;;  %4669 = vst.msk [vmem:[#allocation5 + $0x1a8] sm:$0xff] %vm3381_vm9, %v4629_v49  ;;  %3908 = vrot.lane.b32.xlu0 %v10497_v37, %s7942_s16 }
 0x4b1   :  { %5674 = vmatprep.mubr.f32.mxu0 %v5077_v28  ;;  %4324 = vrot.lane.b32.xlu1 %v9888_v45, %s7941_s1  ;;  %v11527_v37 = vld [vmem:[#allocation27_spill] sm:$0xff]  ;;  %v11533_v49 = vld [vmem:[#allocation42_spill] sm:$0xff] }
 0x4b2   :  { %5675 = vmatmul.mubr.f32.gmra.mrb[36].mxu0 %v5076_v54  ;;  %v3164_v44 = vpop.permute.xlu0 %3163  ;;  %v5100_v52 = vld [vmem:[#allocation5 + $0x230] sm:$0xff] }
 0x4b3   :  { %5679 = vmatprep.mubr.f32.mxu0 %v5084_v8  ;;  %3200 = vst.msk [vmem:[#allocation5 + $0x2a0] sm:$0xff] %vm3187_vm7, %v3164_v44  ;;  %v3358_v57 = vpop.permute.xlu1 %3357 }
 0x4b4   :  { %3297 = vst.msk [vmem:[#allocation5 + $0x2a0] sm:$0xff] %vm3284_vm8, %v9900_v19  ;;  %4758 = vrot.lane.b32.xlu0 %v4718_v18, %s7943_s17 }
 0x4b5   :  { %3394 = vst.msk [vmem:[#allocation5 + $0x2a0] sm:$0xff] %vm3381_vm9, %v3358_v57  ;;  %4534 = vrot.lane.b32.xlu1 %v9848_v34, %s7942_s16  ;;  %v11534_v57 = vld [vmem:[#allocation34_spill] sm:$0xff] }
 0x4b6   :  { %v3263_v9 = vpop.permute.xlu0 %3262 }
 0x4b7   :  { %3298 = vst.msk [vmem:[#allocation5 + $0x2d8] sm:$0xff] %vm3284_vm8, %v3263_v9  ;;  %v3362_v1 = vpop.permute.xlu1 %3361  ;;  %v5083_v48 = vld [vmem:[#allocation5 + $0x1a8] sm:$0xff] }
 0x4b8   :  { %3395 = vst.msk [vmem:[#allocation5 + $0x2d8] sm:$0xff] %vm3381_vm9, %v11521_v50  ;;  %5680 = vmatmul.mubr.f32.gmra.mrb[38].mxu0 %v5083_v48  ;;  %4950 = vrot.lane.b32.xlu0 %v11522_v53, %s7941_s1  ;;  %v5107_v3 = vld [vmem:[#allocation5 + $0x268] sm:$0xff]  ;;  %v4597_v50 = vld [vmem:[#allocation4 + $0x173] sm:$0xff] }
 0x4b9   :  { %4440 = vrot.lane.b32.xlu1 %v9848_v34, %s7943_s17  ;;  %v4917_v48 = vld [vmem:[#allocation4 + $0x164] sm:$0xff] }
 0x4ba   :  { %v3168_v19 = vpop.permute.xlu0 %3167 }
 0x4bb   :  { %3202 = vst.msk [vmem:[#allocation5 + $0x310] sm:$0xff] %vm3187_vm7, %v3168_v19  ;;  %v3267_v4 = vpop.permute.xlu1 %3266 }
 0x4bc   :  { %3299 = vst.msk [vmem:[#allocation5 + $0x310] sm:$0xff] %vm3284_vm8, %v11523_v30  ;;  %3300 = vst.msk [vmem:[#allocation5 + $0x348] sm:$0xff] %vm3284_vm8, %v3267_v4  ;;  %4856 = vrot.lane.b32.xlu0 %v11522_v53, %s7942_s16  ;;  %v5114_v28 = vld [vmem:[#allocation5 + $0x2a0] sm:$0xff] }
 0x4bd   :  { %3396 = vst.msk [vmem:[#allocation5 + $0x310] sm:$0xff] %vm3381_vm9, %v3362_v1  ;;  %3397 = vst.msk [vmem:[#allocation5 + $0x348] sm:$0xff] %vm3381_vm9, %v11524_v7  ;;  %4632 = vrot.lane.b32.xlu1 %v9867_v46, %s7941_s1  ;;  %v11535_v7 = vld [vmem:[#allocation36_spill] sm:$0xff] }
 0x4be   :  { %v3489_v34 = vpop.permute.xlu0 %3488 }
 0x4bf   :  { %3523 = vst.msk [vmem:[#allocation5 + $0x2e0] sm:$0xff] %vm3187_vm7, %v3489_v34  ;;  %v3575_v63 = vpop.permute.xlu1 %3574  ;;  %v5121_v18 = vld [vmem:[#allocation5 + $0x2d8] sm:$0xff] }
 0x4c0   :  { %3619 = vst.msk [vmem:[#allocation5 + $0x2e0] sm:$0xff] %vm3284_vm8, %v11525_v62  ;;  %3614 = vst.msk [vmem:[#allocation5 + $0x1c8] sm:$0xff] %vm3284_vm8, %v3575_v63  ;;  %4762 = vrot.lane.b32.xlu0 %v11522_v53, %s7943_s17  ;;  %v11536_v34 = vld [vmem:[#allocation38_spill] sm:$0xff] }
 0x4c1   :  { %3710 = vst.msk [vmem:[#allocation5 + $0x1c8] sm:$0xff] %vm3381_vm9, %v11526_v14  ;;  %4538 = vrot.lane.b32.xlu1 %v9867_v46, %s7942_s16 }
 0x4c2   :  { %v10594_v29 = vpop.permute.xlu0 %4952 }
 0x4c3   :  { %v3481_v36 = vpop.permute.xlu1 %3480 }
 0x4c4   :  { %3519 = vst.msk [vmem:[#allocation5 + $0x200] sm:$0xff] %vm3187_vm7, %v3481_v36  ;;  %4954 = vrot.lane.b32.xlu0 %v11527_v37, %s7941_s1  ;;  %v5128_v19 = vld [vmem:[#allocation5 + $0x310] sm:$0xff]  ;;  %v5135_v36 = vld [vmem:[#allocation5 + $0x348] sm:$0xff] }
 0x4c5   :  { %3615 = vst.msk [vmem:[#allocation5 + $0x200] sm:$0xff] %vm3284_vm8, %v11528_v61  ;;  %4444 = vrot.lane.b32.xlu1 %v9867_v46, %s7943_s17  ;;  %v4596_v46 = vld [vmem:[#allocation4 + $0x163] sm:$0xff]  ;;  %v5241_v61 = vld [vmem:[%s11455_s2 + $0x318] sm:$0xff] }
 0x4c6   :  { %v10603_v51 = vpop.permute.xlu0 %4858 }
 0x4c7   :  { %v3673_v32 = vpop.permute.xlu1 %3672 }
 0x4c8   :  { %3711 = vst.msk [vmem:[#allocation5 + $0x200] sm:$0xff] %vm3381_vm9, %v3673_v32  ;;  %4860 = vrot.lane.b32.xlu0 %v11527_v37, %s7942_s16  ;;  %v5087_v16 = vld [vmem:[#allocation5 + $0x1c8] sm:$0xff]  ;;  %v5033_v32 = vld [vmem:[#allocation5 + $0x18] sm:$0xff] }
 0x4c9   :  { %4636 = vrot.lane.b32.xlu1 %v9888_v45, %s7941_s1  ;;  %5394 = vmatprep.mubr.f32.mxu1 %v5087_v16 }
 0x4ca   :  { %5395 = vmatmul.mubr.f32.gmra.mrb[34].mxu1 %v5086_v24  ;;  %v4765_v26 = vpop.permute.xlu0 %4764 }
 0x4cb   :  { %4801 = vst.msk [vmem:[#allocation5 + $0x290] sm:$0xff] %vm3187_vm7, %v4765_v26  ;;  %v3579_v38 = vpop.permute.xlu1 %3578 }
 0x4cc   :  { %3616 = vst.msk [vmem:[#allocation5 + $0x238] sm:$0xff] %vm3284_vm8, %v3579_v38  ;;  %4772 = vrot.lane.b32.xlu0 %v10384_v33, %s7943_s17  ;;  %v5032_v38 = vld [vmem:[#allocation5 + $0x10] sm:$0xff] }
 0x4cd   :  { %3712 = vst.msk [vmem:[#allocation5 + $0x238] sm:$0xff] %vm3381_vm9, %v11529_v20  ;;  %4642 = vrot.lane.b32.xlu1 %v4596_v46, %s7941_s1  ;;  %v5040_v20 = vld [vmem:[#allocation5 + $0x50] sm:$0xff] }
 0x4ce   :  { %v10617_v25 = vpop.permute.xlu0 %4956 }
 0x4cf   :  { %v3485_v43 = vpop.permute.xlu1 %3484  ;;  %v5094_v39 = vld [vmem:[#allocation5 + $0x200] sm:$0xff] }
 0x4d0   :  { %3521 = vst.msk [vmem:[#allocation5 + $0x270] sm:$0xff] %vm3187_vm7, %v3485_v43  ;;  %5399 = vmatprep.mubr.f32.mxu1 %v5094_v39  ;;  %4766 = vrot.lane.b32.xlu0 %v11527_v37, %s7943_s17  ;;  %v5240_v37 = vld [vmem:[%s11455_s2 + $0x310] sm:$0xff] }
 0x4d1   :  { %3617 = vst.msk [vmem:[#allocation5 + $0x270] sm:$0xff] %vm3284_vm8, %v11530_v10  ;;  %4542 = vrot.lane.b32.xlu1 %v9888_v45, %s7942_s16  ;;  %5400 = vmatmul.mubr.f32.gmra.mrb[36].mxu1 %v5093_v56  ;;  %v7615_v24 = vpack.c.bf16 %v5241_v61, %v5240_v37  ;;  %v5039_v56 = vld [vmem:[#allocation5 + $0x48] sm:$0xff] }
 0x4d2   :  { %v10626_v33 = vpop.permute.xlu0 %4862  ;;  %v5047_v10 = vld [vmem:[#allocation5 + $0x88] sm:$0xff] }
 0x4d3   :  { %v3677_v11 = vpop.permute.xlu1 %3676  ;;  %v11539_v37 = vld [vmem:[#allocation44_spill] sm:$0xff] }
 0x4d4   :  { %3713 = vst.msk [vmem:[#allocation5 + $0x270] sm:$0xff] %vm3381_vm9, %v3677_v11  ;;  %4958 = vrot.lane.b32.xlu0 %v11531_v22, %s7941_s1  ;;  %v5101_v17 = vld [vmem:[#allocation5 + $0x238] sm:$0xff] }
 0x4d5   :  { %4448 = vrot.lane.b32.xlu1 %v9888_v45, %s7943_s17  ;;  %5404 = vmatprep.mubr.f32.mxu1 %v5101_v17  ;;  %v5054_v17 = vld [vmem:[#allocation5 + $0xc0] sm:$0xff] }
 0x4d6   :  { %5405 = vmatmul.mubr.f32.gmra.mrb[38].mxu1 %v5100_v52  ;;  %v4769_v12 = vpop.permute.xlu0 %4768 }
 0x4d7   :  { %4803 = vst.msk [vmem:[#allocation5 + $0x300] sm:$0xff] %vm3187_vm7, %v4769_v12  ;;  %v3583_v0 = vpop.permute.xlu1 %3582  ;;  %v5053_v12 = vld [vmem:[#allocation5 + $0xb8] sm:$0xff] }
 0x4d8   :  { %3618 = vst.msk [vmem:[#allocation5 + $0x2a8] sm:$0xff] %vm3284_vm8, %v3583_v0  ;;  %4864 = vrot.lane.b32.xlu0 %v11531_v22, %s7942_s16 }
 0x4d9   :  { %3714 = vst.msk [vmem:[#allocation5 + $0x2a8] sm:$0xff] %vm3381_vm9, %v11532_v40  ;;  %4640 = vrot.lane.b32.xlu1 %v4595_v15, %s7941_s1  ;;  %v5060_v40 = vld [vmem:[#allocation5 + $0xf0] sm:$0xff] }
 0x4da   :  { %v10640_v47 = vpop.permute.xlu0 %4960 }
 0x4db   :  { %v3681_v45 = vpop.permute.xlu1 %3680  ;;  %v5108_v2 = vld [vmem:[#allocation5 + $0x270] sm:$0xff] }
 0x4dc   :  { %3715 = vst.msk [vmem:[#allocation5 + $0x2e0] sm:$0xff] %vm3381_vm9, %v3681_v45  ;;  %5409 = vmatprep.mubr.f32.mxu1 %v5108_v2  ;;  %4770 = vrot.lane.b32.xlu0 %v11531_v22, %s7943_s17  ;;  %v5046_v22 = vld [vmem:[#allocation5 + $0x80] sm:$0xff] }
 0x4dd   :  { %4546 = vrot.lane.b32.xlu1 %v4595_v15, %s7942_s16  ;;  %5410 = vmatmul.mubr.f32.gmra.mrb[40].mxu1 %v5107_v3  ;;  %v11538_v45 = vld [vmem:[#allocation43_spill] sm:$0xff]  ;;  %v5068_v3 = vld [vmem:[#allocation5 + $0x130] sm:$0xff] }
 0x4de   :  { %v10646_v13 = vpop.permute.xlu0 %4866 }
 0x4df   :  { %v3587_v27 = vpop.permute.xlu1 %3586 }
 0x4e0   :  { %3620 = vst.msk [vmem:[#allocation5 + $0x318] sm:$0xff] %vm3284_vm8, %v3587_v27  ;;  %4962 = vrot.lane.b32.xlu0 %v4916_v6, %s7941_s1  ;;  %v5115_v41 = vld [vmem:[#allocation5 + $0x2a8] sm:$0xff] }
 0x4e1   :  { %3716 = vst.msk [vmem:[#allocation5 + $0x318] sm:$0xff] %vm3381_vm9, %v11533_v49  ;;  %4452 = vrot.lane.b32.xlu1 %v4595_v15, %s7943_s17  ;;  %5414 = vmatprep.mubr.f32.mxu1 %v5115_v41 }
 0x4e2   :  { %5415 = vmatmul.mubr.f32.gmra.mrb[42].mxu1 %v5114_v28  ;;  %v3493_v54 = vpop.permute.xlu0 %3492  ;;  %v5067_v28 = vld [vmem:[#allocation5 + $0x128] sm:$0xff] }
 0x4e3   :  { %3525 = vst.msk [vmem:[#allocation5 + $0x350] sm:$0xff] %vm3187_vm7, %v3493_v54  ;;  %v10654_v8 = vpop.permute.xlu1 %4536  ;;  %v5122_v44 = vld [vmem:[#allocation5 + $0x2e0] sm:$0xff]  ;;  %v5075_v54 = vld [vmem:[#allocation5 + $0x168] sm:$0xff] }
 0x4e4   :  { %3621 = vst.msk [vmem:[#allocation5 + $0x350] sm:$0xff] %vm3284_vm8, %v11534_v57  ;;  %5419 = vmatprep.mubr.f32.mxu1 %v5122_v44  ;;  %4868 = vrot.lane.b32.xlu0 %v4916_v6, %s7942_s16 }
 0x4e5   :  { %4548 = vrot.lane.b32.xlu1 %v4596_v46, %s7942_s16  ;;  %v11537_v46 = vld [vmem:[#allocation40_spill] sm:$0xff] }
 0x4e6   :  { %5420 = vmatmul.mubr.f32.gmra.mrb[44].mxu1 %v5121_v18  ;;  %v3685_v9 = vpop.permute.xlu0 %3684 }
 0x4e7   :  { %3717 = vst.msk [vmem:[#allocation5 + $0x350] sm:$0xff] %vm3381_vm9, %v3685_v9  ;;  %v4443_v1 = vpop.permute.xlu1 %4442  ;;  %v5074_v9 = vld [vmem:[#allocation5 + $0x160] sm:$0xff] }
 0x4e8   :  { %4480 = vst.msk [vmem:[#allocation5 + $0x250] sm:$0xff] %vm3187_vm7, %v4443_v1  ;;  %4964 = vrot.lane.b32.xlu0 %v4917_v48, %s7941_s1  ;;  %v5129_v53 = vld [vmem:[#allocation5 + $0x318] sm:$0xff]  ;;  %v5082_v48 = vld [vmem:[#allocation5 + $0x1a0] sm:$0xff] }
 0x4e9   :  { %4644 = vrot.lane.b32.xlu1 %v4597_v50, %s7941_s1  ;;  %5424 = vmatprep.mubr.f32.mxu1 %v5129_v53 }
 0x4ea   :  { %5425 = vmatmul.mubr.f32.gmra.mrb[46].mxu1 %v5128_v19  ;;  %v4119_v4 = vpop.permute.xlu0 %4118 }
 0x4eb   :  { %4158 = vst.msk [vmem:[#allocation5 + $0x1d8] sm:$0xff] %vm3187_vm7, %v4119_v4  ;;  %v10665_v30 = vpop.permute.xlu1 %4634 }
 0x4ec   :  { %4254 = vst.msk [vmem:[#allocation5 + $0x1d8] sm:$0xff] %vm3284_vm8, %v11535_v7 }
 0x4ed   :  { %4350 = vst.msk [vmem:[#allocation5 + $0x1d8] sm:$0xff] %vm3381_vm9, %v11536_v34 }
 0x4ee   :  { %v3801_v63 = vpop.permute.xlu0 %3800  ;;  %v5136_v62 = vld [vmem:[#allocation5 + $0x350] sm:$0xff] }
 0x4ef   :  { %3839 = vst.msk [vmem:[#allocation5 + $0x208] sm:$0xff] %vm3187_vm7, %v3801_v63  ;;  %v10672_v14 = vpop.permute.xlu1 %4540  ;;  %5429 = vmatprep.mubr.f32.mxu1 %v5136_v62 }
 0x4f0   :  { %5430 = vmatmul.mubr.f32.gmra.mrb[48].mxu1 %v5135_v36 }
 0x4f1   :  { %5499 = vmatprep.mubr.f32.mxu1 %v5033_v32 }
 0x4f2   :  { %v3897_v16 = vpop.permute.xlu0 %3896 }
 0x4f3   :  { %3935 = vst.msk [vmem:[#allocation5 + $0x208] sm:$0xff] %vm3284_vm8, %v3897_v16  ;;  %v4447_v26 = vpop.permute.xlu1 %4446 }
 0x4f4   :  { %4031 = vst.msk [vmem:[#allocation5 + $0x208] sm:$0xff] %vm3381_vm9, %v11537_v46  ;;  %5500 = vmatmul.mubr.f32.vlgmr.msra.gmra.mrb[50].mxu1 %v5032_v38  ;;  %v5089_v4 = vld [vmem:[#allocation5 + $0x1d8] sm:$0xff] }
 0x4f5   :  { %4482 = vst.msk [vmem:[#allocation5 + $0x2c0] sm:$0xff] %vm3187_vm7, %v4447_v26  ;;  %5504 = vmatprep.mubr.f32.mxu1 %v5040_v20  ;;  %7614 = vmatpush3.bf16.msra.mxu1 %v10438_v5 }
 0x4f6   :  { %v4123_v43 = vpop.permute.xlu0 %4122  ;;  %7616 = vmatprep.subr.bf16.mxu1 %v7615_v24 }
 0x4f7   :  { %4160 = vst.msk [vmem:[#allocation5 + $0x248] sm:$0xff] %vm3187_vm7, %v4123_v43  ;;  %v10686_v39 = vpop.permute.xlu1 %4638 }
 0x4f8   :  { %4256 = vst.msk [vmem:[#allocation5 + $0x248] sm:$0xff] %vm3284_vm8, %v10036_v35  ;;  %5505 = vmatmul.mubr.f32.gmra.mrb[52].mxu1 %v5039_v56 }
 0x4f9   :  { %4352 = vst.msk [vmem:[#allocation5 + $0x248] sm:$0xff] %vm3381_vm9, %v10058_v58  ;;  %5509 = vmatprep.mubr.f32.mxu1 %v5047_v10  ;;  %7618 = vmatpush3.bf16.msra.mxu1 %v7615_v24  ;;  %v5061_v58 = vld [vmem:[#allocation5 + $0xf8] sm:$0xff] }
 0x4fa   :  { %v3995_v11 = vpop.permute.xlu0 %3994 }
 0x4fb   :  { %4032 = vst.msk [vmem:[#allocation5 + $0x240] sm:$0xff] %vm3381_vm9, %v3995_v11  ;;  %v10693_v5 = vpop.permute.xlu1 %4544  ;;  %v5095_v26 = vld [vmem:[#allocation5 + $0x208] sm:$0xff] }
 0x4fc   :  { %5510 = vmatmul.mubr.f32.gmra.mrb[54].mxu1 %v5046_v22 }
 0x4fd   :  { %5514 = vmatprep.mubr.f32.mxu1 %v5054_v17 }
 0x4fe   :  { %v3805_v52 = vpop.permute.xlu0 %3804 }
 0x4ff   :  { %3841 = vst.msk [vmem:[#allocation5 + $0x278] sm:$0xff] %vm3187_vm7, %v3805_v52  ;;  %v4451_v35 = vpop.permute.xlu1 %4450 }
 0x500   :  { %4484 = vst.msk [vmem:[#allocation5 + $0x330] sm:$0xff] %vm3187_vm7, %v4451_v35  ;;  %5515 = vmatmul.mubr.f32.gmra.mrb[56].mxu1 %v5053_v12  ;;  %v5103_v46 = vld [vmem:[#allocation5 + $0x248] sm:$0xff] }
 0x501   :  { %5519 = vmatprep.mubr.f32.mxu1 %v5061_v58 }
 0x502   :  { %v3901_v0 = vpop.permute.xlu0 %3900  ;;  %v5102_v10 = vld [vmem:[#allocation5 + $0x240] sm:$0xff] }
 0x503   :  { %3937 = vst.msk [vmem:[#allocation5 + $0x278] sm:$0xff] %vm3284_vm8, %v3901_v0  ;;  %v3991_v15 = vpop.permute.xlu1 %3990 }
 0x504   :  { %4033 = vst.msk [vmem:[#allocation5 + $0x278] sm:$0xff] %vm3381_vm9, %v11538_v45  ;;  %4030 = vst.msk [vmem:[#allocation5 + $0x1d0] sm:$0xff] %vm3381_vm9, %v3991_v15  ;;  %v6965_v2 = vpop.f32.mrb[18].mxu1  ;;  %5520 = vmatmul.mubr.f32.gmra.mrb[58].mxu1 %v5060_v40 }
 0x505   :  { %v6966_v27 = vpop.f32.mrb[19].mxu1  ;;  %5524 = vmatprep.mubr.f32.mxu1 %v5068_v3 }
 0x506   :  { %v10701_v6 = vadd.f32 %v6966_v27, %v6965_v2  ;;  %v4127_v41 = vpop.permute.xlu0 %4126 }
 0x507   :  { %4162 = vst.msk [vmem:[#allocation5 + $0x2b8] sm:$0xff] %vm3187_vm7, %v4127_v41  ;;  %v4217_v49 = vpop.permute.xlu1 %4216 }
 0x508   :  { %4258 = vst.msk [vmem:[#allocation5 + $0x2b8] sm:$0xff] %vm3284_vm8, %v10076_v60  ;;  %4255 = vst.msk [vmem:[#allocation5 + $0x210] sm:$0xff] %vm3284_vm8, %v4217_v49  ;;  %5525 = vmatmul.mubr.f32.gmra.mrb[60].mxu1 %v5067_v28 }
 0x509   :  { %4354 = vst.msk [vmem:[#allocation5 + $0x2b8] sm:$0xff] %vm3381_vm9, %v10097_v31  ;;  %5529 = vmatprep.mubr.f32.mxu1 %v5075_v54  ;;  %v5081_v31 = vld [vmem:[#allocation5 + $0x198] sm:$0xff] }
 0x50a   :  { %v3999_v44 = vpop.permute.xlu0 %3998 }
 0x50b   :  { %4034 = vst.msk [vmem:[#allocation5 + $0x2b0] sm:$0xff] %vm3381_vm9, %v3999_v44  ;;  %v4313_v57 = vpop.permute.xlu1 %4312  ;;  %v6968_v18 = vpop.f32.mrb[20].mxu1  ;;  %v5088_v36 = vld [vmem:[#allocation5 + $0x1d0] sm:$0xff]  ;;  %v5109_v35 = vld [vmem:[#allocation5 + $0x278] sm:$0xff] }
 0x50c   :  { %4351 = vst.msk [vmem:[#allocation5 + $0x210] sm:$0xff] %vm3381_vm9, %v4313_v57  ;;  %v6969_v1 = vpop.f32.mrb[21].mxu1  ;;  %5530 = vmatmul.mubr.f32.gmra.mrb[62].mxu1 %v5074_v9 }
 0x50d   :  { %v10711_v60 = vadd.f32 %v6969_v1, %v6968_v18  ;;  %5534 = vmatprep.mubr.f32.mxu1 %v5082_v48 }
 0x50e   :  { %v3809_v50 = vpop.permute.xlu0 %3808 }
 0x50f   :  { %3843 = vst.msk [vmem:[#allocation5 + $0x2e8] sm:$0xff] %vm3187_vm7, %v3809_v50  ;;  %v4221_v53 = vpop.permute.xlu1 %4220 }
 0x510   :  { %4257 = vst.msk [vmem:[#allocation5 + $0x280] sm:$0xff] %vm3284_vm8, %v4221_v53  ;;  %5535 = vmatmul.mubr.f32.gmra.mrb[64].mxu1 %v5081_v31  ;;  %v5117_v58 = vld [vmem:[#allocation5 + $0x2b8] sm:$0xff] }
 0x511   :  { %v6971_v19 = vpop.f32.mrb[22].mxu1  ;;  %5539 = vmatprep.mubr.f32.mxu1 %v5089_v4 }
 0x512   :  { %v6972_v7 = vpop.f32.mrb[23].mxu1  ;;  %v3905_v63 = vpop.permute.xlu0 %3904  ;;  %v5116_v2 = vld [vmem:[#allocation5 + $0x2b0] sm:$0xff] }
 0x513   :  { %v10715_v34 = vadd.f32 %v6972_v7, %v6971_v19  ;;  %3939 = vst.msk [vmem:[#allocation5 + $0x2e8] sm:$0xff] %vm3284_vm8, %v3905_v63  ;;  %v4317_v62 = vpop.permute.xlu1 %4316  ;;  %v5096_v61 = vld [vmem:[#allocation5 + $0x210] sm:$0xff] }
 0x514   :  { %4035 = vst.msk [vmem:[#allocation5 + $0x2e8] sm:$0xff] %vm3381_vm9, %v11539_v37  ;;  %4353 = vst.msk [vmem:[#allocation5 + $0x280] sm:$0xff] %vm3381_vm9, %v4317_v62  ;;  %5540 = vmatmul.mubr.f32.gmra.mrb[66].mxu1 %v5088_v36  ;;  %v5036_v19 = vld [vmem:[#allocation5 + $0x30] sm:$0xff]  ;;  %v5043_v62 = vld [vmem:[#allocation5 + $0x68] sm:$0xff] }
 0x515   :  { %5544 = vmatprep.mubr.f32.mxu1 %v5096_v61 }
 0x516   :  { %v4131_v32 = vpop.permute.xlu0 %4130 }
 0x517   :  { %4164 = vst.msk [vmem:[#allocation5 + $0x328] sm:$0xff] %vm3187_vm7, %v4131_v32  ;;  %v4225_v16 = vpop.permute.xlu1 %4224  ;;  %v6974_v24 = vpop.f32.mrb[24].mxu1  ;;  %v5057_v32 = vld [vmem:[#allocation5 + $0xd8] sm:$0xff] }
 0x518   :  { %4260 = vst.msk [vmem:[#allocation5 + $0x328] sm:$0xff] %vm3284_vm8, %v10111_v55  ;;  %4259 = vst.msk [vmem:[#allocation5 + $0x2f0] sm:$0xff] %vm3284_vm8, %v4225_v16  ;;  %v6975_v38 = vpop.f32.mrb[25].mxu1  ;;  %5545 = vmatmul.mubr.f32.gmra.mrb[68].mxu1 %v5095_v26  ;;  %v5064_v16 = vld [vmem:[#allocation5 + $0x110] sm:$0xff]  ;;  %v5071_v26 = vld [vmem:[#allocation5 + $0x148] sm:$0xff] }
 0x519   :  { %4356 = vst.msk [vmem:[#allocation5 + $0x328] sm:$0xff] %vm3381_vm9, %v10121_v21  ;;  %v10727_v20 = vadd.f32 %v6975_v38, %v6974_v24  ;;  %5549 = vmatprep.mubr.f32.mxu1 %v5103_v46  ;;  %v5078_v38 = vld [vmem:[#allocation5 + $0x180] sm:$0xff] }
 0x51a   :  { %v4003_v43 = vpop.permute.xlu0 %4002 }
 0x51b   :  { %4036 = vst.msk [vmem:[#allocation5 + $0x320] sm:$0xff] %vm3381_vm9, %v4003_v43  ;;  %v4321_v56 = vpop.permute.xlu1 %4320  ;;  %v5110_v55 = vld [vmem:[#allocation5 + $0x280] sm:$0xff]  ;;  %v5123_v44 = vld [vmem:[#allocation5 + $0x2e8] sm:$0xff] }
 0x51c   :  { %4355 = vst.msk [vmem:[#allocation5 + $0x2f0] sm:$0xff] %vm3381_vm9, %v4321_v56  ;;  %v6977_v11 = vpop.f32.mrb[26].mxu1  ;;  %5550 = vmatmul.mubr.f32.gmra.mrb[70].mxu1 %v5102_v10  ;;  %v5085_v10 = vld [vmem:[#allocation5 + $0x1b8] sm:$0xff] }
 0x51d   :  { %v6978_v22 = vpop.f32.mrb[27].mxu1  ;;  %5554 = vmatprep.mubr.f32.mxu1 %v5110_v55 }
 0x51e   :  { %v10731_v17 = vadd.f32 %v6978_v22, %v6977_v11  ;;  %v3813_v52 = vpop.permute.xlu0 %3812  ;;  %v5092_v11 = vld [vmem:[#allocation5 + $0x1f0] sm:$0xff] }
 0x51f   :  { %3845 = vst.msk [vmem:[#allocation5 + $0x358] sm:$0xff] %vm3187_vm7, %v3813_v52  ;;  %v4229_v21 = vpop.permute.xlu1 %4228  ;;  %v5099_v52 = vld [vmem:[#allocation5 + $0x228] sm:$0xff] }
 0x520   :  { %4261 = vst.msk [vmem:[#allocation5 + $0x360] sm:$0xff] %vm3284_vm8, %v4229_v21  ;;  %v6980_v12 = vpop.f32.mrb[28].mxu1  ;;  %5555 = vmatmul.mubr.f32.gmra.mrb[72].mxu1 %v5109_v35  ;;  %v5131_v57 = vld [vmem:[#allocation5 + $0x328] sm:$0xff]  ;;  %v5106_v35 = vld [vmem:[#allocation5 + $0x260] sm:$0xff] }
 0x521   :  { %v6981_v0 = vpop.f32.mrb[29].mxu1  ;;  %5559 = vmatprep.mubr.f32.mxu1 %v5117_v58 }
 0x522   :  { %v10735_v15 = vadd.f32 %v6981_v0, %v6980_v12  ;;  %v3909_v40 = vpop.permute.xlu0 %3908  ;;  %v5130_v50 = vld [vmem:[#allocation5 + $0x320] sm:$0xff]  ;;  %v5113_v0 = vld [vmem:[#allocation5 + $0x298] sm:$0xff] }
 0x523   :  { %3941 = vst.msk [vmem:[#allocation5 + $0x358] sm:$0xff] %vm3284_vm8, %v3909_v40  ;;  %v4325_v45 = vpop.permute.xlu1 %4324  ;;  %v5124_v27 = vld [vmem:[#allocation5 + $0x2f0] sm:$0xff] }
 0x524   :  { %4037 = vst.msk [vmem:[#allocation5 + $0x358] sm:$0xff] %vm3381_vm9, %v10134_v59  ;;  %4357 = vst.msk [vmem:[#allocation5 + $0x360] sm:$0xff] %vm3381_vm9, %v4325_v45  ;;  %5560 = vmatmul.mubr.f32.gmra.mrb[74].mxu1 %v5116_v2  ;;  %v5127_v45 = vld [vmem:[#allocation5 + $0x308] sm:$0xff]  ;;  %v5134_v2 = vld [vmem:[#allocation5 + $0x340] sm:$0xff] }
 0x525   :  { %v6983_v3 = vpop.f32.mrb[30].mxu1  ;;  %5564 = vmatprep.mubr.f32.mxu1 %v5124_v27 }
 0x526   :  { %v6984_v41 = vpop.f32.mrb[31].mxu1  ;;  %v4759_v28 = vpop.permute.xlu0 %4758 }
 0x527   :  { %v10741_v49 = vadd.f32 %v6984_v41, %v6983_v3  ;;  %4798 = vst.msk [vmem:[#allocation5 + $0x1e8] sm:$0xff] %vm3187_vm7, %v4759_v28  ;;  %v4535_v54 = vpop.permute.xlu1 %4534  ;;  %v5141_v28 = vld [vmem:[#allocation5 + $0x378] sm:$0xff] }
 0x528   :  { %4894 = vst.msk [vmem:[#allocation5 + $0x1e8] sm:$0xff] %vm3284_vm8, %v10142_v23  ;;  %4574 = vst.msk [vmem:[#allocation5 + $0x1e0] sm:$0xff] %vm3284_vm8, %v4535_v54  ;;  %5565 = vmatmul.mubr.f32.gmra.mrb[76].mxu1 %v5123_v44 }
 0x529   :  { %v6986_v59 = vpop.f32.mrb[32].mxu1  ;;  %4670 = vst.msk [vmem:[#allocation5 + $0x1e0] sm:$0xff] %vm3381_vm9, %v10136_v42  ;;  %5569 = vmatprep.mubr.f32.mxu1 %v5131_v57 }
 0x52a   :  { %v6987_v18 = vpop.f32.mrb[33].mxu1  ;;  %v4951_v1 = vpop.permute.xlu0 %4950 }
 0x52b   :  { %v10749_v9 = vadd.f32 %v6987_v18, %v6986_v59  ;;  %4990 = vst.msk [vmem:[#allocation5 + $0x1e8] sm:$0xff] %vm3381_vm9, %v4951_v1  ;;  %v4441_v48 = vpop.permute.xlu1 %4440  ;;  %v5138_v23 = vld [vmem:[#allocation5 + $0x360] sm:$0xff]  ;;  %v5137_v31 = vld [vmem:[#allocation5 + $0x358] sm:$0xff] }
 0x52c   :  { %4479 = vst.msk [vmem:[#allocation5 + $0x218] sm:$0xff] %vm3187_vm7, %v4441_v48  ;;  %5570 = vmatmul.mubr.f32.gmra.mrb[78].mxu1 %v5130_v50 }
 0x52d   :  { %4575 = vst.msk [vmem:[#allocation5 + $0x218] sm:$0xff] %vm3284_vm8, %v10654_v8  ;;  %5574 = vmatprep.mubr.f32.mxu1 %v5138_v23 }
 0x52e   :  { %v4857_v53 = vpop.permute.xlu0 %4856 }
 0x52f   :  { %4895 = vst.msk [vmem:[#allocation5 + $0x220] sm:$0xff] %vm3284_vm8, %v4857_v53  ;;  %v4633_v42 = vpop.permute.xlu1 %4632 }
 0x530   :  { %4991 = vst.msk [vmem:[#allocation5 + $0x220] sm:$0xff] %vm3381_vm9, %v10594_v29  ;;  %4671 = vst.msk [vmem:[#allocation5 + $0x218] sm:$0xff] %vm3381_vm9, %v4633_v42  ;;  %5575 = vmatmul.mubr.f32.gmra.mrb[80].mxu1 %v5137_v31  ;;  %v5090_v63 = vld [vmem:[#allocation5 + $0x1e0] sm:$0xff] }
 0x531   :  { %7341 = vmatprep.mubr.msk.f32.mxu1 %vm2654_vm5, %v5036_v19  ;;  %v5050_v29 = vld [vmem:[#allocation5 + $0xa0] sm:$0xff] }
 0x532   :  { %v4763_v4 = vpop.permute.xlu0 %4762  ;;  %v5091_v7 = vld [vmem:[#allocation5 + $0x1e8] sm:$0xff] }
 0x533   :  { %4800 = vst.msk [vmem:[#allocation5 + $0x258] sm:$0xff] %vm3187_vm7, %v4763_v4  ;;  %v4539_v8 = vpop.permute.xlu1 %4538  ;;  %5684 = vmatprep.mubr.f32.mxu0 %v5091_v7 }
 0x534   :  { %4896 = vst.msk [vmem:[#allocation5 + $0x258] sm:$0xff] %vm3284_vm8, %v10603_v51  ;;  %4576 = vst.msk [vmem:[#allocation5 + $0x250] sm:$0xff] %vm3284_vm8, %v4539_v8  ;;  %5685 = vmatmul.mubr.f32.gmra.mrb[40].mxu0 %v5090_v63  ;;  %7342 = vmatmul.mubr.msk.f32.vlgmr.msra.gmra.mrb[82].mxu1 %vm2654_vm5, %v5043_v62 }
 0x535   :  { %4672 = vst.msk [vmem:[#allocation5 + $0x250] sm:$0xff] %vm3381_vm9, %v10665_v30  ;;  %7344 = vmatprep.mubr.msk.f32.mxu1 %vm2654_vm5, %v5050_v29 }
 0x536   :  { %v4955_v36 = vpop.permute.xlu0 %4954 }
 0x537   :  { %4992 = vst.msk [vmem:[#allocation5 + $0x258] sm:$0xff] %vm3381_vm9, %v4955_v36  ;;  %v4445_v37 = vpop.permute.xlu1 %4444  ;;  %v5098_v61 = vld [vmem:[#allocation5 + $0x220] sm:$0xff]  ;;  %v5097_v51 = vld [vmem:[#allocation5 + $0x218] sm:$0xff] }
 0x538   :  { %4481 = vst.msk [vmem:[#allocation5 + $0x288] sm:$0xff] %vm3187_vm7, %v4445_v37  ;;  %5689 = vmatprep.mubr.f32.mxu0 %v5098_v61  ;;  %7345 = vmatmul.mubr.msk.f32.gmra.mrb[84].mxu1 %vm2654_vm5, %v5057_v32 }
 0x539   :  { %4577 = vst.msk [vmem:[#allocation5 + $0x288] sm:$0xff] %vm3284_vm8, %v10672_v14  ;;  %5690 = vmatmul.mubr.f32.gmra.mrb[42].mxu0 %v5097_v51  ;;  %7347 = vmatprep.mubr.msk.f32.mxu1 %vm2654_vm5, %v5064_v16 }
 0x53a   :  { %v4861_v30 = vpop.permute.xlu0 %4860 }
 0x53b   :  { %4897 = vst.msk [vmem:[#allocation5 + $0x290] sm:$0xff] %vm3284_vm8, %v4861_v30  ;;  %v4637_v24 = vpop.permute.xlu1 %4636 }
 0x53c   :  { %4993 = vst.msk [vmem:[#allocation5 + $0x290] sm:$0xff] %vm3381_vm9, %v10617_v25  ;;  %4673 = vst.msk [vmem:[#allocation5 + $0x288] sm:$0xff] %vm3381_vm9, %v4637_v24  ;;  %7348 = vmatmul.mubr.msk.f32.gmra.mrb[86].mxu1 %vm2654_vm5, %v5071_v26  ;;  %v5104_v56 = vld [vmem:[#allocation5 + $0x250] sm:$0xff] }
 0x53d   :  { %7350 = vmatprep.mubr.msk.f32.mxu1 %vm2654_vm5, %v5078_v38 }
 0x53e   :  { %v4773_v46 = vpop.permute.xlu0 %4772  ;;  %v5105_v14 = vld [vmem:[#allocation5 + $0x258] sm:$0xff] }
 0x53f   :  { %4805 = vst.msk [vmem:[#allocation5 + $0x370] sm:$0xff] %vm3187_vm7, %v4773_v46  ;;  %v4643_v43 = vpop.permute.xlu1 %4642  ;;  %5694 = vmatprep.mubr.f32.mxu0 %v5105_v14 }
 0x540   :  { %5695 = vmatmul.mubr.f32.gmra.mrb[44].mxu0 %v5104_v56  ;;  %7351 = vmatmul.mubr.msk.f32.gmra.mrb[88].mxu1 %vm2654_vm5, %v5085_v10 }
 0x541   :  { %7353 = vmatprep.mubr.msk.f32.mxu1 %vm2654_vm5, %v5092_v11 }
 0x542   :  { %v4767_v25 = vpop.permute.xlu0 %4766 }
 0x543   :  { %4802 = vst.msk [vmem:[#allocation5 + $0x2c8] sm:$0xff] %vm3187_vm7, %v4767_v25  ;;  %v4543_v55 = vpop.permute.xlu1 %4542  ;;  %v5112_v22 = vld [vmem:[#allocation5 + $0x290] sm:$0xff]  ;;  %v5111_v21 = vld [vmem:[#allocation5 + $0x288] sm:$0xff] }
 0x544   :  { %4898 = vst.msk [vmem:[#allocation5 + $0x2c8] sm:$0xff] %vm3284_vm8, %v10626_v33  ;;  %4578 = vst.msk [vmem:[#allocation5 + $0x2c0] sm:$0xff] %vm3284_vm8, %v4543_v55  ;;  %5699 = vmatprep.mubr.f32.mxu0 %v5112_v22  ;;  %7354 = vmatmul.mubr.msk.f32.gmra.mrb[90].mxu1 %vm2654_vm5, %v5099_v52  ;;  %v5120_v33 = vld [vmem:[#allocation5 + $0x2d0] sm:$0xff] }
 0x545   :  { %4674 = vst.msk [vmem:[#allocation5 + $0x2c0] sm:$0xff] %vm3381_vm9, %v10686_v39  ;;  %5700 = vmatmul.mubr.f32.gmra.mrb[46].mxu0 %v5111_v21  ;;  %7356 = vmatprep.mubr.msk.f32.mxu1 %vm2654_vm5, %v5106_v35 }
 0x546   :  { %v4959_v12 = vpop.permute.xlu0 %4958 }
 0x547   :  { %4994 = vst.msk [vmem:[#allocation5 + $0x2c8] sm:$0xff] %vm3381_vm9, %v4959_v12  ;;  %v4449_v58 = vpop.permute.xlu1 %4448 }
 0x548   :  { %4483 = vst.msk [vmem:[#allocation5 + $0x2f8] sm:$0xff] %vm3187_vm7, %v4449_v58  ;;  %7357 = vmatmul.mubr.msk.f32.gmra.mrb[92].mxu1 %vm2654_vm5, %v5113_v0 }
 0x549   :  { %4579 = vst.msk [vmem:[#allocation5 + $0x2f8] sm:$0xff] %vm3284_vm8, %v10693_v5  ;;  %7359 = vmatprep.mubr.msk.f32.mxu1 %vm2654_vm5, %v5120_v33 }
 0x54a   :  { %v4865_v40 = vpop.permute.xlu0 %4864 }
 0x54b   :  { %4899 = vst.msk [vmem:[#allocation5 + $0x300] sm:$0xff] %vm3284_vm8, %v4865_v40  ;;  %v4641_v39 = vpop.permute.xlu1 %4640 }
 0x54c   :  { %4995 = vst.msk [vmem:[#allocation5 + $0x300] sm:$0xff] %vm3381_vm9, %v10640_v47  ;;  %4675 = vst.msk [vmem:[#allocation5 + $0x2f8] sm:$0xff] %vm3381_vm9, %v4641_v39  ;;  %7360 = vmatmul.mubr.msk.f32.gmra.mrb[94].mxu1 %vm2654_vm5, %v5127_v45  ;;  %v5118_v41 = vld [vmem:[#allocation5 + $0x2c0] sm:$0xff] }
 0x54d   :  { %7362 = vmatprep.mubr.msk.f32.mxu1 %vm2654_vm5, %v5134_v2 }
 0x54e   :  { %v4771_v3 = vpop.permute.xlu0 %4770  ;;  %v5119_v27 = vld [vmem:[#allocation5 + $0x2c8] sm:$0xff] }
 0x54f   :  { %4804 = vst.msk [vmem:[#allocation5 + $0x338] sm:$0xff] %vm3187_vm7, %v4771_v3  ;;  %v4547_v5 = vpop.permute.xlu1 %4546  ;;  %5704 = vmatprep.mubr.f32.mxu0 %v5119_v27 }
 0x550   :  { %4900 = vst.msk [vmem:[#allocation5 + $0x338] sm:$0xff] %vm3284_vm8, %v10646_v13  ;;  %4580 = vst.msk [vmem:[#allocation5 + $0x330] sm:$0xff] %vm3284_vm8, %v4547_v5  ;;  %5705 = vmatmul.mubr.f32.gmra.mrb[48].mxu0 %v5118_v41  ;;  %7363 = vmatmul.mubr.msk.f32.gmra.mrb[96].mxu1 %vm2654_vm5, %v5141_v28 }
 0x551   :  { %4676 = vst.msk [vmem:[#allocation5 + $0x330] sm:$0xff] %vm3381_vm9, %v4643_v43 }
 0x552   :  { %v4963_v47 = vpop.permute.xlu0 %4962 }
 0x553   :  { %4996 = vst.msk [vmem:[#allocation5 + $0x338] sm:$0xff] %vm3381_vm9, %v4963_v47  ;;  %v4453_v54 = vpop.permute.xlu1 %4452  ;;  %v5126_v44 = vld [vmem:[#allocation5 + $0x300] sm:$0xff]  ;;  %v5125_v59 = vld [vmem:[#allocation5 + $0x2f8] sm:$0xff] }
 0x554   :  { %4485 = vst.msk [vmem:[#allocation5 + $0x368] sm:$0xff] %vm3187_vm7, %v4453_v54  ;;  %5709 = vmatprep.mubr.f32.mxu0 %v5126_v44 }
 0x555   :  { %5710 = vmatmul.mubr.f32.gmra.mrb[50].mxu0 %v5125_v59 }
 0x556   :  { %v4869_v57 = vpop.permute.xlu0 %4868 }
 0x557   :  { %4901 = vst.msk [vmem:[#allocation5 + $0x370] sm:$0xff] %vm3284_vm8, %v4869_v57  ;;  %v4549_v13 = vpop.permute.xlu1 %4548  ;;  %v7125_v18 = vpop.f32.mrb[24].mxu0 }
 0x558   :  { %4581 = vst.msk [vmem:[#allocation5 + $0x368] sm:$0xff] %vm3284_vm8, %v4549_v13  ;;  %v7126_v1 = vpop.f32.mrb[25].mxu0  ;;  %v5132_v42 = vld [vmem:[#allocation5 + $0x330] sm:$0xff] }
 0x559   :  { %v10813_v48 = vadd.f32 %v7126_v1, %v7125_v18 }
 0x55a   :  { %v4965_v50 = vpop.permute.xlu0 %4964  ;;  %v5133_v23 = vld [vmem:[#allocation5 + $0x338] sm:$0xff] }
 0x55b   :  { %4997 = vst.msk [vmem:[#allocation5 + $0x370] sm:$0xff] %vm3381_vm9, %v4965_v50  ;;  %v4645_v53 = vpop.permute.xlu1 %4644  ;;  %5714 = vmatprep.mubr.f32.mxu0 %v5133_v23 }
 0x55c   :  { %4677 = vst.msk [vmem:[#allocation5 + $0x368] sm:$0xff] %vm3381_vm9, %v4645_v53  ;;  %v7128_v31 = vpop.f32.mrb[26].mxu0  ;;  %5715 = vmatmul.mubr.f32.gmra.mrb[52].mxu0 %v5132_v42 }
 0x55d   :  { %v7129_v19 = vpop.f32.mrb[27].mxu0 }
 0x55e   :  { %v7130_v4 = vadd.f32 %v7129_v19, %v7128_v31 }
 0x562   :  { %v5140_v7 = vld [vmem:[#allocation5 + $0x370] sm:$0xff] }
 0x563   :  { %5719 = vmatprep.mubr.f32.mxu0 %v5140_v7  ;;  %v5139_v63 = vld [vmem:[#allocation5 + $0x368] sm:$0xff] }
 0x564   :  { %v7131_v8 = vpop.f32.mrb[28].mxu0  ;;  %5720 = vmatmul.mubr.f32.gmra.mrb[54].mxu0 %v5139_v63 }
 0x565   :  { %v7132_v62 = vpop.f32.mrb[29].mxu0 }
 0x566   :  { %v10817_v29 = vadd.f32 %v7132_v62, %v7131_v8  ;;  %v6272_v62 = vld [vmem:[%s11456_s3 + $0x180] sm:$0xff] }
 0x56b   :  { %v7134_v36 = vpop.f32.mrb[30].mxu0 }
 0x56c   :  { %v7135_v37 = vpop.f32.mrb[31].mxu0 }
 0x56d   :  { %v10819_v61 = vadd.f32 %v7135_v37, %v7134_v36  ;;  %v6275_v37 = vld [vmem:[%s11456_s3 + $0x198] sm:$0xff] }
 0x574   :  { %v7137_v32 = vpop.f32.mrb[32].mxu0 }
 0x575   :  { %v7138_v51 = vpop.f32.mrb[33].mxu0 }
 0x576   :  { %v10821_v16 = vadd.f32 %v7138_v51, %v7137_v32 }
 0x57a   :  { %v7140_v30 = vpop.f32.mrb[34].mxu0 }
 0x57b   :  { %v7141_v24 = vpop.f32.mrb[35].mxu0 }
 0x57c   :  { %v10823_v26 = vadd.f32 %v7141_v24, %v7140_v30 }
 0x585   :  { %v7143_v38 = vpop.f32.mrb[36].mxu0 }
 0x586   :  { %v7144_v46 = vpop.f32.mrb[37].mxu0 }
 0x587   :  { %v10825_v14 = vadd.f32 %v7144_v46, %v7143_v38  ;;  %v6258_v38 = vld [vmem:[%s11456_s3 + $0x110] sm:$0xff]  ;;  %v6259_v46 = vld [vmem:[%s11456_s3 + $0x118] sm:$0xff] }
 0x58b   :  { %v7146_v43 = vpop.f32.mrb[38].mxu0 }
 0x58c   :  { %v7147_v56 = vpop.f32.mrb[39].mxu0 }
 0x58d   :  { %v10827_v10 = vadd.f32 %v7147_v56, %v7146_v43  ;;  %v6276_v43 = vld [vmem:[%s11456_s3 + $0x1a0] sm:$0xff] }
 0x59d   :  { %v6989_v11 = vpop.f32.mrb[34].mxu1 }
 0x59e   :  { %v6990_v25 = vpop.f32.mrb[35].mxu1 }
 0x59f   :  { %v10829_v55 = vadd.f32 %v6990_v25, %v6989_v11 }
 0x5a4   :  { %v6992_v22 = vpop.f32.mrb[36].mxu1 }
 0x5a5   :  { %v6993_v52 = vpop.f32.mrb[37].mxu1 }
 0x5a6   :  { %v10831_v21 = vadd.f32 %v6993_v52, %v6992_v22  ;;  %v7657_v22 = vpack.c.bf16 %v6259_v46, %v6258_v38  ;;  %v6260_v52 = vld [vmem:[%s11456_s3 + $0x120] sm:$0xff] }
 0x5a9   :  { %v6995_v35 = vpop.f32.mrb[38].mxu1 }
 0x5aa   :  { %v6996_v12 = vpop.f32.mrb[39].mxu1 }
 0x5ab   :  { %v10833_v58 = vadd.f32 %v6996_v12, %v6995_v35  ;;  %v6261_v35 = vld [vmem:[%s11456_s3 + $0x128] sm:$0xff] }
 0x5b0   :  { %v6998_v0 = vpop.f32.mrb[40].mxu1 }
 0x5b1   :  { %v6999_v33 = vpop.f32.mrb[41].mxu1 }
 0x5b2   :  { %v10835_v40 = vadd.f32 %v6999_v33, %v6998_v0  ;;  %v6278_v0 = vld [vmem:[%s11456_s3 + $0x1b0] sm:$0xff]  ;;  %v6241_v33 = vld [vmem:[%s11456_s3 + $0x88] sm:$0xff] }
 0x5b5   :  { %v7001_v39 = vpop.f32.mrb[42].mxu1 }
 0x5b6   :  { %v7002_v45 = vpop.f32.mrb[43].mxu1 }
 0x5b7   :  { %v10837_v2 = vadd.f32 %v7002_v45, %v7001_v39 }
 0x5b9   :  { %v7004_v3 = vpop.f32.mrb[44].mxu1 }
 0x5ba   :  { %v7005_v27 = vpop.f32.mrb[45].mxu1 }
 0x5bb   :  { %v10839_v5 = vadd.f32 %v7005_v27, %v7004_v3  ;;  %v6279_v3 = vld [vmem:[%s11456_s3 + $0x1b8] sm:$0xff] }
 0x5bd   :  { %v7007_v41 = vpop.f32.mrb[46].mxu1 }
 0x5be   :  { %v7008_v28 = vpop.f32.mrb[47].mxu1 }
 0x5bf   :  { %v10841_v47 = vadd.f32 %v7008_v28, %v7007_v41  ;;  %v6224_v41 = vld [vmem:[%s11456_s3] sm:$0xff]  ;;  %v6225_v28 = vld [vmem:[%s11456_s3 + $0x8] sm:$0xff] }
 0x5c3   :  { %v7010_v54 = vpop.f32.mrb[48].mxu1 }
 0x5c4   :  { %v7011_v44 = vpop.f32.mrb[49].mxu1 }
 0x5c5   :  { %v10843_v59 = vadd.f32 %v7011_v44, %v7010_v54  ;;  %v6262_v44 = vld [vmem:[%s11456_s3 + $0x130] sm:$0xff] }
 0x5c7   :  { %v7045_v57 = vpop.f32.mrb[50].mxu1 }
 0x5c8   :  { %v7046_v13 = vpop.f32.mrb[51].mxu1 }
 0x5c9   :  { %v7047_v18 = vadd.f32 %v7046_v13, %v7045_v57  ;;  %v6242_v57 = vld [vmem:[%s11456_s3 + $0x90] sm:$0xff]  ;;  %v6243_v13 = vld [vmem:[%s11456_s3 + $0x98] sm:$0xff] }
 0x5cb   :  { %v5502_v1 = vadd.f32 %v7047_v18, %v10701_v6  ;;  %v7048_v50 = vpop.f32.mrb[52].mxu1  ;;  %v6273_v6 = vld [vmem:[%s11456_s3 + $0x188] sm:$0xff] }
 0x5cc   :  { %v7049_v23 = vpop.f32.mrb[53].mxu1  ;;  %v7651_v36 = vpack.c.bf16 %v6273_v6, %v6272_v62  ;;  %v6245_v62 = vld [vmem:[%s11456_s3 + $0xa8] sm:$0xff] }
 0x5cd   :  { %v7050_v53 = vadd.f32 %v7049_v23, %v7048_v50  ;;  %v10847_v42 = vadd.f32 %v10813_v48, %v5502_v1  ;;  %v6256_v48 = vld [vmem:[%s11456_s3 + $0x100] sm:$0xff]  ;;  %v7661_v50 = vpack.c.bf16 %v6261_v35, %v6260_v52  ;;  %v6263_v23 = vld [vmem:[%s11456_s3 + $0x138] sm:$0xff] }
 0x5ce   :  { %7652 = vmatprep.subr.bf16.mxu0 %v7651_v36  ;;  %v6281_v36 = vld [vmem:[%s11456_s3 + $0x1c8] sm:$0xff]  ;;  %v7665_v46 = vpack.c.bf16 %v6263_v23, %v6262_v44  ;;  %v6283_v35 = vld [vmem:[%s11456_s3 + $0x1d8] sm:$0xff] }
 0x5cf   :  { %v5507_v31 = vadd.f32 %v7050_v53, %v10711_v60  ;;  %v7051_v19 = vpop.f32.mrb[54].mxu1  ;;  %v6257_v60 = vld [vmem:[%s11456_s3 + $0x108] sm:$0xff]  ;;  %v6280_v53 = vld [vmem:[%s11456_s3 + $0x1c0] sm:$0xff] }
 0x5d0   :  { %v7052_v7 = vpop.f32.mrb[55].mxu1  ;;  %v7653_v30 = vpack.c.bf16 %v6257_v60, %v6256_v48 }
 0x5d1   :  { %v7053_v8 = vadd.f32 %v7052_v7, %v7051_v19  ;;  %v10850_v63 = vadd.f32 %v7130_v4, %v5507_v31  ;;  %v6274_v4 = vld [vmem:[%s11456_s3 + $0x190] sm:$0xff]  ;;  %v7663_v19 = vpack.c.bf16 %v6279_v3, %v6278_v0  ;;  %v6227_v7 = vld [vmem:[%s11456_s3 + $0x18] sm:$0xff] }
 0x5d2   :  { %v7655_v24 = vpack.c.bf16 %v6275_v37, %v6274_v4  ;;  %7654 = vmatpush3.bf16.msra.mxu0 %v7653_v30  ;;  %v6226_v31 = vld [vmem:[%s11456_s3 + $0x10] sm:$0xff]  ;;  %v6228_v37 = vld [vmem:[%s11456_s3 + $0x20] sm:$0xff]  ;;  %v6247_v30 = vld [vmem:[%s11456_s3 + $0xb8] sm:$0xff] }
 0x5d3   :  { %v5512_v32 = vadd.f32 %v7053_v8, %v10715_v34  ;;  %v7054_v51 = vpop.f32.mrb[56].mxu1  ;;  %v6277_v34 = vld [vmem:[%s11456_s3 + $0x1a8] sm:$0xff]  ;;  %v6244_v8 = vld [vmem:[%s11456_s3 + $0xa0] sm:$0xff]  ;;  %v7625_v60 = vpack.c.bf16 %v6227_v7, %v6226_v31  ;;  %v6267_v3 = vld [vmem:[%s11456_s3 + $0x158] sm:$0xff] }
 0x5d4   :  { %v7055_v56 = vpop.f32.mrb[57].mxu1  ;;  %7656 = vmatprep.subr.bf16.mxu0 %v7655_v24  ;;  %v7659_v12 = vpack.c.bf16 %v6277_v34, %v6276_v43  ;;  %v7627_v4 = vpack.c.bf16 %v6245_v62, %v6244_v8  ;;  %v7667_v43 = vpack.c.bf16 %v6281_v36, %v6280_v53  ;;  %v6265_v34 = vld [vmem:[%s11456_s3 + $0x148] sm:$0xff] }
 0x5d5   :  { %v7056_v11 = vadd.f32 %v7055_v56, %v7054_v51  ;;  %v10884_v25 = vadd.f32 %v10817_v29, %v5512_v32  ;;  %v6240_v29 = vld [vmem:[%s11456_s3 + $0x80] sm:$0xff]  ;;  %v6229_v32 = vld [vmem:[%s11456_s3 + $0x28] sm:$0xff] }
 0x5d6   :  { %v7619_v27 = vpack.c.bf16 %v6241_v33, %v6240_v29  ;;  %7658 = vmatpush3.bf16.msra.mxu0 %v7657_v22  ;;  %v6264_v56 = vld [vmem:[%s11456_s3 + $0x140] sm:$0xff] }
 0x5d7   :  { %v5517_v39 = vadd.f32 %v7056_v11, %v10727_v20  ;;  %v7057_v45 = vpop.f32.mrb[58].mxu1  ;;  %v7621_v20 = vpack.c.bf16 %v6225_v28, %v6224_v41  ;;  %7660 = vmatprep.subr.bf16.mxu0 %v7659_v12  ;;  %v7629_v11 = vpack.c.bf16 %v6229_v32, %v6228_v37 }
 0x5d8   :  { %v7058_v54 = vpop.f32.mrb[59].mxu1  ;;  %7620 = vmatprep.subr.bf16.mxu1 %v7619_v27 }
 0x5d9   :  { %v7059_v18 = vadd.f32 %v7058_v54, %v7057_v45  ;;  %v10921_v1 = vadd.f32 %v10819_v61, %v5517_v39  ;;  %7622 = vmatpush3.bf16.msra.mxu1 %v7621_v20  ;;  %v7623_v61 = vpack.c.bf16 %v6243_v13, %v6242_v57  ;;  %v7669_v39 = vpack.c.bf16 %v6265_v34, %v6264_v56  ;;  %v6266_v45 = vld [vmem:[%s11456_s3 + $0x150] sm:$0xff] }
 0x5da   :  { %7662 = vmatpush3.bf16.msra.mxu0 %v7661_v50  ;;  %v7673_v44 = vpack.c.bf16 %v6267_v3, %v6266_v45 }
 0x5db   :  { %v5522_v6 = vadd.f32 %v7059_v18, %v10731_v17  ;;  %v7060_v48 = vpop.f32.mrb[60].mxu1  ;;  %7624 = vmatprep.subr.bf16.mxu1 %v7623_v61  ;;  %v6246_v17 = vld [vmem:[%s11456_s3 + $0xb0] sm:$0xff]  ;;  %7664 = vmatprep.subr.bf16.mxu0 %v7663_v19 }
 0x5dc   :  { %v7061_v51 = vpop.f32.mrb[61].mxu1  ;;  %v7631_v12 = vpack.c.bf16 %v6247_v30, %v6246_v17 }
 0x5dd   :  { %v7062_v24 = vadd.f32 %v7061_v51, %v7060_v48  ;;  %v10958_v38 = vadd.f32 %v10821_v16, %v5522_v6  ;;  %7626 = vmatpush3.bf16.msra.mxu1 %v7625_v60  ;;  %v6282_v16 = vld [vmem:[%s11456_s3 + $0x1d0] sm:$0xff] }
 0x5de   :  { %7628 = vmatprep.subr.bf16.mxu1 %v7627_v4  ;;  %7666 = vmatpush3.bf16.msra.mxu0 %v7665_v46 }
 0x5df   :  { %v5527_v22 = vadd.f32 %v7062_v24, %v10735_v15  ;;  %v7063_v52 = vpop.f32.mrb[62].mxu1  ;;  %7668 = vmatprep.subr.bf16.mxu0 %v7667_v43  ;;  %v7671_v15 = vpack.c.bf16 %v6283_v35, %v6282_v16 }
 0x5e0   :  { %v7064_v0 = vpop.f32.mrb[63].mxu1 }
 0x5e1   :  { %v7065_v29 = vadd.f32 %v7064_v0, %v7063_v52  ;;  %v10974_v33 = vadd.f32 %v10823_v26, %v5527_v22  ;;  %7630 = vmatpush3.bf16.msra.mxu1 %v7629_v11 }
 0x5e2   :  { %7632 = vmatprep.subr.bf16.mxu1 %v7631_v12  ;;  %7670 = vmatpush3.bf16.msra.mxu0 %v7669_v39 }
 0x5e3   :  { %v5532_v27 = vadd.f32 %v7065_v29, %v10741_v49  ;;  %v7066_v41 = vpop.f32.mrb[64].mxu1  ;;  %7672 = vmatprep.subr.bf16.mxu0 %v7671_v15 }
 0x5e4   :  { %v7067_v28 = vpop.f32.mrb[65].mxu1 }
 0x5e5   :  { %v7068_v26 = vadd.f32 %v7067_v28, %v7066_v41  ;;  %v10984_v54 = vadd.f32 %v10825_v14, %v5532_v27 }
 0x5e6   :  { %7674 = vmatpush3.bf16.msra.mxu0 %v7673_v44 }
 0x5e7   :  { %v5537_v20 = vadd.f32 %v7068_v26, %v10749_v9  ;;  %v7069_v57 = vpop.f32.mrb[66].mxu1  ;;  %v7944_v26 = vmov 1983009808  }
 0x5e8   :  { %v7070_v13 = vpop.f32.mrb[67].mxu1  ;;  %v5883_v44 = vunpack.c.l.s4 %v7944_v26 }
 0x5e9   :  { %v7071_v18 = vadd.f32 %v7070_v13, %v7069_v57  ;;  %v5682_v50 = vadd.f32 %v10827_v10, %v5537_v20 }
 0x5eb   :  { %v5542_v49 = vadd.f32 %v7071_v18, %v10829_v55  ;;  %v7072_v23 = vpop.f32.mrb[68].mxu1 }
 0x5ec   :  { %v7073_v53 = vpop.f32.mrb[69].mxu1 }
 0x5ed   :  { %v7074_v31 = vadd.f32 %v7073_v53, %v7072_v23  ;;  %v11540_v23 = vlaneseq }
 0x5ef   :  { %v5547_v19 = vadd.f32 %v7074_v31, %v10831_v21  ;;  %v7075_v14 = vpop.f32.mrb[70].mxu1  ;;  %v5886_v53 = vshrl.u32 %v11540_v23, 7 }
 0x5f0   :  { %v7076_v61 = vpop.f32.mrb[71].mxu1 }
 0x5f1   :  { %v7077_v7 = vadd.f32 %v7076_v61, %v7075_v14  ;;  %v5884_v14 = vunpack.c.0.s8 %v5883_v44 }
 0x5f3   :  { %v10991_v8 = vadd.f32 %v7077_v7, %v10833_v58  ;;  %v7078_v9 = vpop.f32.mrb[72].mxu1 }
 0x5f4   :  { %v7079_v62 = vpop.f32.mrb[73].mxu1 }
 0x5f5   :  { %v7080_v6 = vadd.f32 %v7079_v62, %v7078_v9 }
 0x5f7   :  { %v10994_v48 = vadd.f32 %v7080_v6, %v10835_v40  ;;  %v7081_v10 = vpop.f32.mrb[74].mxu1 }
 0x5f8   :  { %v7082_v36 = vpop.f32.mrb[75].mxu1 }
 0x5f9   :  { %v7083_v55 = vadd.f32 %v7082_v36, %v7081_v10 }
 0x5fb   :  { %v10997_v60 = vadd.f32 %v7083_v55, %v10837_v2  ;;  %v7084_v4 = vpop.f32.mrb[76].mxu1  ;;  %v11019_v55 = vsub.s32 %v5884_v14, %v5886_v53 }
 0x5fc   :  { %v7085_v21 = vpop.f32.mrb[77].mxu1 }
 0x5fd   :  { %v7086_v37 = vadd.f32 %v7085_v21, %v7084_v4 }
 0x5ff   :  { %v11000_v32 = vadd.f32 %v7086_v37, %v10839_v5  ;;  %v7087_v58 = vpop.f32.mrb[78].mxu1 }
 0x600   :  { %v7088_v51 = vpop.f32.mrb[79].mxu1 }
 0x601   :  { %v7089_v17 = vadd.f32 %v7088_v51, %v7087_v58 }
 0x603   :  { %v11003_v30 = vadd.f32 %v7089_v17, %v10841_v47  ;;  %v7090_v40 = vpop.f32.mrb[80].mxu1 }
 0x604   :  { %v7091_v24 = vpop.f32.mrb[81].mxu1 }
 0x605   :  { %v7092_v46 = vadd.f32 %v7091_v24, %v7090_v40 }
 0x607   :  { %v11006_v43 = vadd.f32 %v7092_v46, %v10843_v59  ;;  %v7149_v2 = vpop.f32.mrb[40].mxu0  ;;  %v7343_v56 = vpop.f32.mrb[82].mxu1 }
 0x608   :  { %v5797_v34 = vadd.f32 %v7343_v56, %v10850_v63  ;;  %v7150_v11 = vpop.f32.mrb[41].mxu0  ;;  %v5791_v22 = vpop.f32.mrb[83].mxu1 }
 0x609   :  { %v7151_v5 = vadd.f32 %v7150_v11, %v7149_v2  ;;  %v5792_v52 = vadd.f32 %v5791_v22, %v10847_v42  ;;  %v6231_v22 = vld [vmem:[%s11456_s3 + $0x38] sm:$0xff] }
 0x60b   :  { %v5870_v16 = vmax.f32 %v5792_v52, %v5797_v34  ;;  %v7346_v35 = vpop.f32.mrb[84].mxu1  ;;  %v5687_v12 = vadd.f32 %v7151_v5, %v5542_v49 }
 0x60c   :  { %v5807_v47 = vadd.f32 %v7346_v35, %v10921_v1  ;;  %v7152_v0 = vpop.f32.mrb[42].mxu0  ;;  %v5801_v29 = vpop.f32.mrb[85].mxu1 }
 0x60d   :  { %v5802_v39 = vadd.f32 %v5801_v29, %v10884_v25  ;;  %v7153_v59 = vpop.f32.mrb[43].mxu0  ;;  %v5874_v42 = vrot.slane %v5870_v16, 1 }
 0x60e   :  { %v7154_v15 = vadd.f32 %v7153_v59, %v7152_v0  ;;  %v6249_v59 = vld [vmem:[%s11456_s3 + $0xc8] sm:$0xff] }
 0x60f   :  { %v5964_v45 = vmax.f32 %v5802_v39, %v5807_v47  ;;  %v7349_v3 = vpop.f32.mrb[86].mxu1  ;;  %v5878_v31 = vmax.f32 %v5870_v16, %v5874_v42  ;;  %v6248_v39 = vld [vmem:[%s11456_s3 + $0xc0] sm:$0xff] }
 0x610   :  { %v5817_v63 = vadd.f32 %v7349_v3, %v10974_v33  ;;  %v5811_v27 = vpop.f32.mrb[87].mxu1  ;;  %v5692_v41 = vadd.f32 %v7154_v15, %v5547_v19  ;;  %v6232_v15 = vld [vmem:[%s11456_s3 + $0x40] sm:$0xff] }
 0x611   :  { %v5812_v28 = vadd.f32 %v5811_v27, %v10958_v38  ;;  %v5968_v13 = vrot.slane %v5964_v45, 1  ;;  %v5926_v4 = vcombine.high %v5878_v31, %v5878_v31  ;;  %v5888_v2 = vrot.slane %v5878_v31, %v11019_v55 }
 0x612   :  { %v7635_v27 = vpack.c.bf16 %v6249_v59, %v6248_v39 }
 0x613   :  { %v6050_v20 = vmax.f32 %v5812_v28, %v5817_v63  ;;  %v7155_v57 = vpop.f32.mrb[44].mxu0  ;;  %v7352_v1 = vpop.f32.mrb[88].mxu1  ;;  %v5972_v7 = vmax.f32 %v5964_v45, %v5968_v13  ;;  %v11024_v56 = vrot.slane %v5926_v4, %v11019_v55  ;;  %v5912_v45 = vcombine.high %v5888_v2, %v5888_v2  ;;  %v6285_v13 = vld [vmem:[%s11456_s3 + $0x1e8] sm:$0xff] }
 0x614   :  { %v5827_v18 = vadd.f32 %v7352_v1, %v5682_v50  ;;  %v7156_v49 = vpop.f32.mrb[45].mxu0  ;;  %v5821_v25 = vpop.f32.mrb[89].mxu1  ;;  %v6284_v1 = vld [vmem:[%s11456_s3 + $0x1e0] sm:$0xff] }
 0x615   :  { %v7157_v61 = vadd.f32 %v7156_v49, %v7155_v57  ;;  %v5822_v33 = vadd.f32 %v5821_v25, %v10984_v54  ;;  %v6012_v51 = vcombine.high %v5972_v7, %v5972_v7  ;;  %v6054_v40 = vrot.slane %v6050_v20, 1 }
 0x616   :  { %v11035_v5 = vrot.slane %v5972_v7, %v11019_v55  ;;  %v5951_v3 = vcombine.high %v11024_v56, %v11024_v56  ;;  %v7675_v31 = vpack.c.bf16 %v6285_v13, %v6284_v1  ;;  %v6268_v1 = vld [vmem:[%s11456_s3 + $0x160] sm:$0xff]  ;;  %v6269_v13 = vld [vmem:[%s11456_s3 + $0x168] sm:$0xff] }
 0x617   :  { %v7355_v19 = vpop.f32.mrb[90].mxu1  ;;  %v11016_v38 = vmax.f32 %v5822_v33, %v5827_v18  ;;  %v5697_v10 = vadd.f32 %v7157_v61, %v10991_v8  ;;  %v11038_v52 = vrot.slane %v6012_v51, %v11019_v55  ;;  %v11040_v47 = vmax.f32 %v6050_v20, %v6054_v40 }
 0x618   :  { %v5837_v9 = vadd.f32 %v7355_v19, %v5692_v41  ;;  %v7158_v62 = vpop.f32.mrb[46].mxu0  ;;  %v5831_v6 = vpop.f32.mrb[91].mxu1  ;;  %v6233_v41 = vld [vmem:[%s11456_s3 + $0x48] sm:$0xff]  ;;  %v5999_v18 = vcombine.high %v11035_v5, %v11035_v5  ;;  %7676 = vmatprep.subr.bf16.mxu0 %v7675_v31 }
 0x619   :  { %v5832_v36 = vadd.f32 %v5831_v6, %v5687_v12  ;;  %v7159_v50 = vpop.f32.mrb[47].mxu0  ;;  %v7637_v57 = vpack.c.bf16 %v6233_v41, %v6232_v15  ;;  %v6037_v49 = vcombine.high %v11038_v52, %v11038_v52  ;;  %v6098_v14 = vcombine.high %v11040_v47, %v11040_v47 }
 0x61a   :  { %v7160_v21 = vadd.f32 %v7159_v50, %v7158_v62 }
 0x61b   :  { %v5871_v37 = vmax.f32 %v5832_v36, %v5837_v9  ;;  %v7358_v58 = vpop.f32.mrb[92].mxu1 }
 0x61c   :  { %v5702_v54 = vadd.f32 %v7160_v21, %v10994_v48  ;;  %v5841_v17 = vpop.f32.mrb[93].mxu1  ;;  %v6230_v48 = vld [vmem:[%s11456_s3 + $0x30] sm:$0xff] }
 0x61d   :  { %v5875_v24 = vrot.slane %v5871_v37, 1  ;;  %v5842_v46 = vadd.f32 %v5841_v17, %v5697_v10  ;;  %v7633_v12 = vpack.c.bf16 %v6231_v22, %v6230_v48 }
 0x61e   :  { %v5847_v8 = vadd.f32 %v7358_v58, %v5702_v54 }
 0x61f   :  { %v5879_v34 = vmax.f32 %v5871_v37, %v5875_v24  ;;  %v11026_v11 = vpop.f32.mrb[94].mxu1  ;;  %7634 = vmatpush3.bf16.msra.mxu1 %v7633_v12 }
 0x620   :  { %v5965_v16 = vmax.f32 %v5842_v46, %v5847_v8  ;;  %v5851_v35 = vpop.f32.mrb[95].mxu1  ;;  %7636 = vmatprep.subr.bf16.mxu1 %v7635_v27 }
 0x621   :  { %v5895_v0 = vrot.slane %v5879_v34, %v11019_v55  ;;  %v5934_v29 = vcombine.high %v5879_v34, %v5879_v34 }
 0x622   :  { %v5969_v63 = vrot.slane %v5965_v16, 1 }
 0x623   :  { %v5900_v28 = vrot.slane %v5895_v0, 7  ;;  %v5913_v42 = vcombine.high %v5895_v0, %v5895_v0  ;;  %v5941_v26 = vrot.slane %v5934_v29, %v11019_v55  ;;  %v7161_v44 = vpop.f32.mrb[48].mxu0  ;;  %v11058_v20 = vpop.f32.mrb[96].mxu1  ;;  %7638 = vmatpush3.bf16.msra.mxu1 %v7637_v57 }
 0x624   :  { %v5973_v25 = vmax.f32 %v5965_v16, %v5969_v63  ;;  %v7162_v23 = vpop.f32.mrb[49].mxu0  ;;  %v11070_v53 = vpop.f32.mrb[97].mxu1 }
 0x625   :  { %v5916_v61 = vrot.slane %v5913_v42, 7  ;;  %v5952_v33 = vcombine.high %v5941_v26, %v5941_v26  ;;  %v7163_v19 = vadd.f32 %v7162_v23, %v7161_v44  ;;  %v5944_v7 = vrot.slane %v5941_v26, 7  ;;  %v6251_v42 = vld [vmem:[%s11456_s3 + $0xd8] sm:$0xff] }
 0x626   :  { %v5989_v9 = vrot.slane %v5973_v25, %v11019_v55  ;;  %v6020_v62 = vcombine.high %v5973_v25, %v5973_v25  ;;  %v5902_v6 = vsel %vm5901_vm10, %v5900_v28, %v5888_v2 }
 0x627   :  { %v5955_v10 = vrot.slane %v5952_v33, 7  ;;  %v5707_v36 = vadd.f32 %v7163_v19, %v10997_v60  ;;  %v5917_v50 = vsel %vm5901_vm10, %v5916_v61, %v5912_v45  ;;  %v5904_v4 = vsel %vm5903_vm11, %v5900_v28, %v5902_v6  ;;  %v6235_v33 = vld [vmem:[%s11456_s3 + $0x58] sm:$0xff]  ;;  %v6252_v19 = vld [vmem:[%s11456_s3 + $0xe0] sm:$0xff] }
 0x628   :  { %v5992_v21 = vrot.slane %v5989_v9, 7  ;;  %v6000_v37 = vcombine.high %v5989_v9, %v5989_v9  ;;  %v6027_v58 = vrot.slane %v6020_v62, %v11019_v55  ;;  %v7164_v51 = vpop.f32.mrb[50].mxu0  ;;  %v5918_v54 = vsel %vm5903_vm11, %v5916_v61, %v5917_v50  ;;  %v6287_v50 = vld [vmem:[%s11456_s3 + $0x1f8] sm:$0xff] }
 0x629   :  { %v5852_v17 = vadd.f32 %v5851_v35, %v5707_v36  ;;  %v7165_v40 = vpop.f32.mrb[51].mxu0  ;;  %v5919_v24 = vsel %vm5905_vm12, %v5916_v61, %v5918_v54  ;;  %v5956_v46 = vsel %vm5901_vm10, %v5955_v10, %v5951_v3  ;;  %v5906_v2 = vsel %vm5905_vm12, %v5900_v28, %v5904_v4  ;;  %v6286_v36 = vld [vmem:[%s11456_s3 + $0x1f0] sm:$0xff] }
 0x62a   :  { %v6003_v60 = vrot.slane %v6000_v37, 7  ;;  %v6030_v8 = vrot.slane %v6027_v58, 7  ;;  %v6038_v34 = vcombine.high %v6027_v58, %v6027_v58  ;;  %v7166_v48 = vadd.f32 %v7165_v40, %v7164_v51  ;;  %v6237_v51 = vld [vmem:[%s11456_s3 + $0x68] sm:$0xff]  ;;  %v6270_v54 = vld [vmem:[%s11456_s3 + $0x170] sm:$0xff] }
 0x62b   :  { %v5920_v22 = vsel %vm5907_vm13, %v5916_v61, %v5919_v24  ;;  %v5957_v16 = vsel %vm5903_vm11, %v5955_v10, %v5956_v46  ;;  %v5908_v12 = vsel %vm5907_vm13, %v5900_v28, %v5906_v2  ;;  %v5945_v35 = vsel %vm5901_vm10, %v5944_v7, %v11024_v56  ;;  %v6250_v28 = vld [vmem:[%s11456_s3 + $0xd0] sm:$0xff] }
 0x62c   :  { %v6041_v0 = vrot.slane %v6038_v34, 7  ;;  %v5712_v29 = vadd.f32 %v7166_v48, %v11000_v32  ;;  %5921 = vrot.lane.b32.xlu0 %v5920_v22, %s7942_s16  ;;  %v5958_v39 = vsel %vm5905_vm12, %v5955_v10, %v5957_v16  ;;  %v6004_v59 = vsel %vm5901_vm10, %v6003_v60, %v5999_v18  ;;  %5911 = vst.msk [vmem:[#allocation6] sm:$0x3] %vm5910_vm14, %v5908_v12  ;;  %v6234_v18 = vld [vmem:[%s11456_s3 + $0x50] sm:$0xff]  ;;  %v6255_v34 = vld [vmem:[%s11456_s3 + $0xf8] sm:$0xff]  ;;  %v6337_v16 = vld [vmem:[%s11456_s3 + $0x388] sm:$0xff] }
 0x62d   :  { %v5959_v15 = vsel %vm5907_vm13, %v5955_v10, %v5958_v39  ;;  %v6005_v45 = vsel %vm5903_vm11, %v6003_v60, %v6004_v59  ;;  %v5946_v3 = vsel %vm5903_vm11, %v5944_v7, %v5945_v35  ;;  %v5993_v56 = vsel %vm5901_vm10, %v5992_v21, %v11035_v5 }
 0x62e   :  { %v5857_v63 = vadd.f32 %v11026_v11, %v5712_v29  ;;  %5960 = vrot.lane.b32.xlu1 %v5959_v15, %s7942_s16  ;;  %v6006_v32 = vsel %vm5905_vm12, %v6003_v60, %v6005_v45  ;;  %v6042_v27 = vsel %vm5901_vm10, %v6041_v0, %v6037_v49  ;;  %v5947_v41 = vsel %vm5905_vm12, %v5944_v7, %v5946_v3  ;;  %v6238_v29 = vld [vmem:[%s11456_s3 + $0x70] sm:$0xff]  ;;  %v6239_v45 = vld [vmem:[%s11456_s3 + $0x78] sm:$0xff]  ;;  %v6305_v3 = vld [vmem:[%s11456_s3 + $0x288] sm:$0xff] }
 0x62f   :  { %v7167_v26 = vpop.f32.mrb[52].mxu0  ;;  %v6007_v5 = vsel %vm5907_vm13, %v6003_v60, %v6006_v32  ;;  %v6043_v11 = vsel %vm5903_vm11, %v6041_v0, %v6042_v27  ;;  %v5948_v44 = vsel %vm5907_vm13, %v5944_v7, %v5947_v41  ;;  %v5994_v57 = vsel %vm5903_vm11, %v5992_v21, %v5993_v56  ;;  %v6253_v7 = vld [vmem:[%s11456_s3 + $0xe8] sm:$0xff]  ;;  %v6254_v60 = vld [vmem:[%s11456_s3 + $0xf0] sm:$0xff] }
 0x630   :  { %v6051_v49 = vmax.f32 %v5852_v17, %v5857_v63  ;;  %6008 = vrot.lane.b32.xlu0 %v6007_v5, %s7942_s16  ;;  %v7168_v25 = vpop.f32.mrb[53].mxu0  ;;  %v6044_v23 = vsel %vm5905_vm12, %v6041_v0, %v6043_v11  ;;  %5950 = vst.msk [vmem:[#allocation6 + $0x2] sm:$0x3] %vm5910_vm14, %v5948_v44  ;;  %v5995_v31 = vsel %vm5905_vm12, %v5992_v21, %v5994_v57  ;;  %v6271_v17 = vld [vmem:[%s11456_s3 + $0x178] sm:$0xff]  ;;  %v6140_v5 = vrot.slane %v11016_v38, 1 }
 0x631   :  { %v6031_v61 = vsel %vm5901_vm10, %v6030_v8, %v11038_v52  ;;  %v7169_v9 = vadd.f32 %v7168_v25, %v7167_v26  ;;  %v6045_v62 = vsel %vm5907_vm13, %v6041_v0, %v6044_v23  ;;  %v5996_v6 = vsel %vm5907_vm13, %v5992_v21, %v5995_v31  ;;  %v6236_v52 = vld [vmem:[%s11456_s3 + $0x60] sm:$0xff] }
 0x632   :  { %v6032_v10 = vsel %vm5903_vm11, %v6030_v8, %v6031_v61  ;;  %v6055_v4 = vrot.slane %v6051_v49, 1  ;;  %6046 = vrot.lane.b32.xlu1 %v6045_v62, %s7942_s16  ;;  %5998 = vst.msk [vmem:[#allocation6 + $0x4] sm:$0x3] %vm5910_vm14, %v5996_v6  ;;  %v7639_v37 = vpack.c.bf16 %v6251_v42, %v6250_v28  ;;  %v7677_v58 = vpack.c.bf16 %v6269_v13, %v6268_v1 }
 0x633   :  { %v6033_v21 = vsel %vm5905_vm12, %v6030_v8, %v6032_v10  ;;  %v5717_v40 = vadd.f32 %v7169_v9, %v11003_v30  ;;  %v7641_v46 = vpack.c.bf16 %v6235_v33, %v6234_v18  ;;  %v7643_v2 = vpack.c.bf16 %v6253_v7, %v6252_v19 }
 0x634   :  { %v6034_v24 = vsel %vm5907_vm13, %v6030_v8, %v6033_v21  ;;  %v6068_v48 = vrot.slane %v11040_v47, %v11019_v55  ;;  %v6059_v22 = vmax.f32 %v6051_v49, %v6055_v4  ;;  %7640 = vmatprep.subr.bf16.mxu1 %v7639_v37  ;;  %7678 = vmatpush3.bf16.msra.mxu0 %v7677_v58  ;;  %v6336_v8 = vld [vmem:[%s11456_s3 + $0x380] sm:$0xff] }
 0x635   :  { %6036 = vst.msk [vmem:[#allocation6 + $0x6] sm:$0x3] %vm5910_vm14, %v6034_v24  ;;  %v7679_v30 = vpack.c.bf16 %v6287_v50, %v6286_v36  ;;  %v5862_v12 = vadd.f32 %v11070_v53, %v5717_v40  ;;  %7642 = vmatpush3.bf16.msra.mxu1 %v7641_v46  ;;  %v7645_v35 = vpack.c.bf16 %v6237_v51, %v6236_v52  ;;  %v6304_v53 = vld [vmem:[%s11456_s3 + $0x280] sm:$0xff] }
 0x636   :  { %v7681_v0 = vpack.c.bf16 %v6271_v17, %v6270_v54  ;;  %v6075_v39 = vrot.slane %v6059_v22, %v11019_v55  ;;  %v6106_v59 = vcombine.high %v6059_v22, %v6059_v22  ;;  %7644 = vmatprep.subr.bf16.mxu1 %v7643_v2  ;;  %v7647_v15 = vpack.c.bf16 %v6255_v34, %v6254_v60 }
 0x637   :  { %7680 = vmatprep.subr.bf16.mxu0 %v7679_v30  ;;  %v6105_v56 = vrot.slane %v6098_v14, %v11019_v55  ;;  %v7170_v63 = vpop.f32.mrb[54].mxu0  ;;  %v7715_v32 = vpack.c.bf16 %v6337_v16, %v6336_v8  ;;  %v6085_v27 = vcombine.high %v6068_v48, %v6068_v48  ;;  %v7649_v44 = vpack.c.bf16 %v6239_v45, %v6238_v29 }
 0x638   :  { %v6078_v41 = vrot.slane %v6075_v39, 7  ;;  %v6113_v28 = vrot.slane %v6106_v59, %v11019_v55  ;;  %v7171_v42 = vpop.f32.mrb[55].mxu0  ;;  %v6086_v26 = vcombine.high %v6075_v39, %v6075_v39  ;;  %7682 = vmatpush3.bf16.msra.mxu0 %v7681_v0  ;;  %v7683_v57 = vpack.c.bf16 %v6305_v3, %v6304_v53 }
 0x639   :  { %v7172_v11 = vadd.f32 %v7171_v42, %v7170_v63  ;;  %7646 = vmatpush3.bf16.msra.mxu1 %v7645_v35  ;;  %7716 = vmatprep.subr.bf16.mxu0 %v7715_v32  ;;  %v6123_v18 = vcombine.high %v6105_v56, %v6105_v56 }
 0x63a   :  { %v6089_v1 = vrot.slane %v6086_v26, 7  ;;  %v6124_v13 = vcombine.high %v6113_v28, %v6113_v28  ;;  %7648 = vmatprep.subr.bf16.mxu1 %v7647_v15  ;;  %v6079_v47 = vsel %vm5901_vm10, %v6078_v41, %v6068_v48  ;;  %v6116_v14 = vrot.slane %v6113_v28, 7 }
 0x63b   :  { %v5722_v49 = vadd.f32 %v7172_v11, %v11006_v43  ;;  %v6080_v25 = vsel %vm5903_vm11, %v6078_v41, %v6079_v47  ;;  %v6144_v43 = vmax.f32 %v11016_v38, %v6140_v5 }
 0x63c   :  { %v6090_v23 = vsel %vm5901_vm10, %v6089_v1, %v6085_v27  ;;  %v6127_v31 = vrot.slane %v6124_v13, 7  ;;  %v6081_v61 = vsel %vm5905_vm12, %v6078_v41, %v6080_v25  ;;  %v6117_v33 = vsel %vm5901_vm10, %v6116_v14, %v6105_v56  ;;  %v6321_v25 = vld [vmem:[%s11456_s3 + $0x308] sm:$0xff] }
 0x63d   :  { %v5867_v19 = vadd.f32 %v11058_v20, %v5722_v49  ;;  %v6091_v7 = vsel %vm5903_vm11, %v6089_v1, %v6090_v23  ;;  %7650 = vmatpush3.bf16.msra.mxu1 %v7649_v44  ;;  %v6082_v9 = vsel %vm5907_vm13, %v6078_v41, %v6081_v61  ;;  %v6118_v62 = vsel %vm5903_vm11, %v6116_v14, %v6117_v33  ;;  %v6320_v49 = vld [vmem:[%s11456_s3 + $0x300] sm:$0xff]  ;;  %v6338_v33 = vld [vmem:[%s11456_s3 + $0x390] sm:$0xff] }
 0x63e   :  { %v6092_v6 = vsel %vm5905_vm12, %v6089_v1, %v6091_v7  ;;  %v6128_v10 = vsel %vm5901_vm10, %v6127_v31, %v6123_v18  ;;  %7684 = vmatprep.subr.bf16.mxu1 %v7683_v57  ;;  %6084 = vst.msk [vmem:[#allocation6 + $0x8] sm:$0x3] %vm5910_vm14, %v6082_v9  ;;  %v6119_v52 = vsel %vm5905_vm12, %v6116_v14, %v6118_v62  ;;  %v6288_v57 = vld [vmem:[%s11456_s3 + $0x200] sm:$0xff]  ;;  %v6307_v18 = vld [vmem:[%s11456_s3 + $0x298] sm:$0xff]  ;;  %v6290_v9 = vld [vmem:[%s11456_s3 + $0x210] sm:$0xff] }
 0x63f   :  { %v6137_v36 = vmax.f32 %v5862_v12, %v5867_v19  ;;  %v6093_v20 = vsel %vm5907_vm13, %v6089_v1, %v6092_v6  ;;  %v6129_v50 = vsel %vm5903_vm11, %v6127_v31, %v6128_v10  ;;  %v6120_v4 = vsel %vm5907_vm13, %v6116_v14, %v6119_v52  ;;  %v6289_v1 = vld [vmem:[%s11456_s3 + $0x208] sm:$0xff]  ;;  %v6306_v14 = vld [vmem:[%s11456_s3 + $0x290] sm:$0xff]  ;;  %v6339_v19 = vld [vmem:[%s11456_s3 + $0x398] sm:$0xff] }
 0x640   :  { %6094 = vrot.lane.b32.xlu0 %v6093_v20, %s7942_s16  ;;  %v6130_v38 = vsel %vm5905_vm12, %v6127_v31, %v6129_v50  ;;  %6122 = vst.msk [vmem:[#allocation6 + $0xa] sm:$0x3] %vm5910_vm14, %v6120_v4  ;;  %v6184_v58 = vcombine.high %v6144_v43, %v6144_v43  ;;  %v6154_v54 = vrot.slane %v6144_v43, %v11019_v55  ;;  %v6291_v62 = vld [vmem:[%s11456_s3 + $0x218] sm:$0xff]  ;;  %v6308_v10 = vld [vmem:[%s11456_s3 + $0x2a0] sm:$0xff]  ;;  %v6309_v52 = vld [vmem:[%s11456_s3 + $0x2a8] sm:$0xff] }
 0x641   :  { %v6141_v21 = vrot.slane %v6137_v36, 1  ;;  %v6131_v37 = vsel %vm5907_vm13, %v6127_v31, %v6130_v38  ;;  %v7685_v31 = vpack.c.bf16 %v6289_v1, %v6288_v57  ;;  %v7687_v7 = vpack.c.bf16 %v6307_v18, %v6306_v14  ;;  %v6322_v50 = vld [vmem:[%s11456_s3 + $0x310] sm:$0xff]  ;;  %v6323_v4 = vld [vmem:[%s11456_s3 + $0x318] sm:$0xff] }
 0x642   :  { %6132 = vrot.lane.b32.xlu1 %v6131_v37, %s7942_s16  ;;  %v6191_v24 = vrot.slane %v6184_v58, %v11019_v55  ;;  %v6171_v34 = vcombine.high %v6154_v54, %v6154_v54  ;;  %v7717_v6 = vpack.c.bf16 %v6321_v25, %v6320_v49  ;;  %v7719_v20 = vpack.c.bf16 %v6339_v19, %v6338_v33  ;;  %v6341_v37 = vld [vmem:[%s11456_s3 + $0x3a8] sm:$0xff]  ;;  %v6347_v57 = vld [vmem:[%s11456_s3 + $0x3d8] sm:$0xff]  ;;  %v6316_v49 = vld [vmem:[%s11456_s3 + $0x2e0] sm:$0xff] }
 0x643   :  { %v6145_v51 = vmax.f32 %v6137_v36, %v6141_v21  ;;  %v7689_v38 = vpack.c.bf16 %v6291_v62, %v6290_v9  ;;  %v6340_v21 = vld [vmem:[%s11456_s3 + $0x3a0] sm:$0xff]  ;;  %v6317_v25 = vld [vmem:[%s11456_s3 + $0x2e8] sm:$0xff] }
 0x644   :  { %v6209_v16 = vcombine.high %v6191_v24, %v6191_v24  ;;  %v6349_v9 = vld [vmem:[%s11456_s3 + $0x3e8] sm:$0xff]  ;;  %v7707_v62 = vpack.c.bf16 %v6317_v25, %v6316_v49 }
 0x645   :  { %v6161_v17 = vrot.slane %v6145_v51, %v11019_v55  ;;  %v6192_v40 = vcombine.high %v6145_v51, %v6145_v51  ;;  %v7691_v51 = vpack.c.bf16 %v6309_v52, %v6308_v10  ;;  %v6318_v52 = vld [vmem:[%s11456_s3 + $0x2f0] sm:$0xff] }
 0x647   :  { %v6164_v46 = vrot.slane %v6161_v17, 7  ;;  %v6199_v2 = vrot.slane %v6192_v40, %v11019_v55  ;;  %v6172_v60 = vcombine.high %v6161_v17, %v6161_v17  ;;  %v6293_v17 = vld [vmem:[%s11456_s3 + $0x228] sm:$0xff]  ;;  %v7721_v40 = vpack.c.bf16 %v6323_v4, %v6322_v50  ;;  %v6332_v50 = vld [vmem:[%s11456_s3 + $0x360] sm:$0xff] }
 0x648   :  { %v6333_v4 = vld [vmem:[%s11456_s3 + $0x368] sm:$0xff] }
 0x649   :  { %v6175_v48 = vrot.slane %v6172_v60, 7  ;;  %v6210_v22 = vcombine.high %v6199_v2, %v6199_v2  ;;  %v6165_v30 = vsel %vm5901_vm10, %v6164_v46, %v6154_v54  ;;  %v6202_v8 = vrot.slane %v6199_v2, 7  ;;  %v6292_v54 = vld [vmem:[%s11456_s3 + $0x220] sm:$0xff] }
 0x64a   :  { %v6166_v12 = vsel %vm5903_vm11, %v6164_v46, %v6165_v30  ;;  %v7723_v2 = vpack.c.bf16 %v6341_v37, %v6340_v21  ;;  %v6324_v60 = vld [vmem:[%s11456_s3 + $0x320] sm:$0xff]  ;;  %v6343_v30 = vld [vmem:[%s11456_s3 + $0x3b8] sm:$0xff]  ;;  %v6350_v21 = vld [vmem:[%s11456_s3 + $0x3f0] sm:$0xff] }
 0x64b   :  { %v6176_v35 = vsel %vm5901_vm10, %v6175_v48, %v6171_v34  ;;  %v6213_v0 = vrot.slane %v6210_v22, 7  ;;  %v6167_v29 = vsel %vm5905_vm12, %v6164_v46, %v6166_v12  ;;  %v6203_v39 = vsel %vm5901_vm10, %v6202_v8, %v6191_v24  ;;  %v6310_v24 = vld [vmem:[%s11456_s3 + $0x2b0] sm:$0xff]  ;;  %v6325_v34 = vld [vmem:[%s11456_s3 + $0x328] sm:$0xff]  ;;  %v6295_v12 = vld [vmem:[%s11456_s3 + $0x238] sm:$0xff] }
 0x64c   :  { %v6177_v59 = vsel %vm5903_vm11, %v6175_v48, %v6176_v35  ;;  %v6168_v15 = vsel %vm5907_vm13, %v6164_v46, %v6167_v29  ;;  %v6204_v45 = vsel %vm5903_vm11, %v6202_v8, %v6203_v39  ;;  %v6311_v46 = vld [vmem:[%s11456_s3 + $0x2b8] sm:$0xff]  ;;  %v6342_v22 = vld [vmem:[%s11456_s3 + $0x3b0] sm:$0xff]  ;;  %v7725_v35 = vpack.c.bf16 %v6325_v34, %v6324_v60  ;;  %v6313_v29 = vld [vmem:[%s11456_s3 + $0x2c8] sm:$0xff] }
 0x64d   :  { %v6178_v53 = vsel %vm5905_vm12, %v6175_v48, %v6177_v59  ;;  %v6214_v3 = vsel %vm5901_vm10, %v6213_v0, %v6209_v16  ;;  %6170 = vst.msk [vmem:[#allocation6 + $0xc] sm:$0x3] %vm5910_vm14, %v6168_v15  ;;  %v6205_v56 = vsel %vm5905_vm12, %v6202_v8, %v6204_v45  ;;  %v6294_v16 = vld [vmem:[%s11456_s3 + $0x230] sm:$0xff]  ;;  %v7727_v39 = vpack.c.bf16 %v6343_v30, %v6342_v22  ;;  %v6327_v15 = vld [vmem:[%s11456_s3 + $0x338] sm:$0xff] }
 0x64e   :  { %v6179_v63 = vsel %vm5907_vm13, %v6175_v48, %v6178_v53  ;;  %v6215_v32 = vsel %vm5903_vm11, %v6213_v0, %v6214_v3  ;;  %v6206_v27 = vsel %vm5907_vm13, %v6202_v8, %v6205_v56  ;;  %v7693_v48 = vpack.c.bf16 %v6293_v17, %v6292_v54  ;;  %v6326_v59 = vld [vmem:[%s11456_s3 + $0x330] sm:$0xff]  ;;  %v6344_v53 = vld [vmem:[%s11456_s3 + $0x3c0] sm:$0xff]  ;;  %v6345_v3 = vld [vmem:[%s11456_s3 + $0x3c8] sm:$0xff] }
 0x64f   :  { %6180 = vrot.lane.b32.xlu0 %v6179_v63, %s7942_s16  ;;  %v6216_v41 = vsel %vm5905_vm12, %v6213_v0, %v6215_v32  ;;  %6208 = vst.msk [vmem:[#allocation6 + $0xe] sm:$0x3] %vm5910_vm14, %v6206_v27  ;;  %v7695_v8 = vpack.c.bf16 %v6311_v46, %v6310_v24  ;;  %v7697_v45 = vpack.c.bf16 %v6295_v12, %v6294_v16  ;;  %v6296_v63 = vld [vmem:[%s11456_s3 + $0x240] sm:$0xff]  ;;  %v6297_v32 = vld [vmem:[%s11456_s3 + $0x248] sm:$0xff]  ;;  %v6351_v37 = vld [vmem:[%s11456_s3 + $0x3f8] sm:$0xff] }
 0x650   :  { %v6217_v28 = vsel %vm5907_vm13, %v6213_v0, %v6216_v41  ;;  %v6312_v0 = vld [vmem:[%s11456_s3 + $0x2c0] sm:$0xff]  ;;  %v7729_v27 = vpack.c.bf16 %v6327_v15, %v6326_v59  ;;  %v6314_v41 = vld [vmem:[%s11456_s3 + $0x2d0] sm:$0xff]  ;;  %v6303_v54 = vld [vmem:[%s11456_s3 + $0x278] sm:$0xff]  ;;  %v7741_v17 = vpack.c.bf16 %v6333_v4, %v6332_v50 }
 0x651   :  { %6218 = vrot.lane.b32.xlu1 %v6217_v28, %s7942_s16  ;;  %v7699_v56 = vpack.c.bf16 %v6313_v29, %v6312_v0  ;;  %v6315_v28 = vld [vmem:[%s11456_s3 + $0x2d8] sm:$0xff]  ;;  %v6334_v24 = vld [vmem:[%s11456_s3 + $0x370] sm:$0xff] }
 0x652   :  { %v7703_v1 = vpack.c.bf16 %v6315_v28, %v6314_v41  ;;  %v6335_v46 = vld [vmem:[%s11456_s3 + $0x378] sm:$0xff] }
 0x653   :  { %v7745_v22 = vpack.c.bf16 %v6335_v46, %v6334_v24 }
 0x69e   :  { %v5922_v42 = vpop.permute.xlu0 %5921 }
 0x69f   :  { %5925 = vst.msk [vmem:[#allocation6] sm:$0x3] %vm5924_vm15, %v5922_v42  ;;  %v7731_v42 = vpack.c.bf16 %v6345_v3, %v6344_v53 }
 0x6a0   :  { %v5961_v26 = vpop.permute.xlu1 %5960 }
 0x6a1   :  { %5963 = vst.msk [vmem:[#allocation6 + $0x2] sm:$0x3] %vm5924_vm15, %v5961_v26  ;;  %v6328_v26 = vld [vmem:[%s11456_s3 + $0x340] sm:$0xff] }
 0x6a2   :  { %v6009_v5 = vpop.permute.xlu0 %6008 }
 0x6a3   :  { %6011 = vst.msk [vmem:[#allocation6 + $0x4] sm:$0x3] %vm5924_vm15, %v6009_v5  ;;  %v6329_v5 = vld [vmem:[%s11456_s3 + $0x348] sm:$0xff] }
 0x6a4   :  { %v6047_v11 = vpop.permute.xlu1 %6046  ;;  %v7733_v18 = vpack.c.bf16 %v6329_v5, %v6328_v26 }
 0x6a5   :  { %6049 = vst.msk [vmem:[#allocation6 + $0x6] sm:$0x3] %vm5924_vm15, %v6047_v11  ;;  %v7701_v11 = vpack.c.bf16 %v6297_v32, %v6296_v63 }
 0x6ac   :  { %v6222_v44 = vld [vmem:[#allocation6] sm:$0xff] }
 0x6ad   :  { %v6368_v13 = vrot.slane %v6222_v44, %v11019_v55  ;;  %v6361_v47 = vcombine.high %v6222_v44, %v6222_v44  ;;  %v6346_v44 = vld [vmem:[%s11456_s3 + $0x3d0] sm:$0xff] }
 0x6af   :  { %v6376_v23 = vcombine.high %v6368_v13, %v6368_v13  ;;  %v6375_v61 = vrot.slane %v6361_v47, %v11019_v55  ;;  %v6299_v47 = vld [vmem:[%s11456_s3 + $0x258] sm:$0xff] }
 0x6b1   :  { %6467 = vmatprep.mubr.f32.mxu1 %v6376_v23  ;;  %v6377_v43 = vcombine.high %v6375_v61, %v6375_v61  ;;  %v7735_v23 = vpack.c.bf16 %v6347_v57, %v6346_v44 }
 0x6b2   :  { %v6095_v36 = vpop.permute.xlu0 %6094  ;;  %6468 = vmatmul.mubr.f32.vlgmr.msra.gmra.mrb[98].mxu1 %v6368_v13  ;;  %v6298_v13 = vld [vmem:[%s11456_s3 + $0x250] sm:$0xff] }
 0x6b3   :  { %6097 = vst.msk [vmem:[#allocation6 + $0x8] sm:$0x3] %vm5924_vm15, %v6095_v36  ;;  %7686 = vmatpush3.bf16.msra.mxu1 %v7685_v31  ;;  %6537 = vmatprep.mubr.f32.mxu0 %v6377_v43  ;;  %v6330_v31 = vld [vmem:[%s11456_s3 + $0x350] sm:$0xff]  ;;  %v7705_v19 = vpack.c.bf16 %v6299_v47, %v6298_v13  ;;  %v6300_v43 = vld [vmem:[%s11456_s3 + $0x260] sm:$0xff]  ;;  %v6319_v36 = vld [vmem:[%s11456_s3 + $0x2f8] sm:$0xff] }
 0x6b4   :  { %6538 = vmatmul.mubr.f32.vlgmr.msra.gmra.mrb[56].mxu0 %v6375_v61  ;;  %v6133_v58 = vpop.permute.xlu1 %6132  ;;  %7688 = vmatprep.subr.bf16.mxu1 %v7687_v7  ;;  %v6331_v61 = vld [vmem:[%s11456_s3 + $0x358] sm:$0xff]  ;;  %v6348_v7 = vld [vmem:[%s11456_s3 + $0x3e0] sm:$0xff] }
 0x6b5   :  { %7718 = vmatpush3.bf16.msra.mxu0 %v7717_v6  ;;  %6135 = vst.msk [vmem:[#allocation6 + $0xa] sm:$0x3] %vm5924_vm15, %v6133_v58  ;;  %v6301_v6 = vld [vmem:[%s11456_s3 + $0x268] sm:$0xff]  ;;  %v7737_v10 = vpack.c.bf16 %v6331_v61, %v6330_v31  ;;  %v7711_v58 = vpack.c.bf16 %v6319_v36, %v6318_v52 }
 0x6b6   :  { %7720 = vmatprep.subr.bf16.mxu0 %v7719_v20  ;;  %v7739_v20 = vpack.c.bf16 %v6349_v9, %v6348_v7 }
 0x6b7   :  { %7690 = vmatpush3.bf16.msra.mxu1 %v7689_v38  ;;  %v7709_v38 = vpack.c.bf16 %v6301_v6, %v6300_v43 }
 0x6b8   :  { %7692 = vmatprep.subr.bf16.mxu1 %v7691_v51  ;;  %v6302_v51 = vld [vmem:[%s11456_s3 + $0x270] sm:$0xff] }
 0x6b9   :  { %7722 = vmatpush3.bf16.msra.mxu0 %v7721_v40  ;;  %v7743_v40 = vpack.c.bf16 %v6351_v37, %v6350_v21 }
 0x6ba   :  { %7724 = vmatprep.subr.bf16.mxu0 %v7723_v2  ;;  %v7713_v2 = vpack.c.bf16 %v6303_v54, %v6302_v51 }
 0x6bb   :  { %7694 = vmatpush3.bf16.msra.mxu1 %v7693_v48 }
 0x6bc   :  { %7696 = vmatprep.subr.bf16.mxu1 %v7695_v8 }
 0x6bd   :  { %7726 = vmatpush3.bf16.msra.mxu0 %v7725_v35  ;;  %v6932_v35 = vld [vmem:[%s11457_s4] ss:$0 sm:$0xff]  ;;  %s7915_s4 = scalar_lea.vmem %s6693_s7, 32 }
 0x6be   :  { %7728 = vmatprep.subr.bf16.mxu0 %v7727_v39  ;;  %p7916_p0 = scmp.ne.s32.totalorder %s6693_s7, %s7915_s4  ;;  %p7921_p2 = scmp.lt.s32.totalorder %s7915_s4, %s7915_s4 }
 0x6bf   :  { %7698 = vmatpush3.bf16.msra.mxu1 %v7697_v45 }
 0x6c0   :  { %7700 = vmatprep.subr.bf16.mxu1 %v7699_v56  ;;  %p7922_p3 = por %p7921_p2, %p7920_p1 }
 0x6c1   :  { %7730 = vmatpush3.bf16.msra.mxu0 %v7729_v27  ;;  %v6181_v14 = vpop.permute.xlu0 %6180 }
 0x6c2   :  { %6183 = vst.msk [vmem:[#allocation6 + $0xc] sm:$0x3] %vm5924_vm15, %v6181_v14  ;;  %7732 = vmatprep.subr.bf16.mxu0 %v7731_v42  ;;  %p7923_p4 = pnand %p7922_p3, %p7916_p0 }
 0x6c3   :  { %7702 = vmatpush3.bf16.msra.mxu1 %v7701_v11  ;;  %v6219_v33 = vpop.permute.xlu1 %6218 }
 0x6c4   :  { %6221 = vst.msk [vmem:[#allocation6 + $0xe] sm:$0x3] %vm5924_vm15, %v6219_v33  ;;  %7704 = vmatprep.subr.bf16.mxu1 %v7703_v1 }
 0x6c5   :  { %7734 = vmatpush3.bf16.msra.mxu0 %v7733_v18 }
 0x6c6   :  { %7736 = vmatprep.subr.bf16.mxu0 %v7735_v23 }
 0x6c7   :  { %7706 = vmatpush3.bf16.msra.mxu1 %v7705_v19 }
 0x6c8   :  { %7708 = vmatprep.subr.bf16.mxu1 %v7707_v62 }
 0x6c9   :  { %7738 = vmatpush3.bf16.msra.mxu0 %v7737_v10 }
 0x6ca   :  { %7740 = vmatprep.subr.bf16.mxu0 %v7739_v20 }
 0x6cb   :  { %7710 = vmatpush3.bf16.msra.mxu1 %v7709_v38  ;;  %v6223_v60 = vld [vmem:[#allocation6 + $0x8] sm:$0xff] }
 0x6cc   :  { %7712 = vmatprep.subr.bf16.mxu1 %v7711_v58  ;;  %v6385_v34 = vrot.slane %v6223_v60, %v11019_v55  ;;  %v6378_v48 = vcombine.high %v6223_v60, %v6223_v60 }
 0x6cd   :  { %7742 = vmatpush3.bf16.msra.mxu0 %v7741_v17 }
 0x6ce   :  { %7744 = vmatprep.subr.bf16.mxu0 %v7743_v40  ;;  %v6393_v30 = vcombine.high %v6385_v34, %v6385_v34  ;;  %v6392_v8 = vrot.slane %v6378_v48, %v11019_v55 }
 0x6cf   :  { %7714 = vmatpush3.bf16.msra.mxu1 %v7713_v2 }
 0x6d0   :  { %6607 = vmatprep.mubr.f32.mxu1 %v6393_v30  ;;  %v6394_v16 = vcombine.high %v6392_v8, %v6392_v8 }
 0x6d1   :  { %7746 = vmatpush3.bf16.msra.mxu0 %v7745_v22 }
 0x6d2   :  { %6608 = vmatmul.mubr.f32.vlgmr.msra.gmra.mrb[100].mxu1 %v6385_v34  ;;  %6677 = vmatprep.mubr.f32.mxu0 %v6394_v16 }
 0x6d4   :  { %6678 = vmatmul.mubr.f32.vlgmr.msra.gmra.mrb[58].mxu0 %v6392_v8 }
 0x785   :  { %v7225_v12 = vpop.f32.mrb[98].mxu1 }
 0x786   :  { %v7226_v0 = vpop.f32.mrb[99].mxu1 }
 0x787   :  { %v7227_v29 = vadd.f32 %v7226_v0, %v7225_v12  ;;  %v7260_v39 = vpop.f32.mrb[56].mxu0 }
 0x788   :  { %v7261_v59 = vpop.f32.mrb[57].mxu0 }
 0x789   :  { %v6470_v15 = vadd.f32 %v7227_v29, %v6932_v35  ;;  %v7262_v45 = vadd.f32 %v7261_v59, %v7260_v39 }
 0x78b   :  { %v6540_v53 = vadd.f32 %v7262_v45, %v6470_v15 }
 0x7a5   :  { %v7295_v55 = vpop.f32.mrb[100].mxu1 }
 0x7a6   :  { %v7296_v3 = vpop.f32.mrb[101].mxu1 }
 0x7a7   :  { %v7297_v56 = vadd.f32 %v7296_v3, %v7295_v55  ;;  %v7330_v63 = vpop.f32.mrb[58].mxu0 }
 0x7a8   :  { %v7331_v32 = vpop.f32.mrb[59].mxu0 }
 0x7a9   :  { %v6610_v27 = vadd.f32 %v7297_v56, %v6540_v53  ;;  %v7332_v41 = vadd.f32 %v7331_v32, %v7330_v63 }
 0x7ab   :  { %v6680_v28 = vadd.f32 %v7332_v41, %v6610_v27 }
 0x7ad   :  { %v6683_v42 = vmax.f32 %v6680_v28, 0.0 }
 0x7af   :  { %6685 = vst.msk [vmem:[#allocation7] sm:$0x3] %vm6684_vm0, %v6683_v42 }
 0x7b0   :  { %7926 = shalt.err (!%p7923_p4)
}
 0x7b1   :  { %s7927_s10 = scalar_lea.hbm %s11458_s5, 32 }
 0x7b2   :  { %p7928_p5 = scmp.ne.s32.totalorder %s11458_s5, %s7927_s10  ;;  %p7931_p6 = scmp.lt.u32.totalorder %s7927_s10, %s11458_s5 }
 0x7b4   :  { %p7933_p7 = pnand %p7931_p6, %p7928_p5 }
 0x7b6   :  { %7936 = shalt.err (!%p7933_p7)
}
 0x7b7   :  { %6695 = dma.vmem_to_hbm [thread:$0]  %s6693_s7, 32, %s11458_s5, [#allocation8]  }
 0x7b8   :  { %7937 = dma.done.wait [#allocation8], 32  }
 0x7b9   :  { %7938 = vsyncadd [#allocation8], 4294967264 }
 0x7ba   :  { %6699 = vsyncpa [#allocation8], 1 }

</bundles_post_ra>
